<compile_context>
chip_gen: v7x
topology: tpu7x:2x2x1
jax: 0.10.0
libtpu: 0.0.40
codegen_flags: <defaults>
</compile_context>

<pallas_src>
import jax
import jax.numpy as jnp
from jax import lax
from jax.experimental import pallas as pl
from jax.experimental.pallas import tpu as pltpu

_EPS = 1e-5          # torch.nn.InstanceNorm3d default eps
_NEG_SLOPE = 0.2     # LeakyReLU(0.2)


def _instance_norm_rows(a):
    """Instance norm over the last axis of a (C, S) array (biased variance)."""
    mu = jnp.mean(a, axis=-1, keepdims=True)
    var = jnp.mean(jnp.square(a - mu), axis=-1, keepdims=True)
    return (a - mu) * lax.rsqrt(var + _EPS)


def _leaky_relu(a):
    # max(x, 0.2*x) == LeakyReLU(0.2) for all real x
    return jnp.maximum(a, _NEG_SLOPE * a)


def _bottleneck_kernel(x1_ref, x2_ref, w1_ref, w2_ref, w3_ref, o_ref, pad_ref):
    """One batch element per grid step.

    x1_ref : (Cin, S)             flattened NCDHW input slab (S = D*H*W)
    x2_ref : (C2, S)              tensor concatenated at the end
    w1_ref : (C1, Cin)            conv_1 1x1x1 weight
    w2_ref : (27, C1, C1)         conv_2 3x3x3 weight, (tap, c_out, c_in)
    w3_ref : (C3, C1)             conv_3 1x1x1 weight
    o_ref  : (C3 + C2, S)         output slab (lane-dense, == flattened NCDHW)
    pad_ref: (D+2, H+2, W+2, C1)  zero-padded channels-last scratch for conv_2
    """
    C1 = w1_ref.shape[0]
    C3 = w3_ref.shape[0]
    S = x1_ref.shape[1]
    D = pad_ref.shape[0] - 2
    H = pad_ref.shape[1] - 2
    W = pad_ref.shape[2] - 2

    # ---- conv_1 (1x1x1, no bias) + InstanceNorm + LeakyReLU  (C1, S) --------
    x1 = x1_ref[...].astype(jnp.float32)
    a = jnp.dot(w1_ref[...].astype(jnp.float32), x1,
                preferred_element_type=jnp.float32)              # (C1, S)
    a = _leaky_relu(_instance_norm_rows(a))

    # ---- conv_2 (3x3x3, pad=1, no bias): padded scratch + 27 MXU matmuls ----
    pad_ref[...] = jnp.zeros_like(pad_ref)
    # (C1, S) -> (S, C1) -> (D, H, W, C1); slice offsets below never touch lanes.
    interior = a.T.reshape(D, H, W, C1)
    pad_ref[1:D + 1, 1:H + 1, 1:W + 1, :] = interior

    acc = jnp.zeros((C1, S), jnp.float32)                        # lane-dense acc
    for kd in range(3):
        for kh in range(3):
            for kw in range(3):
                k = kd * 9 + kh * 3 + kw
                tap = pad_ref[kd:kd + D, kh:kh + H, kw:kw + W, :]    # (D,H,W,C1)
                tap = tap.reshape(S, C1)                             # layout-preserving
                # (C1out, C1in) x (S, C1in)^T -> (C1out, S)
                acc = acc + lax.dot_general(
                    w2_ref[k].astype(jnp.float32), tap,
                    dimension_numbers=(((1,), (1,)), ((), ())),
                    preferred_element_type=jnp.float32)
    b = _leaky_relu(_instance_norm_rows(acc))                    # (C1, S)

    # ---- conv_3 (1x1x1, no bias) + InstanceNorm -----------------------------
    c = jnp.dot(w3_ref[...].astype(jnp.float32), b,
                preferred_element_type=jnp.float32)              # (C3, S)
    c = _instance_norm_rows(c)

    # ---- concat((conv path, x2), channel dim) + output LeakyReLU ------------
    o_ref[0:C3, :] = _leaky_relu(c).astype(o_ref.dtype)
    o_ref[C3:, :] = _leaky_relu(x2_ref[...].astype(jnp.float32)).astype(o_ref.dtype)


@jax.jit
def bottleneck_block_forward(x1, x2, w1, w2, w3):
    """Forward pass of Bottlenet_block_instance.

    x1: (N, Cin, D, H, W)    x2: (N, C2, D, H, W)
    w1: (C1, Cin, 1, 1, 1)   w2: (C1, C1, 3, 3, 3)   w3: (C3, C1, 1, 1, 1)
    returns (N, C3 + C2, D, H, W)
    """
    N, Cin, D, H, W = x1.shape
    C2 = x2.shape[1]
    C1 = w1.shape[0]
    C3 = w3.shape[0]
    S = D * H * W
    Ctot = C3 + C2

    # Only free reshapes + tiny weight re-layouts in the wrapper.
    x1f = x1.reshape(N, Cin, S)
    x2f = x2.reshape(N, C2, S)
    w1m = w1.reshape(C1, Cin)
    # (c_out, c_in, kd, kh, kw) -> (k, c_out, c_in) with k = kd*9 + kh*3 + kw
    w2t = jnp.transpose(w2.reshape(C1, C1, 27), (2, 0, 1))
    w3m = w3.reshape(C3, C1)

    out = pl.pallas_call(
        _bottleneck_kernel,
        out_shape=jax.ShapeDtypeStruct((N, Ctot, S), x1.dtype),
        grid=(N,),
        in_specs=[
            pl.BlockSpec((None, Cin, S), lambda n: (n, 0, 0)),
            pl.BlockSpec((None, C2, S), lambda n: (n, 0, 0)),
            pl.BlockSpec((C1, Cin), lambda n: (0, 0)),
            pl.BlockSpec((27, C1, C1), lambda n: (0, 0, 0)),
            pl.BlockSpec((C3, C1), lambda n: (0, 0)),
        ],
        out_specs=pl.BlockSpec((None, Ctot, S), lambda n: (n, 0, 0)),
        scratch_shapes=[pltpu.VMEM((D + 2, H + 2, W + 2, C1), jnp.float32)],
        compiler_params=pltpu.CompilerParams(
            dimension_semantics=("parallel",)),
    )(x1f, x2f, w1m, w2t, w3m)

    return out.reshape(N, Ctot, D, H, W)


def _reference(x1, x2, w1, w2, w3):
    """Pure-JAX reference matching the PyTorch module semantics."""
    def inorm(t):
        mu = jnp.mean(t, axis=(2, 3, 4), keepdims=True)
        var = jnp.var(t, axis=(2, 3, 4), keepdims=True)
        return (t - mu) / jnp.sqrt(var + _EPS)

    def lrelu(t):
        return jnp.where(t >= 0, t, _NEG_SLOPE * t)

    dn = ("NCDHW", "OIDHW", "NCDHW")
    a = lax.conv_general_dilated(x1, w1, (1, 1, 1), "VALID", dimension_numbers=dn)
    a = lrelu(inorm(a))
    b = lax.conv_general_dilated(a, w2, (1, 1, 1), ((1, 1), (1, 1), (1, 1)),
                                 dimension_numbers=dn)
    b = lrelu(inorm(b))
    c = lax.conv_general_dilated(b, w3, (1, 1, 1), "VALID", dimension_numbers=dn)
    c = inorm(c)
    return lrelu(jnp.concatenate([c, x2], axis=1))


if __name__ == "__main__":
    key = jax.random.PRNGKey(0)
    k1, k2, kw1, kw2, kw3 = jax.random.split(key, 5)

    # Small shapes consistent with the module: in_ch=4, out_ch=8, expansion=2,
    # x2 carries 4 channels, spatial 8x8x8, batch 2.
    N, Cin, C1, EXP, C2 = 2, 4, 8, 2, 4
    D = H = W = 8
    C3 = C1 * EXP

    x1 = jax.random.normal(k1, (N, Cin, D, H, W), dtype=jnp.float32)
    x2 = jax.random.normal(k2, (N, C2, D, H, W), dtype=jnp.float32)

    # xavier_normal_ init as in apply_init(); conv biases are disabled in torch
    # (conv1x1x1 / conv3x3x3 use bias=False).
    def xavier(k, shape):
        recf = shape[2] * shape[3] * shape[4]
        fan_out, fan_in = shape[0] * recf, shape[1] * recf
        std = (2.0 / (fan_in + fan_out)) ** 0.5
        return std * jax.random.normal(k, shape, dtype=jnp.float32)

    w1 = xavier(kw1, (C1, Cin, 1, 1, 1))
    w2 = xavier(kw2, (C1, C1, 3, 3, 3))
    w3 = xavier(kw3, (C3, C1, 1, 1, 1))

    out = jax.block_until_ready(bottleneck_block_forward(x1, x2, w1, w2, w3))
    ref = jax.block_until_ready(_reference(x1, x2, w1, w2, w3))

    assert out.shape == (N, C3 + C2, D, H, W), out.shape
    err = float(jnp.max(jnp.abs(out - ref)))
    assert err < 1e-3, err
    print("KERNEL_OK")
</pallas_src>

<mosaic_0001>
module attributes {stable_mosaic.version = 11 : i64} {
  func.func @_bottleneck_kernel(%arg0: i32, %arg1: memref<1x4x512xf32, #tpu.memory_space<vmem>>, %arg2: memref<1x4x512xf32, #tpu.memory_space<vmem>>, %arg3: memref<8x4xf32, #tpu.memory_space<vmem>>, %arg4: memref<27x8x8xf32, #tpu.memory_space<vmem>>, %arg5: memref<16x8xf32, #tpu.memory_space<vmem>>, %arg6: memref<1x20x512xf32, #tpu.memory_space<vmem>>, %arg7: memref<10x10x10x8xf32, #tpu.memory_space<vmem>>) attributes {dimension_semantics = [#tpu.dimension_semantics<parallel>], iteration_bounds = array<i64: 2>, scalar_prefetch = 0 : i64, scratch_operands = 1 : i64, tpu.core_type = #tpu.core_type<tc>, window_params = [{transform_indices = @transform_0, window_bounds = array<i64: 1, 4, 512>}, {transform_indices = @transform_1, window_bounds = array<i64: 1, 4, 512>}, {pipeline_mode = #tpu.pipeline_mode<synchronous>, transform_indices = @transform_2, window_bounds = array<i64: 8, 4>}, {pipeline_mode = #tpu.pipeline_mode<synchronous>, transform_indices = @transform_3, window_bounds = array<i64: 27, 8, 8>}, {pipeline_mode = #tpu.pipeline_mode<synchronous>, transform_indices = @transform_4, window_bounds = array<i64: 16, 8>}, {transform_indices = @transform_5, window_bounds = array<i64: 1, 20, 512>}]} {
    %c0 = arith.constant 0 : index
    %c0_0 = arith.constant 0 : index
    %c0_1 = arith.constant 0 : index
    %0 = vector.load %arg1[%c0, %c0_0, %c0_1] : memref<1x4x512xf32, #tpu.memory_space<vmem>>, vector<1x4x512xf32>
    %1 = vector.shape_cast %0 : vector<1x4x512xf32> to vector<4x512xf32>
    %c0_2 = arith.constant 0 : index
    %c0_3 = arith.constant 0 : index
    %2 = vector.load %arg3[%c0_2, %c0_3] : memref<8x4xf32, #tpu.memory_space<vmem>>, vector<8x4xf32>
    %cst = arith.constant dense<0.000000e+00> : vector<8x512xf32>
    %3 = tpu.matmul %2, %1, %cst {dimension_numbers = #tpu.dot_dimension_numbers<[1], [0], [0], [1], [0, 0, 1, 1], [], []>} : vector<8x4xf32>, vector<4x512xf32>, vector<8x512xf32> -> vector<8x512xf32>
    %cst_4 = arith.constant dense<0.000000e+00> : vector<8xf32>
    %4 = vector.multi_reduction <add>, %3, %cst_4 [1] : vector<8x512xf32> to vector<8xf32>
    %5 = vector.shape_cast %4 : vector<8xf32> to vector<8x1xf32>
    %cst_5 = arith.constant 5.120000e+02 : f32
    %6 = vector.broadcast %cst_5 : f32 to vector<8x1xf32>
    %7 = arith.divf %5, %6 : vector<8x1xf32>
    %8 = vector.broadcast %7 : vector<8x1xf32> to vector<8x512xf32>
    %9 = arith.subf %3, %8 : vector<8x512xf32>
    %10 = arith.mulf %9, %9 : vector<8x512xf32>
    %cst_6 = arith.constant dense<0.000000e+00> : vector<8xf32>
    %11 = vector.multi_reduction <add>, %10, %cst_6 [1] : vector<8x512xf32> to vector<8xf32>
    %12 = vector.shape_cast %11 : vector<8xf32> to vector<8x1xf32>
    %cst_7 = arith.constant 5.120000e+02 : f32
    %13 = vector.broadcast %cst_7 : f32 to vector<8x1xf32>
    %14 = arith.divf %12, %13 : vector<8x1xf32>
    %15 = vector.broadcast %7 : vector<8x1xf32> to vector<8x512xf32>
    %16 = arith.subf %3, %15 : vector<8x512xf32>
    %cst_8 = arith.constant 9.99999974E-6 : f32
    %17 = vector.broadcast %cst_8 : f32 to vector<8x1xf32>
    %18 = arith.addf %14, %17 : vector<8x1xf32>
    %19 = math.rsqrt %18 : vector<8x1xf32>
    %20 = vector.broadcast %19 : vector<8x1xf32> to vector<8x512xf32>
    %21 = arith.mulf %16, %20 : vector<8x512xf32>
    %cst_9 = arith.constant 2.000000e-01 : f32
    %22 = vector.broadcast %cst_9 : f32 to vector<8x512xf32>
    %23 = arith.mulf %22, %21 : vector<8x512xf32>
    %24 = arith.maximumf %21, %23 : vector<8x512xf32>
    %cst_10 = arith.constant 0.000000e+00 : f32
    %25 = vector.broadcast %cst_10 : f32 to vector<10x10x10x8xf32>
    %c0_11 = arith.constant 0 : index
    %c0_12 = arith.constant 0 : index
    %c0_13 = arith.constant 0 : index
    %c0_14 = arith.constant 0 : index
    %26 = vector.load %arg7[%c0_11, %c0_12, %c0_13, %c0_14] : memref<10x10x10x8xf32, #tpu.memory_space<vmem>>, vector<10x10x10x8xf32>
    tpu.vector_store %arg7[%c0_11, %c0_12, %c0_13, %c0_14], %25 {strides = array<i32>} : memref<10x10x10x8xf32, #tpu.memory_space<vmem>>, vector<10x10x10x8xf32>,
    %27 = tpu.transpose %24, [1, 0] : vector<8x512xf32> -> vector<512x8xf32>
    %28 = vector.shape_cast %27 : vector<512x8xf32> to vector<8x8x8x8xf32>
    %c1 = arith.constant 1 : index
    %c1_15 = arith.constant 1 : index
    %c1_16 = arith.constant 1 : index
    %c0_17 = arith.constant 0 : index
    %29 = vector.load %arg7[%c1, %c1_15, %c1_16, %c0_17] : memref<10x10x10x8xf32, #tpu.memory_space<vmem>>, vector<8x8x8x8xf32>
    tpu.vector_store %arg7[%c1, %c1_15, %c1_16, %c0_17], %28 {strides = array<i32>} : memref<10x10x10x8xf32, #tpu.memory_space<vmem>>, vector<8x8x8x8xf32>,
    %cst_18 = arith.constant 0.000000e+00 : f32
    %30 = vector.broadcast %cst_18 : f32 to vector<8x512xf32>
    %c0_19 = arith.constant 0 : index
    %c0_20 = arith.constant 0 : index
    %c0_21 = arith.constant 0 : index
    %c0_22 = arith.constant 0 : index
    %31 = vector.load %arg7[%c0_19, %c0_20, %c0_21, %c0_22] : memref<10x10x10x8xf32, #tpu.memory_space<vmem>>, vector<8x8x8x8xf32>
    %32 = vector.shape_cast %31 : vector<8x8x8x8xf32> to vector<512x8xf32>
    %c0_23 = arith.constant 0 : index
    %c0_24 = arith.constant 0 : index
    %c0_25 = arith.constant 0 : index
    %33 = vector.load %arg4[%c0_23, %c0_24, %c0_25] : memref<27x8x8xf32, #tpu.memory_space<vmem>>, vector<1x8x8xf32>
    %34 = vector.shape_cast %33 : vector<1x8x8xf32> to vector<8x8xf32>
    %cst_26 = arith.constant dense<0.000000e+00> : vector<8x512xf32>
    %35 = tpu.matmul %34, %32, %cst_26 {dimension_numbers = #tpu.dot_dimension_numbers<[1], [1], [0], [0], [0, 0, 1, 0], [], []>} : vector<8x8xf32>, vector<512x8xf32>, vector<8x512xf32> -> vector<8x512xf32>
    %36 = arith.addf %30, %35 : vector<8x512xf32>
    %c0_27 = arith.constant 0 : index
    %c0_28 = arith.constant 0 : index
    %c1_29 = arith.constant 1 : index
    %c0_30 = arith.constant 0 : index
    %37 = vector.load %arg7[%c0_27, %c0_28, %c1_29, %c0_30] : memref<10x10x10x8xf32, #tpu.memory_space<vmem>>, vector<8x8x8x8xf32>
    %38 = vector.shape_cast %37 : vector<8x8x8x8xf32> to vector<512x8xf32>
    %c1_31 = arith.constant 1 : index
    %c0_32 = arith.constant 0 : index
    %c0_33 = arith.constant 0 : index
    %39 = vector.load %arg4[%c1_31, %c0_32, %c0_33] : memref<27x8x8xf32, #tpu.memory_space<vmem>>, vector<1x8x8xf32>
    %40 = vector.shape_cast %39 : vector<1x8x8xf32> to vector<8x8xf32>
    %cst_34 = arith.constant dense<0.000000e+00> : vector<8x512xf32>
    %41 = tpu.matmul %40, %38, %cst_34 {dimension_numbers = #tpu.dot_dimension_numbers<[1], [1], [0], [0], [0, 0, 1, 0], [], []>} : vector<8x8xf32>, vector<512x8xf32>, vector<8x512xf32> -> vector<8x512xf32>
    %42 = arith.addf %36, %41 : vector<8x512xf32>
    %c0_35 = arith.constant 0 : index
    %c0_36 = arith.constant 0 : index
    %c2 = arith.constant 2 : index
    %c0_37 = arith.constant 0 : index
    %43 = vector.load %arg7[%c0_35, %c0_36, %c2, %c0_37] : memref<10x10x10x8xf32, #tpu.memory_space<vmem>>, vector<8x8x8x8xf32>
    %44 = vector.shape_cast %43 : vector<8x8x8x8xf32> to vector<512x8xf32>
    %c2_38 = arith.constant 2 : index
    %c0_39 = arith.constant 0 : index
    %c0_40 = arith.constant 0 : index
    %45 = vector.load %arg4[%c2_38, %c0_39, %c0_40] : memref<27x8x8xf32, #tpu.memory_space<vmem>>, vector<1x8x8xf32>
    %46 = vector.shape_cast %45 : vector<1x8x8xf32> to vector<8x8xf32>
    %cst_41 = arith.constant dense<0.000000e+00> : vector<8x512xf32>
    %47 = tpu.matmul %46, %44, %cst_41 {dimension_numbers = #tpu.dot_dimension_numbers<[1], [1], [0], [0], [0, 0, 1, 0], [], []>} : vector<8x8xf32>, vector<512x8xf32>, vector<8x512xf32> -> vector<8x512xf32>
    %48 = arith.addf %42, %47 : vector<8x512xf32>
    %c0_42 = arith.constant 0 : index
    %c1_43 = arith.constant 1 : index
    %c0_44 = arith.constant 0 : index
    %c0_45 = arith.constant 0 : index
    %49 = vector.load %arg7[%c0_42, %c1_43, %c0_44, %c0_45] : memref<10x10x10x8xf32, #tpu.memory_space<vmem>>, vector<8x8x8x8xf32>
    %50 = vector.shape_cast %49 : vector<8x8x8x8xf32> to vector<512x8xf32>
    %c3 = arith.constant 3 : index
    %c0_46 = arith.constant 0 : index
    %c0_47 = arith.constant 0 : index
    %51 = vector.load %arg4[%c3, %c0_46, %c0_47] : memref<27x8x8xf32, #tpu.memory_space<vmem>>, vector<1x8x8xf32>
    %52 = vector.shape_cast %51 : vector<1x8x8xf32> to vector<8x8xf32>
    %cst_48 = arith.constant dense<0.000000e+00> : vector<8x512xf32>
    %53 = tpu.matmul %52, %50, %cst_48 {dimension_numbers = #tpu.dot_dimension_numbers<[1], [1], [0], [0], [0, 0, 1, 0], [], []>} : vector<8x8xf32>, vector<512x8xf32>, vector<8x512xf32> -> vector<8x512xf32>
    %54 = arith.addf %48, %53 : vector<8x512xf32>
    %c0_49 = arith.constant 0 : index
    %c1_50 = arith.constant 1 : index
    %c1_51 = arith.constant 1 : index
    %c0_52 = arith.constant 0 : index
    %55 = vector.load %arg7[%c0_49, %c1_50, %c1_51, %c0_52] : memref<10x10x10x8xf32, #tpu.memory_space<vmem>>, vector<8x8x8x8xf32>
    %56 = vector.shape_cast %55 : vector<8x8x8x8xf32> to vector<512x8xf32>
    %c4 = arith.constant 4 : index
    %c0_53 = arith.constant 0 : index
    %c0_54 = arith.constant 0 : index
    %57 = vector.load %arg4[%c4, %c0_53, %c0_54] : memref<27x8x8xf32, #tpu.memory_space<vmem>>, vector<1x8x8xf32>
    %58 = vector.shape_cast %57 : vector<1x8x8xf32> to vector<8x8xf32>
    %cst_55 = arith.constant dense<0.000000e+00> : vector<8x512xf32>
    %59 = tpu.matmul %58, %56, %cst_55 {dimension_numbers = #tpu.dot_dimension_numbers<[1], [1], [0], [0], [0, 0, 1, 0], [], []>} : vector<8x8xf32>, vector<512x8xf32>, vector<8x512xf32> -> vector<8x512xf32>
    %60 = arith.addf %54, %59 : vector<8x512xf32>
    %c0_56 = arith.constant 0 : index
    %c1_57 = arith.constant 1 : index
    %c2_58 = arith.constant 2 : index
    %c0_59 = arith.constant 0 : index
    %61 = vector.load %arg7[%c0_56, %c1_57, %c2_58, %c0_59] : memref<10x10x10x8xf32, #tpu.memory_space<vmem>>, vector<8x8x8x8xf32>
    %62 = vector.shape_cast %61 : vector<8x8x8x8xf32> to vector<512x8xf32>
    %c5 = arith.constant 5 : index
    %c0_60 = arith.constant 0 : index
    %c0_61 = arith.constant 0 : index
    %63 = vector.load %arg4[%c5, %c0_60, %c0_61] : memref<27x8x8xf32, #tpu.memory_space<vmem>>, vector<1x8x8xf32>
    %64 = vector.shape_cast %63 : vector<1x8x8xf32> to vector<8x8xf32>
    %cst_62 = arith.constant dense<0.000000e+00> : vector<8x512xf32>
    %65 = tpu.matmul %64, %62, %cst_62 {dimension_numbers = #tpu.dot_dimension_numbers<[1], [1], [0], [0], [0, 0, 1, 0], [], []>} : vector<8x8xf32>, vector<512x8xf32>, vector<8x512xf32> -> vector<8x512xf32>
    %66 = arith.addf %60, %65 : vector<8x512xf32>
    %c0_63 = arith.constant 0 : index
    %c2_64 = arith.constant 2 : index
    %c0_65 = arith.constant 0 : index
    %c0_66 = arith.constant 0 : index
    %67 = vector.load %arg7[%c0_63, %c2_64, %c0_65, %c0_66] : memref<10x10x10x8xf32, #tpu.memory_space<vmem>>, vector<8x8x8x8xf32>
    %68 = vector.shape_cast %67 : vector<8x8x8x8xf32> to vector<512x8xf32>
    %c6 = arith.constant 6 : index
    %c0_67 = arith.constant 0 : index
    %c0_68 = arith.constant 0 : index
    %69 = vector.load %arg4[%c6, %c0_67, %c0_68] : memref<27x8x8xf32, #tpu.memory_space<vmem>>, vector<1x8x8xf32>
    %70 = vector.shape_cast %69 : vector<1x8x8xf32> to vector<8x8xf32>
    %cst_69 = arith.constant dense<0.000000e+00> : vector<8x512xf32>
    %71 = tpu.matmul %70, %68, %cst_69 {dimension_numbers = #tpu.dot_dimension_numbers<[1], [1], [0], [0], [0, 0, 1, 0], [], []>} : vector<8x8xf32>, vector<512x8xf32>, vector<8x512xf32> -> vector<8x512xf32>
    %72 = arith.addf %66, %71 : vector<8x512xf32>
    %c0_70 = arith.constant 0 : index
    %c2_71 = arith.constant 2 : index
    %c1_72 = arith.constant 1 : index
    %c0_73 = arith.constant 0 : index
    %73 = vector.load %arg7[%c0_70, %c2_71, %c1_72, %c0_73] : memref<10x10x10x8xf32, #tpu.memory_space<vmem>>, vector<8x8x8x8xf32>
    %74 = vector.shape_cast %73 : vector<8x8x8x8xf32> to vector<512x8xf32>
    %c7 = arith.constant 7 : index
    %c0_74 = arith.constant 0 : index
    %c0_75 = arith.constant 0 : index
    %75 = vector.load %arg4[%c7, %c0_74, %c0_75] : memref<27x8x8xf32, #tpu.memory_space<vmem>>, vector<1x8x8xf32>
    %76 = vector.shape_cast %75 : vector<1x8x8xf32> to vector<8x8xf32>
    %cst_76 = arith.constant dense<0.000000e+00> : vector<8x512xf32>
    %77 = tpu.matmul %76, %74, %cst_76 {dimension_numbers = #tpu.dot_dimension_numbers<[1], [1], [0], [0], [0, 0, 1, 0], [], []>} : vector<8x8xf32>, vector<512x8xf32>, vector<8x512xf32> -> vector<8x512xf32>
    %78 = arith.addf %72, %77 : vector<8x512xf32>
    %c0_77 = arith.constant 0 : index
    %c2_78 = arith.constant 2 : index
    %c2_79 = arith.constant 2 : index
    %c0_80 = arith.constant 0 : index
    %79 = vector.load %arg7[%c0_77, %c2_78, %c2_79, %c0_80] : memref<10x10x10x8xf32, #tpu.memory_space<vmem>>, vector<8x8x8x8xf32>
    %80 = vector.shape_cast %79 : vector<8x8x8x8xf32> to vector<512x8xf32>
    %c8 = arith.constant 8 : index
    %c0_81 = arith.constant 0 : index
    %c0_82 = arith.constant 0 : index
    %81 = vector.load %arg4[%c8, %c0_81, %c0_82] : memref<27x8x8xf32, #tpu.memory_space<vmem>>, vector<1x8x8xf32>
    %82 = vector.shape_cast %81 : vector<1x8x8xf32> to vector<8x8xf32>
    %cst_83 = arith.constant dense<0.000000e+00> : vector<8x512xf32>
    %83 = tpu.matmul %82, %80, %cst_83 {dimension_numbers = #tpu.dot_dimension_numbers<[1], [1], [0], [0], [0, 0, 1, 0], [], []>} : vector<8x8xf32>, vector<512x8xf32>, vector<8x512xf32> -> vector<8x512xf32>
    %84 = arith.addf %78, %83 : vector<8x512xf32>
    %c1_84 = arith.constant 1 : index
    %c0_85 = arith.constant 0 : index
    %c0_86 = arith.constant 0 : index
    %c0_87 = arith.constant 0 : index
    %85 = vector.load %arg7[%c1_84, %c0_85, %c0_86, %c0_87] : memref<10x10x10x8xf32, #tpu.memory_space<vmem>>, vector<8x8x8x8xf32>
    %86 = vector.shape_cast %85 : vector<8x8x8x8xf32> to vector<512x8xf32>
    %c9 = arith.constant 9 : index
    %c0_88 = arith.constant 0 : index
    %c0_89 = arith.constant 0 : index
    %87 = vector.load %arg4[%c9, %c0_88, %c0_89] : memref<27x8x8xf32, #tpu.memory_space<vmem>>, vector<1x8x8xf32>
    %88 = vector.shape_cast %87 : vector<1x8x8xf32> to vector<8x8xf32>
    %cst_90 = arith.constant dense<0.000000e+00> : vector<8x512xf32>
    %89 = tpu.matmul %88, %86, %cst_90 {dimension_numbers = #tpu.dot_dimension_numbers<[1], [1], [0], [0], [0, 0, 1, 0], [], []>} : vector<8x8xf32>, vector<512x8xf32>, vector<8x512xf32> -> vector<8x512xf32>
    %90 = arith.addf %84, %89 : vector<8x512xf32>
    %c1_91 = arith.constant 1 : index
    %c0_92 = arith.constant 0 : index
    %c1_93 = arith.constant 1 : index
    %c0_94 = arith.constant 0 : index
    %91 = vector.load %arg7[%c1_91, %c0_92, %c1_93, %c0_94] : memref<10x10x10x8xf32, #tpu.memory_space<vmem>>, vector<8x8x8x8xf32>
    %92 = vector.shape_cast %91 : vector<8x8x8x8xf32> to vector<512x8xf32>
    %c10 = arith.constant 10 : index
    %c0_95 = arith.constant 0 : index
    %c0_96 = arith.constant 0 : index
    %93 = vector.load %arg4[%c10, %c0_95, %c0_96] : memref<27x8x8xf32, #tpu.memory_space<vmem>>, vector<1x8x8xf32>
    %94 = vector.shape_cast %93 : vector<1x8x8xf32> to vector<8x8xf32>
    %cst_97 = arith.constant dense<0.000000e+00> : vector<8x512xf32>
    %95 = tpu.matmul %94, %92, %cst_97 {dimension_numbers = #tpu.dot_dimension_numbers<[1], [1], [0], [0], [0, 0, 1, 0], [], []>} : vector<8x8xf32>, vector<512x8xf32>, vector<8x512xf32> -> vector<8x512xf32>
    %96 = arith.addf %90, %95 : vector<8x512xf32>
    %c1_98 = arith.constant 1 : index
    %c0_99 = arith.constant 0 : index
    %c2_100 = arith.constant 2 : index
    %c0_101 = arith.constant 0 : index
    %97 = vector.load %arg7[%c1_98, %c0_99, %c2_100, %c0_101] : memref<10x10x10x8xf32, #tpu.memory_space<vmem>>, vector<8x8x8x8xf32>
    %98 = vector.shape_cast %97 : vector<8x8x8x8xf32> to vector<512x8xf32>
    %c11 = arith.constant 11 : index
    %c0_102 = arith.constant 0 : index
    %c0_103 = arith.constant 0 : index
    %99 = vector.load %arg4[%c11, %c0_102, %c0_103] : memref<27x8x8xf32, #tpu.memory_space<vmem>>, vector<1x8x8xf32>
    %100 = vector.shape_cast %99 : vector<1x8x8xf32> to vector<8x8xf32>
    %cst_104 = arith.constant dense<0.000000e+00> : vector<8x512xf32>
    %101 = tpu.matmul %100, %98, %cst_104 {dimension_numbers = #tpu.dot_dimension_numbers<[1], [1], [0], [0], [0, 0, 1, 0], [], []>} : vector<8x8xf32>, vector<512x8xf32>, vector<8x512xf32> -> vector<8x512xf32>
    %102 = arith.addf %96, %101 : vector<8x512xf32>
    %c1_105 = arith.constant 1 : index
    %c1_106 = arith.constant 1 : index
    %c0_107 = arith.constant 0 : index
    %c0_108 = arith.constant 0 : index
    %103 = vector.load %arg7[%c1_105, %c1_106, %c0_107, %c0_108] : memref<10x10x10x8xf32, #tpu.memory_space<vmem>>, vector<8x8x8x8xf32>
    %104 = vector.shape_cast %103 : vector<8x8x8x8xf32> to vector<512x8xf32>
    %c12 = arith.constant 12 : index
    %c0_109 = arith.constant 0 : index
    %c0_110 = arith.constant 0 : index
    %105 = vector.load %arg4[%c12, %c0_109, %c0_110] : memref<27x8x8xf32, #tpu.memory_space<vmem>>, vector<1x8x8xf32>
    %106 = vector.shape_cast %105 : vector<1x8x8xf32> to vector<8x8xf32>
    %cst_111 = arith.constant dense<0.000000e+00> : vector<8x512xf32>
    %107 = tpu.matmul %106, %104, %cst_111 {dimension_numbers = #tpu.dot_dimension_numbers<[1], [1], [0], [0], [0, 0, 1, 0], [], []>} : vector<8x8xf32>, vector<512x8xf32>, vector<8x512xf32> -> vector<8x512xf32>
    %108 = arith.addf %102, %107 : vector<8x512xf32>
    %c1_112 = arith.constant 1 : index
    %c1_113 = arith.constant 1 : index
    %c1_114 = arith.constant 1 : index
    %c0_115 = arith.constant 0 : index
    %109 = vector.load %arg7[%c1_112, %c1_113, %c1_114, %c0_115] : memref<10x10x10x8xf32, #tpu.memory_space<vmem>>, vector<8x8x8x8xf32>
    %110 = vector.shape_cast %109 : vector<8x8x8x8xf32> to vector<512x8xf32>
    %c13 = arith.constant 13 : index
    %c0_116 = arith.constant 0 : index
    %c0_117 = arith.constant 0 : index
    %111 = vector.load %arg4[%c13, %c0_116, %c0_117] : memref<27x8x8xf32, #tpu.memory_space<vmem>>, vector<1x8x8xf32>
    %112 = vector.shape_cast %111 : vector<1x8x8xf32> to vector<8x8xf32>
    %cst_118 = arith.constant dense<0.000000e+00> : vector<8x512xf32>
    %113 = tpu.matmul %112, %110, %cst_118 {dimension_numbers = #tpu.dot_dimension_numbers<[1], [1], [0], [0], [0, 0, 1, 0], [], []>} : vector<8x8xf32>, vector<512x8xf32>, vector<8x512xf32> -> vector<8x512xf32>
    %114 = arith.addf %108, %113 : vector<8x512xf32>
    %c1_119 = arith.constant 1 : index
    %c1_120 = arith.constant 1 : index
    %c2_121 = arith.constant 2 : index
    %c0_122 = arith.constant 0 : index
    %115 = vector.load %arg7[%c1_119, %c1_120, %c2_121, %c0_122] : memref<10x10x10x8xf32, #tpu.memory_space<vmem>>, vector<8x8x8x8xf32>
    %116 = vector.shape_cast %115 : vector<8x8x8x8xf32> to vector<512x8xf32>
    %c14 = arith.constant 14 : index
    %c0_123 = arith.constant 0 : index
    %c0_124 = arith.constant 0 : index
    %117 = vector.load %arg4[%c14, %c0_123, %c0_124] : memref<27x8x8xf32, #tpu.memory_space<vmem>>, vector<1x8x8xf32>
    %118 = vector.shape_cast %117 : vector<1x8x8xf32> to vector<8x8xf32>
    %cst_125 = arith.constant dense<0.000000e+00> : vector<8x512xf32>
    %119 = tpu.matmul %118, %116, %cst_125 {dimension_numbers = #tpu.dot_dimension_numbers<[1], [1], [0], [0], [0, 0, 1, 0], [], []>} : vector<8x8xf32>, vector<512x8xf32>, vector<8x512xf32> -> vector<8x512xf32>
    %120 = arith.addf %114, %119 : vector<8x512xf32>
    %c1_126 = arith.constant 1 : index
    %c2_127 = arith.constant 2 : index
    %c0_128 = arith.constant 0 : index
    %c0_129 = arith.constant 0 : index
    %121 = vector.load %arg7[%c1_126, %c2_127, %c0_128, %c0_129] : memref<10x10x10x8xf32, #tpu.memory_space<vmem>>, vector<8x8x8x8xf32>
    %122 = vector.shape_cast %121 : vector<8x8x8x8xf32> to vector<512x8xf32>
    %c15 = arith.constant 15 : index
    %c0_130 = arith.constant 0 : index
    %c0_131 = arith.constant 0 : index
    %123 = vector.load %arg4[%c15, %c0_130, %c0_131] : memref<27x8x8xf32, #tpu.memory_space<vmem>>, vector<1x8x8xf32>
    %124 = vector.shape_cast %123 : vector<1x8x8xf32> to vector<8x8xf32>
    %cst_132 = arith.constant dense<0.000000e+00> : vector<8x512xf32>
    %125 = tpu.matmul %124, %122, %cst_132 {dimension_numbers = #tpu.dot_dimension_numbers<[1], [1], [0], [0], [0, 0, 1, 0], [], []>} : vector<8x8xf32>, vector<512x8xf32>, vector<8x512xf32> -> vector<8x512xf32>
    %126 = arith.addf %120, %125 : vector<8x512xf32>
    %c1_133 = arith.constant 1 : index
    %c2_134 = arith.constant 2 : index
    %c1_135 = arith.constant 1 : index
    %c0_136 = arith.constant 0 : index
    %127 = vector.load %arg7[%c1_133, %c2_134, %c1_135, %c0_136] : memref<10x10x10x8xf32, #tpu.memory_space<vmem>>, vector<8x8x8x8xf32>
    %128 = vector.shape_cast %127 : vector<8x8x8x8xf32> to vector<512x8xf32>
    %c16 = arith.constant 16 : index
    %c0_137 = arith.constant 0 : index
    %c0_138 = arith.constant 0 : index
    %129 = vector.load %arg4[%c16, %c0_137, %c0_138] : memref<27x8x8xf32, #tpu.memory_space<vmem>>, vector<1x8x8xf32>
    %130 = vector.shape_cast %129 : vector<1x8x8xf32> to vector<8x8xf32>
    %cst_139 = arith.constant dense<0.000000e+00> : vector<8x512xf32>
    %131 = tpu.matmul %130, %128, %cst_139 {dimension_numbers = #tpu.dot_dimension_numbers<[1], [1], [0], [0], [0, 0, 1, 0], [], []>} : vector<8x8xf32>, vector<512x8xf32>, vector<8x512xf32> -> vector<8x512xf32>
    %132 = arith.addf %126, %131 : vector<8x512xf32>
    %c1_140 = arith.constant 1 : index
    %c2_141 = arith.constant 2 : index
    %c2_142 = arith.constant 2 : index
    %c0_143 = arith.constant 0 : index
    %133 = vector.load %arg7[%c1_140, %c2_141, %c2_142, %c0_143] : memref<10x10x10x8xf32, #tpu.memory_space<vmem>>, vector<8x8x8x8xf32>
    %134 = vector.shape_cast %133 : vector<8x8x8x8xf32> to vector<512x8xf32>
    %c17 = arith.constant 17 : index
    %c0_144 = arith.constant 0 : index
    %c0_145 = arith.constant 0 : index
    %135 = vector.load %arg4[%c17, %c0_144, %c0_145] : memref<27x8x8xf32, #tpu.memory_space<vmem>>, vector<1x8x8xf32>
    %136 = vector.shape_cast %135 : vector<1x8x8xf32> to vector<8x8xf32>
    %cst_146 = arith.constant dense<0.000000e+00> : vector<8x512xf32>
    %137 = tpu.matmul %136, %134, %cst_146 {dimension_numbers = #tpu.dot_dimension_numbers<[1], [1], [0], [0], [0, 0, 1, 0], [], []>} : vector<8x8xf32>, vector<512x8xf32>, vector<8x512xf32> -> vector<8x512xf32>
    %138 = arith.addf %132, %137 : vector<8x512xf32>
    %c2_147 = arith.constant 2 : index
    %c0_148 = arith.constant 0 : index
    %c0_149 = arith.constant 0 : index
    %c0_150 = arith.constant 0 : index
    %139 = vector.load %arg7[%c2_147, %c0_148, %c0_149, %c0_150] : memref<10x10x10x8xf32, #tpu.memory_space<vmem>>, vector<8x8x8x8xf32>
    %140 = vector.shape_cast %139 : vector<8x8x8x8xf32> to vector<512x8xf32>
    %c18 = arith.constant 18 : index
    %c0_151 = arith.constant 0 : index
    %c0_152 = arith.constant 0 : index
    %141 = vector.load %arg4[%c18, %c0_151, %c0_152] : memref<27x8x8xf32, #tpu.memory_space<vmem>>, vector<1x8x8xf32>
    %142 = vector.shape_cast %141 : vector<1x8x8xf32> to vector<8x8xf32>
    %cst_153 = arith.constant dense<0.000000e+00> : vector<8x512xf32>
    %143 = tpu.matmul %142, %140, %cst_153 {dimension_numbers = #tpu.dot_dimension_numbers<[1], [1], [0], [0], [0, 0, 1, 0], [], []>} : vector<8x8xf32>, vector<512x8xf32>, vector<8x512xf32> -> vector<8x512xf32>
    %144 = arith.addf %138, %143 : vector<8x512xf32>
    %c2_154 = arith.constant 2 : index
    %c0_155 = arith.constant 0 : index
    %c1_156 = arith.constant 1 : index
    %c0_157 = arith.constant 0 : index
    %145 = vector.load %arg7[%c2_154, %c0_155, %c1_156, %c0_157] : memref<10x10x10x8xf32, #tpu.memory_space<vmem>>, vector<8x8x8x8xf32>
    %146 = vector.shape_cast %145 : vector<8x8x8x8xf32> to vector<512x8xf32>
    %c19 = arith.constant 19 : index
    %c0_158 = arith.constant 0 : index
    %c0_159 = arith.constant 0 : index
    %147 = vector.load %arg4[%c19, %c0_158, %c0_159] : memref<27x8x8xf32, #tpu.memory_space<vmem>>, vector<1x8x8xf32>
    %148 = vector.shape_cast %147 : vector<1x8x8xf32> to vector<8x8xf32>
    %cst_160 = arith.constant dense<0.000000e+00> : vector<8x512xf32>
    %149 = tpu.matmul %148, %146, %cst_160 {dimension_numbers = #tpu.dot_dimension_numbers<[1], [1], [0], [0], [0, 0, 1, 0], [], []>} : vector<8x8xf32>, vector<512x8xf32>, vector<8x512xf32> -> vector<8x512xf32>
    %150 = arith.addf %144, %149 : vector<8x512xf32>
    %c2_161 = arith.constant 2 : index
    %c0_162 = arith.constant 0 : index
    %c2_163 = arith.constant 2 : index
    %c0_164 = arith.constant 0 : index
    %151 = vector.load %arg7[%c2_161, %c0_162, %c2_163, %c0_164] : memref<10x10x10x8xf32, #tpu.memory_space<vmem>>, vector<8x8x8x8xf32>
    %152 = vector.shape_cast %151 : vector<8x8x8x8xf32> to vector<512x8xf32>
    %c20 = arith.constant 20 : index
    %c0_165 = arith.constant 0 : index
    %c0_166 = arith.constant 0 : index
    %153 = vector.load %arg4[%c20, %c0_165, %c0_166] : memref<27x8x8xf32, #tpu.memory_space<vmem>>, vector<1x8x8xf32>
    %154 = vector.shape_cast %153 : vector<1x8x8xf32> to vector<8x8xf32>
    %cst_167 = arith.constant dense<0.000000e+00> : vector<8x512xf32>
    %155 = tpu.matmul %154, %152, %cst_167 {dimension_numbers = #tpu.dot_dimension_numbers<[1], [1], [0], [0], [0, 0, 1, 0], [], []>} : vector<8x8xf32>, vector<512x8xf32>, vector<8x512xf32> -> vector<8x512xf32>
    %156 = arith.addf %150, %155 : vector<8x512xf32>
    %c2_168 = arith.constant 2 : index
    %c1_169 = arith.constant 1 : index
    %c0_170 = arith.constant 0 : index
    %c0_171 = arith.constant 0 : index
    %157 = vector.load %arg7[%c2_168, %c1_169, %c0_170, %c0_171] : memref<10x10x10x8xf32, #tpu.memory_space<vmem>>, vector<8x8x8x8xf32>
    %158 = vector.shape_cast %157 : vector<8x8x8x8xf32> to vector<512x8xf32>
    %c21 = arith.constant 21 : index
    %c0_172 = arith.constant 0 : index
    %c0_173 = arith.constant 0 : index
    %159 = vector.load %arg4[%c21, %c0_172, %c0_173] : memref<27x8x8xf32, #tpu.memory_space<vmem>>, vector<1x8x8xf32>
    %160 = vector.shape_cast %159 : vector<1x8x8xf32> to vector<8x8xf32>
    %cst_174 = arith.constant dense<0.000000e+00> : vector<8x512xf32>
    %161 = tpu.matmul %160, %158, %cst_174 {dimension_numbers = #tpu.dot_dimension_numbers<[1], [1], [0], [0], [0, 0, 1, 0], [], []>} : vector<8x8xf32>, vector<512x8xf32>, vector<8x512xf32> -> vector<8x512xf32>
    %162 = arith.addf %156, %161 : vector<8x512xf32>
    %c2_175 = arith.constant 2 : index
    %c1_176 = arith.constant 1 : index
    %c1_177 = arith.constant 1 : index
    %c0_178 = arith.constant 0 : index
    %163 = vector.load %arg7[%c2_175, %c1_176, %c1_177, %c0_178] : memref<10x10x10x8xf32, #tpu.memory_space<vmem>>, vector<8x8x8x8xf32>
    %164 = vector.shape_cast %163 : vector<8x8x8x8xf32> to vector<512x8xf32>
    %c22 = arith.constant 22 : index
    %c0_179 = arith.constant 0 : index
    %c0_180 = arith.constant 0 : index
    %165 = vector.load %arg4[%c22, %c0_179, %c0_180] : memref<27x8x8xf32, #tpu.memory_space<vmem>>, vector<1x8x8xf32>
    %166 = vector.shape_cast %165 : vector<1x8x8xf32> to vector<8x8xf32>
    %cst_181 = arith.constant dense<0.000000e+00> : vector<8x512xf32>
    %167 = tpu.matmul %166, %164, %cst_181 {dimension_numbers = #tpu.dot_dimension_numbers<[1], [1], [0], [0], [0, 0, 1, 0], [], []>} : vector<8x8xf32>, vector<512x8xf32>, vector<8x512xf32> -> vector<8x512xf32>
    %168 = arith.addf %162, %167 : vector<8x512xf32>
    %c2_182 = arith.constant 2 : index
    %c1_183 = arith.constant 1 : index
    %c2_184 = arith.constant 2 : index
    %c0_185 = arith.constant 0 : index
    %169 = vector.load %arg7[%c2_182, %c1_183, %c2_184, %c0_185] : memref<10x10x10x8xf32, #tpu.memory_space<vmem>>, vector<8x8x8x8xf32>
    %170 = vector.shape_cast %169 : vector<8x8x8x8xf32> to vector<512x8xf32>
    %c23 = arith.constant 23 : index
    %c0_186 = arith.constant 0 : index
    %c0_187 = arith.constant 0 : index
    %171 = vector.load %arg4[%c23, %c0_186, %c0_187] : memref<27x8x8xf32, #tpu.memory_space<vmem>>, vector<1x8x8xf32>
    %172 = vector.shape_cast %171 : vector<1x8x8xf32> to vector<8x8xf32>
    %cst_188 = arith.constant dense<0.000000e+00> : vector<8x512xf32>
    %173 = tpu.matmul %172, %170, %cst_188 {dimension_numbers = #tpu.dot_dimension_numbers<[1], [1], [0], [0], [0, 0, 1, 0], [], []>} : vector<8x8xf32>, vector<512x8xf32>, vector<8x512xf32> -> vector<8x512xf32>
    %174 = arith.addf %168, %173 : vector<8x512xf32>
    %c2_189 = arith.constant 2 : index
    %c2_190 = arith.constant 2 : index
    %c0_191 = arith.constant 0 : index
    %c0_192 = arith.constant 0 : index
    %175 = vector.load %arg7[%c2_189, %c2_190, %c0_191, %c0_192] : memref<10x10x10x8xf32, #tpu.memory_space<vmem>>, vector<8x8x8x8xf32>
    %176 = vector.shape_cast %175 : vector<8x8x8x8xf32> to vector<512x8xf32>
    %c24 = arith.constant 24 : index
    %c0_193 = arith.constant 0 : index
    %c0_194 = arith.constant 0 : index
    %177 = vector.load %arg4[%c24, %c0_193, %c0_194] : memref<27x8x8xf32, #tpu.memory_space<vmem>>, vector<1x8x8xf32>
    %178 = vector.shape_cast %177 : vector<1x8x8xf32> to vector<8x8xf32>
    %cst_195 = arith.constant dense<0.000000e+00> : vector<8x512xf32>
    %179 = tpu.matmul %178, %176, %cst_195 {dimension_numbers = #tpu.dot_dimension_numbers<[1], [1], [0], [0], [0, 0, 1, 0], [], []>} : vector<8x8xf32>, vector<512x8xf32>, vector<8x512xf32> -> vector<8x512xf32>
    %180 = arith.addf %174, %179 : vector<8x512xf32>
    %c2_196 = arith.constant 2 : index
    %c2_197 = arith.constant 2 : index
    %c1_198 = arith.constant 1 : index
    %c0_199 = arith.constant 0 : index
    %181 = vector.load %arg7[%c2_196, %c2_197, %c1_198, %c0_199] : memref<10x10x10x8xf32, #tpu.memory_space<vmem>>, vector<8x8x8x8xf32>
    %182 = vector.shape_cast %181 : vector<8x8x8x8xf32> to vector<512x8xf32>
    %c25 = arith.constant 25 : index
    %c0_200 = arith.constant 0 : index
    %c0_201 = arith.constant 0 : index
    %183 = vector.load %arg4[%c25, %c0_200, %c0_201] : memref<27x8x8xf32, #tpu.memory_space<vmem>>, vector<1x8x8xf32>
    %184 = vector.shape_cast %183 : vector<1x8x8xf32> to vector<8x8xf32>
    %cst_202 = arith.constant dense<0.000000e+00> : vector<8x512xf32>
    %185 = tpu.matmul %184, %182, %cst_202 {dimension_numbers = #tpu.dot_dimension_numbers<[1], [1], [0], [0], [0, 0, 1, 0], [], []>} : vector<8x8xf32>, vector<512x8xf32>, vector<8x512xf32> -> vector<8x512xf32>
    %186 = arith.addf %180, %185 : vector<8x512xf32>
    %c2_203 = arith.constant 2 : index
    %c2_204 = arith.constant 2 : index
    %c2_205 = arith.constant 2 : index
    %c0_206 = arith.constant 0 : index
    %187 = vector.load %arg7[%c2_203, %c2_204, %c2_205, %c0_206] : memref<10x10x10x8xf32, #tpu.memory_space<vmem>>, vector<8x8x8x8xf32>
    %188 = vector.shape_cast %187 : vector<8x8x8x8xf32> to vector<512x8xf32>
    %c26 = arith.constant 26 : index
    %c0_207 = arith.constant 0 : index
    %c0_208 = arith.constant 0 : index
    %189 = vector.load %arg4[%c26, %c0_207, %c0_208] : memref<27x8x8xf32, #tpu.memory_space<vmem>>, vector<1x8x8xf32>
    %190 = vector.shape_cast %189 : vector<1x8x8xf32> to vector<8x8xf32>
    %cst_209 = arith.constant dense<0.000000e+00> : vector<8x512xf32>
    %191 = tpu.matmul %190, %188, %cst_209 {dimension_numbers = #tpu.dot_dimension_numbers<[1], [1], [0], [0], [0, 0, 1, 0], [], []>} : vector<8x8xf32>, vector<512x8xf32>, vector<8x512xf32> -> vector<8x512xf32>
    %192 = arith.addf %186, %191 : vector<8x512xf32>
    %cst_210 = arith.constant dense<0.000000e+00> : vector<8xf32>
    %193 = vector.multi_reduction <add>, %192, %cst_210 [1] : vector<8x512xf32> to vector<8xf32>
    %194 = vector.shape_cast %193 : vector<8xf32> to vector<8x1xf32>
    %cst_211 = arith.constant 5.120000e+02 : f32
    %195 = vector.broadcast %cst_211 : f32 to vector<8x1xf32>
    %196 = arith.divf %194, %195 : vector<8x1xf32>
    %197 = vector.broadcast %196 : vector<8x1xf32> to vector<8x512xf32>
    %198 = arith.subf %192, %197 : vector<8x512xf32>
    %199 = arith.mulf %198, %198 : vector<8x512xf32>
    %cst_212 = arith.constant dense<0.000000e+00> : vector<8xf32>
    %200 = vector.multi_reduction <add>, %199, %cst_212 [1] : vector<8x512xf32> to vector<8xf32>
    %201 = vector.shape_cast %200 : vector<8xf32> to vector<8x1xf32>
    %cst_213 = arith.constant 5.120000e+02 : f32
    %202 = vector.broadcast %cst_213 : f32 to vector<8x1xf32>
    %203 = arith.divf %201, %202 : vector<8x1xf32>
    %204 = vector.broadcast %196 : vector<8x1xf32> to vector<8x512xf32>
    %205 = arith.subf %192, %204 : vector<8x512xf32>
    %cst_214 = arith.constant 9.99999974E-6 : f32
    %206 = vector.broadcast %cst_214 : f32 to vector<8x1xf32>
    %207 = arith.addf %203, %206 : vector<8x1xf32>
    %208 = math.rsqrt %207 : vector<8x1xf32>
    %209 = vector.broadcast %208 : vector<8x1xf32> to vector<8x512xf32>
    %210 = arith.mulf %205, %209 : vector<8x512xf32>
    %cst_215 = arith.constant 2.000000e-01 : f32
    %211 = vector.broadcast %cst_215 : f32 to vector<8x512xf32>
    %212 = arith.mulf %211, %210 : vector<8x512xf32>
    %213 = arith.maximumf %210, %212 : vector<8x512xf32>
    %c0_216 = arith.constant 0 : index
    %c0_217 = arith.constant 0 : index
    %214 = vector.load %arg5[%c0_216, %c0_217] : memref<16x8xf32, #tpu.memory_space<vmem>>, vector<16x8xf32>
    %cst_218 = arith.constant dense<0.000000e+00> : vector<16x512xf32>
    %215 = tpu.matmul %214, %213, %cst_218 {dimension_numbers = #tpu.dot_dimension_numbers<[1], [0], [0], [1], [0, 0, 1, 1], [], []>} : vector<16x8xf32>, vector<8x512xf32>, vector<16x512xf32> -> vector<16x512xf32>
    %cst_219 = arith.constant dense<0.000000e+00> : vector<16xf32>
    %216 = vector.multi_reduction <add>, %215, %cst_219 [1] : vector<16x512xf32> to vector<16xf32>
    %217 = vector.shape_cast %216 : vector<16xf32> to vector<16x1xf32>
    %cst_220 = arith.constant 5.120000e+02 : f32
    %218 = vector.broadcast %cst_220 : f32 to vector<16x1xf32>
    %219 = arith.divf %217, %218 : vector<16x1xf32>
    %220 = vector.broadcast %219 : vector<16x1xf32> to vector<16x512xf32>
    %221 = arith.subf %215, %220 : vector<16x512xf32>
    %222 = arith.mulf %221, %221 : vector<16x512xf32>
    %cst_221 = arith.constant dense<0.000000e+00> : vector<16xf32>
    %223 = vector.multi_reduction <add>, %222, %cst_221 [1] : vector<16x512xf32> to vector<16xf32>
    %224 = vector.shape_cast %223 : vector<16xf32> to vector<16x1xf32>
    %cst_222 = arith.constant 5.120000e+02 : f32
    %225 = vector.broadcast %cst_222 : f32 to vector<16x1xf32>
    %226 = arith.divf %224, %225 : vector<16x1xf32>
    %227 = vector.broadcast %219 : vector<16x1xf32> to vector<16x512xf32>
    %228 = arith.subf %215, %227 : vector<16x512xf32>
    %cst_223 = arith.constant 9.99999974E-6 : f32
    %229 = vector.broadcast %cst_223 : f32 to vector<16x1xf32>
    %230 = arith.addf %226, %229 : vector<16x1xf32>
    %231 = math.rsqrt %230 : vector<16x1xf32>
    %232 = vector.broadcast %231 : vector<16x1xf32> to vector<16x512xf32>
    %233 = arith.mulf %228, %232 : vector<16x512xf32>
    %cst_224 = arith.constant 2.000000e-01 : f32
    %234 = vector.broadcast %cst_224 : f32 to vector<16x512xf32>
    %235 = arith.mulf %234, %233 : vector<16x512xf32>
    %236 = arith.maximumf %233, %235 : vector<16x512xf32>
    %c0_225 = arith.constant 0 : index
    %c0_226 = arith.constant 0 : index
    %c0_227 = arith.constant 0 : index
    %237 = vector.load %arg6[%c0_225, %c0_226, %c0_227] : memref<1x20x512xf32, #tpu.memory_space<vmem>>, vector<1x16x512xf32>
    %238 = vector.shape_cast %237 : vector<1x16x512xf32> to vector<16x512xf32>
    %239 = vector.shape_cast %236 : vector<16x512xf32> to vector<1x16x512xf32>
    tpu.vector_store %arg6[%c0_225, %c0_226, %c0_227], %239 {strides = array<i32>} : memref<1x20x512xf32, #tpu.memory_space<vmem>>, vector<1x16x512xf32>,
    %c0_228 = arith.constant 0 : index
    %c0_229 = arith.constant 0 : index
    %c0_230 = arith.constant 0 : index
    %240 = vector.load %arg2[%c0_228, %c0_229, %c0_230] : memref<1x4x512xf32, #tpu.memory_space<vmem>>, vector<1x4x512xf32>
    %241 = vector.shape_cast %240 : vector<1x4x512xf32> to vector<4x512xf32>
    %cst_231 = arith.constant 2.000000e-01 : f32
    %242 = vector.broadcast %cst_231 : f32 to vector<4x512xf32>
    %243 = arith.mulf %242, %241 : vector<4x512xf32>
    %244 = arith.maximumf %241, %243 : vector<4x512xf32>
    %c0_232 = arith.constant 0 : index
    %c16_233 = arith.constant 16 : index
    %c0_234 = arith.constant 0 : index
    %245 = vector.load %arg6[%c0_232, %c16_233, %c0_234] : memref<1x20x512xf32, #tpu.memory_space<vmem>>, vector<1x4x512xf32>
    %246 = vector.shape_cast %245 : vector<1x4x512xf32> to vector<4x512xf32>
    %247 = vector.shape_cast %244 : vector<4x512xf32> to vector<1x4x512xf32>
    tpu.vector_store %arg6[%c0_232, %c16_233, %c0_234], %247 {strides = array<i32>} : memref<1x20x512xf32, #tpu.memory_space<vmem>>, vector<1x4x512xf32>,
    return
  }
  func.func @transform_0(%arg0: i32) -> (i32, i32, i32) {
    %c0_i32 = arith.constant 0 : i32
    %c0_i32_0 = arith.constant 0 : i32
    %c0_i32_1 = arith.constant 0 : i32
    return %arg0, %c0_i32, %c0_i32_0 : i32, i32, i32
  }
  func.func @transform_1(%arg0: i32) -> (i32, i32, i32) {
    %c0_i32 = arith.constant 0 : i32
    %c0_i32_0 = arith.constant 0 : i32
    %c0_i32_1 = arith.constant 0 : i32
    return %arg0, %c0_i32, %c0_i32_0 : i32, i32, i32
  }
  func.func @transform_2(%arg0: i32) -> (i32, i32) {
    %c0_i32 = arith.constant 0 : i32
    %c0_i32_0 = arith.constant 0 : i32
    %c0_i32_1 = arith.constant 0 : i32
    return %c0_i32, %c0_i32_0 : i32, i32
  }
  func.func @transform_3(%arg0: i32) -> (i32, i32, i32) {
    %c0_i32 = arith.constant 0 : i32
    %c0_i32_0 = arith.constant 0 : i32
    %c0_i32_1 = arith.constant 0 : i32
    %c0_i32_2 = arith.constant 0 : i32
    return %c0_i32, %c0_i32_0, %c0_i32_1 : i32, i32, i32
  }
  func.func @transform_4(%arg0: i32) -> (i32, i32) {
    %c0_i32 = arith.constant 0 : i32
    %c0_i32_0 = arith.constant 0 : i32
    %c0_i32_1 = arith.constant 0 : i32
    return %c0_i32, %c0_i32_0 : i32, i32
  }
  func.func @transform_5(%arg0: i32) -> (i32, i32, i32) {
    %c0_i32 = arith.constant 0 : i32
    %c0_i32_0 = arith.constant 0 : i32
    %c0_i32_1 = arith.constant 0 : i32
    return %arg0, %c0_i32, %c0_i32_0 : i32, i32, i32
  }
}

</mosaic_0001>

<bundles_post_ra>
// kernel: bottleneck_block_forward.1
= control target key start
LH: loop header
LB: loop body
LE: loop exit
PB: predicated region body
PF: predicated region fallthrough
CT: control target
= control target key end

     0   :  { %s18951_s18 = smov 0   ;;  %s24346_s0 = inlined_call_operand.vmem [shape: f32[2,4,512], index: 0, kind: input, shape index: {}]   ;;  %s24347_s1 = inlined_call_operand.vmem [shape: f32[2,4,512], index: 1, kind: input, shape index: {}]   ;;  %s24348_s2 = inlined_call_operand.vmem [shape: f32[8,4], index: 2, kind: input, shape index: {}]   ;;  %s24349_s3 = inlined_call_operand.vmem [shape: f32[27,8,8], index: 3, kind: input, shape index: {}]   ;;  %s24350_s4 = inlined_call_operand.vmem [shape: f32[16,8], index: 4, kind: input, shape index: {}]   ;;  %s24351_s5 = inlined_call_operand.vmem [shape: f32[2,20,512], index: 5, kind: output, shape index: {}]  }
   0x1 LB: > { %s12179_s19 = sadd.s32 4294967295, %s18918_s18   ;;  %p12183_p0 = scmp.ge.s32.totalorder %s18918_s18, 1  ;;  %s18918_s18 = sphi %s18951_s18, %s15_s18  }
   0x2   : > { %p197_p1 = scmp.lt.s32.totalorder %s18918_s18, 3 }
   0x4   : > { %p198_p2 = pnand %p12183_p0, %p197_p1 }
   0x6   : > { %201 = sbr.rel (%p198_p2) target bundleno = 3626 (0xe2a), region = 40 }
   0xd   : > { %p230_p3 = scmp.lt.s32.totalorder %s12179_s19, 1  ;;  %v24352_v0 = vmov 0.0   ;;  %vm256_vm0 = vcmask 1043456   ;;  %v247_v8 = vld [vmem:[%s24348_s2] sm:$0xff]  ;;  %vm252_vm1 = vcmask 31744   ;;  %vm442_vm2 = vcmask 64512  }
   0xe   : > { %329 = vmatprep.mubr.f32.mxu0 %v24352_v0  ;;  %400 = vmatprep.mubr.f32.mxu1 %v24352_v0  ;;  %vm444_vm3 = vcmask 58368   ;;  %466 = vst.msk [vmem:[#allocation2 + $0xb0] sm:$0xff] %vm442_vm2, %v24352_v0  ;;  %443 = vst.msk [vmem:[#allocation2] sm:$0xff] %vm442_vm2, %v24352_v0  ;;  %v19406_v50 = vld [vmem:[%s24349_s3 + $0x8] sm:$0xff] }
   0xf   : > { %s25588_s19 = smov (!%p230_p3, %s12179_s19), 1  ;;  %467 = vst.msk [vmem:[#allocation2 + $0xb8] sm:$0x3] %vm444_vm3, %v24352_v0  ;;  %445 = vst.msk [vmem:[#allocation2 + $0x8] sm:$0x3] %vm444_vm3, %v24352_v0 }
  0x10   : > { %s14009_s20 = sshll.u32 %s25588_s19, 4  ;;  %s18543_s27 = smul.u32 96, %s25588_s19  ;;  %446 = vst.msk [vmem:[#allocation2 + $0x10] sm:$0xff] %vm442_vm2, %v24352_v0  ;;  %448 = vst.msk [vmem:[#allocation2 + $0x20] sm:$0xff] %vm442_vm2, %v24352_v0 }
  0x11   : > { %s234_s23 = scalar_lea.vmem %s24346_s0, %s14009_s20  ;;  %s239_s26 = scalar_lea.vmem %s24347_s1, %s14009_s20  ;;  %447 = vst.msk [vmem:[#allocation2 + $0x18] sm:$0x3] %vm444_vm3, %v24352_v0  ;;  %449 = vst.msk [vmem:[#allocation2 + $0x28] sm:$0x3] %vm444_vm3, %v24352_v0 }
  0x12   : > { %v245_v1 = vld [vmem:[%s234_s23] sm:$0xff]  ;;  %v12097_v3 = vld [vmem:[%s239_s26 + $0x8] sm:$0xff]  ;;  %s18974_s7 = scalar_lea.vmem %s24351_s5, %s18543_s27  ;;  %450 = vst.msk [vmem:[#allocation2 + $0x30] sm:$0xff] %vm442_vm2, %v24352_v0  ;;  %452 = vst.msk [vmem:[#allocation2 + $0x40] sm:$0xff] %vm442_vm2, %v24352_v0 }
  0x13   : > { %v12096_v2 = vld [vmem:[%s239_s26] sm:$0xff]  ;;  %v250_v4 = vcombine.high %v245_v1, %v245_v1  ;;  %v12099_v6 = vmul.f32 0.2, %v12097_v3  ;;  %v246_v7 = vld [vmem:[%s234_s23 + $0x8] sm:$0xff]  ;;  %451 = vst.msk [vmem:[#allocation2 + $0x38] sm:$0x3] %vm444_vm3, %v24352_v0  ;;  %vm19542_vm4 = vmpackc.low %vm442_vm2, %vm442_vm2 }
  0x14   : > { %v12098_v5 = vmul.f32 0.2, %v12096_v2  ;;  %v251_v9 = vcombine.high %v246_v7, %v246_v7  ;;  %453 = vst.msk [vmem:[#allocation2 + $0x48] sm:$0x3] %vm444_vm3, %v24352_v0  ;;  %455 = vst.msk [vmem:[#allocation2 + $0x58] sm:$0x3] %vm444_vm3, %v24352_v0 }
  0x15   : > { %12189 = vmatprep.subr.msk.mxu0 %vm256_vm0, %v250_v4  ;;  %v12101_v11 = vmax.f32 %v12097_v3, %v12099_v6  ;;  %454 = vst.msk [vmem:[#allocation2 + $0x50] sm:$0xff] %vm442_vm2, %v24352_v0  ;;  %456 = vst.msk [vmem:[#allocation2 + $0x60] sm:$0xff] %vm442_vm2, %v24352_v0 }
  0x16   : > { %v12100_v10 = vmax.f32 %v12096_v2, %v12098_v5  ;;  %12190 = vmatpush1.msk.msra.mxu0 %vm256_vm0, %v245_v1  ;;  %12192 = vmatprep.subr.msk.mxu1 %vm256_vm0, %v251_v9  ;;  %457 = vst.msk [vmem:[#allocation2 + $0x68] sm:$0x3] %vm444_vm3, %v24352_v0  ;;  %459 = vst.msk [vmem:[#allocation2 + $0x78] sm:$0x3] %vm444_vm3, %v24352_v0 }
  0x17   : > { %v12105_v13 = vcombine.high %v12101_v11, %v12101_v11  ;;  %12110 = vst [vmem:[%s18974_s7 + $0x50] sm:$0xf] %v12101_v11  ;;  %12191 = vmatmul.mubr.msk.f32.vlgmr.msra.gmra.mrb[0].mxu0 %vm252_vm1, %v247_v8  ;;  %12193 = vmatpush1.msk.msra.mxu1 %vm256_vm0, %v246_v7  ;;  %458 = vst.msk [vmem:[#allocation2 + $0x70] sm:$0xff] %vm442_vm2, %v24352_v0 }
  0x18   : > { %v12104_v12 = vcombine.high %v12100_v10, %v12100_v10  ;;  %12108 = vst [vmem:[%s18974_s7 + $0x40] sm:$0xf] %v12100_v10  ;;  %12194 = vmatmul.mubr.msk.f32.vlgmr.msra.gmra.mrb[0].mxu1 %vm252_vm1, %v247_v8  ;;  %460 = vst.msk [vmem:[#allocation2 + $0x80] sm:$0xff] %vm442_vm2, %v24352_v0  ;;  %14043 = vmatprep.mubr.msk.f32.mxu0 %vm442_vm2, %v19406_v50 }
  0x19   : > { %12111 = vst [vmem:[%s18974_s7 + $0x58] sm:$0xf] %v12105_v13  ;;  %461 = vst.msk [vmem:[#allocation2 + $0x88] sm:$0x3] %vm444_vm3, %v24352_v0  ;;  %14077 = vmatprep.mubr.msk.f32.mxu1 %vm442_vm2, %v19406_v50 }
  0x1a   : > { %12109 = vst [vmem:[%s18974_s7 + $0x48] sm:$0xf] %v12104_v12  ;;  %462 = vst.msk [vmem:[#allocation2 + $0x90] sm:$0xff] %vm442_vm2, %v24352_v0 }
  0x1b   : > { %463 = vst.msk [vmem:[#allocation2 + $0x98] sm:$0x3] %vm444_vm3, %v24352_v0  ;;  %465 = vst.msk [vmem:[#allocation2 + $0xa8] sm:$0x3] %vm444_vm3, %v24352_v0 }
  0x1c   : > { %464 = vst.msk [vmem:[#allocation2 + $0xa0] sm:$0xff] %vm442_vm2, %v24352_v0  ;;  %468 = vst.msk [vmem:[#allocation2 + $0xc0] sm:$0xff] %vm442_vm2, %v24352_v0 }
  0x1d   : > { %469 = vst.msk [vmem:[#allocation2 + $0xc8] sm:$0x3] %vm444_vm3, %v24352_v0  ;;  %471 = vst.msk [vmem:[#allocation2 + $0xd8] sm:$0x3] %vm444_vm3, %v24352_v0 }
  0x1e   : > { %470 = vst.msk [vmem:[#allocation2 + $0xd0] sm:$0xff] %vm442_vm2, %v24352_v0  ;;  %472 = vst.msk [vmem:[#allocation2 + $0xe0] sm:$0xff] %vm442_vm2, %v24352_v0 }
  0x1f   : > { %473 = vst.msk [vmem:[#allocation2 + $0xe8] sm:$0x3] %vm444_vm3, %v24352_v0  ;;  %475 = vst.msk [vmem:[#allocation2 + $0xf8] sm:$0x3] %vm444_vm3, %v24352_v0 }
  0x20   : > { %474 = vst.msk [vmem:[#allocation2 + $0xf0] sm:$0xff] %vm442_vm2, %v24352_v0  ;;  %476 = vst.msk [vmem:[#allocation2 + $0x100] sm:$0xff] %vm442_vm2, %v24352_v0 }
  0x21   : > { %477 = vst.msk [vmem:[#allocation2 + $0x108] sm:$0x3] %vm444_vm3, %v24352_v0  ;;  %479 = vst.msk [vmem:[#allocation2 + $0x118] sm:$0x3] %vm444_vm3, %v24352_v0 }
  0x22   : > { %478 = vst.msk [vmem:[#allocation2 + $0x110] sm:$0xff] %vm442_vm2, %v24352_v0  ;;  %480 = vst.msk [vmem:[#allocation2 + $0x120] sm:$0xff] %vm442_vm2, %v24352_v0 }
  0x23   : > { %481 = vst.msk [vmem:[#allocation2 + $0x128] sm:$0x3] %vm444_vm3, %v24352_v0  ;;  %483 = vst.msk [vmem:[#allocation2 + $0x138] sm:$0x3] %vm444_vm3, %v24352_v0 }
  0x24   : > { %482 = vst.msk [vmem:[#allocation2 + $0x130] sm:$0xff] %vm442_vm2, %v24352_v0  ;;  %484 = vst.msk [vmem:[#allocation2 + $0x140] sm:$0xff] %vm442_vm2, %v24352_v0 }
  0x25   : > { %485 = vst.msk [vmem:[#allocation2 + $0x148] sm:$0x3] %vm444_vm3, %v24352_v0  ;;  %487 = vst.msk [vmem:[#allocation2 + $0x158] sm:$0x3] %vm444_vm3, %v24352_v0 }
  0x26   : > { %486 = vst.msk [vmem:[#allocation2 + $0x150] sm:$0xff] %vm442_vm2, %v24352_v0  ;;  %488 = vst.msk [vmem:[#allocation2 + $0x160] sm:$0xff] %vm442_vm2, %v24352_v0 }
  0x27   : > { %489 = vst.msk [vmem:[#allocation2 + $0x168] sm:$0x3] %vm444_vm3, %v24352_v0  ;;  %491 = vst.msk [vmem:[#allocation2 + $0x178] sm:$0x3] %vm444_vm3, %v24352_v0 }
  0x28   : > { %490 = vst.msk [vmem:[#allocation2 + $0x170] sm:$0xff] %vm442_vm2, %v24352_v0  ;;  %492 = vst.msk [vmem:[#allocation2 + $0x180] sm:$0xff] %vm442_vm2, %v24352_v0 }
  0x29   : > { %493 = vst.msk [vmem:[#allocation2 + $0x188] sm:$0x3] %vm444_vm3, %v24352_v0  ;;  %495 = vst.msk [vmem:[#allocation2 + $0x198] sm:$0x3] %vm444_vm3, %v24352_v0 }
  0x2a   : > { %494 = vst.msk [vmem:[#allocation2 + $0x190] sm:$0xff] %vm442_vm2, %v24352_v0  ;;  %496 = vst.msk [vmem:[#allocation2 + $0x1a0] sm:$0xff] %vm442_vm2, %v24352_v0 }
  0x2b   : > { %497 = vst.msk [vmem:[#allocation2 + $0x1a8] sm:$0x3] %vm444_vm3, %v24352_v0  ;;  %499 = vst.msk [vmem:[#allocation2 + $0x1b8] sm:$0x3] %vm444_vm3, %v24352_v0 }
  0x2c   : > { %498 = vst.msk [vmem:[#allocation2 + $0x1b0] sm:$0xff] %vm442_vm2, %v24352_v0  ;;  %500 = vst.msk [vmem:[#allocation2 + $0x1c0] sm:$0xff] %vm442_vm2, %v24352_v0 }
  0x2d   : > { %501 = vst.msk [vmem:[#allocation2 + $0x1c8] sm:$0x3] %vm444_vm3, %v24352_v0  ;;  %503 = vst.msk [vmem:[#allocation2 + $0x1d8] sm:$0x3] %vm444_vm3, %v24352_v0 }
  0x2e   : > { %502 = vst.msk [vmem:[#allocation2 + $0x1d0] sm:$0xff] %vm442_vm2, %v24352_v0  ;;  %504 = vst.msk [vmem:[#allocation2 + $0x1e0] sm:$0xff] %vm442_vm2, %v24352_v0 }
  0x2f   : > { %505 = vst.msk [vmem:[#allocation2 + $0x1e8] sm:$0x3] %vm444_vm3, %v24352_v0  ;;  %507 = vst.msk [vmem:[#allocation2 + $0x1f8] sm:$0x3] %vm444_vm3, %v24352_v0 }
  0x30   : > { %506 = vst.msk [vmem:[#allocation2 + $0x1f0] sm:$0xff] %vm442_vm2, %v24352_v0  ;;  %508 = vst.msk [vmem:[#allocation2 + $0x200] sm:$0xff] %vm442_vm2, %v24352_v0 }
  0x31   : > { %509 = vst.msk [vmem:[#allocation2 + $0x208] sm:$0x3] %vm444_vm3, %v24352_v0  ;;  %511 = vst.msk [vmem:[#allocation2 + $0x218] sm:$0x3] %vm444_vm3, %v24352_v0 }
  0x32   : > { %510 = vst.msk [vmem:[#allocation2 + $0x210] sm:$0xff] %vm442_vm2, %v24352_v0  ;;  %512 = vst.msk [vmem:[#allocation2 + $0x220] sm:$0xff] %vm442_vm2, %v24352_v0 }
  0x33   : > { %513 = vst.msk [vmem:[#allocation2 + $0x228] sm:$0x3] %vm444_vm3, %v24352_v0  ;;  %515 = vst.msk [vmem:[#allocation2 + $0x238] sm:$0x3] %vm444_vm3, %v24352_v0 }
  0x34   : > { %514 = vst.msk [vmem:[#allocation2 + $0x230] sm:$0xff] %vm442_vm2, %v24352_v0  ;;  %516 = vst.msk [vmem:[#allocation2 + $0x240] sm:$0xff] %vm442_vm2, %v24352_v0 }
  0x35   : > { %517 = vst.msk [vmem:[#allocation2 + $0x248] sm:$0x3] %vm444_vm3, %v24352_v0  ;;  %519 = vst.msk [vmem:[#allocation2 + $0x258] sm:$0x3] %vm444_vm3, %v24352_v0 }
  0x36   : > { %518 = vst.msk [vmem:[#allocation2 + $0x250] sm:$0xff] %vm442_vm2, %v24352_v0  ;;  %520 = vst.msk [vmem:[#allocation2 + $0x260] sm:$0xff] %vm442_vm2, %v24352_v0 }
  0x37   : > { %521 = vst.msk [vmem:[#allocation2 + $0x268] sm:$0x3] %vm444_vm3, %v24352_v0  ;;  %523 = vst.msk [vmem:[#allocation2 + $0x278] sm:$0x3] %vm444_vm3, %v24352_v0 }
  0x38   : > { %522 = vst.msk [vmem:[#allocation2 + $0x270] sm:$0xff] %vm442_vm2, %v24352_v0  ;;  %524 = vst.msk [vmem:[#allocation2 + $0x280] sm:$0xff] %vm442_vm2, %v24352_v0 }
  0x39   : > { %525 = vst.msk [vmem:[#allocation2 + $0x288] sm:$0x3] %vm444_vm3, %v24352_v0  ;;  %527 = vst.msk [vmem:[#allocation2 + $0x298] sm:$0x3] %vm444_vm3, %v24352_v0 }
  0x3a   : > { %526 = vst.msk [vmem:[#allocation2 + $0x290] sm:$0xff] %vm442_vm2, %v24352_v0  ;;  %528 = vst.msk [vmem:[#allocation2 + $0x2a0] sm:$0xff] %vm442_vm2, %v24352_v0 }
  0x3b   : > { %529 = vst.msk [vmem:[#allocation2 + $0x2a8] sm:$0x3] %vm444_vm3, %v24352_v0  ;;  %531 = vst.msk [vmem:[#allocation2 + $0x2b8] sm:$0x3] %vm444_vm3, %v24352_v0 }
  0x3c   : > { %530 = vst.msk [vmem:[#allocation2 + $0x2b0] sm:$0xff] %vm442_vm2, %v24352_v0  ;;  %532 = vst.msk [vmem:[#allocation2 + $0x2c0] sm:$0xff] %vm442_vm2, %v24352_v0 }
  0x3d   : > { %533 = vst.msk [vmem:[#allocation2 + $0x2c8] sm:$0x3] %vm444_vm3, %v24352_v0  ;;  %535 = vst.msk [vmem:[#allocation2 + $0x2d8] sm:$0x3] %vm444_vm3, %v24352_v0 }
  0x3e   : > { %534 = vst.msk [vmem:[#allocation2 + $0x2d0] sm:$0xff] %vm442_vm2, %v24352_v0  ;;  %536 = vst.msk [vmem:[#allocation2 + $0x2e0] sm:$0xff] %vm442_vm2, %v24352_v0 }
  0x3f   : > { %537 = vst.msk [vmem:[#allocation2 + $0x2e8] sm:$0x3] %vm444_vm3, %v24352_v0  ;;  %539 = vst.msk [vmem:[#allocation2 + $0x2f8] sm:$0x3] %vm444_vm3, %v24352_v0 }
  0x40   : > { %538 = vst.msk [vmem:[#allocation2 + $0x2f0] sm:$0xff] %vm442_vm2, %v24352_v0  ;;  %540 = vst.msk [vmem:[#allocation2 + $0x300] sm:$0xff] %vm442_vm2, %v24352_v0 }
  0x41   : > { %541 = vst.msk [vmem:[#allocation2 + $0x308] sm:$0x3] %vm444_vm3, %v24352_v0  ;;  %543 = vst.msk [vmem:[#allocation2 + $0x318] sm:$0x3] %vm444_vm3, %v24352_v0 }
  0x42   : > { %542 = vst.msk [vmem:[#allocation2 + $0x310] sm:$0xff] %vm442_vm2, %v24352_v0  ;;  %544 = vst.msk [vmem:[#allocation2 + $0x320] sm:$0xff] %vm442_vm2, %v24352_v0 }
  0x43   : > { %545 = vst.msk [vmem:[#allocation2 + $0x328] sm:$0x3] %vm444_vm3, %v24352_v0  ;;  %547 = vst.msk [vmem:[#allocation2 + $0x338] sm:$0x3] %vm444_vm3, %v24352_v0 }
  0x44   : > { %546 = vst.msk [vmem:[#allocation2 + $0x330] sm:$0xff] %vm442_vm2, %v24352_v0  ;;  %548 = vst.msk [vmem:[#allocation2 + $0x340] sm:$0xff] %vm442_vm2, %v24352_v0 }
  0x45   : > { %549 = vst.msk [vmem:[#allocation2 + $0x348] sm:$0x3] %vm444_vm3, %v24352_v0  ;;  %551 = vst.msk [vmem:[#allocation2 + $0x358] sm:$0x3] %vm444_vm3, %v24352_v0 }
  0x46   : > { %550 = vst.msk [vmem:[#allocation2 + $0x350] sm:$0xff] %vm442_vm2, %v24352_v0  ;;  %552 = vst.msk [vmem:[#allocation2 + $0x360] sm:$0xff] %vm442_vm2, %v24352_v0 }
  0x47   : > { %553 = vst.msk [vmem:[#allocation2 + $0x368] sm:$0x3] %vm444_vm3, %v24352_v0  ;;  %555 = vst.msk [vmem:[#allocation2 + $0x378] sm:$0x3] %vm444_vm3, %v24352_v0 }
  0x48   : > { %554 = vst.msk [vmem:[#allocation2 + $0x370] sm:$0xff] %vm442_vm2, %v24352_v0  ;;  %556 = vst.msk [vmem:[#allocation2 + $0x380] sm:$0xff] %vm442_vm2, %v24352_v0 }
  0x49   : > { %557 = vst.msk [vmem:[#allocation2 + $0x388] sm:$0x3] %vm444_vm3, %v24352_v0  ;;  %559 = vst.msk [vmem:[#allocation2 + $0x398] sm:$0x3] %vm444_vm3, %v24352_v0 }
  0x4a   : > { %558 = vst.msk [vmem:[#allocation2 + $0x390] sm:$0xff] %vm442_vm2, %v24352_v0  ;;  %560 = vst.msk [vmem:[#allocation2 + $0x3a0] sm:$0xff] %vm442_vm2, %v24352_v0 }
  0x4b   : > { %561 = vst.msk [vmem:[#allocation2 + $0x3a8] sm:$0x3] %vm444_vm3, %v24352_v0  ;;  %563 = vst.msk [vmem:[#allocation2 + $0x3b8] sm:$0x3] %vm444_vm3, %v24352_v0 }
  0x4c   : > { %562 = vst.msk [vmem:[#allocation2 + $0x3b0] sm:$0xff] %vm442_vm2, %v24352_v0  ;;  %564 = vst.msk [vmem:[#allocation2 + $0x3c0] sm:$0xff] %vm442_vm2, %v24352_v0 }
  0x4d   : > { %565 = vst.msk [vmem:[#allocation2 + $0x3c8] sm:$0x3] %vm444_vm3, %v24352_v0  ;;  %567 = vst.msk [vmem:[#allocation2 + $0x3d8] sm:$0x3] %vm444_vm3, %v24352_v0 }
  0x4e   : > { %566 = vst.msk [vmem:[#allocation2 + $0x3d0] sm:$0xff] %vm442_vm2, %v24352_v0  ;;  %568 = vst.msk [vmem:[#allocation2 + $0x3e0] sm:$0xff] %vm442_vm2, %v24352_v0 }
  0x4f   : > { %569 = vst.msk [vmem:[#allocation2 + $0x3e8] sm:$0x3] %vm444_vm3, %v24352_v0  ;;  %571 = vst.msk [vmem:[#allocation2 + $0x3f8] sm:$0x3] %vm444_vm3, %v24352_v0 }
  0x50   : > { %570 = vst.msk [vmem:[#allocation2 + $0x3f0] sm:$0xff] %vm442_vm2, %v24352_v0  ;;  %572 = vst.msk [vmem:[#allocation2 + $0x400] sm:$0xff] %vm442_vm2, %v24352_v0 }
  0x51   : > { %573 = vst.msk [vmem:[#allocation2 + $0x408] sm:$0x3] %vm444_vm3, %v24352_v0  ;;  %575 = vst.msk [vmem:[#allocation2 + $0x418] sm:$0x3] %vm444_vm3, %v24352_v0 }
  0x52   : > { %574 = vst.msk [vmem:[#allocation2 + $0x410] sm:$0xff] %vm442_vm2, %v24352_v0  ;;  %576 = vst.msk [vmem:[#allocation2 + $0x420] sm:$0xff] %vm442_vm2, %v24352_v0 }
  0x53   : > { %577 = vst.msk [vmem:[#allocation2 + $0x428] sm:$0x3] %vm444_vm3, %v24352_v0  ;;  %579 = vst.msk [vmem:[#allocation2 + $0x438] sm:$0x3] %vm444_vm3, %v24352_v0 }
  0x54   : > { %578 = vst.msk [vmem:[#allocation2 + $0x430] sm:$0xff] %vm442_vm2, %v24352_v0  ;;  %580 = vst.msk [vmem:[#allocation2 + $0x440] sm:$0xff] %vm442_vm2, %v24352_v0 }
  0x55   : > { %581 = vst.msk [vmem:[#allocation2 + $0x448] sm:$0x3] %vm444_vm3, %v24352_v0  ;;  %583 = vst.msk [vmem:[#allocation2 + $0x458] sm:$0x3] %vm444_vm3, %v24352_v0 }
  0x56   : > { %582 = vst.msk [vmem:[#allocation2 + $0x450] sm:$0xff] %vm442_vm2, %v24352_v0  ;;  %584 = vst.msk [vmem:[#allocation2 + $0x460] sm:$0xff] %vm442_vm2, %v24352_v0 }
  0x57   : > { %585 = vst.msk [vmem:[#allocation2 + $0x468] sm:$0x3] %vm444_vm3, %v24352_v0  ;;  %587 = vst.msk [vmem:[#allocation2 + $0x478] sm:$0x3] %vm444_vm3, %v24352_v0 }
  0x58   : > { %586 = vst.msk [vmem:[#allocation2 + $0x470] sm:$0xff] %vm442_vm2, %v24352_v0  ;;  %588 = vst.msk [vmem:[#allocation2 + $0x480] sm:$0xff] %vm442_vm2, %v24352_v0 }
  0x59   : > { %589 = vst.msk [vmem:[#allocation2 + $0x488] sm:$0x3] %vm444_vm3, %v24352_v0  ;;  %591 = vst.msk [vmem:[#allocation2 + $0x498] sm:$0x3] %vm444_vm3, %v24352_v0 }
  0x5a   : > { %590 = vst.msk [vmem:[#allocation2 + $0x490] sm:$0xff] %vm442_vm2, %v24352_v0  ;;  %592 = vst.msk [vmem:[#allocation2 + $0x4a0] sm:$0xff] %vm442_vm2, %v24352_v0 }
  0x5b   : > { %593 = vst.msk [vmem:[#allocation2 + $0x4a8] sm:$0x3] %vm444_vm3, %v24352_v0  ;;  %595 = vst.msk [vmem:[#allocation2 + $0x4b8] sm:$0x3] %vm444_vm3, %v24352_v0 }
  0x5c   : > { %594 = vst.msk [vmem:[#allocation2 + $0x4b0] sm:$0xff] %vm442_vm2, %v24352_v0  ;;  %596 = vst.msk [vmem:[#allocation2 + $0x4c0] sm:$0xff] %vm442_vm2, %v24352_v0 }
  0x5d   : > { %597 = vst.msk [vmem:[#allocation2 + $0x4c8] sm:$0x3] %vm444_vm3, %v24352_v0  ;;  %599 = vst.msk [vmem:[#allocation2 + $0x4d8] sm:$0x3] %vm444_vm3, %v24352_v0 }
  0x5e   : > { %598 = vst.msk [vmem:[#allocation2 + $0x4d0] sm:$0xff] %vm442_vm2, %v24352_v0  ;;  %600 = vst.msk [vmem:[#allocation2 + $0x4e0] sm:$0xff] %vm442_vm2, %v24352_v0 }
  0x5f   : > { %601 = vst.msk [vmem:[#allocation2 + $0x4e8] sm:$0x3] %vm444_vm3, %v24352_v0  ;;  %603 = vst.msk [vmem:[#allocation2 + $0x4f8] sm:$0x3] %vm444_vm3, %v24352_v0 }
  0x60   : > { %602 = vst.msk [vmem:[#allocation2 + $0x4f0] sm:$0xff] %vm442_vm2, %v24352_v0  ;;  %604 = vst.msk [vmem:[#allocation2 + $0x500] sm:$0xff] %vm442_vm2, %v24352_v0 }
  0x61   : > { %605 = vst.msk [vmem:[#allocation2 + $0x508] sm:$0x3] %vm444_vm3, %v24352_v0  ;;  %607 = vst.msk [vmem:[#allocation2 + $0x518] sm:$0x3] %vm444_vm3, %v24352_v0 }
  0x62   : > { %606 = vst.msk [vmem:[#allocation2 + $0x510] sm:$0xff] %vm442_vm2, %v24352_v0  ;;  %608 = vst.msk [vmem:[#allocation2 + $0x520] sm:$0xff] %vm442_vm2, %v24352_v0 }
  0x63   : > { %609 = vst.msk [vmem:[#allocation2 + $0x528] sm:$0x3] %vm444_vm3, %v24352_v0  ;;  %611 = vst.msk [vmem:[#allocation2 + $0x538] sm:$0x3] %vm444_vm3, %v24352_v0 }
  0x64   : > { %610 = vst.msk [vmem:[#allocation2 + $0x530] sm:$0xff] %vm442_vm2, %v24352_v0  ;;  %612 = vst.msk [vmem:[#allocation2 + $0x540] sm:$0xff] %vm442_vm2, %v24352_v0 }
  0x65   : > { %613 = vst.msk [vmem:[#allocation2 + $0x548] sm:$0x3] %vm444_vm3, %v24352_v0  ;;  %615 = vst.msk [vmem:[#allocation2 + $0x558] sm:$0x3] %vm444_vm3, %v24352_v0 }
  0x66   : > { %614 = vst.msk [vmem:[#allocation2 + $0x550] sm:$0xff] %vm442_vm2, %v24352_v0  ;;  %616 = vst.msk [vmem:[#allocation2 + $0x560] sm:$0xff] %vm442_vm2, %v24352_v0 }
  0x67   : > { %617 = vst.msk [vmem:[#allocation2 + $0x568] sm:$0x3] %vm444_vm3, %v24352_v0  ;;  %619 = vst.msk [vmem:[#allocation2 + $0x578] sm:$0x3] %vm444_vm3, %v24352_v0 }
  0x68   : > { %618 = vst.msk [vmem:[#allocation2 + $0x570] sm:$0xff] %vm442_vm2, %v24352_v0  ;;  %620 = vst.msk [vmem:[#allocation2 + $0x580] sm:$0xff] %vm442_vm2, %v24352_v0 }
  0x69   : > { %621 = vst.msk [vmem:[#allocation2 + $0x588] sm:$0x3] %vm444_vm3, %v24352_v0  ;;  %623 = vst.msk [vmem:[#allocation2 + $0x598] sm:$0x3] %vm444_vm3, %v24352_v0 }
  0x6a   : > { %622 = vst.msk [vmem:[#allocation2 + $0x590] sm:$0xff] %vm442_vm2, %v24352_v0  ;;  %624 = vst.msk [vmem:[#allocation2 + $0x5a0] sm:$0xff] %vm442_vm2, %v24352_v0 }
  0x6b   : > { %625 = vst.msk [vmem:[#allocation2 + $0x5a8] sm:$0x3] %vm444_vm3, %v24352_v0  ;;  %627 = vst.msk [vmem:[#allocation2 + $0x5b8] sm:$0x3] %vm444_vm3, %v24352_v0 }
  0x6c   : > { %626 = vst.msk [vmem:[#allocation2 + $0x5b0] sm:$0xff] %vm442_vm2, %v24352_v0  ;;  %628 = vst.msk [vmem:[#allocation2 + $0x5c0] sm:$0xff] %vm442_vm2, %v24352_v0 }
  0x6d   : > { %629 = vst.msk [vmem:[#allocation2 + $0x5c8] sm:$0x3] %vm444_vm3, %v24352_v0  ;;  %631 = vst.msk [vmem:[#allocation2 + $0x5d8] sm:$0x3] %vm444_vm3, %v24352_v0 }
  0x6e   : > { %630 = vst.msk [vmem:[#allocation2 + $0x5d0] sm:$0xff] %vm442_vm2, %v24352_v0  ;;  %632 = vst.msk [vmem:[#allocation2 + $0x5e0] sm:$0xff] %vm442_vm2, %v24352_v0 }
  0x6f   : > { %633 = vst.msk [vmem:[#allocation2 + $0x5e8] sm:$0x3] %vm444_vm3, %v24352_v0  ;;  %635 = vst.msk [vmem:[#allocation2 + $0x5f8] sm:$0x3] %vm444_vm3, %v24352_v0 }
  0x70   : > { %634 = vst.msk [vmem:[#allocation2 + $0x5f0] sm:$0xff] %vm442_vm2, %v24352_v0  ;;  %636 = vst.msk [vmem:[#allocation2 + $0x600] sm:$0xff] %vm442_vm2, %v24352_v0 }
  0x71   : > { %637 = vst.msk [vmem:[#allocation2 + $0x608] sm:$0x3] %vm444_vm3, %v24352_v0  ;;  %639 = vst.msk [vmem:[#allocation2 + $0x618] sm:$0x3] %vm444_vm3, %v24352_v0 }
  0x72   : > { %638 = vst.msk [vmem:[#allocation2 + $0x610] sm:$0xff] %vm442_vm2, %v24352_v0  ;;  %640 = vst.msk [vmem:[#allocation2 + $0x620] sm:$0xff] %vm442_vm2, %v24352_v0 }
  0x73   : > { %641 = vst.msk [vmem:[#allocation2 + $0x628] sm:$0x3] %vm444_vm3, %v24352_v0  ;;  %643 = vst.msk [vmem:[#allocation2 + $0x638] sm:$0x3] %vm444_vm3, %v24352_v0 }
  0x74   : > { %642 = vst.msk [vmem:[#allocation2 + $0x630] sm:$0xff] %vm442_vm2, %v24352_v0 }
  0xea   : > { %v331_v14 = vpop.f32.mrb[0].mxu0 }
  0xeb   : > { %v333_v15 = vpop.f32.mrb[1].mxu0  ;;  %v402_v16 = vpop.f32.mrb[0].mxu1 }
  0xec   : > { %v407_v17 = vadd.f32 %v333_v15, %v331_v14  ;;  %v404_v18 = vpop.f32.mrb[1].mxu1 }
  0xee   : > { %v408_v19 = vadd.f32 %v407_v17, %v402_v16 }
  0xf0   : > { %v409_v20 = vadd.f32 %v408_v19, %v404_v18 }
  0xf2   : > { %410 = vadd.xlane.f32.xlu0 %v409_v20 }
 0x17f   : > { %v411_v21 = vpop.xlane.xlu0 %410 }
 0x180   : > { %v413_v22 = vmul.f32 0.001953125, %v411_v21 }
 0x182   : > { %v18983_v23 = vsub.f32 %v331_v14, %v413_v22  ;;  %v18985_v24 = vsub.f32 %v333_v15, %v413_v22  ;;  %v18987_v25 = vsub.f32 %v402_v16, %v413_v22  ;;  %v18989_v26 = vsub.f32 %v404_v18, %v413_v22 }
 0x184   : > { %v418_v27 = vmul.f32 %v18983_v23, %v18983_v23  ;;  %v419_v28 = vmul.f32 %v18985_v24, %v18985_v24  ;;  %v420_v29 = vmul.f32 %v18987_v25, %v18987_v25  ;;  %v421_v31 = vmul.f32 %v18989_v26, %v18989_v26 }
 0x186   : > { %v422_v30 = vadd.f32 %v419_v28, %v418_v27 }
 0x188   : > { %v423_v32 = vadd.f32 %v422_v30, %v420_v29 }
 0x18a   : > { %v424_v33 = vadd.f32 %v423_v32, %v421_v31 }
 0x18c   : > { %425 = vadd.xlane.f32.xlu0 %v424_v33 }
 0x219   : > { %v426_v34 = vpop.xlane.xlu0 %425 }
 0x21a   : > { %v427_v35 = vmul.f32 0.001953125, %v426_v34 }
 0x21c   : > { %v428_v36 = vadd.f32 1e-05, %v427_v35 }
 0x21e   : > { %18555 = vrsqrt.f32 %v428_v36 }
 0x228   : > { %v18556_v37 = vpop.eup %18555 }
 0x229   : > { %v431_v38 = vmul.f32 %v18556_v37, %v18985_v24  ;;  %v430_v39 = vmul.f32 %v18556_v37, %v18983_v23  ;;  %v433_v44 = vmul.f32 %v18556_v37, %v18989_v26  ;;  %v432_v45 = vmul.f32 %v18556_v37, %v18987_v25 }
 0x22b   : > { %v435_v40 = vmul.f32 0.2, %v431_v38  ;;  %v434_v41 = vmul.f32 0.2, %v430_v39  ;;  %v437_v46 = vmul.f32 0.2, %v433_v44 }
 0x22c   : > { %v436_v47 = vmul.f32 0.2, %v432_v45 }
 0x22d   : > { %v439_v42 = vmax.f32 %v431_v38, %v435_v40  ;;  %v438_v43 = vmax.f32 %v430_v39, %v434_v41  ;;  %v441_v48 = vmax.f32 %v433_v44, %v437_v46 }
 0x22e   : > { %v440_v49 = vmax.f32 %v432_v45, %v436_v47 }
 0x22f   : > { %676 = vxpose.xlu0.b32.start.end [1/1] (short) %v439_v42, 128  ;;  %644 = vxpose.xlu1.b32.start.end [1/1] (short) %v438_v43, 128 }
 0x26c   : > { %740 = vxpose.xlu0.b32.start.end [1/1] (short) %v441_v48, 128  ;;  %708 = vxpose.xlu1.b32.start.end [1/1] (short) %v440_v49, 128 }
 0x2af   : > { %v660_v51 = vpop.trf.xlu1  ;;  %v692_v52 = vpop.trf.xlu0 }
 0x2b0   : > { %773 = vst.msk [vmem:[#allocation2 + $0xb1] sm:$0xff] %vm442_vm2, %v660_v51  ;;  %789 = vst.msk [vmem:[#allocation2 + $0x1f1] sm:$0xff] %vm442_vm2, %v692_v52  ;;  %v907_v52 = vld [vmem:[#allocation2 + $0x51] sm:$0xff] }
 0x2b3   : > { %v661_v53 = vpop.trf.xlu1  ;;  %v693_v54 = vpop.trf.xlu0 }
 0x2b4   : > { %774 = vst.msk [vmem:[#allocation2 + $0xc1] sm:$0xff] %vm442_vm2, %v661_v53  ;;  %790 = vst.msk [vmem:[#allocation2 + $0x201] sm:$0xff] %vm442_vm2, %v693_v54 }
 0x2b7   : > { %v662_v55 = vpop.trf.xlu1  ;;  %v694_v56 = vpop.trf.xlu0  ;;  %v19418_v57 = vld [vmem:[#allocation2 + $0x1f0] sm:$0xff] }
 0x2b8   : > { %775 = vst.msk [vmem:[#allocation2 + $0xd1] sm:$0xff] %vm442_vm2, %v662_v55  ;;  %791 = vst.msk [vmem:[#allocation2 + $0x211] sm:$0xff] %vm442_vm2, %v694_v56  ;;  %v19420_v58 = vld [vmem:[#allocation2 + $0x1f2] sm:$0xff] }
 0x2b9   : > { %24700 = vst [vmem:[#allocation3_spill] sm:$0xff] %v19420_v58  ;;  %v19422_v61 = vld [vmem:[#allocation2 + $0xb0] sm:$0xff] }
 0x2ba   : > { %v19426_v63 = vld [vmem:[#allocation2 + $0xb2] sm:$0xff] }
 0x2bb   : > { %v663_v59 = vpop.trf.xlu1  ;;  %v695_v60 = vpop.trf.xlu0  ;;  %v19424_v62 = vld [vmem:[#allocation2 + $0x200] sm:$0xff]  ;;  %24701 = vst [vmem:[#allocation4_spill] sm:$0xff] %v19426_v63 }
 0x2bc   : > { %776 = vst.msk [vmem:[#allocation2 + $0xe1] sm:$0xff] %vm442_vm2, %v663_v59  ;;  %792 = vst.msk [vmem:[#allocation2 + $0x221] sm:$0xff] %vm442_vm2, %v695_v60  ;;  %v19430_v1 = vld [vmem:[#allocation2 + $0xc0] sm:$0xff] }
 0x2bd   : > { %v19432_v2 = vld [vmem:[#allocation2 + $0x202] sm:$0xff] }
 0x2be   : > { %24702 = vst [vmem:[#allocation5_spill] sm:$0xff] %v19432_v2  ;;  %v19434_v3 = vld [vmem:[#allocation2 + $0xc2] sm:$0xff] }
 0x2bf   : > { %24703 = vst [vmem:[#allocation6_spill] sm:$0xff] %v19434_v3  ;;  %v664_v8 = vpop.trf.xlu1  ;;  %v696_v9 = vpop.trf.xlu0  ;;  %v19446_v10 = vld [vmem:[#allocation2 + $0x201] sm:$0xff]  ;;  %v19450_v12 = vld [vmem:[#allocation2 + $0x211] sm:$0xff] }
 0x2c0   : > { %777 = vst.msk [vmem:[#allocation2 + $0xf1] sm:$0xff] %vm442_vm2, %v664_v8  ;;  %793 = vst.msk [vmem:[#allocation2 + $0x231] sm:$0xff] %vm442_vm2, %v696_v9  ;;  %v19448_v11 = vld [vmem:[#allocation2 + $0xc1] sm:$0xff]  ;;  %v19452_v13 = vld [vmem:[#allocation2 + $0xd1] sm:$0xff] }
 0x2c1   : > { %24704 = vst [vmem:[#allocation7_spill] sm:$0xff] %v19446_v10  ;;  %24705 = vst [vmem:[#allocation8_spill] sm:$0xff] %v19448_v11  ;;  %v19454_v14 = vld [vmem:[#allocation2 + $0x210] sm:$0xff]  ;;  %v926_v10 = vld [vmem:[#allocation2 + $0x1e1] sm:$0xff] }
 0x2c2   : > { %24706 = vst [vmem:[#allocation9_spill] sm:$0xff] %v19450_v12  ;;  %24707 = vst [vmem:[#allocation10_spill] sm:$0xff] %v19452_v13  ;;  %v19456_v15 = vld [vmem:[#allocation2 + $0xd0] sm:$0xff]  ;;  %v19892_v63 = vld [vmem:[#allocation2 + $0x20] sm:$0xff] }
 0x2c3   : > { %v665_v18 = vpop.trf.xlu1  ;;  %v697_v19 = vpop.trf.xlu0  ;;  %v19462_v20 = vld [vmem:[#allocation2 + $0x220] sm:$0xff]  ;;  %v19464_v21 = vld [vmem:[#allocation2 + $0x212] sm:$0xff] }
 0x2c4   : > { %24708 = vst [vmem:[#allocation11_spill] sm:$0xff] %v19464_v21  ;;  %v19466_v22 = vld [vmem:[#allocation2 + $0xd2] sm:$0xff]  ;;  %778 = vst.msk [vmem:[#allocation2 + $0x101] sm:$0xff] %vm442_vm2, %v665_v18  ;;  %v19470_v23 = vld [vmem:[#allocation2 + $0xe0] sm:$0xff] }
 0x2c5   : > { %24709 = vst [vmem:[#allocation12_spill] sm:$0xff] %v19466_v22  ;;  %794 = vst.msk [vmem:[#allocation2 + $0x241] sm:$0xff] %vm442_vm2, %v697_v19  ;;  %v19472_v24 = vld [vmem:[#allocation2 + $0x222] sm:$0xff]  ;;  %v927_v12 = vld [vmem:[#allocation2 + $0x1f1] sm:$0xff] }
 0x2c6   : > { %24710 = vst [vmem:[#allocation13_spill] sm:$0xff] %v19472_v24  ;;  %v19474_v25 = vld [vmem:[#allocation2 + $0xe2] sm:$0xff] }
 0x2c7   : > { %24711 = vst [vmem:[#allocation14_spill] sm:$0xff] %v19474_v25  ;;  %v666_v30 = vpop.trf.xlu1  ;;  %v698_v31 = vpop.trf.xlu0  ;;  %v19486_v32 = vld [vmem:[#allocation2 + $0x221] sm:$0xff]  ;;  %v19490_v34 = vld [vmem:[#allocation2 + $0x231] sm:$0xff] }
 0x2c8   : > { %779 = vst.msk [vmem:[#allocation2 + $0x111] sm:$0xff] %vm442_vm2, %v666_v30  ;;  %795 = vst.msk [vmem:[#allocation2 + $0x251] sm:$0xff] %vm442_vm2, %v698_v31  ;;  %v19488_v33 = vld [vmem:[#allocation2 + $0xe1] sm:$0xff]  ;;  %v19492_v35 = vld [vmem:[#allocation2 + $0xf1] sm:$0xff] }
 0x2c9   : > { %24712 = vst [vmem:[#allocation15_spill] sm:$0xff] %v19486_v32  ;;  %24713 = vst [vmem:[#allocation16_spill] sm:$0xff] %v19488_v33  ;;  %v19494_v36 = vld [vmem:[#allocation2 + $0x230] sm:$0xff]  ;;  %v902_v30 = vld [vmem:[#allocation2 + $0x1] sm:$0xff] }
 0x2ca   : > { %24714 = vst [vmem:[#allocation17_spill] sm:$0xff] %v19490_v34  ;;  %24715 = vst [vmem:[#allocation18_spill] sm:$0xff] %v19492_v35  ;;  %v19496_v37 = vld [vmem:[#allocation2 + $0xf0] sm:$0xff] }
 0x2cb   : > { %24716 = vst [vmem:[#allocation19_spill] sm:$0xff] %v19494_v36  ;;  %24717 = vst [vmem:[#allocation20_spill] sm:$0xff] %v19496_v37  ;;  %v667_v40 = vpop.trf.xlu1  ;;  %v699_v41 = vpop.trf.xlu0  ;;  %v19504_v43 = vld [vmem:[#allocation2 + $0x232] sm:$0xff]  ;;  %v19510_v45 = vld [vmem:[#allocation2 + $0x100] sm:$0xff] }
 0x2cc   : > { %v19502_v42 = vld [vmem:[#allocation2 + $0x240] sm:$0xff]  ;;  %24719 = vst [vmem:[#allocation22_spill] sm:$0xff] %v19504_v43  ;;  %v19506_v44 = vld [vmem:[#allocation2 + $0xf2] sm:$0xff]  ;;  %780 = vst.msk [vmem:[#allocation2 + $0x121] sm:$0xff] %vm442_vm2, %v667_v40 }
 0x2cd   : > { %24718 = vst [vmem:[#allocation21_spill] sm:$0xff] %v19502_v42  ;;  %24720 = vst [vmem:[#allocation23_spill] sm:$0xff] %v19506_v44  ;;  %v19512_v46 = vld [vmem:[#allocation2 + $0x242] sm:$0xff]  ;;  %v903_v31 = vld [vmem:[#allocation2 + $0x11] sm:$0xff] }
 0x2ce   : > { %796 = vst.msk [vmem:[#allocation2 + $0x261] sm:$0xff] %vm442_vm2, %v699_v41  ;;  %24721 = vst [vmem:[#allocation24_spill] sm:$0xff] %v19510_v45  ;;  %v19514_v47 = vld [vmem:[#allocation2 + $0x102] sm:$0xff]  ;;  %v15850_v0 = vpack.c.bf16 %v903_v31, %v902_v30  ;;  %v19852_v2 = vld [vmem:[#allocation2 + $0x231] sm:$0xff] }
 0x2cf   : > { %24722 = vst [vmem:[#allocation25_spill] sm:$0xff] %v19512_v46  ;;  %24723 = vst [vmem:[#allocation26_spill] sm:$0xff] %v19514_v47  ;;  %v668_v53 = vpop.trf.xlu1  ;;  %v700_v54 = vpop.trf.xlu0  ;;  %v19526_v55 = vld [vmem:[#allocation2 + $0x241] sm:$0xff]  ;;  %v19530_v59 = vld [vmem:[#allocation2 + $0x251] sm:$0xff] }
 0x2d0   : > { %781 = vst.msk [vmem:[#allocation2 + $0x151] sm:$0xff] %vm442_vm2, %v668_v53  ;;  %797 = vst.msk [vmem:[#allocation2 + $0x291] sm:$0xff] %vm442_vm2, %v700_v54  ;;  %v19528_v56 = vld [vmem:[#allocation2 + $0x101] sm:$0xff]  ;;  %v19532_v60 = vld [vmem:[#allocation2 + $0x111] sm:$0xff] }
 0x2d1   : > { %24724 = vst [vmem:[#allocation27_spill] sm:$0xff] %v19526_v55  ;;  %24725 = vst [vmem:[#allocation28_spill] sm:$0xff] %v19528_v56  ;;  %v918_v40 = vld [vmem:[#allocation2 + $0x141] sm:$0xff] }
 0x2d2   : > { %24726 = vst [vmem:[#allocation29_spill] sm:$0xff] %v19530_v59  ;;  %24727 = vst [vmem:[#allocation30_spill] sm:$0xff] %v19532_v60  ;;  %v909_v60 = vld [vmem:[#allocation2 + $0x71] sm:$0xff]  ;;  %v914_v47 = vld [vmem:[#allocation2 + $0xe1] sm:$0xff] }
 0x2d3   : > { %v669_v18 = vpop.trf.xlu1  ;;  %v701_v19 = vpop.trf.xlu0  ;;  %24797 = vst [vmem:[#allocation98_spill] sm:$0xff] %v19852_v2 }
 0x2d4   : > { %782 = vst.msk [vmem:[#allocation2 + $0x161] sm:$0xff] %vm442_vm2, %v669_v18  ;;  %798 = vst.msk [vmem:[#allocation2 + $0x2a1] sm:$0xff] %vm442_vm2, %v701_v19  ;;  %v904_v18 = vld [vmem:[#allocation2 + $0x21] sm:$0xff]  ;;  %v905_v19 = vld [vmem:[#allocation2 + $0x31] sm:$0xff] }
 0x2d5   : > { %v15856_v28 = vpack.c.bf16 %v905_v19, %v904_v18 }
 0x2d7   : > { %v670_v41 = vpop.trf.xlu1  ;;  %v919_v53 = vld [vmem:[#allocation2 + $0x151] sm:$0xff]  ;;  %v702_v8 = vpop.trf.xlu0 }
 0x2d8   : > { %783 = vst.msk [vmem:[#allocation2 + $0x171] sm:$0xff] %vm442_vm2, %v670_v41  ;;  %v15847_v9 = vpack.c.bf16 %v919_v53, %v918_v40  ;;  %799 = vst.msk [vmem:[#allocation2 + $0x2b1] sm:$0xff] %vm442_vm2, %v702_v8  ;;  %v19550_v39 = vld [vmem:[#allocation2 + $0x290] sm:$0xff] }
 0x2d9   : > { %24730 = vst [vmem:[#allocation31_spill] sm:$0xff] %v19550_v39  ;;  %v19552_v38 = vld [vmem:[#allocation2 + $0x292] sm:$0xff] }
 0x2da   : > { %15849 = vmatprep.subr.msk.bf16.mxu0 %vm19542_vm4, %v15847_v9  ;;  %24731 = vst [vmem:[#allocation32_spill] sm:$0xff] %v19552_v38  ;;  %v19556_v30 = vld [vmem:[#allocation2 + $0x150] sm:$0xff] }
 0x2db   : > { %15852 = vmatpush3.bf16.xpose.msk.msra.mxu0 %vm19542_vm4, %v15850_v0  ;;  %v671_v17 = vpop.trf.xlu1  ;;  %v703_v31 = vpop.trf.xlu0  ;;  %v19558_v41 = vld [vmem:[#allocation2 + $0x160] sm:$0xff]  ;;  %v19560_v40 = vld [vmem:[#allocation2 + $0x152] sm:$0xff] }
 0x2dc   : > { %784 = vst.msk [vmem:[#allocation2 + $0x181] sm:$0xff] %vm442_vm2, %v671_v17  ;;  %800 = vst.msk [vmem:[#allocation2 + $0x2c1] sm:$0xff] %vm442_vm2, %v703_v31  ;;  %v19564_v8 = vld [vmem:[#allocation2 + $0x162] sm:$0xff]  ;;  %v19887_v3 = vld [vmem:[#allocation2 + $0x291] sm:$0xff] }
 0x2dd   : > { %24732 = vst [vmem:[#allocation33_spill] sm:$0xff] %v19564_v8  ;;  %v19566_v9 = vld [vmem:[#allocation2 + $0x2a0] sm:$0xff]  ;;  %24801 = vst [vmem:[#allocation102_spill] sm:$0xff] %v19887_v3 }
 0x2de   : > { %24733 = vst [vmem:[#allocation34_spill] sm:$0xff] %v19566_v9  ;;  %v19570_v0 = vld [vmem:[#allocation2 + $0x2a2] sm:$0xff] }
 0x2df   : > { %24734 = vst [vmem:[#allocation35_spill] sm:$0xff] %v19570_v0  ;;  %v672_v51 = vpop.trf.xlu1  ;;  %v920_v31 = vld [vmem:[#allocation2 + $0x161] sm:$0xff]  ;;  %v921_v29 = vld [vmem:[#allocation2 + $0x171] sm:$0xff]  ;;  %v704_v7 = vpop.trf.xlu0 }
 0x2e0   : > { %785 = vst.msk [vmem:[#allocation2 + $0x191] sm:$0xff] %vm442_vm2, %v672_v51  ;;  %v15853_v6 = vpack.c.bf16 %v921_v29, %v920_v31  ;;  %801 = vst.msk [vmem:[#allocation2 + $0x2d1] sm:$0xff] %vm442_vm2, %v704_v7  ;;  %v19580_v49 = vld [vmem:[#allocation2 + $0x161] sm:$0xff]  ;;  %v19582_v48 = vld [vmem:[#allocation2 + $0x171] sm:$0xff] }
 0x2e1   : > { %24735 = vst [vmem:[#allocation36_spill] sm:$0xff] %v19580_v49  ;;  %24736 = vst [vmem:[#allocation37_spill] sm:$0xff] %v19582_v48  ;;  %v19584_v16 = vld [vmem:[#allocation2 + $0x2a1] sm:$0xff]  ;;  %v19588_v27 = vld [vmem:[#allocation2 + $0x170] sm:$0xff]  ;;  %v15871_v48 = vpack.c.bf16 %v927_v12, %v926_v10 }
 0x2e2   : > { %24737 = vst [vmem:[#allocation38_spill] sm:$0xff] %v19584_v16  ;;  %15855 = vmatprep.subr.msk.bf16.mxu0 %vm19542_vm4, %v15853_v6  ;;  %v906_v17 = vld [vmem:[#allocation2 + $0x41] sm:$0xff]  ;;  %v19590_v18 = vld [vmem:[#allocation2 + $0x172] sm:$0xff] }
 0x2e3   : > { %24738 = vst [vmem:[#allocation39_spill] sm:$0xff] %v19590_v18  ;;  %v19592_v19 = vld [vmem:[#allocation2 + $0x2b1] sm:$0xff]  ;;  %15858 = vmatpush3.bf16.xpose.msk.msra.mxu0 %vm19542_vm4, %v15856_v28  ;;  %v673_v29 = vpop.trf.xlu1  ;;  %v705_v51 = vpop.trf.xlu0  ;;  %v19598_v31 = vld [vmem:[#allocation2 + $0x180] sm:$0xff] }
 0x2e4   : > { %24739 = vst [vmem:[#allocation40_spill] sm:$0xff] %v19592_v19  ;;  %v19600_v26 = vld [vmem:[#allocation2 + $0x2b0] sm:$0xff]  ;;  %786 = vst.msk [vmem:[#allocation2 + $0x1a1] sm:$0xff] %vm442_vm2, %v673_v29  ;;  %v19608_v4 = vld [vmem:[#allocation2 + $0x182] sm:$0xff]  ;;  %v15862_v19 = vpack.c.bf16 %v907_v52, %v906_v17 }
 0x2e5   : > { %24740 = vst [vmem:[#allocation41_spill] sm:$0xff] %v19600_v26  ;;  %v19602_v6 = vld [vmem:[#allocation2 + $0x2b2] sm:$0xff]  ;;  %802 = vst.msk [vmem:[#allocation2 + $0x2e1] sm:$0xff] %vm442_vm2, %v705_v51  ;;  %v19610_v7 = vld [vmem:[#allocation2 + $0x2c0] sm:$0xff] }
 0x2e6   : > { %24741 = vst [vmem:[#allocation42_spill] sm:$0xff] %v19602_v6  ;;  %24742 = vst [vmem:[#allocation43_spill] sm:$0xff] %v19608_v4  ;;  %v19614_v53 = vld [vmem:[#allocation2 + $0x2c2] sm:$0xff]  ;;  %v937_v2 = vld [vmem:[#allocation2 + $0x2b1] sm:$0xff] }
 0x2e7   : > { %24743 = vst [vmem:[#allocation44_spill] sm:$0xff] %v19610_v7  ;;  %24744 = vst [vmem:[#allocation45_spill] sm:$0xff] %v19614_v53  ;;  %v674_v5 = vpop.trf.xlu1  ;;  %v922_v51 = vld [vmem:[#allocation2 + $0x181] sm:$0xff]  ;;  %v923_v16 = vld [vmem:[#allocation2 + $0x191] sm:$0xff]  ;;  %v706_v55 = vpop.trf.xlu0 }
 0x2e8   : > { %787 = vst.msk [vmem:[#allocation2 + $0x1b1] sm:$0xff] %vm442_vm2, %v674_v5  ;;  %v15859_v59 = vpack.c.bf16 %v923_v16, %v922_v51  ;;  %803 = vst.msk [vmem:[#allocation2 + $0x2f1] sm:$0xff] %vm442_vm2, %v706_v55  ;;  %v19624_v28 = vld [vmem:[#allocation2 + $0x181] sm:$0xff]  ;;  %v19626_v33 = vld [vmem:[#allocation2 + $0x191] sm:$0xff] }
 0x2e9   : > { %24745 = vst [vmem:[#allocation46_spill] sm:$0xff] %v19624_v28  ;;  %24746 = vst [vmem:[#allocation47_spill] sm:$0xff] %v19626_v33  ;;  %v19628_v56 = vld [vmem:[#allocation2 + $0x2c1] sm:$0xff]  ;;  %v19632_v35 = vld [vmem:[#allocation2 + $0x190] sm:$0xff] }
 0x2ea   : > { %24747 = vst [vmem:[#allocation48_spill] sm:$0xff] %v19628_v56  ;;  %15861 = vmatprep.subr.msk.bf16.mxu0 %vm19542_vm4, %v15859_v59  ;;  %v908_v29 = vld [vmem:[#allocation2 + $0x61] sm:$0xff]  ;;  %v19634_v52 = vld [vmem:[#allocation2 + $0x192] sm:$0xff] }
 0x2eb   : > { %24748 = vst [vmem:[#allocation49_spill] sm:$0xff] %v19634_v52  ;;  %v19636_v17 = vld [vmem:[#allocation2 + $0x2d1] sm:$0xff]  ;;  %15864 = vmatpush3.bf16.xpose.msk.msra.mxu0 %vm19542_vm4, %v15862_v19  ;;  %v675_v16 = vpop.trf.xlu1  ;;  %v707_v55 = vpop.trf.xlu0  ;;  %v19642_v51 = vld [vmem:[#allocation2 + $0x1a0] sm:$0xff]  ;;  %v15868_v33 = vpack.c.bf16 %v909_v60, %v908_v29 }
 0x2ec   : > { %24749 = vst [vmem:[#allocation50_spill] sm:$0xff] %v19636_v17  ;;  %v19644_v32 = vld [vmem:[#allocation2 + $0x2d0] sm:$0xff]  ;;  %788 = vst.msk [vmem:[#allocation2 + $0x1c1] sm:$0xff] %vm442_vm2, %v675_v16  ;;  %v19652_v11 = vld [vmem:[#allocation2 + $0x1a2] sm:$0xff] }
 0x2ed   : > { %24750 = vst [vmem:[#allocation51_spill] sm:$0xff] %v19644_v32  ;;  %v19646_v59 = vld [vmem:[#allocation2 + $0x2d2] sm:$0xff]  ;;  %804 = vst.msk [vmem:[#allocation2 + $0x301] sm:$0xff] %vm442_vm2, %v707_v55  ;;  %v19654_v5 = vld [vmem:[#allocation2 + $0x2e0] sm:$0xff] }
 0x2ee   : > { %24751 = vst [vmem:[#allocation52_spill] sm:$0xff] %v19646_v59  ;;  %24752 = vst [vmem:[#allocation53_spill] sm:$0xff] %v19652_v11  ;;  %v19658_v13 = vld [vmem:[#allocation2 + $0x2e2] sm:$0xff]  ;;  %v929_v29 = vld [vmem:[#allocation2 + $0x211] sm:$0xff] }
 0x2ef   : > { %24753 = vst [vmem:[#allocation54_spill] sm:$0xff] %v19654_v5  ;;  %24754 = vst [vmem:[#allocation55_spill] sm:$0xff] %v19658_v13  ;;  %v724_v55 = vpop.trf.xlu1  ;;  %v924_v56 = vld [vmem:[#allocation2 + $0x1a1] sm:$0xff]  ;;  %v925_v17 = vld [vmem:[#allocation2 + $0x1b1] sm:$0xff]  ;;  %v756_v49 = vpop.trf.xlu0 }
 0x2f0   : > { %805 = vst.msk [vmem:[#allocation2 + $0x331] sm:$0xff] %vm442_vm2, %v724_v55  ;;  %v15865_v19 = vpack.c.bf16 %v925_v17, %v924_v56  ;;  %821 = vst.msk [vmem:[#allocation2 + $0x471] sm:$0xff] %vm442_vm2, %v756_v49  ;;  %v19668_v6 = vld [vmem:[#allocation2 + $0x1a1] sm:$0xff]  ;;  %v19670_v28 = vld [vmem:[#allocation2 + $0x1b1] sm:$0xff] }
 0x2f1   : > { %24755 = vst [vmem:[#allocation56_spill] sm:$0xff] %v19668_v6  ;;  %24756 = vst [vmem:[#allocation57_spill] sm:$0xff] %v19670_v28  ;;  %v19674_v34 = vld [vmem:[#allocation2 + $0x2e1] sm:$0xff]  ;;  %v19676_v16 = vld [vmem:[#allocation2 + $0x2f1] sm:$0xff] }
 0x2f2   : > { %15867 = vmatprep.subr.msk.bf16.mxu0 %vm19542_vm4, %v15865_v19  ;;  %24757 = vst [vmem:[#allocation58_spill] sm:$0xff] %v19674_v34  ;;  %24758 = vst [vmem:[#allocation59_spill] sm:$0xff] %v19676_v16  ;;  %v928_v56 = vld [vmem:[#allocation2 + $0x201] sm:$0xff]  ;;  %v911_v19 = vld [vmem:[#allocation2 + $0xb1] sm:$0xff] }
 0x2f3   : > { %15870 = vmatpush3.bf16.xpose.msk.msra.mxu0 %vm19542_vm4, %v15868_v33  ;;  %v725_v10 = vpop.trf.xlu1  ;;  %v757_v12 = vpop.trf.xlu0  ;;  %v910_v17 = vld [vmem:[#allocation2 + $0xa1] sm:$0xff]  ;;  %v15877_v33 = vpack.c.bf16 %v929_v29, %v928_v56  ;;  %v19690_v6 = vld [vmem:[#allocation2 + $0x1f1] sm:$0xff] }
 0x2f4   : > { %806 = vst.msk [vmem:[#allocation2 + $0x341] sm:$0xff] %vm442_vm2, %v725_v10  ;;  %15873 = vmatprep.subr.msk.bf16.mxu0 %vm19542_vm4, %v15871_v48  ;;  %822 = vst.msk [vmem:[#allocation2 + $0x481] sm:$0xff] %vm442_vm2, %v757_v12  ;;  %v15874_v49 = vpack.c.bf16 %v911_v19, %v910_v17  ;;  %v19696_v48 = vld [vmem:[#allocation2 + $0x201] sm:$0xff]  ;;  %v931_v13 = vld [vmem:[#allocation2 + $0x231] sm:$0xff] }
 0x2f5   : > { %24759 = vst [vmem:[#allocation60_spill] sm:$0xff] %v19690_v6  ;;  %24761 = vst [vmem:[#allocation62_spill] sm:$0xff] %v19696_v48  ;;  %v930_v59 = vld [vmem:[#allocation2 + $0x221] sm:$0xff]  ;;  %v19916_v18 = vld [vmem:[#allocation2 + $0x2b1] sm:$0xff] }
 0x2f6   : > { %v912_v53 = vld [vmem:[#allocation2 + $0xc1] sm:$0xff]  ;;  %v15883_v38 = vpack.c.bf16 %v931_v13, %v930_v59  ;;  %24807 = vst [vmem:[#allocation108_spill] sm:$0xff] %v19916_v18  ;;  %v19920_v3 = vld [vmem:[#allocation2 + $0x171] sm:$0xff] }
 0x2f7   : > { %v726_v55 = vpop.trf.xlu1  ;;  %v758_v60 = vpop.trf.xlu0  ;;  %v19692_v10 = vld [vmem:[#allocation2 + $0x470] sm:$0xff]  ;;  %v19854_v11 = vld [vmem:[#allocation2 + $0x241] sm:$0xff]  ;;  %24808 = vst [vmem:[#allocation109_spill] sm:$0xff] %v19920_v3 }
 0x2f8   : > { %807 = vst.msk [vmem:[#allocation2 + $0x351] sm:$0xff] %vm442_vm2, %v726_v55  ;;  %823 = vst.msk [vmem:[#allocation2 + $0x491] sm:$0xff] %vm442_vm2, %v758_v60  ;;  %v19694_v34 = vld [vmem:[#allocation2 + $0x472] sm:$0xff]  ;;  %v19961_v18 = vld [vmem:[#allocation2 + $0x1a1] sm:$0xff] }
 0x2f9   : > { %24760 = vst [vmem:[#allocation61_spill] sm:$0xff] %v19694_v34  ;;  %v19700_v28 = vld [vmem:[#allocation2 + $0x330] sm:$0xff]  ;;  %24798 = vst [vmem:[#allocation99_spill] sm:$0xff] %v19854_v11  ;;  %v19904_v11 = vld [vmem:[#allocation2 + $0x161] sm:$0xff] }
 0x2fa   : > { %v19704_v56 = vld [vmem:[#allocation2 + $0x332] sm:$0xff]  ;;  %24804 = vst [vmem:[#allocation105_spill] sm:$0xff] %v19904_v11  ;;  %24814 = vst [vmem:[#allocation115_spill] sm:$0xff] %v19961_v18  ;;  %v20056_v9 = vld [vmem:[#allocation2 + $0x200] sm:$0xff] }
 0x2fb   : > { %15876 = vmatpush3.bf16.xpose.msk.msra.mxu0 %vm19542_vm4, %v15874_v49  ;;  %v727_v12 = vpop.trf.xlu1  ;;  %v759_v16 = vpop.trf.xlu0  ;;  %v19702_v55 = vld [vmem:[#allocation2 + $0x480] sm:$0xff]  ;;  %24763 = vst [vmem:[#allocation64_spill] sm:$0xff] %v19704_v56  ;;  %v19957_v3 = vld [vmem:[#allocation2 + $0x2d1] sm:$0xff]  ;;  %24831 = vst [vmem:[#allocation132_spill] sm:$0xff] %v20056_v9 }
 0x2fc   : > { %24762 = vst [vmem:[#allocation63_spill] sm:$0xff] %v19702_v55  ;;  %808 = vst.msk [vmem:[#allocation2 + $0x361] sm:$0xff] %vm442_vm2, %v727_v12  ;;  %15879 = vmatprep.subr.msk.bf16.mxu0 %vm19542_vm4, %v15877_v33  ;;  %v19712_v29 = vld [vmem:[#allocation2 + $0x340] sm:$0xff]  ;;  %v913_v33 = vld [vmem:[#allocation2 + $0xd1] sm:$0xff] }
 0x2fd   : > { %824 = vst.msk [vmem:[#allocation2 + $0x4a1] sm:$0xff] %vm442_vm2, %v759_v16  ;;  %24764 = vst [vmem:[#allocation65_spill] sm:$0xff] %v19712_v29  ;;  %v19714_v49 = vld [vmem:[#allocation2 + $0x482] sm:$0xff]  ;;  %v15880_v0 = vpack.c.bf16 %v913_v33, %v912_v53  ;;  %v19982_v18 = vld [vmem:[#allocation2 + $0x331] sm:$0xff] }
 0x2fe   : > { %24765 = vst [vmem:[#allocation66_spill] sm:$0xff] %v19714_v49  ;;  %v19716_v17 = vld [vmem:[#allocation2 + $0x342] sm:$0xff]  ;;  %24812 = vst [vmem:[#allocation113_spill] sm:$0xff] %v19957_v3 }
 0x2ff   : > { %24766 = vst [vmem:[#allocation67_spill] sm:$0xff] %v19716_v17  ;;  %v728_v6 = vpop.trf.xlu1  ;;  %v760_v48 = vpop.trf.xlu0  ;;  %v19728_v19 = vld [vmem:[#allocation2 + $0x481] sm:$0xff]  ;;  %v19732_v60 = vld [vmem:[#allocation2 + $0x491] sm:$0xff]  ;;  %24817 = vst [vmem:[#allocation118_spill] sm:$0xff] %v19982_v18 }
 0x300   : > { %809 = vst.msk [vmem:[#allocation2 + $0x371] sm:$0xff] %vm442_vm2, %v728_v6  ;;  %825 = vst.msk [vmem:[#allocation2 + $0x4b1] sm:$0xff] %vm442_vm2, %v760_v48  ;;  %v19730_v44 = vld [vmem:[#allocation2 + $0x341] sm:$0xff]  ;;  %v19734_v12 = vld [vmem:[#allocation2 + $0x351] sm:$0xff] }
 0x301   : > { %24767 = vst [vmem:[#allocation68_spill] sm:$0xff] %v19728_v19  ;;  %24768 = vst [vmem:[#allocation69_spill] sm:$0xff] %v19730_v44  ;;  %v19736_v34 = vld [vmem:[#allocation2 + $0x490] sm:$0xff]  ;;  %v861_v55 = vld [vmem:[#allocation2 + $0x1e0] sm:$0xff] }
 0x302   : > { %24769 = vst [vmem:[#allocation70_spill] sm:$0xff] %v19732_v60  ;;  %24770 = vst [vmem:[#allocation71_spill] sm:$0xff] %v19734_v12  ;;  %v19738_v16 = vld [vmem:[#allocation2 + $0x350] sm:$0xff]  ;;  %v932_v12 = vld [vmem:[#allocation2 + $0x241] sm:$0xff] }
 0x303   : > { %24771 = vst [vmem:[#allocation72_spill] sm:$0xff] %v19738_v16  ;;  %15882 = vmatpush3.bf16.xpose.msk.msra.mxu0 %vm19542_vm4, %v15880_v0  ;;  %v729_v53 = vpop.trf.xlu1  ;;  %v761_v59 = vpop.trf.xlu0  ;;  %v19748_v33 = vld [vmem:[#allocation2 + $0x492] sm:$0xff]  ;;  %v19756_v6 = vld [vmem:[#allocation2 + $0x360] sm:$0xff] }
 0x304   : > { %v19746_v48 = vld [vmem:[#allocation2 + $0x4a0] sm:$0xff]  ;;  %24773 = vst [vmem:[#allocation74_spill] sm:$0xff] %v19748_v33  ;;  %v19750_v56 = vld [vmem:[#allocation2 + $0x352] sm:$0xff]  ;;  %810 = vst.msk [vmem:[#allocation2 + $0x381] sm:$0xff] %vm442_vm2, %v729_v53  ;;  %15885 = vmatprep.subr.msk.bf16.mxu0 %vm19542_vm4, %v15883_v38 }
 0x305   : > { %24772 = vst [vmem:[#allocation73_spill] sm:$0xff] %v19746_v48  ;;  %24774 = vst [vmem:[#allocation75_spill] sm:$0xff] %v19750_v56  ;;  %v19758_v13 = vld [vmem:[#allocation2 + $0x4a2] sm:$0xff]  ;;  %v933_v19 = vld [vmem:[#allocation2 + $0x251] sm:$0xff] }
 0x306   : > { %826 = vst.msk [vmem:[#allocation2 + $0x4c1] sm:$0xff] %vm442_vm2, %v761_v59  ;;  %24775 = vst [vmem:[#allocation76_spill] sm:$0xff] %v19756_v6  ;;  %v19760_v0 = vld [vmem:[#allocation2 + $0x362] sm:$0xff]  ;;  %v915_v59 = vld [vmem:[#allocation2 + $0xf1] sm:$0xff]  ;;  %v15889_v43 = vpack.c.bf16 %v933_v19, %v932_v12 }
 0x307   : > { %24776 = vst [vmem:[#allocation77_spill] sm:$0xff] %v19758_v13  ;;  %24777 = vst [vmem:[#allocation78_spill] sm:$0xff] %v19760_v0  ;;  %v730_v17 = vpop.trf.xlu1  ;;  %v762_v49 = vpop.trf.xlu0  ;;  %v19772_v44 = vld [vmem:[#allocation2 + $0x4a1] sm:$0xff]  ;;  %v15886_v46 = vpack.c.bf16 %v915_v59, %v914_v47  ;;  %v19776_v60 = vld [vmem:[#allocation2 + $0x4b1] sm:$0xff] }
 0x308   : > { %811 = vst.msk [vmem:[#allocation2 + $0x391] sm:$0xff] %vm442_vm2, %v730_v17  ;;  %827 = vst.msk [vmem:[#allocation2 + $0x4d1] sm:$0xff] %vm442_vm2, %v762_v49  ;;  %v19774_v22 = vld [vmem:[#allocation2 + $0x361] sm:$0xff]  ;;  %v19778_v53 = vld [vmem:[#allocation2 + $0x371] sm:$0xff] }
 0x309   : > { %24778 = vst [vmem:[#allocation79_spill] sm:$0xff] %v19772_v44  ;;  %24779 = vst [vmem:[#allocation80_spill] sm:$0xff] %v19774_v22  ;;  %v19780_v33 = vld [vmem:[#allocation2 + $0x4b0] sm:$0xff]  ;;  %v916_v0 = vld [vmem:[#allocation2 + $0x101] sm:$0xff] }
 0x30a   : > { %24780 = vst [vmem:[#allocation81_spill] sm:$0xff] %v19776_v60  ;;  %24781 = vst [vmem:[#allocation82_spill] sm:$0xff] %v19778_v53  ;;  %v19782_v38 = vld [vmem:[#allocation2 + $0x370] sm:$0xff]  ;;  %v853_v60 = vld [vmem:[#allocation2 + $0x140] sm:$0xff] }
 0x30b   : > { %15888 = vmatpush3.bf16.xpose.msk.msra.mxu0 %vm19542_vm4, %v15886_v46  ;;  %v731_v47 = vpop.trf.xlu1  ;;  %v763_v49 = vpop.trf.xlu0  ;;  %v19792_v59 = vld [vmem:[#allocation2 + $0x4b2] sm:$0xff]  ;;  %v19800_v17 = vld [vmem:[#allocation2 + $0x380] sm:$0xff] }
 0x30c   : > { %24782 = vst [vmem:[#allocation83_spill] sm:$0xff] %v19792_v59  ;;  %v19794_v56 = vld [vmem:[#allocation2 + $0x372] sm:$0xff]  ;;  %812 = vst.msk [vmem:[#allocation2 + $0x3a1] sm:$0xff] %vm442_vm2, %v731_v47  ;;  %15891 = vmatprep.subr.msk.bf16.mxu0 %vm19542_vm4, %v15889_v43  ;;  %v19804_v46 = vld [vmem:[#allocation2 + $0x382] sm:$0xff]  ;;  %v15943_v47 = vpack.c.bf16 %v19556_v30, %v853_v60 }
 0x30d   : > { %v19790_v12 = vld [vmem:[#allocation2 + $0x4c0] sm:$0xff]  ;;  %24783 = vst [vmem:[#allocation84_spill] sm:$0xff] %v19794_v56  ;;  %828 = vst.msk [vmem:[#allocation2 + $0x4e1] sm:$0xff] %vm442_vm2, %v763_v49  ;;  %v917_v44 = vld [vmem:[#allocation2 + $0x111] sm:$0xff] }
 0x30e   : > { %24784 = vst [vmem:[#allocation85_spill] sm:$0xff] %v19800_v17  ;;  %v19802_v19 = vld [vmem:[#allocation2 + $0x4c2] sm:$0xff]  ;;  %24786 = vst [vmem:[#allocation87_spill] sm:$0xff] %v19804_v46  ;;  %v15892_v25 = vpack.c.bf16 %v917_v44, %v916_v0  ;;  %v935_v0 = vld [vmem:[#allocation2 + $0x291] sm:$0xff] }
 0x30f   : > { %24785 = vst [vmem:[#allocation86_spill] sm:$0xff] %v19802_v19  ;;  %v732_v49 = vpop.trf.xlu1  ;;  %v19815_v13 = vld [vmem:[#allocation2 + $0x4c1] sm:$0xff]  ;;  %v19819_v22 = vld [vmem:[#allocation2 + $0x4d1] sm:$0xff] }
 0x310   : > { %813 = vst.msk [vmem:[#allocation2 + $0x3d1] sm:$0xff] %vm442_vm2, %v732_v49  ;;  %24787 = vst [vmem:[#allocation88_spill] sm:$0xff] %v19815_v13  ;;  %v19817_v21 = vld [vmem:[#allocation2 + $0x381] sm:$0xff]  ;;  %v19821_v53 = vld [vmem:[#allocation2 + $0x391] sm:$0xff] }
 0x311   : > { %24788 = vst [vmem:[#allocation89_spill] sm:$0xff] %v19817_v21  ;;  %24789 = vst [vmem:[#allocation90_spill] sm:$0xff] %v19819_v22  ;;  %v950_v46 = vld [vmem:[#allocation2 + $0x3c1] sm:$0xff]  ;;  %v838_v60 = vld [vmem:[#allocation2 + $0x10] sm:$0xff] }
 0x312   : > { %24790 = vst [vmem:[#allocation91_spill] sm:$0xff] %v19821_v53  ;;  %v934_v44 = vld [vmem:[#allocation2 + $0x281] sm:$0xff]  ;;  %v19833_v19 = vld [vmem:[#allocation2 + $0xb1] sm:$0xff] }
 0x313   : > { %15894 = vmatpush3.bf16.xpose.msk.msra.mxu0 %vm19542_vm4, %v15892_v25  ;;  %v733_v49 = vpop.trf.xlu1  ;;  %v837_v59 = vld [vmem:[#allocation2] sm:$0xff]  ;;  %24791 = vst [vmem:[#allocation92_spill] sm:$0xff] %v19833_v19  ;;  %v19835_v43 = vld [vmem:[#allocation2 + $0x211] sm:$0xff]  ;;  %v15898_v22 = vpack.c.bf16 %v935_v0, %v934_v44 }
 0x314   : > { %814 = vst.msk [vmem:[#allocation2 + $0x3e1] sm:$0xff] %vm442_vm2, %v733_v49  ;;  %15945 = vmatprep.subr.msk.bf16.mxu0 %vm19542_vm4, %v15943_v47  ;;  %24792 = vst [vmem:[#allocation93_spill] sm:$0xff] %v19835_v43  ;;  %v19837_v13 = vld [vmem:[#allocation2 + $0xc1] sm:$0xff]  ;;  %v19839_v56 = vld [vmem:[#allocation2 + $0xd1] sm:$0xff]  ;;  %v15946_v24 = vpack.c.bf16 %v838_v60, %v837_v59 }
 0x315   : > { %24793 = vst [vmem:[#allocation94_spill] sm:$0xff] %v19837_v13  ;;  %24794 = vst [vmem:[#allocation95_spill] sm:$0xff] %v19839_v56  ;;  %v19841_v25 = vld [vmem:[#allocation2 + $0x221] sm:$0xff]  ;;  %v19861_v44 = vld [vmem:[#allocation2 + $0xf1] sm:$0xff] }
 0x316   : > { %24795 = vst [vmem:[#allocation96_spill] sm:$0xff] %v19841_v25  ;;  %v19843_v21 = vld [vmem:[#allocation2 + $0xe1] sm:$0xff]  ;;  %24799 = vst [vmem:[#allocation100_spill] sm:$0xff] %v19861_v44  ;;  %v963_v9 = vld [vmem:[#allocation2 + $0x4b1] sm:$0xff] }
 0x317   : > { %24796 = vst [vmem:[#allocation97_spill] sm:$0xff] %v19843_v21  ;;  %v734_v53 = vpop.trf.xlu1  ;;  %v951_v47 = vld [vmem:[#allocation2 + $0x3d1] sm:$0xff]  ;;  %v19859_v49 = vld [vmem:[%s24349_s3] sm:$0xff] }
 0x318   : > { %815 = vst.msk [vmem:[#allocation2 + $0x3f1] sm:$0xff] %vm442_vm2, %v734_v53  ;;  %v15895_v58 = vpack.c.bf16 %v951_v47, %v950_v46  ;;  %v19863_v59 = vld [vmem:[#allocation2 + $0x101] sm:$0xff]  ;;  %v15949_v53 = vpack.c.bf16 %v19588_v27, %v19558_v41  ;;  %v19873_v46 = vld [vmem:[#allocation2 + $0x3d0] sm:$0xff] }
 0x319   : > { %24800 = vst [vmem:[#allocation101_spill] sm:$0xff] %v19863_v59  ;;  %v19875_v60 = vld [vmem:[#allocation2 + $0x3d2] sm:$0xff]  ;;  %v936_v44 = vld [vmem:[#allocation2 + $0x2a1] sm:$0xff] }
 0x31a   : > { %15897 = vmatprep.subr.msk.bf16.mxu1 %vm19542_vm4, %v15895_v58  ;;  %14044 = vmatmul.mubr.msk.f32.vlgmr.msra.gmra.mrb[2].mxu0 %vm442_vm2, %v19406_v50  ;;  %v840_v47 = vld [vmem:[#allocation2 + $0x30] sm:$0xff]  ;;  %v19900_v59 = vld [vmem:[#allocation2 + $0x2a1] sm:$0xff]  ;;  %v15904_v4 = vpack.c.bf16 %v937_v2, %v936_v44 }
 0x31b   : > { %15900 = vmatpush3.bf16.xpose.msk.msra.mxu1 %vm19542_vm4, %v15898_v22  ;;  %15948 = vmatpush3.bf16.xpose.msk.msra.mxu0 %vm19542_vm4, %v15946_v24  ;;  %v735_v58 = vpop.trf.xlu1  ;;  %v19883_v0 = vld [vmem:[#allocation2 + $0x3e0] sm:$0xff]  ;;  %24802 = vst [vmem:[#allocation103_spill] sm:$0xff] %v19900_v59  ;;  %v15952_v25 = vpack.c.bf16 %v840_v47, %v19892_v63  ;;  %v842_v44 = vld [vmem:[#allocation2 + $0x50] sm:$0xff] }
 0x31c   : > { %v19885_v50 = vld [vmem:[#allocation2 + $0x3e2] sm:$0xff]  ;;  %816 = vst.msk [vmem:[#allocation2 + $0x401] sm:$0xff] %vm442_vm2, %v735_v58  ;;  %15951 = vmatprep.subr.msk.bf16.mxu0 %vm19542_vm4, %v15949_v53  ;;  %14111 = vmatprep.mubr.msk.f32.mxu0 %vm442_vm2, %v19859_v49  ;;  %v19902_v58 = vld [vmem:[#allocation2 + $0x151] sm:$0xff] }
 0x31d   : > { %24803 = vst [vmem:[#allocation104_spill] sm:$0xff] %v19902_v58  ;;  %v952_v21 = vld [vmem:[#allocation2 + $0x3e1] sm:$0xff]  ;;  %v949_v45 = vld [vmem:[#allocation2 + $0x391] sm:$0xff] }
 0x31e   : > { %v19912_v19 = vld [vmem:[#allocation2 + $0x3e1] sm:$0xff] }
 0x31f   : > { %v736_v56 = vpop.trf.xlu1  ;;  %v953_v43 = vld [vmem:[#allocation2 + $0x3f1] sm:$0xff]  ;;  %24805 = vst [vmem:[#allocation106_spill] sm:$0xff] %v19912_v19  ;;  %v19922_v59 = vld [vmem:[#allocation2 + $0x2c1] sm:$0xff] }
 0x320   : > { %817 = vst.msk [vmem:[#allocation2 + $0x411] sm:$0xff] %vm442_vm2, %v736_v56  ;;  %v15901_v24 = vpack.c.bf16 %v953_v43, %v952_v21  ;;  %v19914_v13 = vld [vmem:[#allocation2 + $0x3f1] sm:$0xff]  ;;  %24809 = vst [vmem:[#allocation110_spill] sm:$0xff] %v19922_v59  ;;  %v19924_v47 = vld [vmem:[#allocation2 + $0x181] sm:$0xff]  ;;  %v15955_v21 = vpack.c.bf16 %v19632_v35, %v19598_v31 }
 0x321   : > { %24806 = vst [vmem:[#allocation107_spill] sm:$0xff] %v19914_v13  ;;  %24810 = vst [vmem:[#allocation111_spill] sm:$0xff] %v19924_v47  ;;  %v19930_v56 = vld [vmem:[#allocation2 + $0x3f0] sm:$0xff]  ;;  %v19932_v43 = vld [vmem:[#allocation2 + $0x2e1] sm:$0xff] }
 0x322   : > { %15903 = vmatprep.subr.msk.bf16.mxu1 %vm19542_vm4, %v15901_v24  ;;  %24811 = vst [vmem:[#allocation112_spill] sm:$0xff] %v19932_v43  ;;  %v19944_v53 = vld [vmem:[#allocation2 + $0x3f2] sm:$0xff]  ;;  %v19951_v2 = vld [vmem:[#allocation2 + $0x40] sm:$0xff] }
 0x323   : > { %15906 = vmatpush3.bf16.xpose.msk.msra.mxu1 %vm19542_vm4, %v15904_v4  ;;  %15954 = vmatpush3.bf16.xpose.msk.msra.mxu0 %vm19542_vm4, %v15952_v25  ;;  %v737_v24 = vpop.trf.xlu1  ;;  %v19942_v22 = vld [vmem:[#allocation2 + $0x400] sm:$0xff]  ;;  %v19959_v47 = vld [vmem:[#allocation2 + $0x191] sm:$0xff]  ;;  %v15958_v8 = vpack.c.bf16 %v842_v44, %v19951_v2 }
 0x324   : > { %v19946_v58 = vld [vmem:[#allocation2 + $0x402] sm:$0xff]  ;;  %818 = vst.msk [vmem:[#allocation2 + $0x421] sm:$0xff] %vm442_vm2, %v737_v24  ;;  %15957 = vmatprep.subr.msk.bf16.mxu0 %vm19542_vm4, %v15955_v21  ;;  %24813 = vst [vmem:[#allocation114_spill] sm:$0xff] %v19959_v47  ;;  %v939_v21 = vld [vmem:[#allocation2 + $0x2d1] sm:$0xff] }
 0x325   : > { %v938_v59 = vld [vmem:[#allocation2 + $0x2c1] sm:$0xff]  ;;  %v860_v25 = vld [vmem:[#allocation2 + $0x1b0] sm:$0xff] }
 0x326   : > { %v954_v13 = vld [vmem:[#allocation2 + $0x401] sm:$0xff]  ;;  %v15910_v48 = vpack.c.bf16 %v939_v21, %v938_v59  ;;  %v15961_v11 = vpack.c.bf16 %v860_v25, %v19642_v51  ;;  %v959_v43 = vld [vmem:[#allocation2 + $0x471] sm:$0xff] }
 0x327   : > { %v738_v19 = vpop.trf.xlu1  ;;  %v955_v4 = vld [vmem:[#allocation2 + $0x411] sm:$0xff]  ;;  %v19969_v16 = vld [vmem:[#allocation2 + $0x401] sm:$0xff] }
 0x328   : > { %819 = vst.msk [vmem:[#allocation2 + $0x431] sm:$0xff] %vm442_vm2, %v738_v19  ;;  %v15907_v17 = vpack.c.bf16 %v955_v4, %v954_v13  ;;  %24815 = vst [vmem:[#allocation116_spill] sm:$0xff] %v19969_v16  ;;  %v19971_v6 = vld [vmem:[#allocation2 + $0x411] sm:$0xff]  ;;  %v19978_v47 = vld [vmem:[#allocation2 + $0x60] sm:$0xff] }
 0x329   : > { %24816 = vst [vmem:[#allocation117_spill] sm:$0xff] %v19971_v6  ;;  %v19980_v44 = vld [vmem:[#allocation2 + $0x410] sm:$0xff]  ;;  %v19984_v13 = vld [vmem:[#allocation2 + $0x341] sm:$0xff] }
 0x32a   : > { %15909 = vmatprep.subr.msk.bf16.mxu1 %vm19542_vm4, %v15907_v17  ;;  %24818 = vst [vmem:[#allocation119_spill] sm:$0xff] %v19984_v13  ;;  %v19992_v17 = vld [vmem:[#allocation2 + $0x412] sm:$0xff]  ;;  %v940_v21 = vld [vmem:[#allocation2 + $0x2e1] sm:$0xff] }
 0x32b   : > { %15912 = vmatpush3.bf16.xpose.msk.msra.mxu1 %vm19542_vm4, %v15910_v48  ;;  %15960 = vmatpush3.bf16.xpose.msk.msra.mxu0 %vm19542_vm4, %v15958_v8  ;;  %v739_v19 = vpop.trf.xlu1  ;;  %v19990_v59 = vld [vmem:[#allocation2 + $0x420] sm:$0xff]  ;;  %v20001_v48 = vld [vmem:[#allocation2 + $0x70] sm:$0xff] }
 0x32c   : > { %v19994_v4 = vld [vmem:[#allocation2 + $0x422] sm:$0xff]  ;;  %820 = vst.msk [vmem:[#allocation2 + $0x441] sm:$0xff] %vm442_vm2, %v739_v19  ;;  %15963 = vmatprep.subr.msk.bf16.mxu0 %vm19542_vm4, %v15961_v11  ;;  %v20007_v16 = vld [vmem:[#allocation2 + $0x351] sm:$0xff]  ;;  %v15964_v8 = vpack.c.bf16 %v20001_v48, %v19978_v47  ;;  %v15967_v11 = vpack.c.bf16 %v19418_v57, %v861_v55 }
 0x32d   : > { %v958_v24 = vld [vmem:[#allocation2 + $0x461] sm:$0xff]  ;;  %24819 = vst [vmem:[#allocation120_spill] sm:$0xff] %v20007_v16  ;;  %v941_v25 = vld [vmem:[#allocation2 + $0x2f1] sm:$0xff] }
 0x32e   : > { %v20009_v6 = vld [vmem:[#allocation2 + $0x361] sm:$0xff]  ;;  %v20011_v19 = vld [vmem:[#allocation2 + $0x371] sm:$0xff]  ;;  %v15919_v5 = vpack.c.bf16 %v959_v43, %v958_v24  ;;  %v15916_v39 = vpack.c.bf16 %v941_v25, %v940_v21 }
 0x32f   : > { %24820 = vst [vmem:[#allocation121_spill] sm:$0xff] %v20009_v6  ;;  %24821 = vst [vmem:[#allocation122_spill] sm:$0xff] %v20011_v19  ;;  %v20013_v18 = vld [vmem:[#allocation2 + $0x381] sm:$0xff]  ;;  %v957_v29 = vld [vmem:[#allocation2 + $0x431] sm:$0xff] }
 0x330   : > { %24822 = vst [vmem:[#allocation123_spill] sm:$0xff] %v20013_v18  ;;  %v956_v13 = vld [vmem:[#allocation2 + $0x421] sm:$0xff]  ;;  %v20023_v7 = vld [vmem:[#allocation2 + $0x431] sm:$0xff] }
 0x331   : > { %v15913_v32 = vpack.c.bf16 %v957_v29, %v956_v13  ;;  %v20021_v26 = vld [vmem:[#allocation2 + $0x421] sm:$0xff]  ;;  %24824 = vst [vmem:[#allocation125_spill] sm:$0xff] %v20023_v7  ;;  %v20030_v16 = vld [vmem:[#allocation2 + $0x471] sm:$0xff] }
 0x332   : > { %24823 = vst [vmem:[#allocation124_spill] sm:$0xff] %v20021_v26  ;;  %24825 = vst [vmem:[#allocation126_spill] sm:$0xff] %v20030_v16  ;;  %v20032_v6 = vld [vmem:[#allocation2 + $0x481] sm:$0xff]  ;;  %v961_v43 = vld [vmem:[#allocation2 + $0x491] sm:$0xff] }
 0x333   : > { %15915 = vmatprep.subr.msk.bf16.mxu1 %vm19542_vm4, %v15913_v32  ;;  %24826 = vst [vmem:[#allocation127_spill] sm:$0xff] %v20032_v6  ;;  %15966 = vmatpush3.bf16.xpose.msk.msra.mxu0 %vm19542_vm4, %v15964_v8  ;;  %v960_v29 = vld [vmem:[#allocation2 + $0x481] sm:$0xff]  ;;  %v20042_v32 = vld [vmem:[#allocation2 + $0x3d1] sm:$0xff] }
 0x334   : > { %15918 = vmatpush3.bf16.xpose.msk.msra.mxu1 %vm19542_vm4, %v15916_v39  ;;  %15969 = vmatprep.subr.msk.bf16.mxu0 %vm19542_vm4, %v15967_v11  ;;  %24827 = vst [vmem:[#allocation128_spill] sm:$0xff] %v20042_v32  ;;  %v20044_v55 = vld [vmem:[#allocation2 + $0x3e1] sm:$0xff]  ;;  %v20046_v24 = vld [vmem:[#allocation2 + $0x3f1] sm:$0xff]  ;;  %v15925_v3 = vpack.c.bf16 %v961_v43, %v960_v29 }
 0x335   : > { %15921 = vmatprep.subr.msk.bf16.mxu1 %vm19542_vm4, %v15919_v5  ;;  %24828 = vst [vmem:[#allocation129_spill] sm:$0xff] %v20044_v55  ;;  %24829 = vst [vmem:[#allocation130_spill] sm:$0xff] %v20046_v24  ;;  %v20048_v13 = vld [vmem:[#allocation2 + $0x401] sm:$0xff]  ;;  %v943_v8 = vld [vmem:[#allocation2 + $0x331] sm:$0xff]  ;;  %v15973_v5 = vpack.c.bf16 %v19454_v14, %v19424_v62 }
 0x336   : > { %24830 = vst [vmem:[#allocation131_spill] sm:$0xff] %v20048_v13  ;;  %v942_v21 = vld [vmem:[#allocation2 + $0x321] sm:$0xff]  ;;  %v20058_v19 = vld [vmem:[#allocation2 + $0x210] sm:$0xff] }
 0x337   : > { %v845_v11 = vld [vmem:[#allocation2 + $0xa0] sm:$0xff]  ;;  %24832 = vst [vmem:[#allocation133_spill] sm:$0xff] %v20058_v19  ;;  %v15922_v18 = vpack.c.bf16 %v943_v8, %v942_v21  ;;  %v20065_v16 = vld [vmem:[#allocation2 + $0xd0] sm:$0xff] }
 0x338   : > { %v15970_v26 = vpack.c.bf16 %v19422_v61, %v845_v11  ;;  %v20061_v7 = vld [vmem:[#allocation2 + $0x421] sm:$0xff]  ;;  %24835 = vst [vmem:[#allocation136_spill] sm:$0xff] %v20065_v16  ;;  %v20071_v29 = vld [vmem:[#allocation2 + $0x411] sm:$0xff]  ;;  %v15979_v16 = vpack.c.bf16 %v19494_v36, %v19462_v20 }
 0x339   : > { %24833 = vst [vmem:[#allocation134_spill] sm:$0xff] %v20061_v7  ;;  %v20063_v39 = vld [vmem:[#allocation2 + $0xc0] sm:$0xff]  ;;  %24836 = vst [vmem:[#allocation137_spill] sm:$0xff] %v20071_v29  ;;  %v20075_v24 = vld [vmem:[#allocation2 + $0x230] sm:$0xff] }
 0x33a   : > { %24834 = vst [vmem:[#allocation135_spill] sm:$0xff] %v20063_v39  ;;  %v20073_v43 = vld [vmem:[#allocation2 + $0x220] sm:$0xff]  ;;  %24838 = vst [vmem:[#allocation139_spill] sm:$0xff] %v20075_v24  ;;  %v20085_v11 = vld [vmem:[#allocation2 + $0xf0] sm:$0xff] }
 0x33b   : > { %24837 = vst [vmem:[#allocation138_spill] sm:$0xff] %v20073_v43  ;;  %15972 = vmatpush3.bf16.xpose.msk.msra.mxu0 %vm19542_vm4, %v15970_v26  ;;  %v20083_v8 = vld [vmem:[#allocation2 + $0xe0] sm:$0xff]  ;;  %24840 = vst [vmem:[#allocation141_spill] sm:$0xff] %v20085_v11  ;;  %v20087_v25 = vld [vmem:[#allocation2 + $0x250] sm:$0xff] }
 0x33c   : > { %15924 = vmatpush3.bf16.xpose.msk.msra.mxu1 %vm19542_vm4, %v15922_v18  ;;  %24839 = vst [vmem:[#allocation140_spill] sm:$0xff] %v20083_v8  ;;  %24841 = vst [vmem:[#allocation142_spill] sm:$0xff] %v20087_v25  ;;  %15975 = vmatprep.subr.msk.bf16.mxu0 %vm19542_vm4, %v15973_v5  ;;  %v20095_v21 = vld [vmem:[#allocation2 + $0x240] sm:$0xff]  ;;  %v20099_v26 = vld [vmem:[#allocation2 + $0x110] sm:$0xff] }
 0x33d   : > { %15927 = vmatprep.subr.msk.bf16.mxu1 %vm19542_vm4, %v15925_v3  ;;  %24842 = vst [vmem:[#allocation143_spill] sm:$0xff] %v20095_v21  ;;  %v20097_v18 = vld [vmem:[#allocation2 + $0x100] sm:$0xff]  ;;  %24844 = vst [vmem:[#allocation145_spill] sm:$0xff] %v20099_v26  ;;  %v945_v24 = vld [vmem:[#allocation2 + $0x351] sm:$0xff] }
 0x33e   : > { %24843 = vst [vmem:[#allocation144_spill] sm:$0xff] %v20097_v18  ;;  %v962_v19 = vld [vmem:[#allocation2 + $0x4a1] sm:$0xff]  ;;  %v20111_v32 = vld [vmem:[#allocation2 + $0x2b0] sm:$0xff] }
 0x33f   : > { %v944_v43 = vld [vmem:[#allocation2 + $0x341] sm:$0xff]  ;;  %24846 = vst [vmem:[#allocation147_spill] sm:$0xff] %v20111_v32  ;;  %v20117_v29 = vld [vmem:[#allocation2 + $0x170] sm:$0xff]  ;;  %v15931_v8 = vpack.c.bf16 %v963_v9, %v962_v19 }
 0x340   : > { %v20109_v13 = vld [vmem:[#allocation2 + $0x2a0] sm:$0xff]  ;;  %24849 = vst [vmem:[#allocation150_spill] sm:$0xff] %v20117_v29  ;;  %v20123_v21 = vld [vmem:[#allocation2 + $0x2d0] sm:$0xff]  ;;  %v15928_v26 = vpack.c.bf16 %v945_v24, %v944_v43 }
 0x341   : > { %24845 = vst [vmem:[#allocation146_spill] sm:$0xff] %v20109_v13  ;;  %v20113_v55 = vld [vmem:[#allocation2 + $0x160] sm:$0xff]  ;;  %24851 = vst [vmem:[#allocation152_spill] sm:$0xff] %v20123_v21  ;;  %v20125_v3 = vld [vmem:[#allocation2 + $0x190] sm:$0xff] }
 0x342   : > { %24847 = vst [vmem:[#allocation148_spill] sm:$0xff] %v20113_v55  ;;  %v20115_v39 = vld [vmem:[#allocation2 + $0x2c0] sm:$0xff]  ;;  %24852 = vst [vmem:[#allocation153_spill] sm:$0xff] %v20125_v3  ;;  %v20132_v6 = vld [vmem:[#allocation2 + $0x2f0] sm:$0xff] }
 0x343   : > { %24848 = vst [vmem:[#allocation149_spill] sm:$0xff] %v20115_v39  ;;  %v20121_v5 = vld [vmem:[#allocation2 + $0x180] sm:$0xff]  ;;  %24854 = vst [vmem:[#allocation155_spill] sm:$0xff] %v20132_v6  ;;  %v20142_v18 = vld [vmem:[#allocation2 + $0x1b0] sm:$0xff] }
 0x344   : > { %24850 = vst [vmem:[#allocation151_spill] sm:$0xff] %v20121_v5  ;;  %v18563_v25 = vld [vmem:[#allocation2 + $0xc0] sm:$0xff]  ;;  %24856 = vst [vmem:[#allocation157_spill] sm:$0xff] %v20142_v18  ;;  %15930 = vmatpush3.bf16.xpose.msk.msra.mxu1 %vm19542_vm4, %v15928_v26  ;;  %v20158_v9 = vld [vmem:[#allocation2 + $0x350] sm:$0xff] }
 0x345   : > { %v15976_v11 = vpack.c.bf16 %v19456_v15, %v18563_v25  ;;  %v20130_v7 = vld [vmem:[#allocation2 + $0x2e0] sm:$0xff]  ;;  %15933 = vmatprep.subr.msk.bf16.mxu1 %vm19542_vm4, %v15931_v8  ;;  %24858 = vst [vmem:[#allocation159_spill] sm:$0xff] %v20158_v9  ;;  %v965_v24 = vld [vmem:[#allocation2 + $0x4d1] sm:$0xff] }
 0x346   : > { %24853 = vst [vmem:[#allocation154_spill] sm:$0xff] %v20130_v7  ;;  %v20140_v13 = vld [vmem:[#allocation2 + $0x1a0] sm:$0xff]  ;;  %v20162_v26 = vld [vmem:[#allocation2 + $0x370] sm:$0xff] }
 0x347   : > { %24855 = vst [vmem:[#allocation156_spill] sm:$0xff] %v20140_v13  ;;  %15978 = vmatpush3.bf16.xpose.msk.msra.mxu0 %vm19542_vm4, %v15976_v11  ;;  %v964_v43 = vld [vmem:[#allocation2 + $0x4c1] sm:$0xff]  ;;  %24860 = vst [vmem:[#allocation161_spill] sm:$0xff] %v20162_v26  ;;  %v947_v25 = vld [vmem:[#allocation2 + $0x371] sm:$0xff] }
 0x348   : > { %15981 = vmatprep.subr.msk.bf16.mxu0 %vm19542_vm4, %v15979_v16  ;;  %v20156_v19 = vld [vmem:[#allocation2 + $0x340] sm:$0xff]  ;;  %v20168_v16 = vld [vmem:[#allocation2 + $0x390] sm:$0xff]  ;;  %v15937_v21 = vpack.c.bf16 %v965_v24, %v964_v43 }
 0x349   : > { %24857 = vst [vmem:[#allocation158_spill] sm:$0xff] %v20156_v19  ;;  %v20160_v7 = vld [vmem:[#allocation2 + $0x360] sm:$0xff]  ;;  %24862 = vst [vmem:[#allocation163_spill] sm:$0xff] %v20168_v16  ;;  %v20172_v18 = vld [vmem:[#allocation2 + $0x250] sm:$0xff] }
 0x34a   : > { %24859 = vst [vmem:[#allocation160_spill] sm:$0xff] %v20160_v7  ;;  %v20166_v13 = vld [vmem:[#allocation2 + $0x380] sm:$0xff]  ;;  %24863 = vst [vmem:[#allocation164_spill] sm:$0xff] %v20172_v18  ;;  %v20176_v5 = vld [vmem:[#allocation2 + $0x3f0] sm:$0xff]  ;;  %v15985_v8 = vpack.c.bf16 %v20172_v18, %v19502_v42 }
 0x34b   : > { %24861 = vst [vmem:[#allocation162_spill] sm:$0xff] %v20166_v13  ;;  %v20174_v6 = vld [vmem:[#allocation2 + $0x3e0] sm:$0xff]  ;;  %24865 = vst [vmem:[#allocation166_spill] sm:$0xff] %v20176_v5  ;;  %v20183_v29 = vld [vmem:[#allocation2 + $0x490] sm:$0xff] }
 0x34c   : > { %24864 = vst [vmem:[#allocation165_spill] sm:$0xff] %v20174_v6  ;;  %v946_v39 = vld [vmem:[#allocation2 + $0x361] sm:$0xff]  ;;  %24866 = vst [vmem:[#allocation167_spill] sm:$0xff] %v20183_v29  ;;  %v20189_v26 = vld [vmem:[#allocation2 + $0x410] sm:$0xff] }
 0x34d   : > { %v15934_v19 = vpack.c.bf16 %v947_v25, %v946_v39  ;;  %v18564_v9 = vld [vmem:[#allocation2 + $0xe0] sm:$0xff]  ;;  %24868 = vst [vmem:[#allocation169_spill] sm:$0xff] %v20189_v26  ;;  %v20201_v25 = vld [vmem:[#allocation2 + $0x212] sm:$0xff] }
 0x34e   : > { %v15982_v55 = vpack.c.bf16 %v19496_v37, %v18564_v9  ;;  %v20187_v7 = vld [vmem:[#allocation2 + $0x480] sm:$0xff]  ;;  %24872 = vst [vmem:[#allocation173_spill] sm:$0xff] %v20201_v25  ;;  %v20207_v43 = vld [vmem:[#allocation2 + $0x110] sm:$0xff] }
 0x34f   : > { %24867 = vst [vmem:[#allocation168_spill] sm:$0xff] %v20187_v7  ;;  %15936 = vmatpush3.bf16.xpose.msk.msra.mxu1 %vm19542_vm4, %v15934_v19  ;;  %v20195_v24 = vld [vmem:[#allocation2 + $0x4a1] sm:$0xff]  ;;  %v20219_v16 = vld [vmem:[#allocation2 + $0x232] sm:$0xff] }
 0x350   : > { %15984 = vmatpush3.bf16.xpose.msk.msra.mxu0 %vm19542_vm4, %v15982_v55  ;;  %24869 = vst [vmem:[#allocation170_spill] sm:$0xff] %v20195_v24  ;;  %v20197_v39 = vld [vmem:[#allocation2 + $0x400] sm:$0xff]  ;;  %15939 = vmatprep.subr.msk.bf16.mxu1 %vm19542_vm4, %v15937_v21  ;;  %v20213_v55 = vld [vmem:[#allocation2 + $0xd2] sm:$0xff]  ;;  %24877 = vst [vmem:[#allocation178_spill] sm:$0xff] %v20219_v16 }
 0x351   : > { %24870 = vst [vmem:[#allocation171_spill] sm:$0xff] %v20197_v39  ;;  %v20199_v9 = vld [vmem:[#allocation2 + $0x202] sm:$0xff]  ;;  %15987 = vmatprep.subr.msk.bf16.mxu0 %vm19542_vm4, %v15985_v8  ;;  %24875 = vst [vmem:[#allocation176_spill] sm:$0xff] %v20213_v55  ;;  %v20221_v8 = vld [vmem:[#allocation2 + $0xf2] sm:$0xff] }
 0x352   : > { %24871 = vst [vmem:[#allocation172_spill] sm:$0xff] %v20199_v9  ;;  %v20209_v19 = vld [vmem:[#allocation2 + $0xc2] sm:$0xff]  ;;  %24878 = vst [vmem:[#allocation179_spill] sm:$0xff] %v20221_v8  ;;  %v20229_v36 = vld [vmem:[#allocation2 + $0x252] sm:$0xff] }
 0x353   : > { %24873 = vst [vmem:[#allocation174_spill] sm:$0xff] %v20209_v19  ;;  %v20211_v11 = vld [vmem:[#allocation2 + $0x222] sm:$0xff]  ;;  %24880 = vst [vmem:[#allocation181_spill] sm:$0xff] %v20229_v36  ;;  %v20237_v42 = vld [vmem:[#allocation2 + $0x491] sm:$0xff] }
 0x354   : > { %24874 = vst [vmem:[#allocation175_spill] sm:$0xff] %v20211_v11  ;;  %v885_v6 = vld [vmem:[#allocation2 + $0x3c0] sm:$0xff]  ;;  %24881 = vst [vmem:[#allocation182_spill] sm:$0xff] %v20237_v42  ;;  %v20241_v32 = vld [vmem:[#allocation2 + $0x112] sm:$0xff] }
 0x355   : > { %v1658_v5 = vld [vmem:[#allocation2 + $0x142] sm:$0xff]  ;;  %24883 = vst [vmem:[#allocation184_spill] sm:$0xff] %v20241_v32  ;;  %v20245_v25 = vld [vmem:[#allocation2 + $0x430] sm:$0xff]  ;;  %v16003_v32 = vpack.c.bf16 %v19980_v44, %v19942_v22 }
 0x356   : > { %v20217_v13 = vld [vmem:[#allocation2 + $0xe2] sm:$0xff]  ;;  %24884 = vst [vmem:[#allocation185_spill] sm:$0xff] %v20245_v25  ;;  %v20251_v7 = vld [vmem:[#allocation2 + $0x2b2] sm:$0xff]  ;;  %v16039_v36 = vpack.c.bf16 %v19560_v40, %v1658_v5 }
 0x357   : > { %24876 = vst [vmem:[#allocation177_spill] sm:$0xff] %v20217_v13  ;;  %v948_v37 = vld [vmem:[#allocation2 + $0x381] sm:$0xff]  ;;  %24886 = vst [vmem:[#allocation187_spill] sm:$0xff] %v20251_v7  ;;  %v20260_v9 = vld [vmem:[#allocation2 + $0x172] sm:$0xff] }
 0x358   : > { %v20227_v18 = vld [vmem:[#allocation2 + $0x242] sm:$0xff]  ;;  %v15940_v13 = vpack.c.bf16 %v949_v45, %v948_v37  ;;  %24889 = vst [vmem:[#allocation190_spill] sm:$0xff] %v20260_v9  ;;  %v20268_v37 = vld [vmem:[#allocation2 + $0x2d2] sm:$0xff] }
 0x359   : > { %24879 = vst [vmem:[#allocation180_spill] sm:$0xff] %v20227_v18  ;;  %v20239_v21 = vld [vmem:[#allocation2 + $0x102] sm:$0xff]  ;;  %v15991_v18 = vpack.c.bf16 %v19873_v46, %v885_v6  ;;  %24891 = vst [vmem:[#allocation192_spill] sm:$0xff] %v20268_v37  ;;  %v20270_v45 = vld [vmem:[#allocation2 + $0x192] sm:$0xff] }
 0x35a   : > { %24882 = vst [vmem:[#allocation183_spill] sm:$0xff] %v20239_v21  ;;  %v20249_v19 = vld [vmem:[#allocation2 + $0x2a2] sm:$0xff]  ;;  %24892 = vst [vmem:[#allocation193_spill] sm:$0xff] %v20270_v45  ;;  %15942 = vmatpush3.bf16.xpose.msk.msra.mxu1 %vm19542_vm4, %v15940_v13  ;;  %v20278_v3 = vld [vmem:[#allocation2 + $0x12] sm:$0xff] }
 0x35b   : > { %24885 = vst [vmem:[#allocation186_spill] sm:$0xff] %v20249_v19  ;;  %v18565_v8 = vld [vmem:[#allocation2 + $0x100] sm:$0xff]  ;;  %v20282_v5 = vld [vmem:[#allocation2 + $0x2f2] sm:$0xff]  ;;  %15993 = vmatprep.subr.msk.bf16.mxu1 %vm19542_vm4, %v15991_v18 }
 0x35c   : > { %v15988_v11 = vpack.c.bf16 %v20207_v43, %v18565_v8  ;;  %v20256_v16 = vld [vmem:[#allocation2 + $0x420] sm:$0xff]  ;;  %24894 = vst [vmem:[#allocation195_spill] sm:$0xff] %v20282_v5  ;;  %v20296_v8 = vld [vmem:[#allocation2 + $0x1b2] sm:$0xff] }
 0x35d   : > { %24887 = vst [vmem:[#allocation188_spill] sm:$0xff] %v20256_v16  ;;  %v20258_v55 = vld [vmem:[#allocation2 + $0x162] sm:$0xff]  ;;  %24897 = vst [vmem:[#allocation198_spill] sm:$0xff] %v20296_v8  ;;  %v20311_v7 = vld [vmem:[#allocation2 + $0x4b1] sm:$0xff] }
 0x35e   : > { %24888 = vst [vmem:[#allocation189_spill] sm:$0xff] %v20258_v55  ;;  %v1642_v39 = vld [vmem:[#allocation2 + $0x2] sm:$0xff]  ;;  %15990 = vmatpush3.bf16.xpose.msk.msra.mxu0 %vm19542_vm4, %v15988_v11  ;;  %24901 = vst [vmem:[#allocation202_spill] sm:$0xff] %v20311_v7  ;;  %v20319_v19 = vld [vmem:[#allocation2 + $0x372] sm:$0xff] }
 0x35f   : > { %v20266_v26 = vld [vmem:[#allocation2 + $0x2c2] sm:$0xff]  ;;  %16041 = vmatprep.subr.msk.bf16.mxu0 %vm19542_vm4, %v16039_v36  ;;  %v20308_v36 = vld [vmem:[#allocation2 + $0x352] sm:$0xff]  ;;  %v16042_v37 = vpack.c.bf16 %v20278_v3, %v1642_v39  ;;  %24903 = vst [vmem:[#allocation204_spill] sm:$0xff] %v20319_v19 }
 0x360   : > { %24890 = vst [vmem:[#allocation191_spill] sm:$0xff] %v20266_v26  ;;  %v20280_v6 = vld [vmem:[#allocation2 + $0x182] sm:$0xff]  ;;  %24900 = vst [vmem:[#allocation201_spill] sm:$0xff] %v20308_v36  ;;  %v18566_v18 = vld [vmem:[#allocation2 + $0x290] sm:$0xff] }
 0x361   : > { %24893 = vst [vmem:[#allocation194_spill] sm:$0xff] %v20280_v6  ;;  %v20292_v13 = vld [vmem:[#allocation2 + $0x2e2] sm:$0xff]  ;;  %v15997_v6 = vpack.c.bf16 %v19930_v56, %v19883_v0  ;;  %v20340_v39 = vld [vmem:[%s24349_s3 + $0x10] sm:$0xff] }
 0x362   : > { %24895 = vst [vmem:[#allocation196_spill] sm:$0xff] %v20292_v13  ;;  %v20294_v11 = vld [vmem:[#allocation2 + $0x1a2] sm:$0xff]  ;;  %v20323_v13 = vld [vmem:[#allocation2 + $0x392] sm:$0xff] }
 0x363   : > { %24896 = vst [vmem:[#allocation197_spill] sm:$0xff] %v20294_v11  ;;  %v20300_v9 = vld [vmem:[#allocation2 + $0x4c1] sm:$0xff]  ;;  %24905 = vst [vmem:[#allocation206_spill] sm:$0xff] %v20323_v13  ;;  %v20449_v42 = vld [vmem:[#allocation2 + $0x290] sm:$0xff] }
 0x364   : > { %24898 = vst [vmem:[#allocation199_spill] sm:$0xff] %v20300_v9  ;;  %v869_v29 = vld [vmem:[#allocation2 + $0x280] sm:$0xff]  ;;  %v18567_v55 = vld [vmem:[%s24349_s3 + $0x8] sm:$0xff]  ;;  %24929 = vst [vmem:[#allocation230_spill] sm:$0xff] %v20449_v42 }
 0x365   : > { %v20306_v26 = vld [vmem:[#allocation2 + $0x342] sm:$0xff]  ;;  %v15994_v11 = vpack.c.bf16 %v18566_v18, %v869_v29  ;;  %14078 = vmatmul.mubr.msk.f32.vlgmr.msra.gmra.mrb[2].mxu1 %vm442_vm2, %v18567_v55  ;;  %14112 = vmatmul.mubr.msk.f32.vlgmr.msra.gmra.mrb[2].mxu0 %vm442_vm2, %v19859_v49  ;;  %v18569_v18 = vld [vmem:[#allocation2 + $0x172] sm:$0xff] }
 0x366   : > { %24899 = vst [vmem:[#allocation200_spill] sm:$0xff] %v20306_v26  ;;  %v20317_v45 = vld [vmem:[#allocation2 + $0x362] sm:$0xff]  ;;  %16044 = vmatpush3.bf16.xpose.msk.msra.mxu0 %vm19542_vm4, %v16042_v37  ;;  %v20348_v55 = vld [vmem:[#allocation2 + $0x32] sm:$0xff]  ;;  %14145 = vmatprep.mubr.msk.f32.mxu1 %vm442_vm2, %v19859_v49 }
 0x367   : > { %24902 = vst [vmem:[#allocation203_spill] sm:$0xff] %v20317_v45  ;;  %v20321_v8 = vld [vmem:[#allocation2 + $0x382] sm:$0xff]  ;;  %15996 = vmatpush3.bf16.xpose.msk.msra.mxu1 %vm19542_vm4, %v15994_v11  ;;  %24907 = vst [vmem:[#allocation208_spill] sm:$0xff] %v20348_v55  ;;  %v20362_v11 = vld [vmem:[#allocation2 + $0x412] sm:$0xff]  ;;  %14179 = vmatprep.mubr.msk.f32.mxu0 %vm442_vm2, %v20340_v39 }
 0x368   : > { %24904 = vst [vmem:[#allocation205_spill] sm:$0xff] %v20321_v8  ;;  %v18568_v29 = vld [vmem:[#allocation2 + $0x162] sm:$0xff]  ;;  %15999 = vmatprep.subr.msk.bf16.mxu1 %vm19542_vm4, %v15997_v6  ;;  %24912 = vst [vmem:[#allocation213_spill] sm:$0xff] %v20362_v11  ;;  %v20372_v6 = vld [vmem:[#allocation2 + $0x432] sm:$0xff] }
 0x369   : > { %v16045_v26 = vpack.c.bf16 %v18569_v18, %v18568_v29  ;;  %v20335_v36 = vld [vmem:[#allocation2 + $0x22] sm:$0xff]  ;;  %v20352_v29 = vld [vmem:[#allocation2 + $0x3f2] sm:$0xff]  ;;  %24914 = vst [vmem:[#allocation215_spill] sm:$0xff] %v20372_v6 }
 0x36a   : > { %24906 = vst [vmem:[#allocation207_spill] sm:$0xff] %v20335_v36  ;;  %v20350_v19 = vld [vmem:[#allocation2 + $0x3e2] sm:$0xff]  ;;  %24909 = vst [vmem:[#allocation210_spill] sm:$0xff] %v20352_v29  ;;  %v20358_v18 = vld [vmem:[#allocation2 + $0x492] sm:$0xff]  ;;  %v16048_v37 = vpack.c.bf16 %v20348_v55, %v20335_v36 }
 0x36b   : > { %24908 = vst [vmem:[#allocation209_spill] sm:$0xff] %v20350_v19  ;;  %16047 = vmatprep.subr.msk.bf16.mxu0 %vm19542_vm4, %v16045_v26  ;;  %24910 = vst [vmem:[#allocation211_spill] sm:$0xff] %v20358_v18  ;;  %v20360_v45 = vld [vmem:[#allocation2 + $0x402] sm:$0xff]  ;;  %v18571_v29 = vld [vmem:[#allocation2 + $0x2b0] sm:$0xff] }
 0x36c   : > { %24911 = vst [vmem:[#allocation212_spill] sm:$0xff] %v20360_v45  ;;  %v20370_v8 = vld [vmem:[#allocation2 + $0x422] sm:$0xff]  ;;  %v20401_v49 = vld [vmem:[#allocation2 + $0x4b2] sm:$0xff] }
 0x36d   : > { %24913 = vst [vmem:[#allocation214_spill] sm:$0xff] %v20370_v8  ;;  %v20376_v13 = vld [vmem:[#allocation2 + $0x482] sm:$0xff]  ;;  %24919 = vst [vmem:[#allocation220_spill] sm:$0xff] %v20401_v49  ;;  %v20409_v8 = vld [vmem:[#allocation2 + $0x430] sm:$0xff] }
 0x36e   : > { %24915 = vst [vmem:[#allocation216_spill] sm:$0xff] %v20376_v13  ;;  %v18570_v19 = vld [vmem:[#allocation2 + $0x2a0] sm:$0xff]  ;;  %16050 = vmatpush3.bf16.xpose.msk.msra.mxu0 %vm19542_vm4, %v16048_v37  ;;  %v20411_v6 = vld [vmem:[#allocation2 + $0x1b2] sm:$0xff]  ;;  %v16009_v18 = vpack.c.bf16 %v20409_v8, %v19990_v59 }
 0x36f   : > { %v16000_v21 = vpack.c.bf16 %v18571_v29, %v18570_v19  ;;  %v18572_v16 = vld [vmem:[#allocation2 + $0x182] sm:$0xff]  ;;  %v20397_v19 = vld [vmem:[#allocation2 + $0x52] sm:$0xff]  ;;  %24922 = vst [vmem:[#allocation223_spill] sm:$0xff] %v20411_v6 }
 0x370   : > { %v16051_v26 = vpack.c.bf16 %v19634_v52, %v18572_v16  ;;  %v20391_v5 = vld [vmem:[#allocation2 + $0x42] sm:$0xff]  ;;  %24917 = vst [vmem:[#allocation218_spill] sm:$0xff] %v20397_v19  ;;  %v20399_v29 = vld [vmem:[#allocation2 + $0x4b0] sm:$0xff] }
 0x371   : > { %16002 = vmatpush3.bf16.xpose.msk.msra.mxu1 %vm19542_vm4, %v16000_v21  ;;  %24916 = vst [vmem:[#allocation217_spill] sm:$0xff] %v20391_v5  ;;  %24918 = vst [vmem:[#allocation219_spill] sm:$0xff] %v20399_v29  ;;  %v20403_v16 = vld [vmem:[#allocation2 + $0x4a0] sm:$0xff]  ;;  %v16054_v37 = vpack.c.bf16 %v20397_v19, %v20391_v5  ;;  %v18574_v11 = vld [vmem:[#allocation2 + $0x2d0] sm:$0xff] }
 0x372   : > { %16005 = vmatprep.subr.msk.bf16.mxu1 %vm19542_vm4, %v16003_v32  ;;  %16053 = vmatprep.subr.msk.bf16.mxu0 %vm19542_vm4, %v16051_v26  ;;  %24920 = vst [vmem:[#allocation221_spill] sm:$0xff] %v20403_v16  ;;  %v20405_v21 = vld [vmem:[#allocation2 + $0x4a2] sm:$0xff]  ;;  %v20434_v26 = vld [vmem:[#allocation2 + $0x4d2] sm:$0xff] }
 0x373   : > { %24921 = vst [vmem:[#allocation222_spill] sm:$0xff] %v20405_v21  ;;  %v18573_v45 = vld [vmem:[#allocation2 + $0x2c0] sm:$0xff]  ;;  %24926 = vst [vmem:[#allocation227_spill] sm:$0xff] %v20434_v26  ;;  %v20462_v49 = vld [vmem:[#allocation2 + $0x150] sm:$0xff] }
 0x374   : > { %v16006_v13 = vpack.c.bf16 %v18574_v11, %v18573_v45  ;;  %v18575_v25 = vld [vmem:[#allocation2 + $0x1a2] sm:$0xff]  ;;  %v20430_v45 = vld [vmem:[#allocation2 + $0x72] sm:$0xff]  ;;  %24931 = vst [vmem:[#allocation232_spill] sm:$0xff] %v20462_v49 }
 0x375   : > { %v16057_v7 = vpack.c.bf16 %v20411_v6, %v18575_v25  ;;  %v20424_v9 = vld [vmem:[#allocation2 + $0x62] sm:$0xff]  ;;  %24924 = vst [vmem:[#allocation225_spill] sm:$0xff] %v20430_v45  ;;  %v20432_v11 = vld [vmem:[#allocation2 + $0x4d0] sm:$0xff] }
 0x376   : > { %16056 = vmatpush3.bf16.xpose.msk.msra.mxu0 %vm19542_vm4, %v16054_v37  ;;  %24923 = vst [vmem:[#allocation224_spill] sm:$0xff] %v20424_v9  ;;  %24925 = vst [vmem:[#allocation226_spill] sm:$0xff] %v20432_v11  ;;  %v20436_v25 = vld [vmem:[#allocation2 + $0x2f0] sm:$0xff]  ;;  %v20440_v32 = vld [vmem:[#allocation2 + $0x4c2] sm:$0xff]  ;;  %v16060_v37 = vpack.c.bf16 %v20430_v45, %v20424_v9 }
 0x377   : > { %16059 = vmatprep.subr.msk.bf16.mxu0 %vm19542_vm4, %v16057_v7  ;;  %24928 = vst [vmem:[#allocation229_spill] sm:$0xff] %v20440_v32  ;;  %v893_v21 = vld [vmem:[#allocation2 + $0x460] sm:$0xff]  ;;  %v18577_v6 = vld [vmem:[#allocation2 + $0x1f2] sm:$0xff] }
 0x378   : > { %v18576_v16 = vld [vmem:[#allocation2 + $0x2e0] sm:$0xff]  ;;  %v16015_v24 = vpack.c.bf16 %v19692_v10, %v893_v21  ;;  %v20464_v21 = vld [vmem:[#allocation2 + $0x2b0] sm:$0xff] }
 0x379   : > { %16008 = vmatpush3.bf16.xpose.msk.msra.mxu1 %vm19542_vm4, %v16006_v13  ;;  %v20438_v13 = vld [vmem:[#allocation2 + $0x4c0] sm:$0xff]  ;;  %v16012_v29 = vpack.c.bf16 %v20436_v25, %v18576_v16  ;;  %24932 = vst [vmem:[#allocation233_spill] sm:$0xff] %v20464_v21  ;;  %v20478_v32 = vld [vmem:[#allocation2 + $0x2d0] sm:$0xff] }
 0x37a   : > { %16011 = vmatprep.subr.msk.bf16.mxu1 %vm19542_vm4, %v16009_v18  ;;  %24927 = vst [vmem:[#allocation228_spill] sm:$0xff] %v20438_v13  ;;  %v1666_v18 = vld [vmem:[#allocation2 + $0x1e2] sm:$0xff]  ;;  %24937 = vst [vmem:[#allocation238_spill] sm:$0xff] %v20478_v32  ;;  %v20486_v42 = vld [vmem:[#allocation2 + $0x190] sm:$0xff] }
 0x37b   : > { %v16063_v19 = vpack.c.bf16 %v18577_v6, %v1666_v18  ;;  %v20456_v45 = vld [vmem:[#allocation2 + $0x2a0] sm:$0xff]  ;;  %v20470_v18 = vld [vmem:[#allocation2 + $0x170] sm:$0xff]  ;;  %24939 = vst [vmem:[#allocation240_spill] sm:$0xff] %v20486_v42 }
 0x37c   : > { %24930 = vst [vmem:[#allocation231_spill] sm:$0xff] %v20456_v45  ;;  %v1650_v16 = vld [vmem:[#allocation2 + $0xa2] sm:$0xff]  ;;  %24934 = vst [vmem:[#allocation235_spill] sm:$0xff] %v20470_v18  ;;  %v20495_v52 = vld [vmem:[#allocation2 + $0x330] sm:$0xff] }
 0x37d   : > { %v20466_v6 = vld [vmem:[#allocation2 + $0x160] sm:$0xff]  ;;  %24941 = vst [vmem:[#allocation242_spill] sm:$0xff] %v20495_v52  ;;  %v20497_v13 = vld [vmem:[#allocation2 + $0x1f0] sm:$0xff] }
 0x37e   : > { %16062 = vmatpush3.bf16.xpose.msk.msra.mxu0 %vm19542_vm4, %v16060_v37  ;;  %24933 = vst [vmem:[#allocation234_spill] sm:$0xff] %v20466_v6  ;;  %v20472_v37 = vld [vmem:[#allocation2 + $0x2c0] sm:$0xff]  ;;  %v18578_v6 = vld [vmem:[#allocation2 + $0xb2] sm:$0xff]  ;;  %24942 = vst [vmem:[#allocation243_spill] sm:$0xff] %v20497_v13 }
 0x37f   : > { %16065 = vmatprep.subr.msk.bf16.mxu0 %vm19542_vm4, %v16063_v19  ;;  %24935 = vst [vmem:[#allocation236_spill] sm:$0xff] %v20472_v37  ;;  %v20474_v7 = vld [vmem:[#allocation2 + $0x180] sm:$0xff]  ;;  %v16066_v9 = vpack.c.bf16 %v18578_v6, %v1650_v16  ;;  %v18581_v37 = vld [vmem:[#allocation2 + $0x212] sm:$0xff] }
 0x380   : > { %24936 = vst [vmem:[#allocation237_spill] sm:$0xff] %v20474_v7  ;;  %v877_v19 = vld [vmem:[#allocation2 + $0x320] sm:$0xff]  ;;  %v20502_v11 = vld [vmem:[#allocation2 + $0x350] sm:$0xff] }
 0x381   : > { %16014 = vmatpush3.bf16.xpose.msk.msra.mxu1 %vm19542_vm4, %v16012_v29  ;;  %v20480_v26 = vld [vmem:[#allocation2 + $0x2e0] sm:$0xff]  ;;  %v16018_v49 = vpack.c.bf16 %v19700_v28, %v877_v19  ;;  %24944 = vst [vmem:[#allocation245_spill] sm:$0xff] %v20502_v11  ;;  %v20512_v16 = vld [vmem:[#allocation2 + $0x210] sm:$0xff] }
 0x382   : > { %16017 = vmatprep.subr.msk.bf16.mxu1 %vm19542_vm4, %v16015_v24  ;;  %24938 = vst [vmem:[#allocation239_spill] sm:$0xff] %v20480_v26  ;;  %v20488_v45 = vld [vmem:[#allocation2 + $0x1a0] sm:$0xff]  ;;  %24946 = vst [vmem:[#allocation247_spill] sm:$0xff] %v20512_v16  ;;  %v20532_v24 = vld [vmem:[#allocation2 + $0x230] sm:$0xff] }
 0x383   : > { %24940 = vst [vmem:[#allocation241_spill] sm:$0xff] %v20488_v45  ;;  %v20499_v21 = vld [vmem:[#allocation2 + $0x340] sm:$0xff]  ;;  %24951 = vst [vmem:[#allocation252_spill] sm:$0xff] %v20532_v24  ;;  %v18588_v45 = vld [vmem:[#allocation2 + $0x232] sm:$0xff] }
 0x384   : > { %24943 = vst [vmem:[#allocation244_spill] sm:$0xff] %v20499_v21  ;;  %v18579_v29 = vld [vmem:[#allocation2 + $0x480] sm:$0xff]  ;;  %v18585_v21 = vld [vmem:[#allocation2 + $0xd2] sm:$0xff] }
 0x385   : > { %v16021_v18 = vpack.c.bf16 %v19736_v34, %v18579_v29  ;;  %v18580_v7 = vld [vmem:[#allocation2 + $0x202] sm:$0xff]  ;;  %v20557_v19 = vld [vmem:[#allocation2 + $0x470] sm:$0xff] }
 0x386   : > { %v16069_v5 = vpack.c.bf16 %v18581_v37, %v18580_v7  ;;  %v20504_v32 = vld [vmem:[#allocation2 + $0x200] sm:$0xff]  ;;  %16068 = vmatpush3.bf16.xpose.msk.msra.mxu0 %vm19542_vm4, %v16066_v9  ;;  %v20524_v37 = vld [vmem:[#allocation2 + $0x370] sm:$0xff]  ;;  %24959 = vst [vmem:[#allocation260_spill] sm:$0xff] %v20557_v19 }
 0x387   : > { %24945 = vst [vmem:[#allocation246_spill] sm:$0xff] %v20504_v32  ;;  %v20514_v6 = vld [vmem:[#allocation2 + $0x360] sm:$0xff]  ;;  %24949 = vst [vmem:[#allocation250_spill] sm:$0xff] %v20524_v37  ;;  %v20540_v7 = vld [vmem:[#allocation2 + $0x3d0] sm:$0xff] }
 0x388   : > { %24947 = vst [vmem:[#allocation248_spill] sm:$0xff] %v20514_v6  ;;  %v20516_v29 = vld [vmem:[#allocation2 + $0x220] sm:$0xff]  ;;  %16071 = vmatprep.subr.msk.bf16.mxu0 %vm19542_vm4, %v16069_v5  ;;  %24953 = vst [vmem:[#allocation254_spill] sm:$0xff] %v20540_v7  ;;  %v20544_v32 = vld [vmem:[#allocation2 + $0x3f0] sm:$0xff] }
 0x389   : > { %16020 = vmatpush3.bf16.xpose.msk.msra.mxu1 %vm19542_vm4, %v16018_v49  ;;  %24948 = vst [vmem:[#allocation249_spill] sm:$0xff] %v20516_v29  ;;  %v20526_v49 = vld [vmem:[#allocation2 + $0x380] sm:$0xff]  ;;  %24955 = vst [vmem:[#allocation256_spill] sm:$0xff] %v20544_v32  ;;  %v18583_v29 = vld [vmem:[#allocation2 + $0x350] sm:$0xff] }
 0x38a   : > { %16023 = vmatprep.subr.msk.bf16.mxu1 %vm19542_vm4, %v16021_v18  ;;  %24950 = vst [vmem:[#allocation251_spill] sm:$0xff] %v20526_v49  ;;  %v20534_v52 = vld [vmem:[#allocation2 + $0x240] sm:$0xff]  ;;  %v20550_v37 = vld [vmem:[#allocation2 + $0x410] sm:$0xff] }
 0x38b   : > { %24952 = vst [vmem:[#allocation253_spill] sm:$0xff] %v20534_v52  ;;  %v20542_v13 = vld [vmem:[#allocation2 + $0x3e0] sm:$0xff]  ;;  %24957 = vst [vmem:[#allocation258_spill] sm:$0xff] %v20550_v37  ;;  %v20593_v37 = vld [vmem:[#allocation2 + $0x152] sm:$0xff] }
 0x38c   : > { %24954 = vst [vmem:[#allocation255_spill] sm:$0xff] %v20542_v13  ;;  %v20546_v9 = vld [vmem:[#allocation2 + $0x400] sm:$0xff]  ;;  %24968 = vst [vmem:[#allocation269_spill] sm:$0xff] %v20593_v37  ;;  %v20678_v36 = vld [vmem:[#allocation2 + $0x3d2] sm:$0xff] }
 0x38d   : > { %24956 = vst [vmem:[#allocation257_spill] sm:$0xff] %v20546_v9  ;;  %v18582_v16 = vld [vmem:[#allocation2 + $0x340] sm:$0xff]  ;;  %v20602_v9 = vld [vmem:[#allocation2 + $0x172] sm:$0xff]  ;;  %24989 = vst [vmem:[#allocation290_spill] sm:$0xff] %v20678_v36 }
 0x38e   : > { %v16024_v11 = vpack.c.bf16 %v18583_v29, %v18582_v16  ;;  %v18584_v6 = vld [vmem:[#allocation2 + $0xc2] sm:$0xff]  ;;  %v20581_v29 = vld [vmem:[#allocation2 + $0x4b0] sm:$0xff]  ;;  %24971 = vst [vmem:[#allocation272_spill] sm:$0xff] %v20602_v9  ;;  %v20739_v36 = vld [vmem:[%s24349_s3 + $0x18] sm:$0xff] }
 0x38f   : > { %v16072_v18 = vpack.c.bf16 %v18585_v21, %v18584_v6  ;;  %v20552_v5 = vld [vmem:[#allocation2 + $0x420] sm:$0xff]  ;;  %24964 = vst [vmem:[#allocation265_spill] sm:$0xff] %v20581_v29  ;;  %v20587_v16 = vld [vmem:[#allocation2 + $0x252] sm:$0xff] }
 0x390   : > { %24958 = vst [vmem:[#allocation259_spill] sm:$0xff] %v20552_v5  ;;  %v18586_v52 = vld [vmem:[#allocation2 + $0x4a0] sm:$0xff]  ;;  %24966 = vst [vmem:[#allocation267_spill] sm:$0xff] %v20587_v16  ;;  %v18591_v5 = vld [vmem:[#allocation2 + $0xf2] sm:$0xff] }
 0x391   : > { %v16027_v49 = vpack.c.bf16 %v19780_v33, %v18586_v52  ;;  %v18587_v42 = vld [vmem:[#allocation2 + $0x222] sm:$0xff]  ;;  %16026 = vmatpush3.bf16.xpose.msk.msra.mxu1 %vm19542_vm4, %v16024_v11  ;;  %16074 = vmatpush3.bf16.xpose.msk.msra.mxu0 %vm19542_vm4, %v16072_v18  ;;  %v20583_v18 = vld [vmem:[#allocation2 + $0x292] sm:$0xff] }
 0x392   : > { %v16075_v26 = vpack.c.bf16 %v18588_v45, %v18587_v42  ;;  %v20565_v21 = vld [vmem:[#allocation2 + $0x480] sm:$0xff]  ;;  %v20571_v42 = vld [vmem:[#allocation2 + $0x490] sm:$0xff]  ;;  %24965 = vst [vmem:[#allocation266_spill] sm:$0xff] %v20583_v18 }
 0x393   : > { %24960 = vst [vmem:[#allocation261_spill] sm:$0xff] %v20565_v21  ;;  %16029 = vmatprep.subr.msk.bf16.mxu1 %vm19542_vm4, %v16027_v49  ;;  %24961 = vst [vmem:[#allocation262_spill] sm:$0xff] %v20571_v42  ;;  %v20573_v52 = vld [vmem:[#allocation2 + $0x4a0] sm:$0xff]  ;;  %v20585_v49 = vld [vmem:[#allocation2 + $0x4d0] sm:$0xff] }
 0x394   : > { %16077 = vmatprep.subr.msk.bf16.mxu0 %vm19542_vm4, %v16075_v26  ;;  %24962 = vst [vmem:[#allocation263_spill] sm:$0xff] %v20573_v52  ;;  %v20577_v6 = vld [vmem:[#allocation2 + $0x4c0] sm:$0xff]  ;;  %v20595_v45 = vld [vmem:[#allocation2 + $0x2b2] sm:$0xff] }
 0x395   : > { %24963 = vst [vmem:[#allocation264_spill] sm:$0xff] %v20577_v6  ;;  %v20589_v26 = vld [vmem:[#allocation2 + $0x2a2] sm:$0xff]  ;;  %24969 = vst [vmem:[#allocation270_spill] sm:$0xff] %v20595_v45  ;;  %v16033_v6 = vpack.c.bf16 %v20585_v49, %v19790_v12  ;;  %v20613_v18 = vld [vmem:[#allocation2 + $0x2d2] sm:$0xff] }
 0x396   : > { %24967 = vst [vmem:[#allocation268_spill] sm:$0xff] %v20589_v26  ;;  %v20597_v19 = vld [vmem:[#allocation2 + $0x162] sm:$0xff]  ;;  %24974 = vst [vmem:[#allocation275_spill] sm:$0xff] %v20613_v18  ;;  %v20625_v29 = vld [vmem:[#allocation2 + $0x192] sm:$0xff] }
 0x397   : > { %24970 = vst [vmem:[#allocation271_spill] sm:$0xff] %v20597_v19  ;;  %v18589_v42 = vld [vmem:[#allocation2 + $0x360] sm:$0xff]  ;;  %24976 = vst [vmem:[#allocation277_spill] sm:$0xff] %v20625_v29  ;;  %v20645_v45 = vld [vmem:[#allocation2 + $0x112] sm:$0xff] }
 0x398   : > { %v16030_v52 = vpack.c.bf16 %v19782_v38, %v18589_v42  ;;  %v18590_v21 = vld [vmem:[#allocation2 + $0xe2] sm:$0xff]  ;;  %v20653_v18 = vld [vmem:[#allocation2 + $0x212] sm:$0xff] }
 0x399   : > { %v16078_v32 = vpack.c.bf16 %v18591_v5, %v18590_v21  ;;  %v20604_v7 = vld [vmem:[#allocation2 + $0x2c2] sm:$0xff]  ;;  %v20637_v5 = vld [vmem:[#allocation2 + $0x332] sm:$0xff]  ;;  %24983 = vst [vmem:[#allocation284_spill] sm:$0xff] %v20653_v18 }
 0x39a   : > { %24972 = vst [vmem:[#allocation273_spill] sm:$0xff] %v20604_v7  ;;  %v20606_v24 = vld [vmem:[#allocation2 + $0x182] sm:$0xff]  ;;  %16032 = vmatpush3.bf16.xpose.msk.msra.mxu1 %vm19542_vm4, %v16030_v52  ;;  %24978 = vst [vmem:[#allocation279_spill] sm:$0xff] %v20637_v5  ;;  %v20688_v19 = vld [vmem:[#allocation2 + $0x3f2] sm:$0xff] }
 0x39b   : > { %24973 = vst [vmem:[#allocation274_spill] sm:$0xff] %v20606_v24  ;;  %v18592_v13 = vld [vmem:[#allocation2 + $0x242] sm:$0xff]  ;;  %16080 = vmatpush3.bf16.xpose.msk.msra.mxu0 %vm19542_vm4, %v16078_v32  ;;  %16035 = vmatprep.subr.msk.bf16.mxu1 %vm19542_vm4, %v16033_v6  ;;  %v20639_v32 = vld [vmem:[#allocation2 + $0x1f2] sm:$0xff]  ;;  %24991 = vst [vmem:[#allocation292_spill] sm:$0xff] %v20688_v19 }
 0x39c   : > { %v16081_v11 = vpack.c.bf16 %v20587_v16, %v18592_v13  ;;  %v20615_v42 = vld [vmem:[#allocation2 + $0x2e2] sm:$0xff]  ;;  %24979 = vst [vmem:[#allocation280_spill] sm:$0xff] %v20639_v32  ;;  %v20643_v24 = vld [vmem:[#allocation2 + $0x390] sm:$0xff] }
 0x39d   : > { %24975 = vst [vmem:[#allocation276_spill] sm:$0xff] %v20615_v42  ;;  %v20627_v37 = vld [vmem:[#allocation2 + $0x1a2] sm:$0xff]  ;;  %v20669_v16 = vld [vmem:[#allocation2 + $0x232] sm:$0xff] }
 0x39e   : > { %24977 = vst [vmem:[#allocation278_spill] sm:$0xff] %v20627_v37  ;;  %16083 = vmatprep.subr.msk.bf16.mxu0 %vm19542_vm4, %v16081_v11  ;;  %v1690_v52 = vld [vmem:[#allocation2 + $0x3c2] sm:$0xff]  ;;  %v20651_v11 = vld [vmem:[#allocation2 + $0x352] sm:$0xff]  ;;  %24987 = vst [vmem:[#allocation288_spill] sm:$0xff] %v20669_v16 }
 0x39f   : > { %v20641_v9 = vld [vmem:[#allocation2 + $0x342] sm:$0xff]  ;;  %24982 = vst [vmem:[#allocation283_spill] sm:$0xff] %v20651_v11  ;;  %v20659_v37 = vld [vmem:[#allocation2 + $0x372] sm:$0xff] }
 0x3a0   : > { %24980 = vst [vmem:[#allocation281_spill] sm:$0xff] %v20641_v9  ;;  %v20647_v13 = vld [vmem:[#allocation2 + $0x202] sm:$0xff]  ;;  %24984 = vst [vmem:[#allocation285_spill] sm:$0xff] %v20659_v37  ;;  %v20714_v37 = vld [vmem:[#allocation2 + $0x492] sm:$0xff] }
 0x3a1   : > { %24981 = vst [vmem:[#allocation282_spill] sm:$0xff] %v20647_v13  ;;  %v20655_v21 = vld [vmem:[#allocation2 + $0x362] sm:$0xff]  ;;  %v16087_v13 = vpack.c.bf16 %v19875_v60, %v1690_v52  ;;  %v24993_v52 = vpack.c.bf16 %v19558_v41, %v19556_v30  ;;  %v18595_v30 = vld [vmem:[#allocation2 + $0x10] sm:$0xff]  ;;  %24998 = vst [vmem:[#allocation298_spill] sm:$0xff] %v20714_v37 }
 0x3a2   : > { %v20661_v42 = vld [vmem:[#allocation2 + $0x222] sm:$0xff]  ;;  %v16138_v41 = vpack.c.bf16 %v19892_v63, %v18595_v30  ;;  %v20751_v63 = vld [vmem:[#allocation2 + $0x171] sm:$0xff] }
 0x3a3   : > { %24985 = vst [vmem:[#allocation286_spill] sm:$0xff] %v20661_v42  ;;  %v20663_v7 = vld [vmem:[#allocation2 + $0x382] sm:$0xff]  ;;  %25005 = vst [vmem:[#allocation305_spill] sm:$0xff] %v20751_v63  ;;  %v18598_v63 = vld [vmem:[#allocation2 + $0x30] sm:$0xff] }
 0x3a4   : > { %24986 = vst [vmem:[#allocation287_spill] sm:$0xff] %v20663_v7  ;;  %v18593_v26 = vld [vmem:[#allocation2 + $0x380] sm:$0xff]  ;;  %v22040_v7 = vld [vmem:[%s24349_s3 + $0x58] sm:$0xff] }
 0x3a5   : > { %v16036_v6 = vpack.c.bf16 %v20643_v24, %v18593_v26  ;;  %v18594_v5 = vld [vmem:[#allocation2 + $0x102] sm:$0xff]  ;;  %v20703_v26 = vld [vmem:[#allocation2 + $0x412] sm:$0xff] }
 0x3a6   : > { %v16084_v9 = vpack.c.bf16 %v20645_v45, %v18594_v5  ;;  %v20671_v55 = vld [vmem:[#allocation2 + $0x242] sm:$0xff]  ;;  %24994 = vst [vmem:[#allocation294_spill] sm:$0xff] %v20703_v26  ;;  %v22160_v42 = vld [vmem:[#allocation2 + $0x472] sm:$0xff] }
 0x3a7   : > { %24988 = vst [vmem:[#allocation289_spill] sm:$0xff] %v20671_v55  ;;  %16038 = vmatpush3.bf16.xpose.msk.msra.mxu1 %vm19542_vm4, %v16036_v6  ;;  %v20686_v5 = vld [vmem:[#allocation2 + $0x3e2] sm:$0xff]  ;;  %v20707_v55 = vld [vmem:[#allocation2 + $0x472] sm:$0xff] }
 0x3a8   : > { %16086 = vmatpush3.bf16.xpose.msk.msra.mxu0 %vm19542_vm4, %v16084_v9  ;;  %24990 = vst [vmem:[#allocation291_spill] sm:$0xff] %v20686_v5  ;;  %v20690_v29 = vld [vmem:[#allocation2 + $0x402] sm:$0xff]  ;;  %16089 = vmatprep.subr.msk.bf16.mxu1 %vm19542_vm4, %v16087_v13  ;;  %24996 = vst [vmem:[#allocation296_spill] sm:$0xff] %v20707_v55  ;;  %v20718_v9 = vld [vmem:[#allocation2 + $0x4b2] sm:$0xff] }
 0x3a9   : > { %24992 = vst [vmem:[#allocation293_spill] sm:$0xff] %v20690_v29  ;;  %16137 = vmatprep.subr.msk.bf16.mxu0 %vm19542_vm4, %v24993_v52  ;;  %v20705_v32 = vld [vmem:[#allocation2 + $0x422] sm:$0xff]  ;;  %25000 = vst [vmem:[#allocation300_spill] sm:$0xff] %v20718_v9  ;;  %v18596_v13 = vld [vmem:[#allocation2 + $0x292] sm:$0xff]  ;;  %v16093_v29 = vpack.c.bf16 %v19944_v53, %v19885_v50 }
 0x3aa   : > { %24995 = vst [vmem:[#allocation295_spill] sm:$0xff] %v20705_v32  ;;  %v1674_v16 = vld [vmem:[#allocation2 + $0x282] sm:$0xff]  ;;  %v20753_v9 = vld [vmem:[#allocation2 + $0x2d1] sm:$0xff] }
 0x3ab   : > { %v20712_v52 = vld [vmem:[#allocation2 + $0x482] sm:$0xff]  ;;  %v16090_v26 = vpack.c.bf16 %v18596_v13, %v1674_v16  ;;  %v20743_v13 = vld [vmem:[#allocation2 + $0x2b1] sm:$0xff]  ;;  %25006 = vst [vmem:[#allocation306_spill] sm:$0xff] %v20753_v9 }
 0x3ac   : > { %24997 = vst [vmem:[#allocation297_spill] sm:$0xff] %v20712_v52  ;;  %v20716_v6 = vld [vmem:[#allocation2 + $0x4a2] sm:$0xff]  ;;  %25003 = vst [vmem:[#allocation303_spill] sm:$0xff] %v20743_v13  ;;  %v20795_v32 = vld [vmem:[#allocation2 + $0x351] sm:$0xff] }
 0x3ad   : > { %24999 = vst [vmem:[#allocation299_spill] sm:$0xff] %v20716_v6  ;;  %v20720_v19 = vld [vmem:[#allocation2 + $0x4c2] sm:$0xff]  ;;  %25017 = vst [vmem:[#allocation316_spill] sm:$0xff] %v20795_v32  ;;  %v20801_v9 = vld [vmem:[#allocation2 + $0x211] sm:$0xff] }
 0x3ae   : > { %25001 = vst [vmem:[#allocation301_spill] sm:$0xff] %v20720_v19  ;;  %v18597_v30 = vld [vmem:[%s24349_s3] sm:$0xff]  ;;  %v25007_v19 = vpack.c.bf16 %v19598_v31, %v19588_v27  ;;  %25019 = vst [vmem:[#allocation318_spill] sm:$0xff] %v20801_v9  ;;  %v20803_v6 = vld [vmem:[#allocation2 + $0x371] sm:$0xff] }
 0x3af   : > { %14146 = vmatmul.mubr.msk.f32.vlgmr.msra.gmra.mrb[2].mxu1 %vm442_vm2, %v18597_v30  ;;  %14180 = vmatmul.mubr.msk.f32.vlgmr.msra.gmra.mrb[2].mxu0 %vm442_vm2, %v20340_v39  ;;  %v20741_v16 = vld [vmem:[#allocation2 + $0x2a1] sm:$0xff]  ;;  %25020 = vst [vmem:[#allocation319_spill] sm:$0xff] %v20803_v6  ;;  %v20819_v5 = vld [vmem:[#allocation2 + $0x391] sm:$0xff] }
 0x3b0   : > { %25002 = vst [vmem:[#allocation302_spill] sm:$0xff] %v20741_v16  ;;  %16092 = vmatpush3.bf16.xpose.msk.msra.mxu1 %vm19542_vm4, %v16090_v26  ;;  %16140 = vmatpush3.bf16.xpose.msk.msra.mxu0 %vm19542_vm4, %v16138_v41  ;;  %v20749_v30 = vld [vmem:[#allocation2 + $0x161] sm:$0xff]  ;;  %v20764_v26 = vld [vmem:[#allocation2 + $0x191] sm:$0xff]  ;;  %v16144_v16 = vpack.c.bf16 %v19951_v2, %v18598_v63  ;;  %25024 = vst [vmem:[#allocation323_spill] sm:$0xff] %v20819_v5 }
 0x3b1   : > { %25004 = vst [vmem:[#allocation304_spill] sm:$0xff] %v20749_v30  ;;  %16095 = vmatprep.subr.msk.bf16.mxu1 %vm19542_vm4, %v16093_v29  ;;  %16143 = vmatprep.subr.msk.bf16.mxu0 %vm19542_vm4, %v25007_v19  ;;  %v20762_v37 = vld [vmem:[#allocation2 + $0x2c1] sm:$0xff]  ;;  %25009 = vst [vmem:[#allocation308_spill] sm:$0xff] %v20764_v26  ;;  %v20778_v19 = vld [vmem:[#allocation2 + $0x2f1] sm:$0xff]  ;;  %v25028_v30 = vpack.c.bf16 %v19642_v51, %v19632_v35 }
 0x3b2   : > { %25008 = vst [vmem:[#allocation307_spill] sm:$0xff] %v20762_v37  ;;  %14213 = vmatprep.mubr.msk.f32.mxu1 %vm442_vm2, %v20340_v39  ;;  %14247 = vmatprep.mubr.msk.f32.mxu0 %vm442_vm2, %v20739_v36  ;;  %v20774_v27 = vld [vmem:[#allocation2 + $0x181] sm:$0xff]  ;;  %25012 = vst [vmem:[#allocation311_spill] sm:$0xff] %v20778_v19  ;;  %v20784_v41 = vld [vmem:[#allocation2 + $0x1b1] sm:$0xff] }
 0x3b3   : > { %25010 = vst [vmem:[#allocation309_spill] sm:$0xff] %v20774_v27  ;;  %v20776_v31 = vld [vmem:[#allocation2 + $0x2e1] sm:$0xff]  ;;  %25014 = vst [vmem:[#allocation313_spill] sm:$0xff] %v20784_v41  ;;  %v18600_v2 = vld [vmem:[#allocation2 + $0x2b2] sm:$0xff] }
 0x3b4   : > { %25011 = vst [vmem:[#allocation310_spill] sm:$0xff] %v20776_v31  ;;  %v20782_v55 = vld [vmem:[#allocation2 + $0x1a1] sm:$0xff]  ;;  %v20809_v27 = vld [vmem:[#allocation2 + $0x231] sm:$0xff] }
 0x3b5   : > { %25013 = vst [vmem:[#allocation312_spill] sm:$0xff] %v20782_v55  ;;  %v20791_v13 = vld [vmem:[#allocation2 + $0x341] sm:$0xff]  ;;  %25022 = vst [vmem:[#allocation321_spill] sm:$0xff] %v20809_v27  ;;  %v16099_v55 = vpack.c.bf16 %v19992_v17, %v19946_v58  ;;  %v20829_v26 = vld [vmem:[#allocation2 + $0x251] sm:$0xff] }
 0x3b6   : > { %25015 = vst [vmem:[#allocation314_spill] sm:$0xff] %v20791_v13  ;;  %v20793_v52 = vld [vmem:[#allocation2 + $0x201] sm:$0xff]  ;;  %25026 = vst [vmem:[#allocation325_spill] sm:$0xff] %v20829_v26  ;;  %v20867_v9 = vld [vmem:[#allocation2 + $0x491] sm:$0xff] }
 0x3b7   : > { %25016 = vst [vmem:[#allocation315_spill] sm:$0xff] %v20793_v52  ;;  %v20799_v37 = vld [vmem:[#allocation2 + $0x361] sm:$0xff]  ;;  %25035 = vst [vmem:[#allocation333_spill] sm:$0xff] %v20867_v9  ;;  %v20871_v35 = vld [vmem:[#allocation2 + $0x4b1] sm:$0xff] }
 0x3b8   : > { %25018 = vst [vmem:[#allocation317_spill] sm:$0xff] %v20799_v37  ;;  %v18599_v31 = vld [vmem:[#allocation2 + $0x2a2] sm:$0xff]  ;;  %16146 = vmatpush3.bf16.xpose.msk.msra.mxu0 %vm19542_vm4, %v16144_v16  ;;  %v20844_v16 = vld [vmem:[#allocation2 + $0x411] sm:$0xff]  ;;  %25037 = vst [vmem:[#allocation335_spill] sm:$0xff] %v20871_v35 }
 0x3b9   : > { %v16096_v63 = vpack.c.bf16 %v18600_v2, %v18599_v31  ;;  %v20807_v19 = vld [vmem:[#allocation2 + $0x221] sm:$0xff]  ;;  %16149 = vmatprep.subr.msk.bf16.mxu0 %vm19542_vm4, %v25028_v30  ;;  %v20840_v31 = vld [vmem:[#allocation2 + $0x3f1] sm:$0xff]  ;;  %25031 = vst [vmem:[#allocation329_spill] sm:$0xff] %v20844_v16 }
 0x3ba   : > { %25021 = vst [vmem:[#allocation320_spill] sm:$0xff] %v20807_v19  ;;  %v20817_v41 = vld [vmem:[#allocation2 + $0x381] sm:$0xff]  ;;  %25029 = vst [vmem:[#allocation327_spill] sm:$0xff] %v20840_v31  ;;  %v20850_v37 = vld [vmem:[#allocation2 + $0x431] sm:$0xff] }
 0x3bb   : > { %25023 = vst [vmem:[#allocation322_spill] sm:$0xff] %v20817_v41  ;;  %16098 = vmatpush3.bf16.xpose.msk.msra.mxu1 %vm19542_vm4, %v16096_v63  ;;  %v20827_v2 = vld [vmem:[#allocation2 + $0x241] sm:$0xff]  ;;  %25033 = vst [vmem:[#allocation331_spill] sm:$0xff] %v20850_v37  ;;  %v20858_v30 = vld [vmem:[#allocation2 + $0x432] sm:$0xff] }
 0x3bc   : > { %25025 = vst [vmem:[#allocation324_spill] sm:$0xff] %v20827_v2  ;;  %v20831_v29 = vld [vmem:[#allocation2 + $0x3e1] sm:$0xff]  ;;  %16101 = vmatprep.subr.msk.bf16.mxu1 %vm19542_vm4, %v16099_v55  ;;  %v18601_v41 = vld [vmem:[#allocation2 + $0x50] sm:$0xff] }
 0x3bd   : > { %25027 = vst [vmem:[#allocation326_spill] sm:$0xff] %v20831_v29  ;;  %v20842_v63 = vld [vmem:[#allocation2 + $0x401] sm:$0xff]  ;;  %v16150_v5 = vpack.c.bf16 %v19978_v47, %v18601_v41  ;;  %v18603_v29 = vld [vmem:[#allocation2 + $0x2d2] sm:$0xff]  ;;  %v16105_v47 = vpack.c.bf16 %v20858_v30, %v19994_v4 }
 0x3be   : > { %25030 = vst [vmem:[#allocation328_spill] sm:$0xff] %v20842_v63  ;;  %v20848_v27 = vld [vmem:[#allocation2 + $0x421] sm:$0xff]  ;;  %v20877_v2 = vld [vmem:[#allocation2 + $0x4d1] sm:$0xff] }
 0x3bf   : > { %25032 = vst [vmem:[#allocation330_spill] sm:$0xff] %v20848_v27  ;;  %v20860_v6 = vld [vmem:[#allocation2 + $0x1c0] sm:$0xff]  ;;  %25038 = vst [vmem:[#allocation336_spill] sm:$0xff] %v20877_v2  ;;  %v18604_v41 = vld [vmem:[#allocation2 + $0x1b0] sm:$0xff] }
 0x3c0   : > { %v20862_v52 = vld [vmem:[#allocation2 + $0x481] sm:$0xff]  ;;  %v16153_v19 = vpack.c.bf16 %v20860_v6, %v18604_v41  ;;  %16152 = vmatpush3.bf16.xpose.msk.msra.mxu0 %vm19542_vm4, %v16150_v5  ;;  %v20896_v41 = vld [vmem:[#allocation2 + $0x2f2] sm:$0xff] }
 0x3c1   : > { %25034 = vst [vmem:[#allocation332_spill] sm:$0xff] %v20862_v52  ;;  %v20869_v55 = vld [vmem:[#allocation2 + $0x4a1] sm:$0xff]  ;;  %v18606_v35 = vld [vmem:[#allocation2 + $0x472] sm:$0xff] }
 0x3c2   : > { %25036 = vst [vmem:[#allocation334_spill] sm:$0xff] %v20869_v55  ;;  %v18602_v16 = vld [vmem:[#allocation2 + $0x2c2] sm:$0xff]  ;;  %16155 = vmatprep.subr.msk.bf16.mxu0 %vm19542_vm4, %v16153_v19  ;;  %v25040_v19 = vpack.c.bf16 %v19424_v62, %v19418_v57  ;;  %v25042_v57 = vpack.c.bf16 %v19462_v20, %v19454_v14  ;;  %v22005_v2 = vld [vmem:[#allocation2 + $0x1b1] sm:$0xff] }
 0x3c3   : > { %v16102_v31 = vpack.c.bf16 %v18603_v29, %v18602_v16  ;;  %v20886_v51 = vld [vmem:[#allocation2 + $0x4c1] sm:$0xff] }
 0x3c4   : > { %25039 = vst [vmem:[#allocation337_spill] sm:$0xff] %v20886_v51  ;;  %v20892_v29 = vld [vmem:[#allocation2 + $0x80] sm:$0xff] }
 0x3c5   : > { %16104 = vmatpush3.bf16.xpose.msk.msra.mxu1 %vm19542_vm4, %v16102_v31  ;;  %v16156_v31 = vpack.c.bf16 %v20892_v29, %v20001_v48  ;;  %v1698_v63 = vld [vmem:[#allocation2 + $0x462] sm:$0xff] }
 0x3c6   : > { %16107 = vmatprep.subr.msk.bf16.mxu1 %vm19542_vm4, %v16105_v47  ;;  %v18605_v5 = vld [vmem:[#allocation2 + $0x2e2] sm:$0xff]  ;;  %v16111_v52 = vpack.c.bf16 %v18606_v35, %v1698_v63  ;;  %v18607_v47 = vld [vmem:[#allocation2 + $0x332] sm:$0xff] }
 0x3c7   : > { %v16108_v55 = vpack.c.bf16 %v20896_v41, %v18605_v5  ;;  %v1682_v48 = vld [vmem:[#allocation2 + $0x322] sm:$0xff]  ;;  %v18609_v63 = vld [vmem:[#allocation2 + $0x492] sm:$0xff] }
 0x3c8   : > { %16158 = vmatpush3.bf16.xpose.msk.msra.mxu0 %vm19542_vm4, %v16156_v31  ;;  %v16114_v5 = vpack.c.bf16 %v18607_v47, %v1682_v48  ;;  %v18608_v16 = vld [vmem:[#allocation2 + $0x482] sm:$0xff]  ;;  %v20940_v47 = vld [vmem:[#allocation2 + $0x4d2] sm:$0xff] }
 0x3c9   : > { %16161 = vmatprep.subr.msk.bf16.mxu0 %vm19542_vm4, %v25040_v19  ;;  %v16117_v35 = vpack.c.bf16 %v18609_v63, %v18608_v16  ;;  %v18610_v62 = vld [vmem:[#allocation2 + $0x342] sm:$0xff]  ;;  %v18613_v19 = vld [vmem:[#allocation2 + $0x4b2] sm:$0xff] }
 0x3ca   : > { %v18612_v31 = vld [vmem:[#allocation2 + $0x4a2] sm:$0xff] }
 0x3cb   : > { %v16123_v48 = vpack.c.bf16 %v18613_v19, %v18612_v31  ;;  %v25045_v14 = vld [vmem:[#allocation19_spill] sm:$0xff]  ;;  %v20958_v19 = vld [vmem:[#allocation2 + $0x392] sm:$0xff] }
 0x3cc   : > { %v18614_v63 = vld [vmem:[#allocation2 + $0x362] sm:$0xff] }
 0x3cd   : > { %16110 = vmatpush3.bf16.xpose.msk.msra.mxu1 %vm19542_vm4, %v16108_v55  ;;  %v25041_v55 = vpack.c.bf16 %v19430_v1, %v19422_v61  ;;  %v25043_v61 = vpack.c.bf16 %v19470_v23, %v19456_v15  ;;  %v25044_v1 = vld [vmem:[#allocation21_spill] sm:$0xff]  ;;  %v18616_v15 = vld [vmem:[#allocation2 + $0x4c2] sm:$0xff] }
 0x3ce   : > { %16113 = vmatprep.subr.msk.bf16.mxu1 %vm19542_vm4, %v16111_v52  ;;  %v18611_v52 = vld [vmem:[#allocation2 + $0x352] sm:$0xff]  ;;  %v25046_v20 = vpack.c.bf16 %v25044_v1, %v25045_v14  ;;  %v16129_v23 = vpack.c.bf16 %v20940_v47, %v18616_v15  ;;  %v5308_v26 = vld [vmem:[#allocation2 + $0xa2] sm:$0xff] }
 0x3cf   : > { %v16120_v16 = vpack.c.bf16 %v18611_v52, %v18610_v62  ;;  %v25048_v52 = vld [vmem:[#allocation24_spill] sm:$0xff]  ;;  %v2457_v15 = vld [vmem:[#allocation2 + $0x11] sm:$0xff] }
 0x3d0   : > { %16164 = vmatpush3.bf16.xpose.msk.msra.mxu0 %vm19542_vm4, %v25041_v55 }
 0x3d1   : > { %16167 = vmatprep.subr.msk.bf16.mxu0 %vm19542_vm4, %v25042_v57  ;;  %v25047_v57 = vld [vmem:[#allocation164_spill] sm:$0xff] }
 0x3d5   : > { %16116 = vmatpush3.bf16.xpose.msk.msra.mxu1 %vm19542_vm4, %v16114_v5  ;;  %v20942_v5 = vld [vmem:[#allocation2 + $0x260] sm:$0xff] }
 0x3d6   : > { %16119 = vmatprep.subr.msk.bf16.mxu1 %vm19542_vm4, %v16117_v35  ;;  %v18615_v35 = vld [vmem:[#allocation2 + $0x372] sm:$0xff]  ;;  %v16177_v62 = vpack.c.bf16 %v20942_v5, %v25047_v57 }
 0x3d7   : > { %v16126_v55 = vpack.c.bf16 %v18615_v35, %v18614_v63  ;;  %v18618_v63 = vld [vmem:[#allocation2 + $0x161] sm:$0xff]  ;;  %v18619_v57 = vld [vmem:[#allocation2 + $0x171] sm:$0xff] }
 0x3d8   : > { %16170 = vmatpush3.bf16.xpose.msk.msra.mxu0 %vm19542_vm4, %v25043_v61  ;;  %v18617_v61 = vld [vmem:[#allocation2 + $0x382] sm:$0xff] }
 0x3d9   : > { %16173 = vmatprep.subr.msk.bf16.mxu0 %vm19542_vm4, %v25046_v20  ;;  %v16132_v1 = vpack.c.bf16 %v20958_v19, %v18617_v61  ;;  %v2473_v20 = vld [vmem:[#allocation2 + $0x151] sm:$0xff] }
 0x3da   : > { %v16231_v35 = vpack.c.bf16 %v18618_v63, %v2473_v20  ;;  %v21002_v61 = vld [vmem:[#allocation2 + $0x31] sm:$0xff]  ;;  %v25056_v63 = vld [vmem:[#allocation44_spill] sm:$0xff] }
 0x3dd   : > { %16122 = vmatpush3.bf16.xpose.msk.msra.mxu1 %vm19542_vm4, %v16120_v16  ;;  %v25049_v16 = vld [vmem:[#allocation20_spill] sm:$0xff] }
 0x3de   : > { %16125 = vmatprep.subr.msk.bf16.mxu1 %vm19542_vm4, %v16123_v48  ;;  %v25050_v31 = vpack.c.bf16 %v25048_v52, %v25049_v16  ;;  %v20960_v48 = vld [vmem:[#allocation2 + $0x120] sm:$0xff]  ;;  %v25052_v52 = vld [vmem:[#allocation34_spill] sm:$0xff] }
 0x3df   : > { %v16180_v14 = vpack.c.bf16 %v20960_v48, %v20207_v43  ;;  %v20976_v43 = vld [vmem:[#allocation2 + $0x21] sm:$0xff] }
 0x3e0   : > { %16176 = vmatpush3.bf16.xpose.msk.msra.mxu0 %vm19542_vm4, %v25050_v31  ;;  %v25053_v16 = vld [vmem:[#allocation31_spill] sm:$0xff] }
 0x3e1   : > { %16179 = vmatprep.subr.msk.bf16.mxu0 %vm19542_vm4, %v16177_v62  ;;  %v18620_v62 = vld [vmem:[#allocation2 + $0x181] sm:$0xff]  ;;  %v25054_v31 = vpack.c.bf16 %v25052_v52, %v25053_v16 }
 0x3e2   : > { %v21034_v52 = vld [vmem:[#allocation2 + $0x1c1] sm:$0xff] }
 0x3e5   : > { %16128 = vmatpush3.bf16.xpose.msk.msra.mxu1 %vm19542_vm4, %v16126_v55  ;;  %v25051_v55 = vpack.c.bf16 %v19883_v0, %v19873_v46  ;;  %v16237_v0 = vpack.c.bf16 %v18620_v62, %v18619_v57  ;;  %v20986_v46 = vld [vmem:[%s24349_s3 + $0x20] sm:$0xff] }
 0x3e6   : > { %16131 = vmatprep.subr.msk.bf16.mxu1 %vm19542_vm4, %v16129_v23  ;;  %v16234_v23 = vpack.c.bf16 %v20976_v43, %v2457_v15  ;;  %v25059_v15 = vpack.c.bf16 %v19990_v59, %v19980_v44  ;;  %v21028_v57 = vld [vmem:[#allocation2 + $0x61] sm:$0xff]  ;;  %v18623_v59 = vld [vmem:[#allocation2 + $0x1b1] sm:$0xff] }
 0x3e7   : > { %v16249_v16 = vpack.c.bf16 %v21034_v52, %v18623_v59  ;;  %v2465_v59 = vld [vmem:[#allocation2 + $0xb1] sm:$0xff] }
 0x3e8   : > { %16182 = vmatpush3.bf16.xpose.msk.msra.mxu0 %vm19542_vm4, %v16180_v14 }
 0x3e9   : > { %16233 = vmatprep.subr.msk.bf16.mxu0 %vm19542_vm4, %v16231_v35  ;;  %v25057_v35 = vld [vmem:[#allocation41_spill] sm:$0xff] }
 0x3ed   : > { %16134 = vmatpush3.bf16.xpose.msk.msra.mxu1 %vm19542_vm4, %v16132_v1  ;;  %v21004_v1 = vld [vmem:[#allocation2 + $0x41] sm:$0xff] }
 0x3ee   : > { %16185 = vmatprep.subr.msk.bf16.mxu1 %vm19542_vm4, %v25051_v55  ;;  %v16240_v14 = vpack.c.bf16 %v21004_v1, %v21002_v61  ;;  %v25058_v55 = vpack.c.bf16 %v25056_v63, %v25057_v35  ;;  %v2481_v63 = vld [vmem:[#allocation2 + $0x1f1] sm:$0xff] }
 0x3ef   : > { %14248 = vmatmul.mubr.msk.f32.vlgmr.msra.gmra.mrb[2].mxu0 %vm442_vm2, %v20739_v36 }
 0x3f0   : > { %16236 = vmatpush3.bf16.xpose.msk.msra.mxu0 %vm19542_vm4, %v16234_v23  ;;  %14315 = vmatprep.mubr.msk.f32.mxu0 %vm442_vm2, %v20986_v46  ;;  %v21026_v23 = vld [vmem:[#allocation2 + $0x51] sm:$0xff] }
 0x3f1   : > { %16239 = vmatprep.subr.msk.bf16.mxu0 %vm19542_vm4, %v16237_v0  ;;  %v16246_v62 = vpack.c.bf16 %v21028_v57, %v21026_v23  ;;  %v21032_v0 = vld [vmem:[#allocation2 + $0x440] sm:$0xff] }
 0x3f2   : > { %v16201_v44 = vpack.c.bf16 %v21032_v0, %v20409_v8  ;;  %v21052_v8 = vld [vmem:[#allocation2 + $0x81] sm:$0xff] }
 0x3f4   : > { %14214 = vmatmul.mubr.msk.f32.vlgmr.msra.gmra.mrb[2].mxu1 %vm442_vm2, %v20340_v39  ;;  %v25055_v39 = vpack.c.bf16 %v19942_v22, %v19930_v56  ;;  %v18621_v22 = vld [vmem:[#allocation2 + $0x191] sm:$0xff]  ;;  %v18622_v56 = vld [vmem:[#allocation2 + $0x1a1] sm:$0xff] }
 0x3f5   : > { %16188 = vmatpush3.bf16.xpose.msk.msra.mxu1 %vm19542_vm4, %v25054_v31  ;;  %14281 = vmatprep.mubr.msk.f32.mxu1 %vm442_vm2, %v20739_v36  ;;  %v16243_v20 = vpack.c.bf16 %v18622_v56, %v18621_v22  ;;  %v25060_v31 = vld [vmem:[#allocation54_spill] sm:$0xff]  ;;  %v21054_v56 = vld [vmem:[#allocation2 + $0x300] sm:$0xff] }
 0x3f6   : > { %16191 = vmatprep.subr.msk.bf16.mxu1 %vm19542_vm4, %v25055_v39  ;;  %v25061_v39 = vld [vmem:[#allocation51_spill] sm:$0xff]  ;;  %v21050_v22 = vld [vmem:[#allocation2 + $0x71] sm:$0xff]  ;;  %v16204_v35 = vpack.c.bf16 %v21054_v56, %v20436_v25 }
 0x3f8   : > { %16242 = vmatpush3.bf16.xpose.msk.msra.mxu0 %vm19542_vm4, %v16240_v14  ;;  %v25062_v14 = vpack.c.bf16 %v25060_v31, %v25061_v39  ;;  %v18626_v31 = vld [vmem:[#allocation2 + $0x211] sm:$0xff]  ;;  %v18627_v39 = vld [vmem:[#allocation2 + $0x221] sm:$0xff] }
 0x3f9   : > { %16245 = vmatprep.subr.msk.bf16.mxu0 %vm19542_vm4, %v16243_v20  ;;  %v16252_v20 = vpack.c.bf16 %v21052_v8, %v21050_v22 }
 0x3fd   : > { %16194 = vmatpush3.bf16.xpose.msk.msra.mxu1 %vm19542_vm4, %v25058_v55  ;;  %v18624_v55 = vld [vmem:[#allocation2 + $0x201] sm:$0xff] }
 0x3fe   : > { %16197 = vmatprep.subr.msk.bf16.mxu1 %vm19542_vm4, %v25059_v15  ;;  %v16255_v15 = vpack.c.bf16 %v18624_v55, %v2481_v63  ;;  %v25065_v63 = vld [vmem:[#allocation65_spill] sm:$0xff] }
 0x3ff   : > { %v18628_v55 = vld [vmem:[#allocation2 + $0xd1] sm:$0xff] }
 0x400   : > { %16248 = vmatpush3.bf16.xpose.msk.msra.mxu0 %vm19542_vm4, %v16246_v62  ;;  %v25063_v62 = vld [vmem:[#allocation63_spill] sm:$0xff] }
 0x401   : > { %16251 = vmatprep.subr.msk.bf16.mxu0 %vm19542_vm4, %v16249_v16  ;;  %v18625_v16 = vld [vmem:[#allocation2 + $0xc1] sm:$0xff] }
 0x402   : > { %v16258_v25 = vpack.c.bf16 %v18625_v16, %v2465_v59  ;;  %v25069_v16 = vld [vmem:[#allocation76_spill] sm:$0xff] }
 0x405   : > { %16200 = vmatpush3.bf16.xpose.msk.msra.mxu1 %vm19542_vm4, %v25062_v14  ;;  %v16261_v14 = vpack.c.bf16 %v18627_v39, %v18626_v31  ;;  %v25070_v31 = vld [vmem:[#allocation72_spill] sm:$0xff] }
 0x406   : > { %16203 = vmatprep.subr.msk.bf16.mxu1 %vm19542_vm4, %v16201_v44  ;;  %v25064_v44 = vpack.c.bf16 %v25063_v62, %v19692_v10  ;;  %v25067_v10 = vld [vmem:[#allocation73_spill] sm:$0xff]  ;;  %v25071_v39 = vpack.c.bf16 %v25069_v16, %v25070_v31  ;;  %v18636_v16 = vld [vmem:[#allocation2 + $0x3e1] sm:$0xff] }
 0x408   : > { %16254 = vmatpush3.bf16.xpose.msk.msra.mxu0 %vm19542_vm4, %v16252_v20  ;;  %v25068_v20 = vpack.c.bf16 %v25067_v10, %v19736_v34  ;;  %v25072_v34 = vpack.c.bf16 %v19790_v12, %v19780_v33  ;;  %v25073_v33 = vld [vmem:[#allocation85_spill] sm:$0xff] }
 0x409   : > { %16257 = vmatprep.subr.msk.bf16.mxu0 %vm19542_vm4, %v16255_v15  ;;  %v18629_v15 = vld [vmem:[#allocation2 + $0xe1] sm:$0xff]  ;;  %v25074_v12 = vpack.c.bf16 %v25073_v33, %v19782_v38  ;;  %v18635_v38 = vld [vmem:[#allocation2 + $0x111] sm:$0xff] }
 0x40a   : > { %v16264_v62 = vpack.c.bf16 %v18629_v15, %v18628_v55  ;;  %v18634_v55 = vld [vmem:[#allocation2 + $0x251] sm:$0xff] }
 0x40d   : > { %16206 = vmatpush3.bf16.xpose.msk.msra.mxu1 %vm19542_vm4, %v16204_v35  ;;  %v25066_v35 = vpack.c.bf16 %v25065_v63, %v19700_v28  ;;  %v18631_v28 = vld [vmem:[#allocation2 + $0x241] sm:$0xff]  ;;  %v18632_v63 = vld [vmem:[#allocation2 + $0xf1] sm:$0xff] }
 0x40e   : > { %16209 = vmatprep.subr.msk.bf16.mxu1 %vm19542_vm4, %v25064_v44  ;;  %v18630_v44 = vld [vmem:[#allocation2 + $0x231] sm:$0xff] }
 0x40f   : > { %v16267_v59 = vpack.c.bf16 %v18631_v28, %v18630_v44 }
 0x410   : > { %16260 = vmatpush3.bf16.xpose.msk.msra.mxu0 %vm19542_vm4, %v16258_v25  ;;  %v21099_v25 = vld [vmem:[#allocation2 + $0x4e0] sm:$0xff] }
 0x411   : > { %16263 = vmatprep.subr.msk.bf16.mxu0 %vm19542_vm4, %v16261_v14  ;;  %v21101_v14 = vld [vmem:[#allocation2 + $0x261] sm:$0xff] }
 0x412   : > { %v16273_v15 = vpack.c.bf16 %v21101_v14, %v18634_v55  ;;  %v18638_v55 = vld [vmem:[#allocation2 + $0x3f1] sm:$0xff] }
 0x415   : > { %16212 = vmatpush3.bf16.xpose.msk.msra.mxu1 %vm19542_vm4, %v25066_v35  ;;  %v18633_v35 = vld [vmem:[#allocation2 + $0x101] sm:$0xff] }
 0x416   : > { %16215 = vmatprep.subr.msk.bf16.mxu1 %vm19542_vm4, %v25068_v20  ;;  %v16270_v10 = vpack.c.bf16 %v18633_v35, %v18632_v63  ;;  %v16225_v20 = vpack.c.bf16 %v21099_v25, %v20585_v49  ;;  %v21119_v49 = vld [vmem:[#allocation2 + $0x121] sm:$0xff] }
 0x417   : > { %v16276_v28 = vpack.c.bf16 %v21119_v49, %v18635_v38  ;;  %v25077_v63 = vld [vmem:[#allocation207_spill] sm:$0xff]  ;;  %v25082_v38 = vld [vmem:[#allocation217_spill] sm:$0xff] }
 0x418   : > { %16266 = vmatpush3.bf16.xpose.msk.msra.mxu0 %vm19542_vm4, %v16264_v62  ;;  %v21117_v62 = vld [vmem:[#allocation2 + $0x3a0] sm:$0xff]  ;;  %v16330_v35 = vpack.c.bf16 %v25077_v63, %v20278_v3  ;;  %v25083_v63 = vld [vmem:[#allocation53_spill] sm:$0xff] }
 0x419   : > { %16269 = vmatprep.subr.msk.bf16.mxu0 %vm19542_vm4, %v16267_v59  ;;  %v16228_v44 = vpack.c.bf16 %v21117_v62, %v20643_v24  ;;  %v2505_v59 = vld [vmem:[#allocation2 + $0x3d1] sm:$0xff]  ;;  %v25078_v3 = vld [vmem:[#allocation43_spill] sm:$0xff] }
 0x41a   : > { %v16279_v31 = vpack.c.bf16 %v18636_v16, %v2505_v59  ;;  %v2489_v24 = vld [vmem:[#allocation2 + $0x291] sm:$0xff]  ;;  %v18641_v16 = vld [vmem:[#allocation2 + $0x2c1] sm:$0xff] }
 0x41b   : > { %v18640_v59 = vld [vmem:[#allocation2 + $0x2b1] sm:$0xff] }
 0x41d   : > { %16218 = vmatpush3.bf16.xpose.msk.msra.mxu1 %vm19542_vm4, %v25071_v39  ;;  %v25075_v39 = vld [vmem:[#allocation33_spill] sm:$0xff] }
 0x41e   : > { %16221 = vmatprep.subr.msk.bf16.mxu1 %vm19542_vm4, %v25072_v34  ;;  %v25076_v34 = vpack.c.bf16 %v25075_v39, %v19560_v40  ;;  %v21144_v40 = vld [vmem:[%s24349_s3 + $0x28] sm:$0xff]  ;;  %v18642_v39 = vld [vmem:[#allocation2 + $0x411] sm:$0xff] }
 0x420   : > { %16272 = vmatpush3.bf16.xpose.msk.msra.mxu0 %vm19542_vm4, %v16270_v10  ;;  %v18637_v10 = vld [vmem:[#allocation2 + $0x2a1] sm:$0xff] }
 0x421   : > { %16275 = vmatprep.subr.msk.bf16.mxu0 %vm19542_vm4, %v16273_v15  ;;  %v18639_v15 = vld [vmem:[#allocation2 + $0x401] sm:$0xff] }
 0x422   : > { %v16285_v33 = vpack.c.bf16 %v18639_v15, %v18638_v55  ;;  %v25087_v55 = vld [vmem:[#allocation224_spill] sm:$0xff] }
 0x425   : > { %16224 = vmatpush3.bf16.xpose.msk.msra.mxu1 %vm19542_vm4, %v25074_v12 }
 0x426   : > { %16227 = vmatprep.subr.msk.bf16.mxu1 %vm19542_vm4, %v16225_v20  ;;  %v16282_v20 = vpack.c.bf16 %v18637_v10, %v2489_v24 }
 0x428   : > { %16278 = vmatpush3.bf16.xpose.msk.msra.mxu0 %vm19542_vm4, %v16276_v28 }
 0x429   : > { %16329 = vmatprep.subr.msk.bf16.mxu0 %vm19542_vm4, %v25076_v34  ;;  %v18643_v34 = vld [vmem:[#allocation2 + $0x421] sm:$0xff] }
 0x42a   : > { %v16291_v24 = vpack.c.bf16 %v18643_v34, %v18642_v39  ;;  %v21193_v39 = vld [vmem:[#allocation2 + $0x301] sm:$0xff]  ;;  %v25089_v34 = vld [vmem:[#allocation225_spill] sm:$0xff] }
 0x42d   : > { %16230 = vmatpush3.bf16.xpose.msk.msra.mxu1 %vm19542_vm4, %v16228_v44  ;;  %v25081_v44 = vld [vmem:[#allocation208_spill] sm:$0xff] }
 0x42e   : > { %16281 = vmatprep.subr.msk.bf16.mxu1 %vm19542_vm4, %v16279_v31  ;;  %v16336_v28 = vpack.c.bf16 %v25082_v38, %v25081_v44  ;;  %v16288_v31 = vpack.c.bf16 %v18641_v16, %v18640_v59  ;;  %v18646_v38 = vld [vmem:[#allocation2 + $0x431] sm:$0xff]  ;;  %v25088_v59 = vld [vmem:[#allocation223_spill] sm:$0xff] }
 0x42f   : > { %14316 = vmatmul.mubr.msk.f32.vlgmr.msra.gmra.mrb[2].mxu0 %vm442_vm2, %v20986_v46 }
 0x430   : > { %16332 = vmatpush3.bf16.xpose.msk.msra.mxu0 %vm19542_vm4, %v16330_v35  ;;  %14383 = vmatprep.mubr.msk.f32.mxu0 %vm442_vm2, %v21144_v40  ;;  %v25084_v35 = vld [vmem:[#allocation49_spill] sm:$0xff] }
 0x431   : > { %v25085_v10 = vpack.c.bf16 %v25083_v63, %v25084_v35  ;;  %v2513_v63 = vld [vmem:[#allocation2 + $0x471] sm:$0xff] }
 0x432   : > { %v18647_v35 = vld [vmem:[#allocation2 + $0x2f1] sm:$0xff] }
 0x434   : > { %14282 = vmatmul.mubr.msk.f32.vlgmr.msra.gmra.mrb[2].mxu1 %vm442_vm2, %v20739_v36  ;;  %v25079_v36 = vld [vmem:[#allocation39_spill] sm:$0xff] }
 0x435   : > { %16284 = vmatpush3.bf16.xpose.msk.msra.mxu1 %vm19542_vm4, %v16282_v20  ;;  %v25080_v12 = vpack.c.bf16 %v25078_v3, %v25079_v36  ;;  %14349 = vmatprep.mubr.msk.f32.mxu1 %vm442_vm2, %v20986_v46  ;;  %v25086_v20 = vld [vmem:[#allocation218_spill] sm:$0xff]  ;;  %v21178_v3 = vld [vmem:[#allocation2 + $0x1c2] sm:$0xff] }
 0x436   : > { %16287 = vmatprep.subr.msk.bf16.mxu1 %vm19542_vm4, %v16285_v33  ;;  %v16342_v15 = vpack.c.bf16 %v25087_v55, %v25086_v20  ;;  %v21176_v33 = vld [vmem:[#allocation2 + $0x441] sm:$0xff]  ;;  %v18644_v36 = vld [vmem:[#allocation2 + $0x2d1] sm:$0xff]  ;;  %v16345_v16 = vpack.c.bf16 %v21178_v3, %v25088_v59 }
 0x437   : > { %16335 = vmatprep.subr.msk.bf16.mxu0 %vm19542_vm4, %v25080_v12  ;;  %v18645_v12 = vld [vmem:[#allocation2 + $0x2e1] sm:$0xff]  ;;  %v18650_v59 = vld [vmem:[#allocation2 + $0x491] sm:$0xff] }
 0x438   : > { %16338 = vmatpush3.bf16.xpose.msk.msra.mxu0 %vm19542_vm4, %v16336_v28  ;;  %v16294_v44 = vpack.c.bf16 %v18645_v12, %v18644_v36  ;;  %v16297_v28 = vpack.c.bf16 %v21176_v33, %v18646_v38  ;;  %v18648_v20 = vld [vmem:[#allocation2 + $0x481] sm:$0xff] }
 0x439   : > { %16341 = vmatprep.subr.msk.bf16.mxu0 %vm19542_vm4, %v25085_v10  ;;  %v16300_v10 = vpack.c.bf16 %v21193_v39, %v18647_v35  ;;  %v16303_v55 = vpack.c.bf16 %v18648_v20, %v2513_v63  ;;  %v25091_v36 = vld [vmem:[#allocation3_spill] sm:$0xff]  ;;  %v25093_v63 = vld [vmem:[#allocation6_spill] sm:$0xff] }
 0x43a   : > { %v18649_v38 = vld [vmem:[#allocation2 + $0x341] sm:$0xff] }
 0x43b   : > { %v25097_v20 = vld [vmem:[#allocation11_spill] sm:$0xff] }
 0x43d   : > { %16290 = vmatpush3.bf16.xpose.msk.msra.mxu1 %vm19542_vm4, %v16288_v31  ;;  %v21191_v31 = vld [vmem:[#allocation2 + $0x82] sm:$0xff] }
 0x43e   : > { %16293 = vmatprep.subr.msk.bf16.mxu1 %vm19542_vm4, %v16291_v24  ;;  %v16348_v24 = vpack.c.bf16 %v21191_v31, %v25089_v34 }
 0x440   : > { %16344 = vmatpush3.bf16.xpose.msk.msra.mxu0 %vm19542_vm4, %v16342_v15  ;;  %v25090_v15 = vld [vmem:[#allocation5_spill] sm:$0xff] }
 0x441   : > { %16347 = vmatprep.subr.msk.bf16.mxu0 %vm19542_vm4, %v16345_v16  ;;  %v25092_v12 = vpack.c.bf16 %v25090_v15, %v25091_v36  ;;  %v18651_v16 = vld [vmem:[#allocation2 + $0x4a1] sm:$0xff]  ;;  %v18652_v15 = vld [vmem:[#allocation2 + $0x351] sm:$0xff] }
 0x442   : > { %v16309_v34 = vpack.c.bf16 %v18651_v16, %v18650_v59  ;;  %v18653_v36 = vld [vmem:[#allocation2 + $0x361] sm:$0xff]  ;;  %v25099_v59 = vld [vmem:[#allocation14_spill] sm:$0xff] }
 0x443   : > { %v25100_v16 = vld [vmem:[#allocation12_spill] sm:$0xff] }
 0x445   : > { %16296 = vmatpush3.bf16.xpose.msk.msra.mxu1 %vm19542_vm4, %v16294_v44  ;;  %v2497_v44 = vld [vmem:[#allocation2 + $0x331] sm:$0xff] }
 0x446   : > { %16299 = vmatprep.subr.msk.bf16.mxu1 %vm19542_vm4, %v16297_v28  ;;  %v16306_v28 = vpack.c.bf16 %v18649_v38, %v2497_v44  ;;  %v18654_v44 = vld [vmem:[#allocation2 + $0x4b1] sm:$0xff]  ;;  %v18655_v38 = vld [vmem:[#allocation2 + $0x4c1] sm:$0xff] }
 0x448   : > { %16350 = vmatpush3.bf16.xpose.msk.msra.mxu0 %vm19542_vm4, %v16348_v24  ;;  %v25094_v24 = vld [vmem:[#allocation4_spill] sm:$0xff] }
 0x449   : > { %16353 = vmatprep.subr.msk.bf16.mxu0 %vm19542_vm4, %v25092_v12  ;;  %v25095_v35 = vpack.c.bf16 %v25093_v63, %v25094_v24  ;;  %v16312_v12 = vpack.c.bf16 %v18653_v36, %v18652_v15  ;;  %v25101_v63 = vpack.c.bf16 %v25099_v59, %v25100_v16  ;;  %v25103_v24 = vld [vmem:[#allocation22_spill] sm:$0xff]  ;;  %v18657_v15 = vld [vmem:[#allocation2 + $0x381] sm:$0xff] }
 0x44a   : > { %v25107_v16 = vld [vmem:[#allocation23_spill] sm:$0xff] }
 0x44d   : > { %16302 = vmatpush3.bf16.xpose.msk.msra.mxu1 %vm19542_vm4, %v16300_v10  ;;  %v25096_v10 = vld [vmem:[#allocation13_spill] sm:$0xff] }
 0x44e   : > { %16305 = vmatprep.subr.msk.bf16.mxu1 %vm19542_vm4, %v16303_v55  ;;  %v25098_v55 = vpack.c.bf16 %v25096_v10, %v25097_v20  ;;  %v21237_v10 = vld [vmem:[#allocation2 + $0x4e1] sm:$0xff] }
 0x44f   : > { %v21239_v20 = vld [vmem:[#allocation2 + $0x262] sm:$0xff] }
 0x450   : > { %16356 = vmatpush3.bf16.xpose.msk.msra.mxu0 %vm19542_vm4, %v25095_v35 }
 0x451   : > { %16359 = vmatprep.subr.msk.bf16.mxu0 %vm19542_vm4, %v25098_v55  ;;  %v18656_v55 = vld [vmem:[#allocation2 + $0x371] sm:$0xff] }
 0x452   : > { %v16318_v36 = vpack.c.bf16 %v18657_v15, %v18656_v55  ;;  %v18659_v55 = vld [vmem:[#allocation2 + $0x391] sm:$0xff] }
 0x455   : > { %16308 = vmatpush3.bf16.xpose.msk.msra.mxu1 %vm19542_vm4, %v16306_v28  ;;  %v16315_v28 = vpack.c.bf16 %v18655_v38, %v18654_v44  ;;  %v25105_v38 = vld [vmem:[#allocation267_spill] sm:$0xff] }
 0x456   : > { %16311 = vmatprep.subr.msk.bf16.mxu1 %vm19542_vm4, %v16309_v34  ;;  %v25102_v34 = vld [vmem:[#allocation25_spill] sm:$0xff]  ;;  %v16369_v59 = vpack.c.bf16 %v21239_v20, %v25105_v38 }
 0x457   : > { %v25104_v35 = vpack.c.bf16 %v25102_v34, %v25103_v24  ;;  %v21255_v34 = vld [vmem:[#allocation2 + $0x3a1] sm:$0xff] }
 0x458   : > { %16362 = vmatpush3.bf16.xpose.msk.msra.mxu0 %vm19542_vm4, %v25101_v63  ;;  %v21257_v24 = vld [vmem:[#allocation2 + $0x122] sm:$0xff]  ;;  %v16324_v15 = vpack.c.bf16 %v21255_v34, %v18659_v55 }
 0x459   : > { %16365 = vmatprep.subr.msk.bf16.mxu0 %vm19542_vm4, %v25104_v35  ;;  %v3289_v35 = vld [vmem:[#allocation2 + $0x170] sm:$0xff]  ;;  %v25111_v55 = vld [vmem:[#allocation32_spill] sm:$0xff] }
 0x45d   : > { %16314 = vmatpush3.bf16.xpose.msk.msra.mxu1 %vm19542_vm4, %v16312_v12  ;;  %v18658_v12 = vld [vmem:[#allocation2 + $0x4d1] sm:$0xff] }
 0x45e   : > { %16317 = vmatprep.subr.msk.bf16.mxu1 %vm19542_vm4, %v16315_v28  ;;  %v16321_v44 = vpack.c.bf16 %v21237_v10, %v18658_v12  ;;  %v25106_v28 = vld [vmem:[#allocation26_spill] sm:$0xff]  ;;  %v3288_v12 = vld [vmem:[#allocation2 + $0x160] sm:$0xff] }
 0x45f   : > { %v25108_v63 = vpack.c.bf16 %v25106_v28, %v25107_v16  ;;  %v21262_v38 = vpack.c.bf16 %v3289_v35, %v3288_v12  ;;  %v3291_v16 = vld [vmem:[#allocation2 + $0x190] sm:$0xff] }
 0x460   : > { %v3275_v12 = vld [vmem:[#allocation2 + $0x50] sm:$0xff] }
 0x461   : > { %16368 = vmatpush3.bf16.xpose.msk.msra.mxu0 %vm19542_vm4, %v25108_v63  ;;  %v3290_v63 = vld [vmem:[#allocation2 + $0x180] sm:$0xff] }
 0x462   : > { %16371 = vmatprep.subr.msk.bf16.mxu0 %vm19542_vm4, %v16369_v59  ;;  %v3273_v59 = vld [vmem:[#allocation2 + $0x30] sm:$0xff]  ;;  %v21280_v35 = vpack.c.bf16 %v3291_v16, %v3290_v63  ;;  %v25117_v63 = vpack.c.bf16 %v19994_v4, %v19992_v17  ;;  %v25119_v17 = vld [vmem:[#allocation52_spill] sm:$0xff] }
 0x465   : > { %16320 = vmatpush3.bf16.xpose.msk.msra.mxu1 %vm19542_vm4, %v16318_v36  ;;  %v16372_v36 = vpack.c.bf16 %v21257_v24, %v20645_v45  ;;  %v3272_v45 = vld [vmem:[#allocation2 + $0x20] sm:$0xff] }
 0x466   : > { %16323 = vmatprep.subr.msk.bf16.mxu1 %vm19542_vm4, %v16321_v44  ;;  %v25109_v44 = vpack.c.bf16 %v19885_v50, %v19875_v60  ;;  %v16426_v28 = vpack.c.bf16 %v3273_v59, %v3272_v45  ;;  %v21285_v60 = vld [vmem:[%s24349_s3 + $0x30] sm:$0xff]  ;;  %v25110_v50 = vld [vmem:[#allocation35_spill] sm:$0xff] }
 0x467   : > { %v3293_v45 = vld [vmem:[#allocation2 + $0x1b0] sm:$0xff]  ;;  %v3292_v59 = vld [vmem:[#allocation2 + $0x1a0] sm:$0xff] }
 0x469   : > { %16374 = vmatpush3.bf16.xpose.msk.msra.mxu0 %vm19542_vm4, %v16372_v36  ;;  %v3274_v36 = vld [vmem:[#allocation2 + $0x40] sm:$0xff] }
 0x46a   : > { %16425 = vmatprep.subr.msk.bf16.mxu0 %vm19542_vm4, %v21262_v38 }
 0x46d   : > { %16326 = vmatpush3.bf16.xpose.msk.msra.mxu1 %vm19542_vm4, %v16324_v15  ;;  %v25112_v15 = vpack.c.bf16 %v25110_v50, %v25111_v55  ;;  %v3276_v50 = vld [vmem:[#allocation2 + $0x60] sm:$0xff]  ;;  %v3277_v55 = vld [vmem:[#allocation2 + $0x70] sm:$0xff] }
 0x46e   : > { %16377 = vmatprep.subr.msk.bf16.mxu1 %vm19542_vm4, %v25109_v44  ;;  %v16432_v44 = vpack.c.bf16 %v3275_v12, %v3274_v36  ;;  %v3295_v36 = vld [vmem:[#allocation2 + $0x1d0] sm:$0xff] }
 0x470   : > { %14384 = vmatmul.mubr.msk.f32.vlgmr.msra.gmra.mrb[2].mxu0 %vm442_vm2, %v21144_v40 }
 0x471   : > { %16428 = vmatpush3.bf16.xpose.msk.msra.mxu0 %vm19542_vm4, %v16426_v28  ;;  %14451 = vmatprep.mubr.msk.f32.mxu0 %vm442_vm2, %v21285_v60  ;;  %v21306_v28 = vpack.c.bf16 %v3293_v45, %v3292_v59  ;;  %v25118_v45 = vld [vmem:[#allocation55_spill] sm:$0xff]  ;;  %v3279_v59 = vld [vmem:[#allocation2 + $0x90] sm:$0xff] }
 0x472   : > { %16431 = vmatprep.subr.msk.bf16.mxu0 %vm19542_vm4, %v21280_v35  ;;  %v25120_v4 = vpack.c.bf16 %v25118_v45, %v25119_v17  ;;  %v25124_v17 = vld [vmem:[#allocation67_spill] sm:$0xff] }
 0x474   : > { %14350 = vmatmul.mubr.msk.f32.vlgmr.msra.gmra.mrb[2].mxu1 %vm442_vm2, %v20986_v46  ;;  %v25113_v46 = vpack.c.bf16 %v19946_v58, %v19944_v53  ;;  %v25114_v58 = vld [vmem:[#allocation45_spill] sm:$0xff]  ;;  %v25115_v53 = vld [vmem:[#allocation42_spill] sm:$0xff] }
 0x475   : > { %16380 = vmatpush3.bf16.xpose.msk.msra.mxu1 %vm19542_vm4, %v25112_v15  ;;  %14417 = vmatprep.mubr.msk.f32.mxu1 %vm442_vm2, %v21144_v40  ;;  %v25116_v16 = vpack.c.bf16 %v25114_v58, %v25115_v53  ;;  %v16438_v15 = vpack.c.bf16 %v3277_v55, %v3276_v50  ;;  %v21339_v58 = vld [vmem:[#allocation2 + $0x302] sm:$0xff]  ;;  %v3297_v53 = vld [vmem:[#allocation2 + $0x210] sm:$0xff]  ;;  %v25121_v50 = vld [vmem:[#allocation66_spill] sm:$0xff] }
 0x476   : > { %16383 = vmatprep.subr.msk.bf16.mxu1 %vm19542_vm4, %v25113_v46  ;;  %v21323_v46 = vld [vmem:[#allocation2 + $0x442] sm:$0xff]  ;;  %v25122_v55 = vld [vmem:[#allocation61_spill] sm:$0xff] }
 0x477   : > { %v16393_v12 = vpack.c.bf16 %v21323_v46, %v20858_v30  ;;  %v3296_v30 = vld [vmem:[#allocation2 + $0x200] sm:$0xff] }
 0x479   : > { %16434 = vmatpush3.bf16.xpose.msk.msra.mxu0 %vm19542_vm4, %v16432_v44  ;;  %v16441_v44 = vpack.c.bf16 %v3295_v36, %v20860_v6  ;;  %v16444_v6 = vpack.c.bf16 %v3279_v59, %v20892_v29  ;;  %v3281_v29 = vld [vmem:[#allocation2 + $0xd0] sm:$0xff] }
 0x47a   : > { %16437 = vmatprep.subr.msk.bf16.mxu0 %vm19542_vm4, %v21306_v28  ;;  %v3299_v36 = vld [vmem:[#allocation2 + $0x230] sm:$0xff] }
 0x47d   : > { %16386 = vmatpush3.bf16.xpose.msk.msra.mxu1 %vm19542_vm4, %v25116_v16  ;;  %v16396_v16 = vpack.c.bf16 %v21339_v58, %v20896_v41  ;;  %v3298_v41 = vld [vmem:[#allocation2 + $0x220] sm:$0xff] }
 0x47e   : > { %16389 = vmatprep.subr.msk.bf16.mxu1 %vm19542_vm4, %v25117_v63  ;;  %v21344_v63 = vpack.c.bf16 %v3297_v53, %v3296_v30  ;;  %v21360_v45 = vpack.c.bf16 %v3299_v36, %v3298_v41  ;;  %v25128_v30 = vld [vmem:[#allocation74_spill] sm:$0xff] }
 0x47f   : > { %v25130_v36 = vld [vmem:[#allocation78_spill] sm:$0xff] }
 0x481   : > { %16440 = vmatpush3.bf16.xpose.msk.msra.mxu0 %vm19542_vm4, %v16438_v15  ;;  %v25123_v15 = vpack.c.bf16 %v25121_v50, %v25122_v55  ;;  %v3300_v50 = vld [vmem:[#allocation2 + $0x240] sm:$0xff]  ;;  %v3301_v55 = vld [vmem:[#allocation2 + $0x250] sm:$0xff] }
 0x482   : > { %16443 = vmatprep.subr.msk.bf16.mxu0 %vm19542_vm4, %v16441_v44  ;;  %v21380_v41 = vpack.c.bf16 %v3301_v55, %v3300_v50  ;;  %v3284_v50 = vld [vmem:[#allocation2 + $0x100] sm:$0xff] }
 0x485   : > { %16392 = vmatpush3.bf16.xpose.msk.msra.mxu1 %vm19542_vm4, %v25120_v4  ;;  %v25125_v4 = vld [vmem:[#allocation64_spill] sm:$0xff] }
 0x486   : > { %16395 = vmatprep.subr.msk.bf16.mxu1 %vm19542_vm4, %v16393_v12  ;;  %v3280_v12 = vld [vmem:[#allocation2 + $0xc0] sm:$0xff]  ;;  %v25126_v59 = vpack.c.bf16 %v25124_v17, %v25125_v4  ;;  %v25133_v4 = vld [vmem:[#allocation86_spill] sm:$0xff] }
 0x487   : > { %v21358_v44 = vpack.c.bf16 %v3281_v29, %v3280_v12  ;;  %v25131_v12 = vld [vmem:[#allocation75_spill] sm:$0xff] }
 0x488   : > { %v25132_v17 = vpack.c.bf16 %v25130_v36, %v25131_v12  ;;  %v25136_v12 = vld [vmem:[#allocation87_spill] sm:$0xff] }
 0x489   : > { %16446 = vmatpush3.bf16.xpose.msk.msra.mxu0 %vm19542_vm4, %v16444_v6  ;;  %v25127_v6 = vld [vmem:[#allocation77_spill] sm:$0xff] }
 0x48a   : > { %16449 = vmatprep.subr.msk.bf16.mxu0 %vm19542_vm4, %v21344_v63  ;;  %v25129_v53 = vpack.c.bf16 %v25127_v6, %v25128_v30  ;;  %v3285_v30 = vld [vmem:[#allocation2 + $0x110] sm:$0xff] }
 0x48b   : > { %v21400_v55 = vpack.c.bf16 %v3285_v30, %v3284_v50 }
 0x48d   : > { %16398 = vmatpush3.bf16.xpose.msk.msra.mxu1 %vm19542_vm4, %v16396_v16  ;;  %v3283_v16 = vld [vmem:[#allocation2 + $0xf0] sm:$0xff] }
 0x48e   : > { %16401 = vmatprep.subr.msk.bf16.mxu1 %vm19542_vm4, %v25123_v15  ;;  %v3282_v15 = vld [vmem:[#allocation2 + $0xe0] sm:$0xff] }
 0x48f   : > { %v21378_v29 = vpack.c.bf16 %v3283_v16, %v3282_v15  ;;  %v3303_v16 = vld [vmem:[#allocation2 + $0x270] sm:$0xff] }
 0x490   : > { %v16465_v36 = vpack.c.bf16 %v3303_v16, %v20942_v5  ;;  %v3321_v5 = vld [vmem:[#allocation2 + $0x3f0] sm:$0xff]  ;;  %v3320_v16 = vld [vmem:[#allocation2 + $0x3e0] sm:$0xff] }
 0x491   : > { %16452 = vmatpush3.bf16.xpose.msk.msra.mxu0 %vm19542_vm4, %v21358_v44  ;;  %v21422_v50 = vpack.c.bf16 %v3321_v5, %v3320_v16  ;;  %v3322_v5 = vld [vmem:[#allocation2 + $0x400] sm:$0xff] }
 0x492   : > { %16455 = vmatprep.subr.msk.bf16.mxu0 %vm19542_vm4, %v21360_v45  ;;  %v3306_v16 = vld [vmem:[#allocation2 + $0x2c0] sm:$0xff] }
 0x495   : > { %16404 = vmatpush3.bf16.xpose.msk.msra.mxu1 %vm19542_vm4, %v25126_v59  ;;  %v25134_v59 = vld [vmem:[#allocation83_spill] sm:$0xff] }
 0x496   : > { %16407 = vmatprep.subr.msk.bf16.mxu1 %vm19542_vm4, %v25129_v53  ;;  %v25135_v6 = vpack.c.bf16 %v25133_v4, %v25134_v59  ;;  %v21398_v53 = vld [vmem:[#allocation2 + $0x4e2] sm:$0xff] }
 0x497   : > { %v16417_v15 = vpack.c.bf16 %v21398_v53, %v20940_v47  ;;  %v21417_v59 = vld [vmem:[#allocation2 + $0x3a2] sm:$0xff]  ;;  %v3287_v47 = vld [vmem:[#allocation2 + $0x130] sm:$0xff] }
 0x498   : > { %v16468_v30 = vpack.c.bf16 %v3287_v47, %v20960_v48  ;;  %v3305_v48 = vld [vmem:[#allocation2 + $0x2b0] sm:$0xff] }
 0x499   : > { %16458 = vmatpush3.bf16.xpose.msk.msra.mxu0 %vm19542_vm4, %v21378_v29 }
 0x49a   : > { %16461 = vmatprep.subr.msk.bf16.mxu0 %vm19542_vm4, %v21380_v41 }
 0x49d   : > { %16410 = vmatpush3.bf16.xpose.msk.msra.mxu1 %vm19542_vm4, %v25132_v17  ;;  %v25137_v17 = vld [vmem:[#allocation84_spill] sm:$0xff] }
 0x49e   : > { %16413 = vmatprep.subr.msk.bf16.mxu1 %vm19542_vm4, %v25135_v6  ;;  %v25138_v4 = vpack.c.bf16 %v25136_v12, %v25137_v17  ;;  %v16420_v6 = vpack.c.bf16 %v21417_v59, %v20958_v19  ;;  %v3304_v19 = vld [vmem:[#allocation2 + $0x2a0] sm:$0xff]  ;;  %v16522_v17 = vpack.c.bf16 %v21002_v61, %v20976_v43  ;;  %v25143_v61 = vld [vmem:[#allocation46_spill] sm:$0xff] }
 0x49f   : > { %v21438_v47 = vpack.c.bf16 %v3305_v48, %v3304_v19  ;;  %v25142_v43 = vld [vmem:[#allocation47_spill] sm:$0xff] }
 0x4a0   : > { %v3324_v48 = vld [vmem:[#allocation2 + $0x420] sm:$0xff] }
 0x4a1   : > { %16464 = vmatpush3.bf16.xpose.msk.msra.mxu0 %vm19542_vm4, %v21400_v55 }
 0x4a2   : > { %16467 = vmatprep.subr.msk.bf16.mxu0 %vm19542_vm4, %v16465_v36  ;;  %v25140_v36 = vld [vmem:[#allocation36_spill] sm:$0xff] }
 0x4a5   : > { %16416 = vmatpush3.bf16.xpose.msk.msra.mxu1 %vm19542_vm4, %v25138_v4  ;;  %v3323_v4 = vld [vmem:[#allocation2 + $0x410] sm:$0xff] }
 0x4a6   : > { %16419 = vmatprep.subr.msk.bf16.mxu1 %vm19542_vm4, %v16417_v15  ;;  %v25139_v15 = vld [vmem:[#allocation37_spill] sm:$0xff] }
 0x4a7   : > { %v25141_v12 = vpack.c.bf16 %v25139_v15, %v25140_v36  ;;  %v3307_v15 = vld [vmem:[#allocation2 + $0x2d0] sm:$0xff]  ;;  %v16528_v36 = vpack.c.bf16 %v21026_v23, %v21004_v1  ;;  %v3308_v23 = vld [vmem:[#allocation2 + $0x2e0] sm:$0xff] }
 0x4a8   : > { %v21470_v19 = vpack.c.bf16 %v3307_v15, %v3306_v16  ;;  %v3702_v16 = vld [vmem:[#allocation2 + $0x1d1] sm:$0xff] }
 0x4a9   : > { %16470 = vmatpush3.bf16.xpose.msk.msra.mxu0 %vm19542_vm4, %v16468_v30  ;;  %v21449_v30 = vld [vmem:[%s24349_s3 + $0x38] sm:$0xff] }
 0x4aa   : > { %16521 = vmatprep.subr.msk.bf16.mxu0 %vm19542_vm4, %v25141_v12  ;;  %v3325_v12 = vld [vmem:[#allocation2 + $0x430] sm:$0xff] }
 0x4ad   : > { %16422 = vmatpush3.bf16.xpose.msk.msra.mxu1 %vm19542_vm4, %v16420_v6  ;;  %v21444_v6 = vpack.c.bf16 %v3323_v4, %v3322_v5  ;;  %v25145_v4 = vld [vmem:[#allocation57_spill] sm:$0xff]  ;;  %v25146_v5 = vld [vmem:[#allocation56_spill] sm:$0xff] }
 0x4ae   : > { %16473 = vmatprep.subr.msk.bf16.mxu1 %vm19542_vm4, %v21422_v50  ;;  %v25147_v1 = vpack.c.bf16 %v25145_v4, %v25146_v5  ;;  %v3329_v4 = vld [vmem:[#allocation2 + $0x490] sm:$0xff] }
 0x4b0   : > { %14452 = vmatmul.mubr.msk.f32.vlgmr.msra.gmra.mrb[2].mxu0 %vm442_vm2, %v21285_v60 }
 0x4b1   : > { %16524 = vmatpush3.bf16.xpose.msk.msra.mxu0 %vm19542_vm4, %v16522_v17  ;;  %14519 = vmatprep.mubr.msk.f32.mxu0 %vm442_vm2, %v21449_v30  ;;  %v21472_v17 = vpack.c.bf16 %v3325_v12, %v3324_v48  ;;  %v16537_v12 = vpack.c.bf16 %v3702_v16, %v21034_v52 }
 0x4b4   : > { %14418 = vmatmul.mubr.msk.f32.vlgmr.msra.gmra.mrb[2].mxu1 %vm442_vm2, %v21144_v40  ;;  %v25144_v40 = vpack.c.bf16 %v25142_v43, %v25143_v61  ;;  %v3309_v43 = vld [vmem:[#allocation2 + $0x2f0] sm:$0xff]  ;;  %v16534_v61 = vpack.c.bf16 %v21050_v22, %v21028_v57 }
 0x4b5   : > { %16476 = vmatpush3.bf16.xpose.msk.msra.mxu1 %vm19542_vm4, %v21438_v47  ;;  %14485 = vmatprep.mubr.msk.f32.mxu1 %vm442_vm2, %v21285_v60  ;;  %v21489_v15 = vpack.c.bf16 %v3309_v43, %v3308_v23  ;;  %v3686_v57 = vld [vmem:[#allocation2 + $0x91] sm:$0xff]  ;;  %v25149_v23 = vld [vmem:[#allocation7_spill] sm:$0xff] }
 0x4b6   : > { %16479 = vmatprep.subr.msk.bf16.mxu1 %vm19542_vm4, %v21444_v6  ;;  %16527 = vmatprep.subr.msk.bf16.mxu0 %vm19542_vm4, %v25144_v40  ;;  %v3327_v40 = vld [vmem:[#allocation2 + $0x450] sm:$0xff]  ;;  %v16540_v48 = vpack.c.bf16 %v3686_v57, %v21052_v8  ;;  %v25152_v57 = vld [vmem:[#allocation8_spill] sm:$0xff] }
 0x4b7   : > { %v3311_v22 = vld [vmem:[#allocation2 + $0x310] sm:$0xff] }
 0x4b8   : > { %v16492_v52 = vpack.c.bf16 %v3311_v22, %v21054_v56  ;;  %v3313_v8 = vld [vmem:[#allocation2 + $0x350] sm:$0xff]  ;;  %v3330_v56 = vld [vmem:[#allocation2 + $0x4a0] sm:$0xff] }
 0x4b9   : > { %16530 = vmatpush3.bf16.xpose.msk.msra.mxu0 %vm19542_vm4, %v16528_v36  ;;  %v16489_v36 = vpack.c.bf16 %v3327_v40, %v21032_v0  ;;  %v3328_v0 = vld [vmem:[#allocation2 + $0x480] sm:$0xff] }
 0x4ba   : > { %16533 = vmatprep.subr.msk.bf16.mxu0 %vm19542_vm4, %v25147_v1  ;;  %v21504_v5 = vpack.c.bf16 %v3329_v4, %v3328_v0  ;;  %v25148_v1 = vld [vmem:[#allocation9_spill] sm:$0xff]  ;;  %v3312_v40 = vld [vmem:[#allocation2 + $0x340] sm:$0xff] }
 0x4bb   : > { %v25150_v43 = vpack.c.bf16 %v25148_v1, %v25149_v23  ;;  %v21518_v16 = vpack.c.bf16 %v3313_v8, %v3312_v40  ;;  %v25155_v0 = vld [vmem:[#allocation15_spill] sm:$0xff]  ;;  %v3333_v23 = vld [vmem:[#allocation2 + $0x4d0] sm:$0xff]  ;;  %v25158_v40 = vld [vmem:[#allocation16_spill] sm:$0xff] }
 0x4bc   : > { %v3332_v1 = vld [vmem:[#allocation2 + $0x4c0] sm:$0xff] }
 0x4bd   : > { %16482 = vmatpush3.bf16.xpose.msk.msra.mxu1 %vm19542_vm4, %v21470_v19 }
 0x4be   : > { %16485 = vmatprep.subr.msk.bf16.mxu1 %vm19542_vm4, %v21472_v17 }
 0x4c1   : > { %16536 = vmatpush3.bf16.xpose.msk.msra.mxu0 %vm19542_vm4, %v16534_v61  ;;  %v3331_v61 = vld [vmem:[#allocation2 + $0x4b0] sm:$0xff] }
 0x4c2   : > { %16539 = vmatprep.subr.msk.bf16.mxu0 %vm19542_vm4, %v16537_v12  ;;  %v25151_v12 = vld [vmem:[#allocation10_spill] sm:$0xff] }
 0x4c3   : > { %v25153_v22 = vpack.c.bf16 %v25151_v12, %v25152_v57  ;;  %v25160_v57 = vld [vmem:[#allocation29_spill] sm:$0xff] }
 0x4c5   : > { %16488 = vmatpush3.bf16.xpose.msk.msra.mxu1 %vm19542_vm4, %v21489_v15 }
 0x4c6   : > { %16491 = vmatprep.subr.msk.bf16.mxu1 %vm19542_vm4, %v16489_v36  ;;  %v21520_v36 = vpack.c.bf16 %v3331_v61, %v3330_v56  ;;  %v21540_v56 = vpack.c.bf16 %v3333_v23, %v3332_v1  ;;  %v25157_v61 = vld [vmem:[#allocation18_spill] sm:$0xff]  ;;  %v3316_v1 = vld [vmem:[#allocation2 + $0x380] sm:$0xff] }
 0x4c7   : > { %v25159_v12 = vpack.c.bf16 %v25157_v61, %v25158_v40  ;;  %v25163_v40 = vld [vmem:[#allocation30_spill] sm:$0xff] }
 0x4c9   : > { %16542 = vmatpush3.bf16.xpose.msk.msra.mxu0 %vm19542_vm4, %v16540_v48  ;;  %v25154_v48 = vld [vmem:[#allocation17_spill] sm:$0xff] }
 0x4ca   : > { %16545 = vmatprep.subr.msk.bf16.mxu0 %vm19542_vm4, %v25150_v43  ;;  %v25156_v4 = vpack.c.bf16 %v25154_v48, %v25155_v0  ;;  %v3314_v43 = vld [vmem:[#allocation2 + $0x360] sm:$0xff]  ;;  %v3317_v0 = vld [vmem:[#allocation2 + $0x390] sm:$0xff] }
 0x4cb   : > { %v21558_v23 = vpack.c.bf16 %v3317_v0, %v3316_v1  ;;  %v25166_v1 = vld [vmem:[#allocation107_spill] sm:$0xff] }
 0x4cd   : > { %16494 = vmatpush3.bf16.xpose.msk.msra.mxu1 %vm19542_vm4, %v16492_v52  ;;  %v3315_v52 = vld [vmem:[#allocation2 + $0x370] sm:$0xff] }
 0x4ce   : > { %16497 = vmatprep.subr.msk.bf16.mxu1 %vm19542_vm4, %v21504_v5  ;;  %v21538_v8 = vpack.c.bf16 %v3315_v52, %v3314_v43  ;;  %v3710_v52 = vld [vmem:[#allocation2 + $0x271] sm:$0xff] }
 0x4cf   : > { %v16561_v61 = vpack.c.bf16 %v3710_v52, %v21101_v14 }
 0x4d1   : > { %16548 = vmatpush3.bf16.xpose.msk.msra.mxu0 %vm19542_vm4, %v25153_v22  ;;  %v25161_v22 = vld [vmem:[#allocation27_spill] sm:$0xff] }
 0x4d2   : > { %16551 = vmatprep.subr.msk.bf16.mxu0 %vm19542_vm4, %v25156_v4  ;;  %v25162_v48 = vpack.c.bf16 %v25160_v57, %v25161_v22  ;;  %v3335_v4 = vld [vmem:[#allocation2 + $0x4f0] sm:$0xff] }
 0x4d3   : > { %v16513_v43 = vpack.c.bf16 %v3335_v4, %v21099_v25  ;;  %v3319_v22 = vld [vmem:[#allocation2 + $0x3b0] sm:$0xff]  ;;  %v4102_v4 = vld [vmem:[#allocation2 + $0x162] sm:$0xff] }
 0x4d4   : > { %v3694_v25 = vld [vmem:[#allocation2 + $0x131] sm:$0xff]  ;;  %v16516_v14 = vpack.c.bf16 %v3319_v22, %v21117_v62  ;;  %v4086_v62 = vld [vmem:[#allocation2 + $0x22] sm:$0xff] }
 0x4d5   : > { %16500 = vmatpush3.bf16.xpose.msk.msra.mxu1 %vm19542_vm4, %v21518_v16  ;;  %v16564_v0 = vpack.c.bf16 %v3694_v25, %v21119_v49  ;;  %v4087_v49 = vld [vmem:[#allocation2 + $0x32] sm:$0xff]  ;;  %v21599_v25 = vld [vmem:[%s24349_s3 + $0x40] sm:$0xff] }
 0x4d6   : > { %16503 = vmatprep.subr.msk.bf16.mxu1 %vm19542_vm4, %v21520_v36 }
 0x4d9   : > { %16554 = vmatpush3.bf16.xpose.msk.msra.mxu0 %vm19542_vm4, %v25159_v12  ;;  %v25164_v12 = vld [vmem:[#allocation28_spill] sm:$0xff] }
 0x4da   : > { %16557 = vmatprep.subr.msk.bf16.mxu0 %vm19542_vm4, %v25162_v48  ;;  %v25165_v57 = vpack.c.bf16 %v25163_v40, %v25164_v12  ;;  %v4103_v48 = vld [vmem:[#allocation2 + $0x172] sm:$0xff] }
 0x4db   : > { %v21576_v52 = vpack.c.bf16 %v4103_v48, %v4102_v4  ;;  %v4105_v12 = vld [vmem:[#allocation2 + $0x192] sm:$0xff]  ;;  %v25169_v48 = vld [vmem:[#allocation40_spill] sm:$0xff] }
 0x4dc   : > { %v25173_v4 = vld [vmem:[#allocation116_spill] sm:$0xff] }
 0x4dd   : > { %16506 = vmatpush3.bf16.xpose.msk.msra.mxu1 %vm19542_vm4, %v21538_v8 }
 0x4de   : > { %16509 = vmatprep.subr.msk.bf16.mxu1 %vm19542_vm4, %v21540_v56 }
 0x4e1   : > { %16560 = vmatpush3.bf16.xpose.msk.msra.mxu0 %vm19542_vm4, %v25165_v57  ;;  %v4104_v57 = vld [vmem:[#allocation2 + $0x182] sm:$0xff] }
 0x4e2   : > { %16563 = vmatprep.subr.msk.bf16.mxu0 %vm19542_vm4, %v16561_v61  ;;  %v16618_v61 = vpack.c.bf16 %v4087_v49, %v4086_v62  ;;  %v21594_v22 = vpack.c.bf16 %v4105_v12, %v4104_v57  ;;  %v4107_v49 = vld [vmem:[#allocation2 + $0x1b2] sm:$0xff] }
 0x4e3   : > { %v25175_v57 = vld [vmem:[#allocation50_spill] sm:$0xff] }
 0x4e5   : > { %16512 = vmatpush3.bf16.xpose.msk.msra.mxu1 %vm19542_vm4, %v21558_v23 }
 0x4e6   : > { %16515 = vmatprep.subr.msk.bf16.mxu1 %vm19542_vm4, %v16513_v43  ;;  %v25167_v43 = vld [vmem:[#allocation106_spill] sm:$0xff] }
 0x4e7   : > { %v25168_v40 = vpack.c.bf16 %v25166_v1, %v25167_v43  ;;  %v4088_v43 = vld [vmem:[#allocation2 + $0x42] sm:$0xff] }
 0x4e9   : > { %16566 = vmatpush3.bf16.xpose.msk.msra.mxu0 %vm19542_vm4, %v16564_v0 }
 0x4ea   : > { %16617 = vmatprep.subr.msk.bf16.mxu0 %vm19542_vm4, %v21576_v52 }
 0x4ed   : > { %16518 = vmatpush3.bf16.xpose.msk.msra.mxu1 %vm19542_vm4, %v16516_v14  ;;  %v25170_v14 = vld [vmem:[#allocation38_spill] sm:$0xff] }
 0x4ee   : > { %16569 = vmatprep.subr.msk.bf16.mxu1 %vm19542_vm4, %v25168_v40  ;;  %v25171_v0 = vpack.c.bf16 %v25169_v48, %v25170_v14  ;;  %v4089_v40 = vld [vmem:[#allocation2 + $0x52] sm:$0xff]  ;;  %v25176_v48 = vld [vmem:[#allocation48_spill] sm:$0xff] }
 0x4ef   : > { %v16624_v62 = vpack.c.bf16 %v4089_v40, %v4088_v43  ;;  %v25177_v14 = vpack.c.bf16 %v25175_v57, %v25176_v48  ;;  %v4091_v43 = vld [vmem:[#allocation2 + $0x72] sm:$0xff]  ;;  %v764_v40 = vpop.trf.xlu0 }
 0x4f0   : > { %14520 = vmatmul.mubr.msk.f32.vlgmr.msra.gmra.mrb[2].mxu0 %vm442_vm2, %v21449_v30  ;;  %829 = vst.msk [vmem:[#allocation2 + $0x511] sm:$0xff] %vm442_vm2, %v764_v40  ;;  %v4109_v57 = vld [vmem:[#allocation2 + $0x1d2] sm:$0xff] }
 0x4f1   : > { %16620 = vmatpush3.bf16.xpose.msk.msra.mxu0 %vm19542_vm4, %v16618_v61  ;;  %14587 = vmatprep.mubr.msk.f32.mxu0 %vm442_vm2, %v21599_v25  ;;  %v4106_v61 = vld [vmem:[#allocation2 + $0x1a2] sm:$0xff]  ;;  %v16633_v48 = vpack.c.bf16 %v4109_v57, %v21178_v3  ;;  %v4111_v40 = vld [vmem:[#allocation2 + $0x212] sm:$0xff] }
 0x4f2   : > { %16623 = vmatprep.subr.msk.bf16.mxu0 %vm19542_vm4, %v21594_v22  ;;  %v21620_v12 = vpack.c.bf16 %v4107_v49, %v4106_v61  ;;  %v3734_v61 = vld [vmem:[#allocation2 + $0x451] sm:$0xff] }
 0x4f4   : > { %14486 = vmatmul.mubr.msk.f32.vlgmr.msra.gmra.mrb[2].mxu1 %vm442_vm2, %v21285_v60  ;;  %v25172_v60 = vld [vmem:[#allocation117_spill] sm:$0xff] }
 0x4f5   : > { %16572 = vmatpush3.bf16.xpose.msk.msra.mxu1 %vm19542_vm4, %v25171_v0  ;;  %v25174_v1 = vpack.c.bf16 %v25172_v60, %v25173_v4  ;;  %14553 = vmatprep.mubr.msk.f32.mxu1 %vm442_vm2, %v21449_v30  ;;  %v25178_v0 = vld [vmem:[#allocation125_spill] sm:$0xff]  ;;  %v25179_v60 = vld [vmem:[#allocation124_spill] sm:$0xff] }
 0x4f6   : > { %v25180_v4 = vpack.c.bf16 %v25178_v0, %v25179_v60  ;;  %v25182_v0 = vld [vmem:[#allocation58_spill] sm:$0xff] }
 0x4f7   : > { %16575 = vmatprep.subr.msk.bf16.mxu1 %vm19542_vm4, %v25174_v1  ;;  %v4090_v1 = vld [vmem:[#allocation2 + $0x62] sm:$0xff] }
 0x4f8   : > { %v16630_v49 = vpack.c.bf16 %v4091_v43, %v4090_v1  ;;  %v765_v1 = vpop.trf.xlu0  ;;  %v4110_v43 = vld [vmem:[#allocation2 + $0x202] sm:$0xff] }
 0x4f9   : > { %16626 = vmatpush3.bf16.xpose.msk.msra.mxu0 %vm19542_vm4, %v16624_v62  ;;  %v16585_v62 = vpack.c.bf16 %v3734_v61, %v21176_v33  ;;  %830 = vst.msk [vmem:[#allocation2 + $0x521] sm:$0xff] %vm442_vm2, %v765_v1  ;;  %v3718_v33 = vld [vmem:[#allocation2 + $0x311] sm:$0xff] }
 0x4fa   : > { %16629 = vmatprep.subr.msk.bf16.mxu0 %vm19542_vm4, %v21620_v12  ;;  %v16588_v57 = vpack.c.bf16 %v3718_v33, %v21193_v39  ;;  %v4095_v39 = vld [vmem:[#allocation2 + $0xd2] sm:$0xff] }
 0x4fc   : > { %v766_v61 = vpop.trf.xlu0 }
 0x4fd   : > { %16578 = vmatpush3.bf16.xpose.msk.msra.mxu1 %vm19542_vm4, %v25177_v14  ;;  %v25181_v14 = vld [vmem:[#allocation59_spill] sm:$0xff]  ;;  %831 = vst.msk [vmem:[#allocation2 + $0x531] sm:$0xff] %vm442_vm2, %v766_v61 }
 0x4fe   : > { %16581 = vmatprep.subr.msk.bf16.mxu1 %vm19542_vm4, %v25180_v4  ;;  %v25183_v60 = vpack.c.bf16 %v25181_v14, %v25182_v0  ;;  %v4093_v4 = vld [vmem:[#allocation2 + $0x92] sm:$0xff]  ;;  %v4112_v0 = vld [vmem:[#allocation2 + $0x222] sm:$0xff] }
 0x4ff   : > { %v16636_v3 = vpack.c.bf16 %v4093_v4, %v21191_v31  ;;  %v4094_v4 = vld [vmem:[#allocation2 + $0xc2] sm:$0xff] }
 0x500   : > { %v767_v31 = vpop.trf.xlu0  ;;  %v21670_v33 = vpack.c.bf16 %v4095_v39, %v4094_v4  ;;  %v4114_v39 = vld [vmem:[#allocation2 + $0x242] sm:$0xff] }
 0x501   : > { %16632 = vmatpush3.bf16.xpose.msk.msra.mxu0 %vm19542_vm4, %v16630_v49  ;;  %v21655_v49 = vpack.c.bf16 %v4111_v40, %v4110_v43  ;;  %832 = vst.msk [vmem:[#allocation2 + $0x541] sm:$0xff] %vm442_vm2, %v767_v31  ;;  %v25187_v43 = vld [vmem:[#allocation71_spill] sm:$0xff]  ;;  %v25188_v40 = vld [vmem:[#allocation69_spill] sm:$0xff] }
 0x502   : > { %16635 = vmatprep.subr.msk.bf16.mxu0 %vm19542_vm4, %v16633_v48  ;;  %v25185_v48 = vld [vmem:[#allocation68_spill] sm:$0xff]  ;;  %v25189_v61 = vpack.c.bf16 %v25187_v43, %v25188_v40  ;;  %v4097_v31 = vld [vmem:[#allocation2 + $0xf2] sm:$0xff]  ;;  %v22140_v18 = vld [vmem:[#allocation2 + $0x520] sm:$0xff] }
 0x503   : > { %v25193_v40 = vld [vmem:[#allocation82_spill] sm:$0xff]  ;;  %25203 = vst [vmem:[#allocation19_spill] sm:$0xff] %v22140_v18 }
 0x504   : > { %v768_v1 = vpop.trf.xlu0  ;;  %v22009_v9 = vld [vmem:[#allocation2 + $0x532] sm:$0xff] }
 0x505   : > { %16584 = vmatpush3.bf16.xpose.msk.msra.mxu1 %vm19542_vm4, %v25183_v60  ;;  %v4113_v60 = vld [vmem:[#allocation2 + $0x232] sm:$0xff]  ;;  %833 = vst.msk [vmem:[#allocation2 + $0x551] sm:$0xff] %vm442_vm2, %v768_v1 }
 0x506   : > { %16587 = vmatprep.subr.msk.bf16.mxu1 %vm19542_vm4, %v16585_v62  ;;  %v25184_v62 = vld [vmem:[#allocation70_spill] sm:$0xff] }
 0x507   : > { %v25186_v14 = vpack.c.bf16 %v25184_v62, %v25185_v48  ;;  %v25191_v62 = vld [vmem:[#allocation79_spill] sm:$0xff] }
 0x509   : > { %16638 = vmatpush3.bf16.xpose.msk.msra.mxu0 %vm19542_vm4, %v16636_v3  ;;  %v21673_v3 = vpack.c.bf16 %v4113_v60, %v4112_v0  ;;  %v4115_v0 = vld [vmem:[#allocation2 + $0x252] sm:$0xff]  ;;  %v4096_v60 = vld [vmem:[#allocation2 + $0xe2] sm:$0xff] }
 0x50a   : > { %16641 = vmatprep.subr.msk.bf16.mxu0 %vm19542_vm4, %v21655_v49  ;;  %v21692_v1 = vpack.c.bf16 %v4097_v31, %v4096_v60  ;;  %v21695_v43 = vpack.c.bf16 %v4115_v0, %v4114_v39  ;;  %v4099_v39 = vld [vmem:[#allocation2 + $0x112] sm:$0xff] }
 0x50b   : > { %v3742_v0 = vld [vmem:[#allocation2 + $0x4f1] sm:$0xff] }
 0x50c   : > { %v4117_v60 = vld [vmem:[#allocation2 + $0x272] sm:$0xff] }
 0x50d   : > { %16590 = vmatpush3.bf16.xpose.msk.msra.mxu1 %vm19542_vm4, %v16588_v57  ;;  %v25190_v57 = vld [vmem:[#allocation81_spill] sm:$0xff] }
 0x50e   : > { %16593 = vmatprep.subr.msk.bf16.mxu1 %vm19542_vm4, %v25186_v14  ;;  %v25192_v48 = vpack.c.bf16 %v25190_v57, %v25191_v62  ;;  %v769_v14 = vpop.trf.xlu0  ;;  %v25196_v62 = vld [vmem:[#allocation90_spill] sm:$0xff]  ;;  %v22162_v11 = vld [vmem:[#allocation2 + $0x550] sm:$0xff] }
 0x50f   : > { %834 = vst.msk [vmem:[#allocation2 + $0x561] sm:$0xff] %vm442_vm2, %v769_v14  ;;  %25205 = vst [vmem:[#allocation24_spill] sm:$0xff] %v22162_v11 }
 0x511   : > { %16644 = vmatpush3.bf16.xpose.msk.msra.mxu0 %vm19542_vm4, %v21670_v33 }
 0x512   : > { %16647 = vmatprep.subr.msk.bf16.mxu0 %vm19542_vm4, %v21673_v3  ;;  %v770_v4 = vpop.trf.xlu0 }
 0x513   : > { %835 = vst.msk [vmem:[#allocation2 + $0x571] sm:$0xff] %vm442_vm2, %v770_v4  ;;  %v4098_v4 = vld [vmem:[#allocation2 + $0x102] sm:$0xff] }
 0x515   : > { %16596 = vmatpush3.bf16.xpose.msk.msra.mxu1 %vm19542_vm4, %v25189_v61  ;;  %v25194_v61 = vld [vmem:[#allocation80_spill] sm:$0xff] }
 0x516   : > { %16599 = vmatprep.subr.msk.bf16.mxu1 %vm19542_vm4, %v25192_v48  ;;  %v25195_v57 = vpack.c.bf16 %v25193_v40, %v25194_v61  ;;  %v25197_v48 = vld [vmem:[#allocation88_spill] sm:$0xff]  ;;  %v771_v31 = vpop.trf.xlu0  ;;  %v21714_v40 = vpack.c.bf16 %v4099_v39, %v4098_v4  ;;  %v16609_v61 = vpack.c.bf16 %v3742_v0, %v21237_v10  ;;  %v4101_v10 = vld [vmem:[#allocation2 + $0x132] sm:$0xff]  ;;  %v22197_v11 = vld [vmem:[#allocation2 + $0x560] sm:$0xff] }
 0x517   : > { %v25198_v14 = vpack.c.bf16 %v25196_v62, %v25197_v48  ;;  %836 = vst.msk [vmem:[#allocation2 + $0x581] sm:$0xff] %vm442_vm2, %v771_v31  ;;  %v25199_v62 = vld [vmem:[#allocation91_spill] sm:$0xff]  ;;  %v25200_v48 = vld [vmem:[#allocation89_spill] sm:$0xff]  ;;  %v16660_v4 = vpack.c.bf16 %v4101_v10, %v21257_v24  ;;  %25208 = vst [vmem:[#allocation31_spill] sm:$0xff] %v22197_v11 }
 0x518   : > { %v3726_v31 = vld [vmem:[#allocation2 + $0x3b1] sm:$0xff]  ;;  %v4118_v24 = vld [vmem:[#allocation2 + $0x2a2] sm:$0xff] }
 0x519   : > { %16650 = vmatpush3.bf16.xpose.msk.msra.mxu0 %vm19542_vm4, %v21692_v1  ;;  %v4135_v39 = vld [vmem:[#allocation2 + $0x3f2] sm:$0xff] }
 0x51a   : > { %16653 = vmatprep.subr.msk.bf16.mxu0 %vm19542_vm4, %v21695_v43  ;;  %v21730_v0 = vld [vmem:[#allocation2 + $0x1f0] sm:$0xff] }
 0x51d   : > { %16602 = vmatpush3.bf16.xpose.msk.msra.mxu1 %vm19542_vm4, %v25195_v57  ;;  %v16657_v57 = vpack.c.bf16 %v4117_v60, %v21239_v20  ;;  %v4510_v20 = vld [vmem:[#allocation2 + $0x1e0] sm:$0xff]  ;;  %v16612_v60 = vpack.c.bf16 %v3726_v31, %v21255_v34  ;;  %v4137_v31 = vld [vmem:[#allocation2 + $0x412] sm:$0xff] }
 0x51e   : > { %16605 = vmatprep.subr.msk.bf16.mxu1 %vm19542_vm4, %v25198_v14  ;;  %v25201_v14 = vpack.c.bf16 %v25199_v62, %v25200_v48  ;;  %v4134_v62 = vld [vmem:[#allocation2 + $0x3e2] sm:$0xff] }
 0x51f   : > { %v21734_v48 = vpack.c.bf16 %v4135_v39, %v4134_v62  ;;  %v4494_v34 = vld [vmem:[#allocation2 + $0xa0] sm:$0xff]  ;;  %v4121_v62 = vld [vmem:[#allocation2 + $0x2d2] sm:$0xff] }
 0x521   : > { %16656 = vmatpush3.bf16.xpose.msk.msra.mxu0 %vm19542_vm4, %v21714_v40 }
 0x522   : > { %16659 = vmatprep.subr.msk.bf16.mxu0 %vm19542_vm4, %v16657_v57  ;;  %v21746_v57 = vld [vmem:[#allocation2 + $0xb0] sm:$0xff] }
 0x523   : > { %v16714_v39 = vpack.c.bf16 %v21746_v57, %v4494_v34 }
 0x525   : > { %16608 = vmatpush3.bf16.xpose.msk.msra.mxu1 %vm19542_vm4, %v25201_v14  ;;  %v16711_v14 = vpack.c.bf16 %v21730_v0, %v4510_v20  ;;  %v4136_v20 = vld [vmem:[#allocation2 + $0x402] sm:$0xff] }
 0x526   : > { %16611 = vmatprep.subr.msk.bf16.mxu1 %vm19542_vm4, %v16609_v61  ;;  %v4119_v61 = vld [vmem:[#allocation2 + $0x2b2] sm:$0xff] }
 0x527   : > { %v21748_v10 = vpack.c.bf16 %v4119_v61, %v4118_v24  ;;  %v4138_v24 = vld [vmem:[#allocation2 + $0x422] sm:$0xff] }
 0x529   : > { %16662 = vmatpush3.bf16.xpose.msk.msra.mxu0 %vm19542_vm4, %v16660_v4  ;;  %v21760_v4 = vld [vmem:[%s24349_s3 + $0x48] sm:$0xff] }
 0x52a   : > { %16713 = vmatprep.subr.msk.bf16.mxu0 %vm19542_vm4, %v16711_v14  ;;  %v4139_v14 = vld [vmem:[#allocation2 + $0x432] sm:$0xff] }
 0x52b   : > { %v21779_v61 = vpack.c.bf16 %v4139_v14, %v4138_v24  ;;  %v4143_v14 = vld [vmem:[#allocation2 + $0x492] sm:$0xff] }
 0x52d   : > { %16614 = vmatpush3.bf16.xpose.msk.msra.mxu1 %vm19542_vm4, %v16612_v60  ;;  %v21755_v60 = vpack.c.bf16 %v4137_v31, %v4136_v20  ;;  %v4123_v31 = vld [vmem:[#allocation2 + $0x2f2] sm:$0xff] }
 0x52e   : > { %16665 = vmatprep.subr.msk.bf16.mxu1 %vm19542_vm4, %v21734_v48 }
 0x530   : > { %14588 = vmatmul.mubr.msk.f32.vlgmr.msra.gmra.mrb[2].mxu0 %vm442_vm2, %v21599_v25 }
 0x531   : > { %16716 = vmatpush3.bf16.xpose.msk.msra.mxu0 %vm19542_vm4, %v16714_v39  ;;  %14655 = vmatprep.mubr.msk.f32.mxu0 %vm442_vm2, %v21760_v4  ;;  %v4141_v39 = vld [vmem:[#allocation2 + $0x452] sm:$0xff] }
 0x532   : > { %16719 = vmatprep.subr.msk.bf16.mxu0 %vm19542_vm4, %v21344_v63  ;;  %v4122_v63 = vld [vmem:[#allocation2 + $0x2e2] sm:$0xff] }
 0x533   : > { %v21793_v20 = vpack.c.bf16 %v4123_v31, %v4122_v63 }
 0x534   : > { %14554 = vmatmul.mubr.msk.f32.vlgmr.msra.gmra.mrb[2].mxu1 %vm442_vm2, %v21449_v30  ;;  %v4120_v30 = vld [vmem:[#allocation2 + $0x2c2] sm:$0xff] }
 0x535   : > { %16668 = vmatpush3.bf16.xpose.msk.msra.mxu1 %vm19542_vm4, %v21748_v10  ;;  %14621 = vmatprep.mubr.msk.f32.mxu1 %vm442_vm2, %v21599_v25  ;;  %v21777_v34 = vpack.c.bf16 %v4121_v62, %v4120_v30  ;;  %v16681_v30 = vpack.c.bf16 %v4141_v39, %v21323_v46  ;;  %v4142_v62 = vld [vmem:[#allocation2 + $0x482] sm:$0xff]  ;;  %v21807_v46 = vld [vmem:[#allocation2 + $0x290] sm:$0xff] }
 0x536   : > { %16671 = vmatprep.subr.msk.bf16.mxu1 %vm19542_vm4, %v21755_v60  ;;  %v21810_v63 = vpack.c.bf16 %v4143_v14, %v4142_v62  ;;  %v4144_v39 = vld [vmem:[#allocation2 + $0x4a2] sm:$0xff] }
 0x539   : > { %16722 = vmatpush3.bf16.xpose.msk.msra.mxu0 %vm19542_vm4, %v21358_v44  ;;  %v4125_v44 = vld [vmem:[#allocation2 + $0x312] sm:$0xff] }
 0x53a   : > { %16725 = vmatprep.subr.msk.bf16.mxu0 %vm19542_vm4, %v21360_v45  ;;  %v4518_v45 = vld [vmem:[#allocation2 + $0x280] sm:$0xff]  ;;  %v16684_v24 = vpack.c.bf16 %v4125_v44, %v21339_v58 }
 0x53b   : > { %v16735_v31 = vpack.c.bf16 %v21807_v46, %v4518_v45  ;;  %v4502_v58 = vld [vmem:[#allocation2 + $0x140] sm:$0xff] }
 0x53c   : > { %v4126_v44 = vld [vmem:[#allocation2 + $0x342] sm:$0xff] }
 0x53d   : > { %16674 = vmatpush3.bf16.xpose.msk.msra.mxu1 %vm19542_vm4, %v21777_v34 }
 0x53e   : > { %16677 = vmatprep.subr.msk.bf16.mxu1 %vm19542_vm4, %v21779_v61 }
 0x541   : > { %16728 = vmatpush3.bf16.xpose.msk.msra.mxu0 %vm19542_vm4, %v21378_v29  ;;  %v4127_v29 = vld [vmem:[#allocation2 + $0x352] sm:$0xff] }
 0x542   : > { %16731 = vmatprep.subr.msk.bf16.mxu0 %vm19542_vm4, %v21380_v41  ;;  %v21823_v41 = vld [vmem:[#allocation2 + $0x150] sm:$0xff]  ;;  %v21825_v45 = vpack.c.bf16 %v4127_v29, %v4126_v44  ;;  %v4128_v29 = vld [vmem:[#allocation2 + $0x362] sm:$0xff] }
 0x543   : > { %v16738_v62 = vpack.c.bf16 %v21823_v41, %v4502_v58  ;;  %v4130_v44 = vld [vmem:[#allocation2 + $0x382] sm:$0xff] }
 0x545   : > { %16680 = vmatpush3.bf16.xpose.msk.msra.mxu1 %vm19542_vm4, %v21793_v20 }
 0x546   : > { %16683 = vmatprep.subr.msk.bf16.mxu1 %vm19542_vm4, %v16681_v30  ;;  %v4145_v30 = vld [vmem:[#allocation2 + $0x4b2] sm:$0xff] }
 0x547   : > { %v21828_v14 = vpack.c.bf16 %v4145_v30, %v4144_v39  ;;  %v4149_v30 = vld [vmem:[#allocation2 + $0x4f2] sm:$0xff] }
 0x549   : > { %16734 = vmatpush3.bf16.xpose.msk.msra.mxu0 %vm19542_vm4, %v21400_v55  ;;  %v4129_v55 = vld [vmem:[#allocation2 + $0x372] sm:$0xff] }
 0x54a   : > { %16737 = vmatprep.subr.msk.bf16.mxu0 %vm19542_vm4, %v16735_v31  ;;  %v4147_v31 = vld [vmem:[#allocation2 + $0x4d2] sm:$0xff]  ;;  %v21841_v58 = vpack.c.bf16 %v4129_v55, %v4128_v29  ;;  %v16705_v55 = vpack.c.bf16 %v4149_v30, %v21398_v53  ;;  %v4917_v53 = vld [vmem:[#allocation2 + $0x1e1] sm:$0xff] }
 0x54d   : > { %16686 = vmatpush3.bf16.xpose.msk.msra.mxu1 %vm19542_vm4, %v16684_v24  ;;  %v4146_v24 = vld [vmem:[#allocation2 + $0x4c2] sm:$0xff] }
 0x54e   : > { %16689 = vmatprep.subr.msk.bf16.mxu1 %vm19542_vm4, %v21810_v63  ;;  %v21843_v39 = vpack.c.bf16 %v4147_v31, %v4146_v24  ;;  %v21871_v24 = vld [vmem:[#allocation2 + $0x470] sm:$0xff] }
 0x551   : > { %16740 = vmatpush3.bf16.xpose.msk.msra.mxu0 %vm19542_vm4, %v16738_v62 }
 0x552   : > { %16743 = vmatprep.subr.msk.bf16.mxu0 %vm19542_vm4, %v21438_v47  ;;  %v4131_v47 = vld [vmem:[#allocation2 + $0x392] sm:$0xff] }
 0x553   : > { %v21857_v62 = vpack.c.bf16 %v4131_v47, %v4130_v44  ;;  %v18660_v47 = vld [vmem:[#allocation2 + $0x1f1] sm:$0xff] }
 0x554   : > { %v16807_v30 = vpack.c.bf16 %v18660_v47, %v4917_v53 }
 0x555   : > { %16692 = vmatpush3.bf16.xpose.msk.msra.mxu1 %vm19542_vm4, %v21825_v45 }
 0x556   : > { %16695 = vmatprep.subr.msk.bf16.mxu1 %vm19542_vm4, %v21828_v14 }
 0x559   : > { %16746 = vmatpush3.bf16.xpose.msk.msra.mxu0 %vm19542_vm4, %v21262_v38  ;;  %v4133_v38 = vld [vmem:[#allocation2 + $0x3b2] sm:$0xff] }
 0x55a   : > { %16749 = vmatprep.subr.msk.bf16.mxu0 %vm19542_vm4, %v21470_v19  ;;  %v4542_v19 = vld [vmem:[#allocation2 + $0x460] sm:$0xff]  ;;  %v16708_v31 = vpack.c.bf16 %v4133_v38, %v21417_v59 }
 0x55b   : > { %v16759_v29 = vpack.c.bf16 %v21871_v24, %v4542_v19  ;;  %v4901_v59 = vld [vmem:[#allocation2 + $0xa1] sm:$0xff]  ;;  %v18663_v19 = vld [vmem:[#allocation2 + $0x211] sm:$0xff] }
 0x55d   : > { %16698 = vmatpush3.bf16.xpose.msk.msra.mxu1 %vm19542_vm4, %v21841_v58 }
 0x55e   : > { %16701 = vmatprep.subr.msk.bf16.mxu1 %vm19542_vm4, %v21843_v39 }
 0x561   : > { %16752 = vmatpush3.bf16.xpose.msk.msra.mxu0 %vm19542_vm4, %v21280_v35  ;;  %v4526_v35 = vld [vmem:[#allocation2 + $0x320] sm:$0xff] }
 0x562   : > { %16755 = vmatprep.subr.msk.bf16.mxu0 %vm19542_vm4, %v21489_v15  ;;  %v21884_v15 = vld [vmem:[#allocation2 + $0x330] sm:$0xff] }
 0x563   : > { %v16762_v44 = vpack.c.bf16 %v21884_v15, %v4526_v35  ;;  %v18667_v35 = vld [vmem:[#allocation2 + $0x231] sm:$0xff] }
 0x565   : > { %16704 = vmatpush3.bf16.xpose.msk.msra.mxu1 %vm19542_vm4, %v21857_v62 }
 0x566   : > { %16707 = vmatprep.subr.msk.bf16.mxu1 %vm19542_vm4, %v16705_v55  ;;  %v18661_v55 = vld [vmem:[#allocation2 + $0xb1] sm:$0xff] }
 0x567   : > { %v16810_v38 = vpack.c.bf16 %v18661_v55, %v4901_v59  ;;  %v18669_v55 = vld [vmem:[#allocation2 + $0xf1] sm:$0xff] }
 0x569   : > { %16758 = vmatpush3.bf16.xpose.msk.msra.mxu0 %vm19542_vm4, %v21306_v28  ;;  %v18662_v28 = vld [vmem:[#allocation2 + $0x201] sm:$0xff] }
 0x56a   : > { %16809 = vmatprep.subr.msk.bf16.mxu0 %vm19542_vm4, %v16807_v30  ;;  %v16813_v53 = vpack.c.bf16 %v18663_v19, %v18662_v28  ;;  %v18666_v30 = vld [vmem:[#allocation2 + $0x221] sm:$0xff] }
 0x56b   : > { %v16819_v59 = vpack.c.bf16 %v18667_v35, %v18666_v30  ;;  %v18670_v28 = vld [vmem:[#allocation2 + $0x241] sm:$0xff]  ;;  %v18672_v30 = vld [vmem:[#allocation2 + $0x291] sm:$0xff] }
 0x56d   : > { %16710 = vmatpush3.bf16.xpose.msk.msra.mxu1 %vm19542_vm4, %v16708_v31  ;;  %v21894_v31 = vld [vmem:[%s24349_s3 + $0x50] sm:$0xff] }
 0x56e   : > { %16761 = vmatprep.subr.msk.bf16.mxu1 %vm19542_vm4, %v16759_v29  ;;  %v18665_v29 = vld [vmem:[#allocation2 + $0xd1] sm:$0xff] }
 0x570   : > { %14656 = vmatmul.mubr.msk.f32.vlgmr.msra.gmra.mrb[2].mxu0 %vm442_vm2, %v21760_v4 }
 0x571   : > { %16812 = vmatpush3.bf16.xpose.msk.msra.mxu0 %vm19542_vm4, %v16810_v38  ;;  %14723 = vmatprep.mubr.msk.f32.mxu0 %vm442_vm2, %v21894_v31 }
 0x572   : > { %16815 = vmatprep.subr.msk.bf16.mxu0 %vm19542_vm4, %v16813_v53  ;;  %v21934_v53 = vld [vmem:[#allocation2 + $0x111] sm:$0xff] }
 0x574   : > { %14622 = vmatmul.mubr.msk.f32.vlgmr.msra.gmra.mrb[2].mxu1 %vm442_vm2, %v21599_v25  ;;  %v18664_v25 = vld [vmem:[#allocation2 + $0xc1] sm:$0xff] }
 0x575   : > { %16764 = vmatpush3.bf16.xpose.msk.msra.mxu1 %vm19542_vm4, %v16762_v44  ;;  %14689 = vmatprep.mubr.msk.f32.mxu1 %vm442_vm2, %v21760_v4  ;;  %v16816_v47 = vpack.c.bf16 %v18665_v29, %v18664_v25  ;;  %v18668_v44 = vld [vmem:[#allocation2 + $0xe1] sm:$0xff] }
 0x576   : > { %16767 = vmatprep.subr.msk.bf16.mxu1 %vm19542_vm4, %v21504_v5  ;;  %v21919_v5 = vld [vmem:[#allocation2 + $0x251] sm:$0xff]  ;;  %v16822_v38 = vpack.c.bf16 %v18669_v55, %v18668_v44  ;;  %v4925_v25 = vld [vmem:[#allocation2 + $0x281] sm:$0xff] }
 0x577   : > { %v16825_v19 = vpack.c.bf16 %v21919_v5, %v18670_v28  ;;  %v16831_v35 = vpack.c.bf16 %v18672_v30, %v4925_v25  ;;  %v21949_v44 = vld [vmem:[#allocation2 + $0x3d0] sm:$0xff]  ;;  %v4909_v55 = vld [vmem:[#allocation2 + $0x141] sm:$0xff] }
 0x578   : > { %v18674_v25 = vld [vmem:[#allocation2 + $0x2a1] sm:$0xff] }
 0x579   : > { %16818 = vmatpush3.bf16.xpose.msk.msra.mxu0 %vm19542_vm4, %v16816_v47  ;;  %v18671_v47 = vld [vmem:[#allocation2 + $0x101] sm:$0xff] }
 0x57a   : > { %16821 = vmatprep.subr.msk.bf16.mxu0 %vm19542_vm4, %v16819_v59  ;;  %v4534_v59 = vld [vmem:[#allocation2 + $0x3c0] sm:$0xff] }
 0x57b   : > { %v16786_v28 = vpack.c.bf16 %v21949_v44, %v4534_v59  ;;  %v21966_v30 = vld [vmem:[#allocation2 + $0x540] sm:$0xff] }
 0x57c   : > { %v18676_v59 = vld [vmem:[#allocation2 + $0x161] sm:$0xff] }
 0x57d   : > { %16770 = vmatpush3.bf16.xpose.msk.msra.mxu1 %vm19542_vm4, %v21518_v16  ;;  %v4550_v16 = vld [vmem:[#allocation2 + $0x500] sm:$0xff] }
 0x57e   : > { %16773 = vmatprep.subr.msk.bf16.mxu1 %vm19542_vm4, %v21520_v36  ;;  %v21932_v36 = vld [vmem:[#allocation2 + $0x510] sm:$0xff] }
 0x57f   : > { %v16783_v29 = vpack.c.bf16 %v21932_v36, %v4550_v16 }
 0x581   : > { %16824 = vmatpush3.bf16.xpose.msk.msra.mxu0 %vm19542_vm4, %v16822_v38  ;;  %v21951_v38 = vld [vmem:[#allocation2 + $0x520] sm:$0xff] }
 0x582   : > { %16827 = vmatprep.subr.msk.bf16.mxu0 %vm19542_vm4, %v16825_v19  ;;  %v18673_v19 = vld [vmem:[#allocation2 + $0x151] sm:$0xff] }
 0x583   : > { %v16834_v16 = vpack.c.bf16 %v18673_v19, %v4909_v55  ;;  %v18677_v55 = vld [vmem:[#allocation2 + $0x171] sm:$0xff] }
 0x584   : > { %v16840_v19 = vpack.c.bf16 %v18677_v55, %v18676_v59  ;;  %v21985_v59 = vld [vmem:[#allocation2 + $0x2f1] sm:$0xff]  ;;  %v21987_v55 = vld [vmem:[#allocation2 + $0x560] sm:$0xff] }
 0x585   : > { %16776 = vmatpush3.bf16.xpose.msk.msra.mxu1 %vm19542_vm4, %v21538_v8  ;;  %v16828_v8 = vpack.c.bf16 %v21934_v53, %v18671_v47  ;;  %v18675_v47 = vld [vmem:[#allocation2 + $0x2b1] sm:$0xff] }
 0x586   : > { %16779 = vmatprep.subr.msk.bf16.mxu1 %vm19542_vm4, %v21540_v56  ;;  %v21947_v56 = vld [vmem:[#allocation2 + $0x530] sm:$0xff] }
 0x589   : > { %16830 = vmatpush3.bf16.xpose.msk.msra.mxu0 %vm19542_vm4, %v16828_v8  ;;  %v16837_v8 = vpack.c.bf16 %v18675_v47, %v18674_v25  ;;  %v18679_v25 = vld [vmem:[#allocation2 + $0x2d1] sm:$0xff] }
 0x58a   : > { %16833 = vmatprep.subr.msk.bf16.mxu0 %vm19542_vm4, %v16831_v35 }
 0x58d   : > { %16782 = vmatpush3.bf16.xpose.msk.msra.mxu1 %vm19542_vm4, %v21558_v23  ;;  %v16789_v23 = vpack.c.bf16 %v21947_v56, %v21951_v38 }
 0x58e   : > { %16785 = vmatprep.subr.msk.bf16.mxu1 %vm19542_vm4, %v16783_v29  ;;  %v21964_v29 = vld [vmem:[#allocation2 + $0x550] sm:$0xff] }
 0x58f   : > { %v16795_v35 = vpack.c.bf16 %v21964_v29, %v21966_v30 }
 0x591   : > { %16836 = vmatpush3.bf16.xpose.msk.msra.mxu0 %vm19542_vm4, %v16834_v16  ;;  %v21981_v16 = vld [vmem:[#allocation2 + $0x512] sm:$0xff] }
 0x592   : > { %16839 = vmatprep.subr.msk.bf16.mxu0 %vm19542_vm4, %v16837_v8  ;;  %v21983_v8 = vld [vmem:[#allocation2 + $0x522] sm:$0xff] }
 0x595   : > { %16788 = vmatpush3.bf16.xpose.msk.msra.mxu1 %vm19542_vm4, %v16786_v28  ;;  %v18678_v28 = vld [vmem:[#allocation2 + $0x2c1] sm:$0xff] }
 0x596   : > { %16791 = vmatprep.subr.msk.bf16.mxu1 %vm19542_vm4, %v16789_v23  ;;  %v16843_v47 = vpack.c.bf16 %v18679_v25, %v18678_v28  ;;  %v21979_v23 = vld [vmem:[#allocation2 + $0x570] sm:$0xff]  ;;  %v18680_v28 = vld [vmem:[#allocation2 + $0x181] sm:$0xff] }
 0x597   : > { %v18681_v25 = vld [vmem:[#allocation2 + $0x191] sm:$0xff] }
 0x599   : > { %16842 = vmatpush3.bf16.xpose.msk.msra.mxu0 %vm19542_vm4, %v16840_v19  ;;  %v22003_v19 = vld [vmem:[#allocation2 + $0x542] sm:$0xff] }
 0x59a   : > { %16845 = vmatprep.subr.msk.bf16.mxu0 %vm19542_vm4, %v16843_v47  ;;  %v16846_v47 = vpack.c.bf16 %v18681_v25, %v18680_v28  ;;  %v4949_v28 = vld [vmem:[#allocation2 + $0x461] sm:$0xff] }
 0x59b   : > { %v5324_v25 = vld [vmem:[#allocation2 + $0x1e2] sm:$0xff] }
 0x59d   : > { %16794 = vmatpush3.bf16.xpose.msk.msra.mxu1 %vm19542_vm4, %v21422_v50  ;;  %v16801_v50 = vpack.c.bf16 %v21979_v23, %v21987_v55 }
 0x59e   : > { %16797 = vmatprep.subr.msk.bf16.mxu1 %vm19542_vm4, %v16795_v35  ;;  %v18682_v35 = vld [vmem:[#allocation2 + $0x2e1] sm:$0xff] }
 0x59f   : > { %v16849_v51 = vpack.c.bf16 %v21985_v59, %v18682_v35  ;;  %v22007_v35 = vld [vmem:[#allocation2 + $0x1f2] sm:$0xff] }
 0x5a1   : > { %16848 = vmatpush3.bf16.xpose.msk.msra.mxu0 %vm19542_vm4, %v16846_v47  ;;  %v18683_v47 = vld [vmem:[#allocation2 + $0x1a1] sm:$0xff] }
 0x5a2   : > { %16851 = vmatprep.subr.msk.bf16.mxu0 %vm19542_vm4, %v16849_v51  ;;  %v16852_v27 = vpack.c.bf16 %v22005_v2, %v18683_v47  ;;  %v18684_v51 = vld [vmem:[#allocation2 + $0x471] sm:$0xff]  ;;  %v4933_v47 = vld [vmem:[#allocation2 + $0x321] sm:$0xff] }
 0x5a3   : > { %v16855_v37 = vpack.c.bf16 %v18684_v51, %v4949_v28  ;;  %v22026_v28 = vld [vmem:[#allocation2 + $0xb2] sm:$0xff] }
 0x5a4   : > { %v18685_v51 = vld [vmem:[#allocation2 + $0x331] sm:$0xff] }
 0x5a5   : > { %16800 = vmatpush3.bf16.xpose.msk.msra.mxu1 %vm19542_vm4, %v21444_v6  ;;  %v22024_v6 = vld [vmem:[#allocation2 + $0x562] sm:$0xff]  ;;  %v16858_v13 = vpack.c.bf16 %v18685_v51, %v4933_v47  ;;  %v18691_v51 = vld [vmem:[#allocation2 + $0x4b1] sm:$0xff] }
 0x5a6   : > { %16803 = vmatprep.subr.msk.bf16.mxu1 %vm19542_vm4, %v16801_v50  ;;  %v16903_v50 = vpack.c.bf16 %v22007_v35, %v5324_v25  ;;  %v22028_v25 = vld [vmem:[#allocation2 + $0x552] sm:$0xff] }
 0x5a9   : > { %16854 = vmatpush3.bf16.xpose.msk.msra.mxu0 %vm19542_vm4, %v16852_v27  ;;  %v16906_v27 = vpack.c.bf16 %v22026_v28, %v5308_v26  ;;  %v18688_v26 = vld [vmem:[#allocation2 + $0x341] sm:$0xff] }
 0x5aa   : > { %16905 = vmatprep.subr.msk.bf16.mxu0 %vm19542_vm4, %v16903_v50  ;;  %v18687_v50 = vld [vmem:[#allocation2 + $0x491] sm:$0xff] }
 0x5ad   : > { %16806 = vmatpush3.bf16.xpose.msk.msra.mxu1 %vm19542_vm4, %v21472_v17  ;;  %v22136_v17 = vld [vmem:[#allocation2 + $0x561] sm:$0xff] }
 0x5ae   : > { %16857 = vmatprep.subr.msk.bf16.mxu1 %vm19542_vm4, %v16855_v37  ;;  %v18686_v37 = vld [vmem:[#allocation2 + $0x481] sm:$0xff] }
 0x5af   : > { %v16861_v32 = vpack.c.bf16 %v18687_v50, %v18686_v37 }
 0x5b0   : > { %14724 = vmatmul.mubr.msk.f32.vlgmr.msra.gmra.mrb[2].mxu0 %vm442_vm2, %v21894_v31 }
 0x5b1   : > { %16908 = vmatpush3.bf16.xpose.msk.msra.mxu0 %vm19542_vm4, %v16906_v27  ;;  %14791 = vmatprep.mubr.msk.f32.mxu0 %vm442_vm2, %v22040_v7  ;;  %v18693_v27 = vld [vmem:[#allocation2 + $0x371] sm:$0xff] }
 0x5b2   : > { %16911 = vmatprep.subr.msk.bf16.mxu0 %vm19542_vm4, %v21655_v49  ;;  %v18692_v49 = vld [vmem:[#allocation2 + $0x361] sm:$0xff] }
 0x5b3   : > { %v16870_v50 = vpack.c.bf16 %v18693_v27, %v18692_v49 }
 0x5b4   : > { %14690 = vmatmul.mubr.msk.f32.vlgmr.msra.gmra.mrb[2].mxu1 %vm442_vm2, %v21760_v4  ;;  %v18689_v4 = vld [vmem:[#allocation2 + $0x351] sm:$0xff] }
 0x5b5   : > { %16860 = vmatpush3.bf16.xpose.msk.msra.mxu1 %vm19542_vm4, %v16858_v13  ;;  %14757 = vmatprep.mubr.msk.f32.mxu1 %vm442_vm2, %v21894_v31  ;;  %v16864_v47 = vpack.c.bf16 %v18689_v4, %v18688_v26  ;;  %v18690_v13 = vld [vmem:[#allocation2 + $0x4a1] sm:$0xff] }
 0x5b6   : > { %16863 = vmatprep.subr.msk.bf16.mxu1 %vm19542_vm4, %v16861_v32  ;;  %v16867_v37 = vpack.c.bf16 %v18691_v51, %v18690_v13  ;;  %v22065_v32 = vld [vmem:[#allocation2 + $0x4d1] sm:$0xff]  ;;  %v18694_v26 = vld [vmem:[#allocation2 + $0x4c1] sm:$0xff] }
 0x5b7   : > { %v16873_v4 = vpack.c.bf16 %v22065_v32, %v18694_v26  ;;  %v22080_v13 = vld [vmem:[#allocation2 + $0x511] sm:$0xff] }
 0x5b8   : > { %v22082_v51 = vld [vmem:[#allocation2 + $0x292] sm:$0xff] }
 0x5b9   : > { %16914 = vmatpush3.bf16.xpose.msk.msra.mxu0 %vm19542_vm4, %v21670_v33  ;;  %v22078_v33 = vld [vmem:[#allocation2 + $0x391] sm:$0xff] }
 0x5ba   : > { %16917 = vmatprep.subr.msk.bf16.mxu0 %vm19542_vm4, %v21673_v3  ;;  %v5332_v3 = vld [vmem:[#allocation2 + $0x282] sm:$0xff]  ;;  %v22096_v26 = vld [vmem:[#allocation2 + $0x152] sm:$0xff] }
 0x5bb   : > { %v16927_v27 = vpack.c.bf16 %v22082_v51, %v5332_v3  ;;  %v18696_v3 = vld [vmem:[#allocation2 + $0x3d1] sm:$0xff] }
 0x5bd   : > { %16866 = vmatpush3.bf16.xpose.msk.msra.mxu1 %vm19542_vm4, %v16864_v47  ;;  %v4957_v47 = vld [vmem:[#allocation2 + $0x501] sm:$0xff] }
 0x5be   : > { %16869 = vmatprep.subr.msk.bf16.mxu1 %vm19542_vm4, %v16867_v37  ;;  %v18695_v37 = vld [vmem:[#allocation2 + $0x381] sm:$0xff] }
 0x5bf   : > { %v16876_v49 = vpack.c.bf16 %v22078_v33, %v18695_v37 }
 0x5c1   : > { %16920 = vmatpush3.bf16.xpose.msk.msra.mxu0 %vm19542_vm4, %v21692_v1  ;;  %v16879_v1 = vpack.c.bf16 %v22080_v13, %v4957_v47 }
 0x5c2   : > { %16923 = vmatprep.subr.msk.bf16.mxu0 %vm19542_vm4, %v21695_v43  ;;  %v4941_v43 = vld [vmem:[#allocation2 + $0x3c1] sm:$0xff] }
 0x5c3   : > { %v16882_v47 = vpack.c.bf16 %v18696_v3, %v4941_v43  ;;  %v18698_v43 = vld [vmem:[#allocation2 + $0x3f1] sm:$0xff]  ;;  %v22116_v3 = vld [vmem:[#allocation2 + $0x541] sm:$0xff] }
 0x5c5   : > { %16872 = vmatpush3.bf16.xpose.msk.msra.mxu1 %vm19542_vm4, %v16870_v50  ;;  %v5316_v50 = vld [vmem:[#allocation2 + $0x142] sm:$0xff] }
 0x5c6   : > { %16875 = vmatprep.subr.msk.bf16.mxu1 %vm19542_vm4, %v16873_v4  ;;  %v22098_v4 = vld [vmem:[#allocation2 + $0x531] sm:$0xff]  ;;  %v16930_v37 = vpack.c.bf16 %v22096_v26, %v5316_v50 }
 0x5c9   : > { %16926 = vmatpush3.bf16.xpose.msk.msra.mxu0 %vm19542_vm4, %v21714_v40 }
 0x5ca   : > { %16929 = vmatprep.subr.msk.bf16.mxu0 %vm19542_vm4, %v16927_v27  ;;  %v18697_v27 = vld [vmem:[#allocation2 + $0x3e1] sm:$0xff] }
 0x5cb   : > { %v16888_v50 = vpack.c.bf16 %v18698_v43, %v18697_v27  ;;  %v18699_v27 = vld [vmem:[#allocation2 + $0x401] sm:$0xff]  ;;  %v18700_v43 = vld [vmem:[#allocation2 + $0x411] sm:$0xff] }
 0x5cd   : > { %16878 = vmatpush3.bf16.xpose.msk.msra.mxu1 %vm19542_vm4, %v16876_v49  ;;  %v22101_v49 = vld [vmem:[#allocation2 + $0x521] sm:$0xff] }
 0x5ce   : > { %16881 = vmatprep.subr.msk.bf16.mxu1 %vm19542_vm4, %v16879_v1  ;;  %v16885_v40 = vpack.c.bf16 %v22098_v4, %v22101_v49  ;;  %v22114_v1 = vld [vmem:[#allocation2 + $0x551] sm:$0xff] }
 0x5d1   : > { %16932 = vmatpush3.bf16.xpose.msk.msra.mxu0 %vm19542_vm4, %v16930_v37  ;;  %v22132_v37 = vld [vmem:[#allocation2 + $0x530] sm:$0xff] }
 0x5d2   : > { %16935 = vmatprep.subr.msk.bf16.mxu0 %vm19542_vm4, %v21748_v10  ;;  %v22130_v10 = vld [vmem:[#allocation2 + $0x571] sm:$0xff] }
 0x5d5   : > { %16884 = vmatpush3.bf16.xpose.msk.msra.mxu1 %vm19542_vm4, %v16882_v47  ;;  %v16891_v47 = vpack.c.bf16 %v22114_v1, %v22116_v3 }
 0x5d6   : > { %16887 = vmatprep.subr.msk.bf16.mxu1 %vm19542_vm4, %v16885_v40  ;;  %v22134_v40 = vld [vmem:[#allocation2 + $0x531] sm:$0xff] }
 0x5d7   : > { %25202 = vst [vmem:[#allocation21_spill] sm:$0xff] %v22134_v40  ;;  %v18703_v40 = vld [vmem:[#allocation2 + $0xc0] sm:$0xff] }
 0x5d9   : > { %16938 = vmatpush3.bf16.xpose.msk.msra.mxu0 %vm19542_vm4, %v21576_v52  ;;  %v16897_v52 = vpack.c.bf16 %v22130_v10, %v22136_v17 }
 0x5da   : > { %16941 = vmatprep.subr.msk.bf16.mxu0 %vm19542_vm4, %v21777_v34 }
 0x5dd   : > { %16890 = vmatpush3.bf16.xpose.msk.msra.mxu1 %vm19542_vm4, %v16888_v50  ;;  %v16894_v50 = vpack.c.bf16 %v18700_v43, %v18699_v27  ;;  %v22158_v43 = vld [vmem:[#allocation2 + $0x431] sm:$0xff]  ;;  %v18702_v27 = vld [vmem:[#allocation2 + $0x200] sm:$0xff] }
 0x5de   : > { %16893 = vmatprep.subr.msk.bf16.mxu1 %vm19542_vm4, %v16891_v47  ;;  %v22142_v47 = vld [vmem:[#allocation2 + $0x521] sm:$0xff] }
 0x5df   : > { %25204 = vst [vmem:[#allocation164_spill] sm:$0xff] %v22142_v47  ;;  %v16999_v47 = vpack.c.bf16 %v18702_v27, %v21730_v0  ;;  %v22180_v0 = vld [vmem:[#allocation2 + $0x332] sm:$0xff] }
 0x5e0   : > { %v22182_v27 = vld [vmem:[#allocation2 + $0x570] sm:$0xff] }
 0x5e1   : > { %16944 = vmatpush3.bf16.xpose.msk.msra.mxu0 %vm19542_vm4, %v21594_v22  ;;  %v18701_v22 = vld [vmem:[#allocation2 + $0x421] sm:$0xff] }
 0x5e2   : > { %16947 = vmatprep.subr.msk.bf16.mxu0 %vm19542_vm4, %v21793_v20  ;;  %v16900_v34 = vpack.c.bf16 %v22158_v43, %v18701_v22  ;;  %v22184_v22 = vld [vmem:[#allocation2 + $0x532] sm:$0xff] }
 0x5e3   : > { %25207 = vst [vmem:[#allocation34_spill] sm:$0xff] %v22184_v22  ;;  %v22224_v22 = vld [vmem:[#allocation2 + $0x542] sm:$0xff] }
 0x5e4   : > { %25212 = vst [vmem:[#allocation51_spill] sm:$0xff] %v22224_v22  ;;  %v22249_v22 = vld [vmem:[#allocation2 + $0x562] sm:$0xff] }
 0x5e5   : > { %16896 = vmatpush3.bf16.xpose.msk.msra.mxu1 %vm19542_vm4, %v16894_v50  ;;  %v5356_v50 = vld [vmem:[#allocation2 + $0x462] sm:$0xff] }
 0x5e6   : > { %16899 = vmatprep.subr.msk.bf16.mxu1 %vm19542_vm4, %v16897_v52  ;;  %v16951_v18 = vpack.c.bf16 %v22160_v42, %v5356_v50  ;;  %v22167_v52 = vld [vmem:[#allocation2 + $0x540] sm:$0xff] }
 0x5e7   : > { %25206 = vst [vmem:[#allocation20_spill] sm:$0xff] %v22167_v52  ;;  %v5340_v50 = vld [vmem:[#allocation2 + $0x322] sm:$0xff] }
 0x5e8   : > { %v22195_v52 = vld [vmem:[%s24349_s3 + $0x60] sm:$0xff] }
 0x5e9   : > { %16950 = vmatpush3.bf16.xpose.msk.msra.mxu0 %vm19542_vm4, %v21620_v12  ;;  %v17002_v12 = vpack.c.bf16 %v18703_v40, %v21746_v57  ;;  %v22218_v40 = vld [vmem:[#allocation2 + $0x551] sm:$0xff]  ;;  %v18709_v57 = vld [vmem:[#allocation2 + $0x240] sm:$0xff] }
 0x5ea   : > { %17001 = vmatprep.subr.msk.bf16.mxu0 %vm19542_vm4, %v16999_v47  ;;  %v18705_v47 = vld [vmem:[#allocation2 + $0x220] sm:$0xff] }
 0x5ed   : > { %16902 = vmatpush3.bf16.xpose.msk.msra.mxu1 %vm19542_vm4, %v16900_v34  ;;  %v16954_v34 = vpack.c.bf16 %v22180_v0, %v5340_v50  ;;  %v22199_v50 = vld [vmem:[#allocation2 + $0x522] sm:$0xff] }
 0x5ee   : > { %16953 = vmatprep.subr.msk.bf16.mxu1 %vm19542_vm4, %v16951_v18  ;;  %v18704_v18 = vld [vmem:[#allocation2 + $0x210] sm:$0xff]  ;;  %25209 = vst [vmem:[#allocation44_spill] sm:$0xff] %v22199_v50 }
 0x5ef   : > { %v17005_v20 = vpack.c.bf16 %v18705_v47, %v18704_v18  ;;  %v18707_v18 = vld [vmem:[#allocation2 + $0xe0] sm:$0xff] }
 0x5f0   : > { %14792 = vmatmul.mubr.msk.f32.vlgmr.msra.gmra.mrb[2].mxu0 %vm442_vm2, %v22040_v7 }
 0x5f1   : > { %17004 = vmatpush3.bf16.xpose.msk.msra.mxu0 %vm19542_vm4, %v17002_v12  ;;  %14859 = vmatprep.mubr.msk.f32.mxu0 %vm442_vm2, %v22195_v52  ;;  %v18706_v12 = vld [vmem:[#allocation2 + $0xd0] sm:$0xff] }
 0x5f2   : > { %17007 = vmatprep.subr.msk.bf16.mxu0 %vm19542_vm4, %v17005_v20  ;;  %v17008_v47 = vpack.c.bf16 %v18707_v18, %v18706_v12  ;;  %v18710_v18 = vld [vmem:[#allocation2 + $0xf0] sm:$0xff]  ;;  %v22247_v12 = vld [vmem:[#allocation2 + $0x561] sm:$0xff] }
 0x5f3   : > { %v18712_v20 = vld [vmem:[#allocation2 + $0x250] sm:$0xff] }
 0x5f4   : > { %14758 = vmatmul.mubr.msk.f32.vlgmr.msra.gmra.mrb[2].mxu1 %vm442_vm2, %v21894_v31  ;;  %v18708_v31 = vld [vmem:[#allocation2 + $0x230] sm:$0xff] }
 0x5f5   : > { %16956 = vmatpush3.bf16.xpose.msk.msra.mxu1 %vm19542_vm4, %v16954_v34  ;;  %14825 = vmatprep.mubr.msk.f32.mxu1 %vm442_vm2, %v22040_v7  ;;  %v22220_v34 = vld [vmem:[#allocation2 + $0x552] sm:$0xff]  ;;  %v17011_v50 = vpack.c.bf16 %v18709_v57, %v18708_v31  ;;  %v22240_v57 = vld [vmem:[#allocation2 + $0x260] sm:$0xff] }
 0x5f6   : > { %16959 = vmatprep.subr.msk.bf16.mxu1 %vm19542_vm4, %v21810_v63  ;;  %25210 = vst [vmem:[#allocation41_spill] sm:$0xff] %v22220_v34  ;;  %v22222_v63 = vld [vmem:[#allocation2 + $0x541] sm:$0xff]  ;;  %v22242_v31 = vld [vmem:[#allocation2 + $0x571] sm:$0xff] }
 0x5f7   : > { %25211 = vst [vmem:[#allocation54_spill] sm:$0xff] %v22222_v63  ;;  %v17017_v63 = vpack.c.bf16 %v22240_v57, %v18712_v20  ;;  %v22265_v20 = vld [vmem:[#allocation2 + $0x120] sm:$0xff] }
 0x5f8   : > { %v18714_v34 = vld [vmem:[#allocation2 + $0x2a0] sm:$0xff] }
 0x5f9   : > { %17010 = vmatpush3.bf16.xpose.msk.msra.mxu0 %vm19542_vm4, %v17008_v47  ;;  %v18711_v47 = vld [vmem:[#allocation2 + $0x100] sm:$0xff] }
 0x5fa   : > { %17013 = vmatprep.subr.msk.bf16.mxu0 %vm19542_vm4, %v17011_v50  ;;  %v17014_v11 = vpack.c.bf16 %v18711_v47, %v18710_v18  ;;  %v5364_v18 = vld [vmem:[#allocation2 + $0x502] sm:$0xff] }
 0x5fb   : > { %v18717_v50 = vld [vmem:[#allocation2 + $0x2c0] sm:$0xff] }
 0x5fd   : > { %16962 = vmatpush3.bf16.xpose.msk.msra.mxu1 %vm19542_vm4, %v21825_v45  ;;  %v22244_v45 = vld [vmem:[#allocation2 + $0x572] sm:$0xff] }
 0x5fe   : > { %16965 = vmatprep.subr.msk.bf16.mxu1 %vm19542_vm4, %v21828_v14  ;;  %v17023_v14 = vpack.c.bf16 %v18714_v34, %v21807_v46  ;;  %v18716_v34 = vld [vmem:[#allocation2 + $0x2b0] sm:$0xff] }
 0x601   : > { %17016 = vmatpush3.bf16.xpose.msk.msra.mxu0 %vm19542_vm4, %v17014_v11  ;;  %v16975_v11 = vpack.c.bf16 %v21981_v16, %v5364_v18 }
 0x602   : > { %17019 = vmatprep.subr.msk.bf16.mxu0 %vm19542_vm4, %v17017_v63  ;;  %v22279_v63 = vld [vmem:[#allocation2 + $0x3d2] sm:$0xff] }
 0x605   : > { %16968 = vmatpush3.bf16.xpose.msk.msra.mxu1 %vm19542_vm4, %v21841_v58  ;;  %v18713_v58 = vld [vmem:[#allocation2 + $0x110] sm:$0xff] }
 0x606   : > { %16971 = vmatprep.subr.msk.bf16.mxu1 %vm19542_vm4, %v21843_v39  ;;  %v17020_v47 = vpack.c.bf16 %v22265_v20, %v18713_v58  ;;  %v5348_v39 = vld [vmem:[#allocation2 + $0x3c2] sm:$0xff] }
 0x607   : > { %v16978_v18 = vpack.c.bf16 %v22279_v63, %v5348_v39  ;;  %v18715_v58 = vld [vmem:[#allocation2 + $0x160] sm:$0xff]  ;;  %v16987_v39 = vpack.c.bf16 %v22028_v25, %v22003_v19 }
 0x608   : > { %v17026_v46 = vpack.c.bf16 %v18715_v58, %v21823_v41  ;;  %v18719_v41 = vld [vmem:[#allocation2 + $0x180] sm:$0xff]  ;;  %v18720_v58 = vld [vmem:[#allocation2 + $0x2d0] sm:$0xff] }
 0x609   : > { %17022 = vmatpush3.bf16.xpose.msk.msra.mxu0 %vm19542_vm4, %v17020_v47  ;;  %v17029_v47 = vpack.c.bf16 %v18717_v50, %v18716_v34  ;;  %v18721_v50 = vld [vmem:[#allocation2 + $0x2e0] sm:$0xff] }
 0x60a   : > { %17025 = vmatprep.subr.msk.bf16.mxu0 %vm19542_vm4, %v17023_v14  ;;  %v18718_v14 = vld [vmem:[#allocation2 + $0x170] sm:$0xff]  ;;  %v17035_v34 = vpack.c.bf16 %v18721_v50, %v18720_v58 }
 0x60d   : > { %16974 = vmatpush3.bf16.xpose.msk.msra.mxu1 %vm19542_vm4, %v21857_v62  ;;  %v16981_v62 = vpack.c.bf16 %v22009_v9, %v21983_v8 }
 0x60e   : > { %16977 = vmatprep.subr.msk.bf16.mxu1 %vm19542_vm4, %v16975_v11  ;;  %v17032_v11 = vpack.c.bf16 %v18719_v41, %v18718_v14 }
 0x611   : > { %17028 = vmatpush3.bf16.xpose.msk.msra.mxu0 %vm19542_vm4, %v17026_v46  ;;  %v22306_v46 = vld [vmem:[#allocation2 + $0x300] sm:$0xff] }
 0x612   : > { %17031 = vmatprep.subr.msk.bf16.mxu0 %vm19542_vm4, %v17029_v47  ;;  %v18723_v47 = vld [vmem:[#allocation2 + $0x1a0] sm:$0xff] }
 0x615   : > { %16980 = vmatpush3.bf16.xpose.msk.msra.mxu1 %vm19542_vm4, %v16978_v18  ;;  %v22304_v18 = vld [vmem:[#allocation2 + $0x572] sm:$0xff] }
 0x616   : > { %16983 = vmatprep.subr.msk.bf16.mxu1 %vm19542_vm4, %v16981_v62  ;;  %v18722_v62 = vld [vmem:[#allocation2 + $0x190] sm:$0xff]  ;;  %v16993_v41 = vpack.c.bf16 %v22304_v18, %v22024_v6 }
 0x617   : > { %v17038_v14 = vpack.c.bf16 %v18723_v47, %v18722_v62  ;;  %v25214_v47 = vld [vmem:[#allocation60_spill] sm:$0xff] }
 0x619   : > { %17034 = vmatpush3.bf16.xpose.msk.msra.mxu0 %vm19542_vm4, %v17032_v11  ;;  %v22320_v11 = vld [vmem:[#allocation2 + $0x1c0] sm:$0xff] }
 0x61a   : > { %17037 = vmatprep.subr.msk.bf16.mxu0 %vm19542_vm4, %v17035_v34  ;;  %v18726_v34 = vld [vmem:[#allocation2 + $0x480] sm:$0xff] }
 0x61b   : > { %v17047_v62 = vpack.c.bf16 %v18726_v34, %v21871_v24  ;;  %v18729_v24 = vld [vmem:[#allocation2 + $0x4a0] sm:$0xff]  ;;  %v25217_v34 = vld [vmem:[#allocation92_spill] sm:$0xff] }
 0x61d   : > { %16986 = vmatpush3.bf16.xpose.msk.msra.mxu1 %vm19542_vm4, %v21734_v48  ;;  %v18724_v48 = vld [vmem:[#allocation2 + $0x2f0] sm:$0xff] }
 0x61e   : > { %16989 = vmatprep.subr.msk.bf16.mxu1 %vm19542_vm4, %v16987_v39  ;;  %v17041_v58 = vpack.c.bf16 %v22306_v46, %v18724_v48  ;;  %v18725_v39 = vld [vmem:[#allocation2 + $0x1b0] sm:$0xff] }
 0x61f   : > { %v17044_v50 = vpack.c.bf16 %v22320_v11, %v18725_v39  ;;  %v22344_v39 = vld [vmem:[%s24349_s3 + $0x68] sm:$0xff] }
 0x621   : > { %17040 = vmatpush3.bf16.xpose.msk.msra.mxu0 %vm19542_vm4, %v17038_v14 }
 0x622   : > { %17043 = vmatprep.subr.msk.bf16.mxu0 %vm19542_vm4, %v17041_v58 }
 0x625   : > { %16992 = vmatpush3.bf16.xpose.msk.msra.mxu1 %vm19542_vm4, %v21755_v60  ;;  %v25213_v60 = vld [vmem:[#allocation62_spill] sm:$0xff] }
 0x626   : > { %16995 = vmatprep.subr.msk.bf16.mxu1 %vm19542_vm4, %v16993_v41  ;;  %v25215_v14 = vpack.c.bf16 %v25213_v60, %v25214_v47  ;;  %v18727_v41 = vld [vmem:[#allocation2 + $0x340] sm:$0xff]  ;;  %v18730_v47 = vld [vmem:[#allocation2 + $0x350] sm:$0xff] }
 0x627   : > { %v17050_v48 = vpack.c.bf16 %v18727_v41, %v21884_v15 }
 0x629   : > { %17046 = vmatpush3.bf16.xpose.msk.msra.mxu0 %vm19542_vm4, %v17044_v50  ;;  %v25216_v50 = vld [vmem:[#allocation94_spill] sm:$0xff] }
 0x62a   : > { %17097 = vmatprep.subr.msk.bf16.mxu0 %vm19542_vm4, %v25215_v14  ;;  %v25218_v15 = vpack.c.bf16 %v25216_v50, %v25217_v34  ;;  %v18731_v14 = vld [vmem:[#allocation2 + $0x360] sm:$0xff] }
 0x62b   : > { %v17056_v41 = vpack.c.bf16 %v18731_v14, %v18730_v47  ;;  %v25223_v50 = vld [vmem:[#allocation95_spill] sm:$0xff]  ;;  %v18734_v14 = vld [vmem:[#allocation2 + $0x370] sm:$0xff] }
 0x62c   : > { %v22380_v47 = vld [vmem:[#allocation2 + $0x261] sm:$0xff] }
 0x62d   : > { %16998 = vmatpush3.bf16.xpose.msk.msra.mxu1 %vm19542_vm4, %v21779_v61  ;;  %v18728_v61 = vld [vmem:[#allocation2 + $0x490] sm:$0xff] }
 0x62e   : > { %17049 = vmatprep.subr.msk.bf16.mxu1 %vm19542_vm4, %v17047_v62  ;;  %v17053_v58 = vpack.c.bf16 %v18729_v24, %v18728_v61  ;;  %v25220_v62 = vld [vmem:[#allocation93_spill] sm:$0xff]  ;;  %v18733_v61 = vld [vmem:[#allocation2 + $0x4c0] sm:$0xff] }
 0x630   : > { %14860 = vmatmul.mubr.msk.f32.vlgmr.msra.gmra.mrb[2].mxu0 %vm442_vm2, %v22195_v52 }
 0x631   : > { %17100 = vmatpush3.bf16.xpose.msk.msra.mxu0 %vm19542_vm4, %v25218_v15  ;;  %14927 = vmatprep.mubr.msk.f32.mxu0 %vm442_vm2, %v22344_v39  ;;  %v25225_v15 = vld [vmem:[#allocation99_spill] sm:$0xff] }
 0x634   : > { %14826 = vmatmul.mubr.msk.f32.vlgmr.msra.gmra.mrb[2].mxu1 %vm442_vm2, %v22040_v7  ;;  %v25219_v7 = vld [vmem:[#allocation96_spill] sm:$0xff] }
 0x635   : > { %17052 = vmatpush3.bf16.xpose.msk.msra.mxu1 %vm19542_vm4, %v17050_v48  ;;  %v25221_v60 = vpack.c.bf16 %v25219_v7, %v25220_v62  ;;  %14893 = vmatprep.mubr.msk.f32.mxu1 %vm442_vm2, %v22195_v52  ;;  %v18732_v48 = vld [vmem:[#allocation2 + $0x4b0] sm:$0xff]  ;;  %v25226_v7 = vld [vmem:[#allocation98_spill] sm:$0xff] }
 0x636   : > { %17055 = vmatprep.subr.msk.bf16.mxu1 %vm19542_vm4, %v17053_v58  ;;  %v17059_v24 = vpack.c.bf16 %v18733_v61, %v18732_v48  ;;  %v25222_v58 = vld [vmem:[#allocation97_spill] sm:$0xff]  ;;  %v25227_v62 = vpack.c.bf16 %v25225_v15, %v25226_v7  ;;  %v22396_v7 = vld [vmem:[#allocation2 + $0x3a0] sm:$0xff] }
 0x637   : > { %17103 = vmatprep.subr.msk.bf16.mxu0 %vm19542_vm4, %v25221_v60  ;;  %v25224_v34 = vpack.c.bf16 %v25222_v58, %v25223_v50  ;;  %v22378_v60 = vld [vmem:[#allocation2 + $0x4e0] sm:$0xff]  ;;  %v18736_v61 = vld [vmem:[#allocation2 + $0x4d0] sm:$0xff]  ;;  %v17113_v50 = vpack.c.bf16 %v22380_v47, %v21919_v5 }
 0x638   : > { %v17065_v58 = vpack.c.bf16 %v22378_v60, %v18736_v61  ;;  %v18737_v5 = vld [vmem:[#allocation2 + $0x390] sm:$0xff]  ;;  %v25231_v61 = vld [vmem:[#allocation103_spill] sm:$0xff] }
 0x639   : > { %17106 = vmatpush3.bf16.xpose.msk.msra.mxu0 %vm19542_vm4, %v25224_v34  ;;  %v25229_v34 = vld [vmem:[#allocation100_spill] sm:$0xff] }
 0x63a   : > { %17109 = vmatprep.subr.msk.bf16.mxu0 %vm19542_vm4, %v25227_v62  ;;  %v22398_v62 = vld [vmem:[#allocation2 + $0x121] sm:$0xff] }
 0x63d   : > { %17058 = vmatpush3.bf16.xpose.msk.msra.mxu1 %vm19542_vm4, %v17056_v41  ;;  %v18735_v41 = vld [vmem:[#allocation2 + $0x380] sm:$0xff] }
 0x63e   : > { %17061 = vmatprep.subr.msk.bf16.mxu1 %vm19542_vm4, %v17059_v24  ;;  %v17062_v48 = vpack.c.bf16 %v18735_v41, %v18734_v14  ;;  %v25228_v24 = vld [vmem:[#allocation101_spill] sm:$0xff]  ;;  %v17068_v14 = vpack.c.bf16 %v22396_v7, %v18737_v5  ;;  %v17116_v41 = vpack.c.bf16 %v22398_v62, %v21934_v53  ;;  %v25237_v5 = vld [vmem:[#allocation110_spill] sm:$0xff] }
 0x63f   : > { %v25230_v15 = vpack.c.bf16 %v25228_v24, %v25229_v34  ;;  %v18738_v24 = vld [vmem:[#allocation2 + $0x3e0] sm:$0xff]  ;;  %v25235_v34 = vld [vmem:[#allocation104_spill] sm:$0xff] }
 0x640   : > { %v17074_v53 = vpack.c.bf16 %v18738_v24, %v21949_v44  ;;  %v18739_v44 = vld [vmem:[#allocation2 + $0x3f0] sm:$0xff]  ;;  %v25243_v24 = vld [vmem:[#allocation112_spill] sm:$0xff] }
 0x641   : > { %17112 = vmatpush3.bf16.xpose.msk.msra.mxu0 %vm19542_vm4, %v25230_v15 }
 0x642   : > { %17115 = vmatprep.subr.msk.bf16.mxu0 %vm19542_vm4, %v17113_v50 }
 0x645   : > { %17064 = vmatpush3.bf16.xpose.msk.msra.mxu1 %vm19542_vm4, %v17062_v48  ;;  %v17071_v48 = vpack.c.bf16 %v21951_v38, %v21932_v36  ;;  %v17077_v36 = vpack.c.bf16 %v21966_v30, %v21947_v56  ;;  %v25234_v38 = vld [vmem:[#allocation105_spill] sm:$0xff]  ;;  %v18740_v56 = vld [vmem:[#allocation2 + $0x400] sm:$0xff] }
 0x646   : > { %17067 = vmatprep.subr.msk.bf16.mxu1 %vm19542_vm4, %v17065_v58  ;;  %v25232_v58 = vld [vmem:[#allocation102_spill] sm:$0xff]  ;;  %v25236_v15 = vpack.c.bf16 %v25234_v38, %v25235_v34  ;;  %v17080_v30 = vpack.c.bf16 %v18740_v56, %v18739_v44  ;;  %v22449_v38 = vld [vmem:[#allocation2 + $0x580] sm:$0xff] }
 0x647   : > { %v25233_v50 = vpack.c.bf16 %v25231_v61, %v25232_v58  ;;  %v25240_v61 = vld [vmem:[#allocation111_spill] sm:$0xff]  ;;  %v25241_v58 = vld [vmem:[#allocation109_spill] sm:$0xff]  ;;  %v25247_v44 = vld [vmem:[#allocation114_spill] sm:$0xff] }
 0x648   : > { %v18742_v34 = vld [vmem:[#allocation2 + $0x420] sm:$0xff] }
 0x649   : > { %17118 = vmatpush3.bf16.xpose.msk.msra.mxu0 %vm19542_vm4, %v17116_v41 }
 0x64a   : > { %17121 = vmatprep.subr.msk.bf16.mxu0 %vm19542_vm4, %v25233_v50  ;;  %v25242_v50 = vpack.c.bf16 %v25240_v61, %v25241_v58  ;;  %v18744_v58 = vld [vmem:[#allocation2 + $0x202] sm:$0xff] }
 0x64d   : > { %17070 = vmatpush3.bf16.xpose.msk.msra.mxu1 %vm19542_vm4, %v17068_v14  ;;  %v25238_v14 = vld [vmem:[#allocation108_spill] sm:$0xff] }
 0x64e   : > { %17073 = vmatprep.subr.msk.bf16.mxu1 %vm19542_vm4, %v17071_v48  ;;  %v25239_v41 = vpack.c.bf16 %v25237_v5, %v25238_v14  ;;  %v17083_v48 = vpack.c.bf16 %v21987_v55, %v21964_v29  ;;  %v22451_v29 = vld [vmem:[#allocation2 + $0x301] sm:$0xff]  ;;  %v18741_v55 = vld [vmem:[#allocation2 + $0x410] sm:$0xff]  ;;  %v17089_v5 = vpack.c.bf16 %v22449_v38, %v21979_v23 }
 0x64f   : > { %v17137_v14 = vpack.c.bf16 %v22451_v29, %v21985_v59  ;;  %v22470_v23 = vld [vmem:[#allocation2 + $0x1c1] sm:$0xff]  ;;  %v18743_v59 = vld [vmem:[#allocation2 + $0x430] sm:$0xff] }
 0x650   : > { %v17140_v61 = vpack.c.bf16 %v22470_v23, %v22005_v2 }
 0x651   : > { %17124 = vmatpush3.bf16.xpose.msk.msra.mxu0 %vm19542_vm4, %v25236_v15  ;;  %v17086_v15 = vpack.c.bf16 %v18742_v34, %v18741_v55  ;;  %v18745_v55 = vld [vmem:[#allocation2 + $0xc2] sm:$0xff] }
 0x652   : > { %17127 = vmatprep.subr.msk.bf16.mxu0 %vm19542_vm4, %v25239_v41  ;;  %v25246_v41 = vld [vmem:[#allocation115_spill] sm:$0xff]  ;;  %v17194_v2 = vpack.c.bf16 %v18745_v55, %v22026_v28  ;;  %v25255_v28 = vld [vmem:[#allocation170_spill] sm:$0xff] }
 0x653   : > { %v25248_v56 = vpack.c.bf16 %v25246_v41, %v25247_v44  ;;  %v18747_v34 = vld [vmem:[#allocation2 + $0x222] sm:$0xff]  ;;  %v25253_v41 = vld [vmem:[#allocation118_spill] sm:$0xff] }
 0x655   : > { %17076 = vmatpush3.bf16.xpose.msk.msra.mxu1 %vm19542_vm4, %v17074_v53  ;;  %v25244_v53 = vld [vmem:[#allocation113_spill] sm:$0xff] }
 0x656   : > { %17079 = vmatprep.subr.msk.bf16.mxu1 %vm19542_vm4, %v17077_v36  ;;  %v25245_v36 = vpack.c.bf16 %v25243_v24, %v25244_v53  ;;  %v25249_v24 = vld [vmem:[#allocation127_spill] sm:$0xff]  ;;  %v25250_v53 = vld [vmem:[#allocation126_spill] sm:$0xff] }
 0x659   : > { %17130 = vmatpush3.bf16.xpose.msk.msra.mxu0 %vm19542_vm4, %v25242_v50  ;;  %v17191_v50 = vpack.c.bf16 %v18744_v58, %v22007_v35  ;;  %v18746_v35 = vld [vmem:[#allocation2 + $0x212] sm:$0xff] }
 0x65a   : > { %17133 = vmatprep.subr.msk.bf16.mxu0 %vm19542_vm4, %v25245_v36  ;;  %v25251_v36 = vpack.c.bf16 %v25249_v24, %v25250_v53  ;;  %v18750_v58 = vld [vmem:[#allocation2 + $0x232] sm:$0xff] }
 0x65b   : > { %v25258_v53 = vld [vmem:[#allocation121_spill] sm:$0xff] }
 0x65d   : > { %17082 = vmatpush3.bf16.xpose.msk.msra.mxu1 %vm19542_vm4, %v17080_v30  ;;  %v22468_v30 = vld [vmem:[#allocation2 + $0x440] sm:$0xff] }
 0x65e   : > { %17085 = vmatprep.subr.msk.bf16.mxu1 %vm19542_vm4, %v17083_v48  ;;  %v17092_v48 = vpack.c.bf16 %v22468_v30, %v18743_v59  ;;  %v18748_v59 = vld [vmem:[#allocation2 + $0xd2] sm:$0xff] }
 0x661   : > { %17136 = vmatpush3.bf16.xpose.msk.msra.mxu0 %vm19542_vm4, %v25248_v56 }
 0x662   : > { %17139 = vmatprep.subr.msk.bf16.mxu0 %vm19542_vm4, %v17137_v14  ;;  %v25252_v14 = vld [vmem:[#allocation119_spill] sm:$0xff] }
 0x663   : > { %v25254_v44 = vpack.c.bf16 %v25252_v14, %v25253_v41  ;;  %v22531_v14 = vld [vmem:[#allocation2 + $0x262] sm:$0xff]  ;;  %v18752_v41 = vld [vmem:[#allocation2 + $0xf2] sm:$0xff] }
 0x665   : > { %17088 = vmatpush3.bf16.xpose.msk.msra.mxu1 %vm19542_vm4, %v17086_v15  ;;  %v17197_v15 = vpack.c.bf16 %v18747_v34, %v18746_v35  ;;  %v25262_v35 = vld [vmem:[#allocation202_spill] sm:$0xff] }
 0x666   : > { %17091 = vmatprep.subr.msk.bf16.mxu1 %vm19542_vm4, %v17089_v5  ;;  %v22495_v5 = vld [vmem:[%s24349_s3 + $0x70] sm:$0xff] }
 0x669   : > { %17142 = vmatpush3.bf16.xpose.msk.msra.mxu0 %vm19542_vm4, %v17140_v61 }
 0x66a   : > { %17193 = vmatprep.subr.msk.bf16.mxu0 %vm19542_vm4, %v17191_v50  ;;  %v18751_v50 = vld [vmem:[#allocation2 + $0x242] sm:$0xff] }
 0x66b   : > { %v17203_v24 = vpack.c.bf16 %v18751_v50, %v18750_v58  ;;  %v22547_v50 = vld [vmem:[#allocation2 + $0x3a1] sm:$0xff] }
 0x66d   : > { %17094 = vmatpush3.bf16.xpose.msk.msra.mxu1 %vm19542_vm4, %v17092_v48  ;;  %v18749_v48 = vld [vmem:[#allocation2 + $0xe2] sm:$0xff] }
 0x66e   : > { %17145 = vmatprep.subr.msk.bf16.mxu1 %vm19542_vm4, %v25251_v36  ;;  %v17200_v61 = vpack.c.bf16 %v18749_v48, %v18748_v59  ;;  %v25259_v36 = vld [vmem:[#allocation120_spill] sm:$0xff]  ;;  %v25264_v48 = vld [vmem:[#allocation123_spill] sm:$0xff] }
 0x66f   : > { %v25260_v55 = vpack.c.bf16 %v25258_v53, %v25259_v36  ;;  %v18755_v53 = vld [vmem:[#allocation2 + $0x112] sm:$0xff] }
 0x670   : > { %14928 = vmatmul.mubr.msk.f32.vlgmr.msra.gmra.mrb[2].mxu0 %vm442_vm2, %v22344_v39 }
 0x671   : > { %17196 = vmatpush3.bf16.xpose.msk.msra.mxu0 %vm19542_vm4, %v17194_v2  ;;  %14995 = vmatprep.mubr.msk.f32.mxu0 %vm442_vm2, %v22495_v5  ;;  %v25261_v2 = vld [vmem:[#allocation199_spill] sm:$0xff] }
 0x672   : > { %17199 = vmatprep.subr.msk.bf16.mxu0 %vm19542_vm4, %v17197_v15  ;;  %v25263_v34 = vpack.c.bf16 %v25261_v2, %v25262_v35  ;;  %v22529_v15 = vld [vmem:[#allocation2 + $0x4e1] sm:$0xff] }
 0x673   : > { %v18756_v2 = vld [vmem:[#allocation2 + $0x2a2] sm:$0xff] }
 0x674   : > { %14894 = vmatmul.mubr.msk.f32.vlgmr.msra.gmra.mrb[2].mxu1 %vm442_vm2, %v22195_v52  ;;  %v25256_v52 = vld [vmem:[#allocation182_spill] sm:$0xff]  ;;  %v17215_v35 = vpack.c.bf16 %v18756_v2, %v22082_v51  ;;  %v18759_v51 = vld [vmem:[#allocation2 + $0x2c2] sm:$0xff] }
 0x675   : > { %17148 = vmatpush3.bf16.xpose.msk.msra.mxu1 %vm19542_vm4, %v25254_v44  ;;  %v25257_v56 = vpack.c.bf16 %v25255_v28, %v25256_v52  ;;  %14961 = vmatprep.mubr.msk.f32.mxu1 %vm442_vm2, %v22344_v39  ;;  %v18753_v44 = vld [vmem:[#allocation2 + $0x102] sm:$0xff]  ;;  %v17161_v52 = vpack.c.bf16 %v22529_v15, %v22065_v32 }
 0x676   : > { %v17206_v28 = vpack.c.bf16 %v18753_v44, %v18752_v41  ;;  %v22549_v32 = vld [vmem:[#allocation2 + $0x122] sm:$0xff]  ;;  %v25267_v44 = vld [vmem:[#allocation129_spill] sm:$0xff] }
 0x677   : > { %17151 = vmatprep.subr.msk.bf16.mxu1 %vm19542_vm4, %v25257_v56  ;;  %v18754_v56 = vld [vmem:[#allocation2 + $0x252] sm:$0xff]  ;;  %v17212_v36 = vpack.c.bf16 %v22549_v32, %v18755_v53 }
 0x678   : > { %v17209_v59 = vpack.c.bf16 %v22531_v14, %v18754_v56  ;;  %v17179_v56 = vpack.c.bf16 %v22136_v17, %v22114_v1  ;;  %v22594_v17 = vld [vmem:[#allocation2 + $0x302] sm:$0xff]  ;;  %v18764_v1 = vld [vmem:[#allocation2 + $0x192] sm:$0xff] }
 0x679   : > { %17202 = vmatpush3.bf16.xpose.msk.msra.mxu0 %vm19542_vm4, %v17200_v61  ;;  %v25265_v61 = vld [vmem:[#allocation122_spill] sm:$0xff] }
 0x67a   : > { %17205 = vmatprep.subr.msk.bf16.mxu0 %vm19542_vm4, %v17203_v24  ;;  %v25266_v58 = vpack.c.bf16 %v25264_v48, %v25265_v61  ;;  %v17164_v24 = vpack.c.bf16 %v22547_v50, %v22078_v33  ;;  %v18757_v33 = vld [vmem:[#allocation2 + $0x162] sm:$0xff] }
 0x67b   : > { %v18763_v48 = vld [vmem:[#allocation2 + $0x2e2] sm:$0xff] }
 0x67d   : > { %17154 = vmatpush3.bf16.xpose.msk.msra.mxu1 %vm19542_vm4, %v25260_v55  ;;  %v17167_v55 = vpack.c.bf16 %v22101_v49, %v22080_v13  ;;  %v17173_v13 = vpack.c.bf16 %v22116_v3, %v22098_v4  ;;  %v18758_v49 = vld [vmem:[#allocation2 + $0x2b2] sm:$0xff]  ;;  %v18761_v4 = vld [vmem:[#allocation2 + $0x182] sm:$0xff] }
 0x67e   : > { %17157 = vmatprep.subr.msk.bf16.mxu1 %vm19542_vm4, %v25263_v34  ;;  %v17218_v34 = vpack.c.bf16 %v18757_v33, %v22096_v26  ;;  %v17221_v41 = vpack.c.bf16 %v18759_v51, %v18758_v49  ;;  %v18760_v26 = vld [vmem:[#allocation2 + $0x172] sm:$0xff] }
 0x67f   : > { %v17224_v3 = vpack.c.bf16 %v18761_v4, %v18760_v26  ;;  %v18766_v33 = vld [vmem:[#allocation2 + $0x2f2] sm:$0xff]  ;;  %v18768_v26 = vld [vmem:[#allocation2 + $0x482] sm:$0xff] }
 0x680   : > { %v25274_v49 = vld [vmem:[#allocation137_spill] sm:$0xff]  ;;  %v17239_v4 = vpack.c.bf16 %v18768_v26, %v22160_v42  ;;  %v25288_v26 = vld [vmem:[#allocation142_spill] sm:$0xff] }
 0x681   : > { %17208 = vmatpush3.bf16.xpose.msk.msra.mxu0 %vm19542_vm4, %v17206_v28  ;;  %v25268_v28 = vld [vmem:[#allocation128_spill] sm:$0xff]  ;;  %v18770_v42 = vld [vmem:[#allocation2 + $0x492] sm:$0xff] }
 0x682   : > { %17211 = vmatprep.subr.msk.bf16.mxu0 %vm19542_vm4, %v17209_v59  ;;  %v18762_v59 = vld [vmem:[#allocation2 + $0x2d2] sm:$0xff] }
 0x683   : > { %v17227_v61 = vpack.c.bf16 %v18763_v48, %v18762_v59 }
 0x685   : > { %17160 = vmatpush3.bf16.xpose.msk.msra.mxu1 %vm19542_vm4, %v25266_v58  ;;  %v25270_v58 = vld [vmem:[#allocation131_spill] sm:$0xff] }
 0x686   : > { %17163 = vmatprep.subr.msk.bf16.mxu1 %vm19542_vm4, %v17161_v52  ;;  %v25269_v52 = vpack.c.bf16 %v25267_v44, %v25268_v28  ;;  %v18767_v28 = vld [vmem:[#allocation2 + $0x1b2] sm:$0xff] }
 0x689   : > { %17214 = vmatpush3.bf16.xpose.msk.msra.mxu0 %vm19542_vm4, %v17212_v36  ;;  %v22592_v36 = vld [vmem:[#allocation2 + $0x581] sm:$0xff] }
 0x68a   : > { %17217 = vmatprep.subr.msk.bf16.mxu0 %vm19542_vm4, %v17215_v35  ;;  %v17185_v35 = vpack.c.bf16 %v22592_v36, %v22130_v10  ;;  %v22612_v10 = vld [vmem:[#allocation2 + $0x1c2] sm:$0xff] }
 0x68d   : > { %17166 = vmatpush3.bf16.xpose.msk.msra.mxu1 %vm19542_vm4, %v17164_v24  ;;  %v25271_v24 = vld [vmem:[#allocation130_spill] sm:$0xff] }
 0x68e   : > { %17169 = vmatprep.subr.msk.bf16.mxu1 %vm19542_vm4, %v17167_v55  ;;  %v25272_v53 = vpack.c.bf16 %v25270_v58, %v25271_v24  ;;  %v18765_v55 = vld [vmem:[#allocation2 + $0x1a2] sm:$0xff]  ;;  %v22637_v24 = vld [vmem:[%s24349_s3 + $0x78] sm:$0xff] }
 0x68f   : > { %v17230_v2 = vpack.c.bf16 %v18765_v55, %v18764_v1  ;;  %v25280_v1 = vld [vmem:[#allocation135_spill] sm:$0xff]  ;;  %v25283_v55 = vld [vmem:[#allocation138_spill] sm:$0xff] }
 0x691   : > { %17220 = vmatpush3.bf16.xpose.msk.msra.mxu0 %vm19542_vm4, %v17218_v34  ;;  %v17233_v34 = vpack.c.bf16 %v22594_v17, %v18766_v33  ;;  %v18773_v33 = vld [vmem:[#allocation2 + $0x362] sm:$0xff] }
 0x692   : > { %17223 = vmatprep.subr.msk.bf16.mxu0 %vm19542_vm4, %v17221_v41  ;;  %v22610_v41 = vld [vmem:[#allocation2 + $0x441] sm:$0xff] }
 0x693   : > { %v17188_v44 = vpack.c.bf16 %v22610_v41, %v22158_v43  ;;  %v18769_v43 = vld [vmem:[#allocation2 + $0x342] sm:$0xff] }
 0x694   : > { %v17242_v48 = vpack.c.bf16 %v18769_v43, %v22180_v0  ;;  %v18776_v43 = vld [vmem:[#allocation2 + $0x372] sm:$0xff] }
 0x695   : > { %17172 = vmatpush3.bf16.xpose.msk.msra.mxu1 %vm19542_vm4, %v25269_v52  ;;  %v17236_v52 = vpack.c.bf16 %v22612_v10, %v18767_v28  ;;  %v25286_v28 = vld [vmem:[#allocation140_spill] sm:$0xff] }
 0x696   : > { %17175 = vmatprep.subr.msk.bf16.mxu1 %vm19542_vm4, %v17173_v13  ;;  %v25273_v13 = vld [vmem:[#allocation134_spill] sm:$0xff] }
 0x697   : > { %v25275_v51 = vpack.c.bf16 %v25273_v13, %v25274_v49  ;;  %v18774_v13 = vld [vmem:[#allocation2 + $0x4b2] sm:$0xff]  ;;  %v18775_v49 = vld [vmem:[#allocation2 + $0x4c2] sm:$0xff] }
 0x699   : > { %17226 = vmatpush3.bf16.xpose.msk.msra.mxu0 %vm19542_vm4, %v17224_v3  ;;  %v25276_v3 = vld [vmem:[#allocation133_spill] sm:$0xff] }
 0x69a   : > { %17229 = vmatprep.subr.msk.bf16.mxu0 %vm19542_vm4, %v17227_v61  ;;  %v18771_v61 = vld [vmem:[#allocation2 + $0x4a2] sm:$0xff] }
 0x69b   : > { %v17245_v58 = vpack.c.bf16 %v18771_v61, %v18770_v42  ;;  %v18778_v61 = vld [vmem:[#allocation2 + $0x4d2] sm:$0xff] }
 0x69d   : > { %17178 = vmatpush3.bf16.xpose.msk.msra.mxu1 %vm19542_vm4, %v25272_v53  ;;  %v25279_v53 = vld [vmem:[#allocation136_spill] sm:$0xff] }
 0x69e   : > { %17181 = vmatprep.subr.msk.bf16.mxu1 %vm19542_vm4, %v17179_v56  ;;  %v25277_v56 = vld [vmem:[#allocation132_spill] sm:$0xff]  ;;  %v25281_v0 = vpack.c.bf16 %v25279_v53, %v25280_v1  ;;  %v25291_v1 = vld [vmem:[#allocation145_spill] sm:$0xff] }
 0x69f   : > { %v25278_v59 = vpack.c.bf16 %v25276_v3, %v25277_v56  ;;  %v22671_v56 = vld [vmem:[#allocation2 + $0x4e2] sm:$0xff] }
 0x6a1   : > { %17232 = vmatpush3.bf16.xpose.msk.msra.mxu0 %vm19542_vm4, %v17230_v2 }
 0x6a2   : > { %17235 = vmatprep.subr.msk.bf16.mxu0 %vm19542_vm4, %v17233_v34 }
 0x6a5   : > { %17184 = vmatpush3.bf16.xpose.msk.msra.mxu1 %vm19542_vm4, %v25275_v51  ;;  %v17251_v51 = vpack.c.bf16 %v18775_v49, %v18774_v13  ;;  %v25295_v13 = vld [vmem:[#allocation147_spill] sm:$0xff]  ;;  %v25296_v49 = vld [vmem:[#allocation146_spill] sm:$0xff] }
 0x6a6   : > { %17187 = vmatprep.subr.msk.bf16.mxu1 %vm19542_vm4, %v17185_v35  ;;  %v18772_v35 = vld [vmem:[#allocation2 + $0x352] sm:$0xff] }
 0x6a7   : > { %v17248_v34 = vpack.c.bf16 %v18773_v33, %v18772_v35  ;;  %v18779_v35 = vld [vmem:[#allocation2 + $0x392] sm:$0xff] }
 0x6a9   : > { %17238 = vmatpush3.bf16.xpose.msk.msra.mxu0 %vm19542_vm4, %v17236_v52 }
 0x6aa   : > { %17289 = vmatprep.subr.msk.bf16.mxu0 %vm19542_vm4, %v25278_v59  ;;  %v6960_v59 = vld [vmem:[#allocation2 + $0x270] sm:$0xff] }
 0x6ab   : > { %v17305_v53 = vpack.c.bf16 %v6960_v59, %v22240_v57  ;;  %v18782_v59 = vld [vmem:[#allocation2 + $0x402] sm:$0xff] }
 0x6ad   : > { %17190 = vmatpush3.bf16.xpose.msk.msra.mxu1 %vm19542_vm4, %v17188_v44  ;;  %v25285_v44 = vld [vmem:[#allocation141_spill] sm:$0xff] }
 0x6ae   : > { %17241 = vmatprep.subr.msk.bf16.mxu1 %vm19542_vm4, %v17239_v4  ;;  %v25287_v52 = vpack.c.bf16 %v25285_v44, %v25286_v28  ;;  %v25289_v4 = vld [vmem:[#allocation143_spill] sm:$0xff]  ;;  %v25298_v28 = vld [vmem:[#allocation150_spill] sm:$0xff] }
 0x6af   : > { %v25290_v3 = vpack.c.bf16 %v25288_v26, %v25289_v4  ;;  %v18780_v44 = vld [vmem:[#allocation2 + $0x3e2] sm:$0xff]  ;;  %v25303_v4 = vld [vmem:[#allocation149_spill] sm:$0xff] }
 0x6b0   : > { %14996 = vmatmul.mubr.msk.f32.vlgmr.msra.gmra.mrb[2].mxu0 %vm442_vm2, %v22495_v5 }
 0x6b1   : > { %17292 = vmatpush3.bf16.xpose.msk.msra.mxu0 %vm19542_vm4, %v25281_v0  ;;  %15063 = vmatprep.mubr.msk.f32.mxu0 %vm442_vm2, %v22637_v24  ;;  %v25292_v0 = vld [vmem:[#allocation144_spill] sm:$0xff] }
 0x6b4   : > { %14962 = vmatmul.mubr.msk.f32.vlgmr.msra.gmra.mrb[2].mxu1 %vm442_vm2, %v22344_v39  ;;  %v25282_v39 = vld [vmem:[#allocation139_spill] sm:$0xff] }
 0x6b5   : > { %17244 = vmatpush3.bf16.xpose.msk.msra.mxu1 %vm19542_vm4, %v17242_v48  ;;  %v25284_v2 = vpack.c.bf16 %v25282_v39, %v25283_v55  ;;  %15029 = vmatprep.mubr.msk.f32.mxu1 %vm442_vm2, %v22495_v5  ;;  %v18777_v48 = vld [vmem:[#allocation2 + $0x382] sm:$0xff]  ;;  %v25293_v39 = vpack.c.bf16 %v25291_v1, %v25292_v0  ;;  %v6968_v0 = vld [vmem:[#allocation2 + $0x310] sm:$0xff] }
 0x6b6   : > { %17247 = vmatprep.subr.msk.bf16.mxu1 %vm19542_vm4, %v17245_v58  ;;  %v17254_v42 = vpack.c.bf16 %v18777_v48, %v18776_v43  ;;  %v17257_v58 = vpack.c.bf16 %v22671_v56, %v18778_v61  ;;  %v22686_v55 = vld [vmem:[#allocation2 + $0x3a2] sm:$0xff]  ;;  %v25305_v48 = vld [vmem:[#allocation153_spill] sm:$0xff] }
 0x6b7   : > { %17295 = vmatprep.subr.msk.bf16.mxu0 %vm19542_vm4, %v25284_v2  ;;  %v6944_v2 = vld [vmem:[#allocation2 + $0x130] sm:$0xff]  ;;  %v17260_v57 = vpack.c.bf16 %v22686_v55, %v18779_v35  ;;  %v22739_v1 = vld [vmem:[#allocation2 + $0x582] sm:$0xff] }
 0x6b8   : > { %v17308_v33 = vpack.c.bf16 %v6944_v2, %v22265_v20  ;;  %v17266_v20 = vpack.c.bf16 %v18780_v44, %v22279_v63  ;;  %v18781_v63 = vld [vmem:[#allocation2 + $0x3f2] sm:$0xff]  ;;  %v18784_v2 = vld [vmem:[#allocation2 + $0x422] sm:$0xff] }
 0x6b9   : > { %17298 = vmatpush3.bf16.xpose.msk.msra.mxu0 %vm19542_vm4, %v25287_v52  ;;  %v25299_v52 = vld [vmem:[#allocation148_spill] sm:$0xff]  ;;  %v17272_v43 = vpack.c.bf16 %v18782_v59, %v18781_v63 }
 0x6ba   : > { %17301 = vmatprep.subr.msk.bf16.mxu0 %vm19542_vm4, %v25290_v3  ;;  %v25300_v26 = vpack.c.bf16 %v25298_v28, %v25299_v52  ;;  %v25315_v52 = vld [vmem:[#allocation167_spill] sm:$0xff] }
 0x6bd   : > { %17250 = vmatpush3.bf16.xpose.msk.msra.mxu1 %vm19542_vm4, %v17248_v34  ;;  %v25294_v34 = vpack.c.bf16 %v21983_v8, %v21981_v16  ;;  %v25301_v16 = vpack.c.bf16 %v22003_v19, %v22009_v9  ;;  %v25302_v8 = vld [vmem:[#allocation152_spill] sm:$0xff]  ;;  %v25308_v9 = vpack.c.bf16 %v22024_v6, %v22028_v25  ;;  %v25309_v19 = vld [vmem:[#allocation155_spill] sm:$0xff]  ;;  %v17329_v6 = vpack.c.bf16 %v6968_v0, %v22306_v46  ;;  %v25312_v25 = vld [vmem:[#allocation157_spill] sm:$0xff] }
 0x6be   : > { %17253 = vmatprep.subr.msk.bf16.mxu1 %vm19542_vm4, %v17251_v51  ;;  %v25297_v51 = vpack.c.bf16 %v25295_v13, %v25296_v49  ;;  %v25304_v3 = vpack.c.bf16 %v25302_v8, %v25303_v4  ;;  %v22755_v13 = vld [vmem:[#allocation2 + $0x442] sm:$0xff]  ;;  %v7361_v46 = vld [vmem:[#allocation2 + $0x211] sm:$0xff] }
 0x6bf   : > { %v7360_v49 = vld [vmem:[#allocation2 + $0x201] sm:$0xff]  ;;  %v7345_v8 = vld [vmem:[#allocation2 + $0xd1] sm:$0xff] }
 0x6c0   : > { %v22759_v28 = vpack.c.bf16 %v7361_v46, %v7360_v49  ;;  %v7363_v4 = vld [vmem:[#allocation2 + $0x231] sm:$0xff] }
 0x6c1   : > { %17304 = vmatpush3.bf16.xpose.msk.msra.mxu0 %vm19542_vm4, %v25293_v39  ;;  %v18783_v39 = vld [vmem:[#allocation2 + $0x412] sm:$0xff] }
 0x6c2   : > { %17307 = vmatprep.subr.msk.bf16.mxu0 %vm19542_vm4, %v17305_v53  ;;  %v17278_v35 = vpack.c.bf16 %v18784_v2, %v18783_v39  ;;  %v7365_v0 = vld [vmem:[#allocation2 + $0x251] sm:$0xff]  ;;  %v7346_v39 = vld [vmem:[#allocation2 + $0xe1] sm:$0xff] }
 0x6c3   : > { %v7349_v49 = vld [vmem:[#allocation2 + $0x111] sm:$0xff] }
 0x6c4   : > { %v6992_v46 = vld [vmem:[#allocation2 + $0x4f0] sm:$0xff] }
 0x6c5   : > { %17256 = vmatpush3.bf16.xpose.msk.msra.mxu1 %vm19542_vm4, %v17254_v42  ;;  %v25306_v42 = vld [vmem:[#allocation151_spill] sm:$0xff] }
 0x6c6   : > { %17259 = vmatprep.subr.msk.bf16.mxu1 %vm19542_vm4, %v17257_v58  ;;  %v25307_v61 = vpack.c.bf16 %v25305_v48, %v25306_v42  ;;  %v25310_v58 = vld [vmem:[#allocation154_spill] sm:$0xff]  ;;  %v25318_v48 = vld [vmem:[#allocation159_spill] sm:$0xff] }
 0x6c7   : > { %v25311_v53 = vpack.c.bf16 %v25309_v19, %v25310_v58  ;;  %v25319_v42 = vld [vmem:[#allocation158_spill] sm:$0xff] }
 0x6c8   : > { %v7347_v58 = vld [vmem:[#allocation2 + $0xf1] sm:$0xff] }
 0x6c9   : > { %17310 = vmatpush3.bf16.xpose.msk.msra.mxu0 %vm19542_vm4, %v17308_v33  ;;  %v25313_v33 = vld [vmem:[#allocation156_spill] sm:$0xff]  ;;  %v17392_v2 = vpack.c.bf16 %v7347_v58, %v7346_v39  ;;  %v6996_v58 = vld [vmem:[#allocation2 + $0x550] sm:$0xff] }
 0x6ca   : > { %17313 = vmatprep.subr.msk.bf16.mxu0 %vm19542_vm4, %v25297_v51  ;;  %v18785_v51 = vld [vmem:[#allocation2 + $0x432] sm:$0xff] }
 0x6cb   : > { %v17284_v44 = vpack.c.bf16 %v22755_v13, %v18785_v51  ;;  %v7367_v51 = vld [vmem:[#allocation2 + $0x271] sm:$0xff] }
 0x6cd   : > { %17262 = vmatpush3.bf16.xpose.msk.msra.mxu1 %vm19542_vm4, %v17260_v57  ;;  %v17281_v57 = vpack.c.bf16 %v22739_v1, %v22304_v18  ;;  %v6952_v18 = vld [vmem:[#allocation2 + $0x1d0] sm:$0xff] }
 0x6ce   : > { %17265 = vmatprep.subr.msk.bf16.mxu1 %vm19542_vm4, %v25294_v34  ;;  %v25314_v34 = vpack.c.bf16 %v25312_v25, %v25313_v33  ;;  %v25327_v33 = vld [vmem:[#allocation226_spill] sm:$0xff] }
 0x6d1   : > { %17316 = vmatpush3.bf16.xpose.msk.msra.mxu0 %vm19542_vm4, %v25300_v26  ;;  %v25316_v26 = vld [vmem:[#allocation168_spill] sm:$0xff] }
 0x6d2   : > { %17319 = vmatprep.subr.msk.bf16.mxu0 %vm19542_vm4, %v25304_v3  ;;  %v7344_v3 = vld [vmem:[#allocation2 + $0xc1] sm:$0xff] }
 0x6d3   : > { %v17386_v63 = vpack.c.bf16 %v7345_v8, %v7344_v3  ;;  %v25331_v8 = vld [vmem:[#allocation162_spill] sm:$0xff] }
 0x6d4   : > { %v7351_v3 = vld [vmem:[#allocation2 + $0x131] sm:$0xff] }
 0x6d5   : > { %17268 = vmatpush3.bf16.xpose.msk.msra.mxu1 %vm19542_vm4, %v17266_v20  ;;  %v17332_v20 = vpack.c.bf16 %v6952_v18, %v22320_v11  ;;  %v7362_v11 = vld [vmem:[#allocation2 + $0x221] sm:$0xff] }
 0x6d6   : > { %17271 = vmatprep.subr.msk.bf16.mxu1 %vm19542_vm4, %v25301_v16  ;;  %v25317_v16 = vpack.c.bf16 %v25315_v52, %v25316_v26  ;;  %v22777_v59 = vpack.c.bf16 %v7363_v4, %v7362_v11  ;;  %v17353_v52 = vpack.c.bf16 %v6992_v46, %v22378_v60  ;;  %v17401_v26 = vpack.c.bf16 %v7367_v51, %v22380_v47  ;;  %v6976_v4 = vld [vmem:[#allocation2 + $0x3b0] sm:$0xff]  ;;  %v7368_v60 = vld [vmem:[#allocation2 + $0x2a1] sm:$0xff] }
 0x6d7   : > { %v6994_v47 = vld [vmem:[#allocation2 + $0x530] sm:$0xff] }
 0x6d8   : > { %v6998_v46 = vld [vmem:[#allocation2 + $0x570] sm:$0xff] }
 0x6d9   : > { %17322 = vmatpush3.bf16.xpose.msk.msra.mxu0 %vm19542_vm4, %v25307_v61  ;;  %v25320_v61 = vpack.c.bf16 %v25318_v48, %v25319_v42  ;;  %v7369_v48 = vld [vmem:[#allocation2 + $0x2b1] sm:$0xff]  ;;  %v17356_v42 = vpack.c.bf16 %v6976_v4, %v22396_v7 }
 0x6da   : > { %17325 = vmatprep.subr.msk.bf16.mxu0 %vm19542_vm4, %v25311_v53  ;;  %v7364_v53 = vld [vmem:[#allocation2 + $0x241] sm:$0xff]  ;;  %v7353_v7 = vld [vmem:[#allocation2 + $0x171] sm:$0xff] }
 0x6db   : > { %v7373_v51 = vld [vmem:[#allocation2 + $0x2f1] sm:$0xff] }
 0x6dc   : > { %v7357_v4 = vld [vmem:[#allocation2 + $0x1b1] sm:$0xff] }
 0x6dd   : > { %17274 = vmatpush3.bf16.xpose.msk.msra.mxu1 %vm19542_vm4, %v17272_v43  ;;  %v22782_v43 = vld [vmem:[%s24349_s3 + $0x80] sm:$0xff] }
 0x6de   : > { %17277 = vmatprep.subr.msk.bf16.mxu1 %vm19542_vm4, %v25308_v9  ;;  %v25322_v9 = vld [vmem:[#allocation221_spill] sm:$0xff] }
 0x6e1   : > { %17328 = vmatpush3.bf16.xpose.msk.msra.mxu0 %vm19542_vm4, %v25314_v34  ;;  %v25328_v34 = vld [vmem:[#allocation228_spill] sm:$0xff] }
 0x6e2   : > { %17331 = vmatprep.subr.msk.bf16.mxu0 %vm19542_vm4, %v17329_v6  ;;  %v25325_v6 = vld [vmem:[#allocation160_spill] sm:$0xff]  ;;  %v25329_v18 = vpack.c.bf16 %v25327_v33, %v25328_v34  ;;  %v7355_v34 = vld [vmem:[#allocation2 + $0x191] sm:$0xff] }
 0x6e5   : > { %17280 = vmatpush3.bf16.xpose.msk.msra.mxu1 %vm19542_vm4, %v17278_v35  ;;  %v22803_v35 = vpack.c.bf16 %v7365_v0, %v7364_v53  ;;  %v7371_v53 = vld [vmem:[#allocation2 + $0x2d1] sm:$0xff]  ;;  %v7352_v0 = vld [vmem:[#allocation2 + $0x161] sm:$0xff] }
 0x6e6   : > { %17283 = vmatprep.subr.msk.bf16.mxu1 %vm19542_vm4, %v17281_v57  ;;  %v25324_v57 = vld [vmem:[#allocation161_spill] sm:$0xff]  ;;  %v22849_v39 = vpack.c.bf16 %v7353_v7, %v7352_v0  ;;  %v25340_v7 = vld [vmem:[#allocation188_spill] sm:$0xff] }
 0x6e7   : > { %v25326_v25 = vpack.c.bf16 %v25324_v57, %v25325_v6  ;;  %v25333_v6 = vld [vmem:[#allocation166_spill] sm:$0xff] }
 0x6e9   : > { %17334 = vmatpush3.bf16.xpose.msk.msra.mxu0 %vm19542_vm4, %v17332_v20 }
 0x6ea   : > { %17385 = vmatprep.subr.msk.bf16.mxu0 %vm19542_vm4, %v22759_v28 }
 0x6ed   : > { %17286 = vmatpush3.bf16.xpose.msk.msra.mxu1 %vm19542_vm4, %v17284_v44  ;;  %v7348_v44 = vld [vmem:[#allocation2 + $0x101] sm:$0xff] }
 0x6ee   : > { %17337 = vmatprep.subr.msk.bf16.mxu1 %vm19542_vm4, %v25317_v16  ;;  %v17398_v20 = vpack.c.bf16 %v7349_v49, %v7348_v44  ;;  %v25330_v16 = vld [vmem:[#allocation163_spill] sm:$0xff] }
 0x6ef   : > { %v25332_v11 = vpack.c.bf16 %v25330_v16, %v25331_v8  ;;  %v6997_v49 = vld [vmem:[#allocation2 + $0x560] sm:$0xff]  ;;  %v25336_v16 = vld [vmem:[#allocation169_spill] sm:$0xff] }
 0x6f0   : > { %15064 = vmatmul.mubr.msk.f32.vlgmr.msra.gmra.mrb[2].mxu0 %vm442_vm2, %v22637_v24  ;;  %v7354_v44 = vld [vmem:[#allocation2 + $0x181] sm:$0xff] }
 0x6f1   : > { %17388 = vmatpush3.bf16.xpose.msk.msra.mxu0 %vm19542_vm4, %v17386_v63  ;;  %15131 = vmatprep.mubr.msk.f32.mxu0 %vm442_vm2, %v22782_v43  ;;  %v6993_v63 = vld [vmem:[#allocation2 + $0x520] sm:$0xff] }
 0x6f2   : > { %17391 = vmatprep.subr.msk.bf16.mxu0 %vm19542_vm4, %v22777_v59  ;;  %v25337_v8 = vld [vmem:[#allocation171_spill] sm:$0xff] }
 0x6f4   : > { %15030 = vmatmul.mubr.msk.f32.vlgmr.msra.gmra.mrb[2].mxu1 %vm442_vm2, %v22495_v5  ;;  %v25321_v5 = vld [vmem:[#allocation219_spill] sm:$0xff] }
 0x6f5   : > { %17340 = vmatpush3.bf16.xpose.msk.msra.mxu1 %vm19542_vm4, %v25320_v61  ;;  %v25323_v19 = vpack.c.bf16 %v25321_v5, %v25322_v9  ;;  %15097 = vmatprep.mubr.msk.f32.mxu1 %vm442_vm2, %v22637_v24  ;;  %v17404_v61 = vpack.c.bf16 %v7351_v3, %v22398_v62  ;;  %v22835_v5 = vpack.c.bf16 %v6994_v47, %v6993_v63  ;;  %v7370_v62 = vld [vmem:[#allocation2 + $0x2c1] sm:$0xff]  ;;  %v7000_v3 = vld [vmem:[#allocation2 + $0x590] sm:$0xff] }
 0x6f6   : > { %v22837_v9 = vpack.c.bf16 %v7369_v48, %v7368_v60  ;;  %v22853_v57 = vpack.c.bf16 %v7371_v53, %v7370_v62  ;;  %v7375_v60 = vld [vmem:[#allocation2 + $0x311] sm:$0xff]  ;;  %v7356_v63 = vld [vmem:[#allocation2 + $0x1a1] sm:$0xff]  ;;  %v17377_v48 = vpack.c.bf16 %v7000_v3, %v22449_v38 }
 0x6f7   : > { %17343 = vmatprep.subr.msk.bf16.mxu1 %vm19542_vm4, %v25323_v19  ;;  %v6995_v19 = vld [vmem:[#allocation2 + $0x540] sm:$0xff]  ;;  %v22889_v47 = vpack.c.bf16 %v7357_v4, %v7356_v63  ;;  %v7359_v38 = vld [vmem:[#allocation2 + $0x1d1] sm:$0xff] }
 0x6f8   : > { %v17428_v0 = vpack.c.bf16 %v7359_v38, %v22470_v23  ;;  %v7394_v23 = vld [vmem:[#allocation2 + $0x4a1] sm:$0xff] }
 0x6f9   : > { %17394 = vmatpush3.bf16.xpose.msk.msra.mxu0 %vm19542_vm4, %v17392_v2  ;;  %v22851_v2 = vpack.c.bf16 %v6996_v58, %v6995_v19  ;;  %v6984_v19 = vld [vmem:[#allocation2 + $0x450] sm:$0xff]  ;;  %v7392_v58 = vld [vmem:[#allocation2 + $0x481] sm:$0xff] }
 0x6fa   : > { %17397 = vmatprep.subr.msk.bf16.mxu0 %vm19542_vm4, %v22803_v35  ;;  %v17380_v53 = vpack.c.bf16 %v6984_v19, %v22468_v30  ;;  %v7377_v30 = vld [vmem:[#allocation2 + $0x351] sm:$0xff]  ;;  %v25349_v4 = vld [vmem:[#allocation175_spill] sm:$0xff] }
 0x6fb   : > { %v7396_v63 = vld [vmem:[#allocation2 + $0x4c1] sm:$0xff]  ;;  %v25352_v19 = vld [vmem:[#allocation177_spill] sm:$0xff] }
 0x6fd   : > { %17346 = vmatpush3.bf16.xpose.msk.msra.mxu1 %vm19542_vm4, %v25326_v25  ;;  %v25334_v25 = vld [vmem:[#allocation165_spill] sm:$0xff] }
 0x6fe   : > { %17349 = vmatprep.subr.msk.bf16.mxu1 %vm19542_vm4, %v25329_v18  ;;  %v25335_v33 = vpack.c.bf16 %v25333_v6, %v25334_v25  ;;  %v7372_v18 = vld [vmem:[#allocation2 + $0x2e1] sm:$0xff]  ;;  %v25342_v25 = vld [vmem:[#allocation173_spill] sm:$0xff] }
 0x701   : > { %17400 = vmatpush3.bf16.xpose.msk.msra.mxu0 %vm19542_vm4, %v17398_v20  ;;  %v22869_v20 = vpack.c.bf16 %v7355_v34, %v7354_v44  ;;  %v22932_v44 = vld [vmem:[%s24349_s3 + $0x88] sm:$0xff] }
 0x702   : > { %17403 = vmatprep.subr.msk.bf16.mxu0 %vm19542_vm4, %v17401_v26  ;;  %v22873_v26 = vpack.c.bf16 %v7373_v51, %v7372_v18  ;;  %v7395_v18 = vld [vmem:[#allocation2 + $0x4b1] sm:$0xff] }
 0x703   : > { %v22927_v51 = vpack.c.bf16 %v7395_v18, %v7394_v23 }
 0x705   : > { %17352 = vmatpush3.bf16.xpose.msk.msra.mxu1 %vm19542_vm4, %v25332_v11  ;;  %v25338_v11 = vpack.c.bf16 %v25336_v16, %v25337_v8  ;;  %v25345_v16 = vld [vmem:[#allocation176_spill] sm:$0xff]  ;;  %v25346_v8 = vld [vmem:[#allocation174_spill] sm:$0xff] }
 0x706   : > { %17355 = vmatprep.subr.msk.bf16.mxu1 %vm19542_vm4, %v17353_v52  ;;  %v22871_v52 = vpack.c.bf16 %v6998_v46, %v6997_v49  ;;  %v7376_v49 = vld [vmem:[#allocation2 + $0x341] sm:$0xff] }
 0x707   : > { %v22921_v46 = vpack.c.bf16 %v7377_v30, %v7376_v49  ;;  %v25357_v49 = vld [vmem:[#allocation184_spill] sm:$0xff] }
 0x709   : > { %17406 = vmatpush3.bf16.xpose.msk.msra.mxu0 %vm19542_vm4, %v17404_v61  ;;  %v25339_v61 = vld [vmem:[#allocation185_spill] sm:$0xff] }
 0x70a   : > { %17409 = vmatprep.subr.msk.bf16.mxu0 %vm19542_vm4, %v22837_v9  ;;  %v25341_v62 = vpack.c.bf16 %v25339_v61, %v25340_v7 }
 0x70d   : > { %17358 = vmatpush3.bf16.xpose.msk.msra.mxu1 %vm19542_vm4, %v17356_v42  ;;  %v17425_v42 = vpack.c.bf16 %v7375_v60, %v22451_v29  ;;  %v7393_v29 = vld [vmem:[#allocation2 + $0x491] sm:$0xff] }
 0x70e   : > { %17361 = vmatprep.subr.msk.bf16.mxu1 %vm19542_vm4, %v22835_v5  ;;  %v22907_v6 = vpack.c.bf16 %v7393_v29, %v7392_v58  ;;  %v7379_v60 = vld [vmem:[#allocation2 + $0x371] sm:$0xff]  ;;  %v25355_v29 = vld [vmem:[#allocation180_spill] sm:$0xff] }
 0x70f   : > { %v25354_v58 = vld [vmem:[#allocation181_spill] sm:$0xff] }
 0x711   : > { %17412 = vmatpush3.bf16.xpose.msk.msra.mxu0 %vm19542_vm4, %v22849_v39 }
 0x712   : > { %17415 = vmatprep.subr.msk.bf16.mxu0 %vm19542_vm4, %v22853_v57 }
 0x715   : > { %17364 = vmatpush3.bf16.xpose.msk.msra.mxu1 %vm19542_vm4, %v25335_v33  ;;  %v25343_v33 = vld [vmem:[#allocation172_spill] sm:$0xff] }
 0x716   : > { %17367 = vmatprep.subr.msk.bf16.mxu1 %vm19542_vm4, %v22851_v2  ;;  %v25344_v34 = vpack.c.bf16 %v25342_v25, %v25343_v33  ;;  %v7399_v25 = vld [vmem:[#allocation2 + $0x4f1] sm:$0xff] }
 0x717   : > { %v7774_v33 = vld [vmem:[#allocation2 + $0x272] sm:$0xff]  ;;  %v17449_v23 = vpack.c.bf16 %v7399_v25, %v22529_v15  ;;  %v25366_v25 = vld [vmem:[#allocation192_spill] sm:$0xff] }
 0x718   : > { %v17497_v18 = vpack.c.bf16 %v7774_v33, %v22531_v14  ;;  %v7758_v15 = vld [vmem:[#allocation2 + $0x132] sm:$0xff]  ;;  %v25367_v33 = vld [vmem:[#allocation191_spill] sm:$0xff] }
 0x719   : > { %17418 = vmatpush3.bf16.xpose.msk.msra.mxu0 %vm19542_vm4, %v22869_v20  ;;  %v7401_v14 = vld [vmem:[#allocation2 + $0x531] sm:$0xff] }
 0x71a   : > { %17421 = vmatprep.subr.msk.bf16.mxu0 %vm19542_vm4, %v22873_v26 }
 0x71d   : > { %17370 = vmatpush3.bf16.xpose.msk.msra.mxu1 %vm19542_vm4, %v25338_v11  ;;  %v25347_v11 = vpack.c.bf16 %v25345_v16, %v25346_v8  ;;  %v25358_v16 = vld [vmem:[#allocation183_spill] sm:$0xff] }
 0x71e   : > { %17373 = vmatprep.subr.msk.bf16.mxu1 %vm19542_vm4, %v22871_v52  ;;  %v25359_v8 = vpack.c.bf16 %v25357_v49, %v25358_v16  ;;  %v7405_v49 = vld [vmem:[#allocation2 + $0x571] sm:$0xff]  ;;  %v7386_v16 = vld [vmem:[#allocation2 + $0x401] sm:$0xff] }
 0x721   : > { %17424 = vmatpush3.bf16.xpose.msk.msra.mxu0 %vm19542_vm4, %v22889_v47 }
 0x722   : > { %17427 = vmatprep.subr.msk.bf16.mxu0 %vm19542_vm4, %v17425_v42  ;;  %v7378_v42 = vld [vmem:[#allocation2 + $0x361] sm:$0xff] }
 0x723   : > { %v22954_v61 = vpack.c.bf16 %v7379_v60, %v7378_v42 }
 0x725   : > { %17376 = vmatpush3.bf16.xpose.msk.msra.mxu1 %vm19542_vm4, %v25341_v62  ;;  %v25351_v62 = vld [vmem:[#allocation179_spill] sm:$0xff] }
 0x726   : > { %17379 = vmatprep.subr.msk.bf16.mxu1 %vm19542_vm4, %v17377_v48  ;;  %v7397_v48 = vld [vmem:[#allocation2 + $0x4d1] sm:$0xff]  ;;  %v25353_v38 = vpack.c.bf16 %v25351_v62, %v25352_v19  ;;  %v7384_v19 = vld [vmem:[#allocation2 + $0x3e1] sm:$0xff] }
 0x727   : > { %v22956_v7 = vpack.c.bf16 %v7397_v48, %v7396_v63  ;;  %v25360_v63 = vld [vmem:[#allocation187_spill] sm:$0xff]  ;;  %v25361_v48 = vld [vmem:[#allocation186_spill] sm:$0xff] }
 0x728   : > { %v25362_v42 = vpack.c.bf16 %v25360_v63, %v25361_v48  ;;  %v7403_v62 = vld [vmem:[#allocation2 + $0x551] sm:$0xff] }
 0x729   : > { %17430 = vmatpush3.bf16.xpose.msk.msra.mxu0 %vm19542_vm4, %v17428_v0  ;;  %v7381_v0 = vld [vmem:[#allocation2 + $0x391] sm:$0xff] }
 0x72a   : > { %17481 = vmatprep.subr.msk.bf16.mxu0 %vm19542_vm4, %v25344_v34  ;;  %v7380_v34 = vld [vmem:[#allocation2 + $0x381] sm:$0xff]  ;;  %v7389_v48 = vld [vmem:[#allocation2 + $0x431] sm:$0xff] }
 0x72b   : > { %v22974_v30 = vpack.c.bf16 %v7381_v0, %v7380_v34  ;;  %v25368_v34 = vpack.c.bf16 %v25366_v25, %v25367_v33  ;;  %v7391_v33 = vld [vmem:[#allocation2 + $0x451] sm:$0xff] }
 0x72d   : > { %17382 = vmatpush3.bf16.xpose.msk.msra.mxu1 %vm19542_vm4, %v17380_v53  ;;  %v25356_v53 = vpack.c.bf16 %v25354_v58, %v25355_v29  ;;  %v25363_v29 = vld [vmem:[#allocation190_spill] sm:$0xff] }
 0x72e   : > { %17433 = vmatprep.subr.msk.bf16.mxu1 %vm19542_vm4, %v22907_v6 }
 0x730   : > { %15132 = vmatmul.mubr.msk.f32.vlgmr.msra.gmra.mrb[2].mxu0 %vm442_vm2, %v22782_v43 }
 0x731   : > { %17484 = vmatpush3.bf16.xpose.msk.msra.mxu0 %vm19542_vm4, %v25347_v11  ;;  %15199 = vmatprep.mubr.msk.f32.mxu0 %vm442_vm2, %v22932_v44  ;;  %v7383_v11 = vld [vmem:[#allocation2 + $0x3b1] sm:$0xff] }
 0x734   : > { %15098 = vmatmul.mubr.msk.f32.vlgmr.msra.gmra.mrb[2].mxu1 %vm442_vm2, %v22637_v24  ;;  %v25348_v24 = vld [vmem:[#allocation178_spill] sm:$0xff] }
 0x735   : > { %17436 = vmatpush3.bf16.xpose.msk.msra.mxu1 %vm19542_vm4, %v22921_v46  ;;  %v25350_v3 = vpack.c.bf16 %v25348_v24, %v25349_v4  ;;  %15165 = vmatprep.mubr.msk.f32.mxu1 %vm442_vm2, %v22782_v43  ;;  %v7400_v24 = vld [vmem:[#allocation2 + $0x521] sm:$0xff]  ;;  %v17452_v4 = vpack.c.bf16 %v7383_v11, %v22547_v50  ;;  %v7385_v50 = vld [vmem:[#allocation2 + $0x3f1] sm:$0xff] }
 0x736   : > { %17439 = vmatprep.subr.msk.bf16.mxu1 %vm19542_vm4, %v22927_v51  ;;  %v22992_v60 = vpack.c.bf16 %v7401_v14, %v7400_v24  ;;  %v25370_v24 = vld [vmem:[#allocation194_spill] sm:$0xff] }
 0x737   : > { %17487 = vmatprep.subr.msk.bf16.mxu0 %vm19542_vm4, %v25350_v3  ;;  %v17500_v3 = vpack.c.bf16 %v7758_v15, %v22549_v32  ;;  %v7402_v32 = vld [vmem:[#allocation2 + $0x541] sm:$0xff]  ;;  %v25369_v15 = vld [vmem:[#allocation193_spill] sm:$0xff] }
 0x738   : > { %v23008_v58 = vpack.c.bf16 %v7403_v62, %v7402_v32  ;;  %v25371_v14 = vpack.c.bf16 %v25369_v15, %v25370_v24  ;;  %v7388_v32 = vld [vmem:[#allocation2 + $0x421] sm:$0xff] }
 0x739   : > { %17490 = vmatpush3.bf16.xpose.msk.msra.mxu0 %vm19542_vm4, %v25353_v38  ;;  %v23006_v38 = vpack.c.bf16 %v7385_v50, %v7384_v19  ;;  %v7782_v50 = vld [vmem:[#allocation2 + $0x312] sm:$0xff]  ;;  %v23046_v62 = vpack.c.bf16 %v7389_v48, %v7388_v32  ;;  %v25379_v15 = vld [vmem:[#allocation216_spill] sm:$0xff] }
 0x73a   : > { %17493 = vmatprep.subr.msk.bf16.mxu0 %vm19542_vm4, %v25356_v53  ;;  %v25364_v53 = vld [vmem:[#allocation189_spill] sm:$0xff] }
 0x73b   : > { %v25365_v0 = vpack.c.bf16 %v25363_v29, %v25364_v53  ;;  %v17521_v29 = vpack.c.bf16 %v7782_v50, %v22594_v17  ;;  %v25375_v53 = vld [vmem:[#allocation198_spill] sm:$0xff]  ;;  %v17476_v17 = vpack.c.bf16 %v7391_v33, %v22610_v41  ;;  %v8159_v41 = vld [vmem:[#allocation2 + $0x140] sm:$0xff]  ;;  %v23082_v48 = vld [vmem:[%s24349_s3 + $0x90] sm:$0xff] }
 0x73c   : > { %v25382_v50 = vld [vmem:[#allocation200_spill] sm:$0xff]  ;;  %v18792_v33 = vld [vmem:[#allocation2 + $0x2c0] sm:$0xff] }
 0x73d   : > { %17442 = vmatpush3.bf16.xpose.msk.msra.mxu1 %vm19542_vm4, %v22954_v61 }
 0x73e   : > { %17445 = vmatprep.subr.msk.bf16.mxu1 %vm19542_vm4, %v22956_v7 }
 0x741   : > { %17496 = vmatpush3.bf16.xpose.msk.msra.mxu0 %vm19542_vm4, %v25359_v8 }
 0x742   : > { %17499 = vmatprep.subr.msk.bf16.mxu0 %vm19542_vm4, %v17497_v18  ;;  %v7404_v18 = vld [vmem:[#allocation2 + $0x561] sm:$0xff] }
 0x743   : > { %v23028_v11 = vpack.c.bf16 %v7405_v49, %v7404_v18  ;;  %v18786_v18 = vld [vmem:[#allocation2 + $0x290] sm:$0xff] }
 0x745   : > { %17448 = vmatpush3.bf16.xpose.msk.msra.mxu1 %vm19542_vm4, %v22974_v30 }
 0x746   : > { %17451 = vmatprep.subr.msk.bf16.mxu1 %vm19542_vm4, %v17449_v23  ;;  %v7387_v23 = vld [vmem:[#allocation2 + $0x411] sm:$0xff] }
 0x747   : > { %v23026_v8 = vpack.c.bf16 %v7387_v23, %v7386_v16  ;;  %v25378_v16 = vld [vmem:[#allocation211_spill] sm:$0xff] }
 0x748   : > { %v25380_v24 = vpack.c.bf16 %v25378_v16, %v25379_v15  ;;  %v25391_v16 = vld [vmem:[#allocation229_spill] sm:$0xff] }
 0x749   : > { %17502 = vmatpush3.bf16.xpose.msk.msra.mxu0 %vm19542_vm4, %v17500_v3  ;;  %v25373_v3 = vld [vmem:[#allocation196_spill] sm:$0xff] }
 0x74a   : > { %17505 = vmatprep.subr.msk.bf16.mxu0 %vm19542_vm4, %v25362_v42  ;;  %v7407_v42 = vld [vmem:[#allocation2 + $0x591] sm:$0xff] }
 0x74b   : > { %v17473_v19 = vpack.c.bf16 %v7407_v42, %v22592_v36  ;;  %v7766_v36 = vld [vmem:[#allocation2 + $0x1d2] sm:$0xff] }
 0x74c   : > { %v17524_v23 = vpack.c.bf16 %v7766_v36, %v22612_v10  ;;  %v25381_v42 = vld [vmem:[#allocation201_spill] sm:$0xff] }
 0x74d   : > { %17454 = vmatpush3.bf16.xpose.msk.msra.mxu1 %vm19542_vm4, %v17452_v4  ;;  %v25372_v4 = vld [vmem:[#allocation195_spill] sm:$0xff]  ;;  %v25383_v32 = vpack.c.bf16 %v25381_v42, %v25382_v50  ;;  %v18793_v36 = vld [vmem:[#allocation2 + $0x2d0] sm:$0xff]  ;;  %v25393_v50 = vld [vmem:[#allocation206_spill] sm:$0xff] }
 0x74e   : > { %17457 = vmatprep.subr.msk.bf16.mxu1 %vm19542_vm4, %v22992_v60  ;;  %v25374_v63 = vpack.c.bf16 %v25372_v4, %v25373_v3  ;;  %v18788_v4 = vld [vmem:[#allocation2 + $0x2a0] sm:$0xff]  ;;  %v18789_v3 = vld [vmem:[#allocation2 + $0x2b0] sm:$0xff] }
 0x751   : > { %17508 = vmatpush3.bf16.xpose.msk.msra.mxu0 %vm19542_vm4, %v25365_v0  ;;  %v25376_v0 = vld [vmem:[#allocation197_spill] sm:$0xff] }
 0x752   : > { %17511 = vmatprep.subr.msk.bf16.mxu0 %vm19542_vm4, %v25368_v34  ;;  %v25377_v25 = vpack.c.bf16 %v25375_v53, %v25376_v0  ;;  %v8175_v34 = vld [vmem:[#allocation2 + $0x280] sm:$0xff]  ;;  %v18791_v0 = vld [vmem:[#allocation2 + $0x170] sm:$0xff] }
 0x753   : > { %v17575_v49 = vpack.c.bf16 %v18786_v18, %v8175_v34  ;;  %v18790_v53 = vld [vmem:[#allocation2 + $0x160] sm:$0xff]  ;;  %v17587_v34 = vpack.c.bf16 %v18793_v36, %v18792_v33 }
 0x754   : > { %v18797_v33 = vld [vmem:[#allocation2 + $0x1a0] sm:$0xff] }
 0x755   : > { %17460 = vmatpush3.bf16.xpose.msk.msra.mxu1 %vm19542_vm4, %v23006_v38 }
 0x756   : > { %17463 = vmatprep.subr.msk.bf16.mxu1 %vm19542_vm4, %v23008_v58 }
 0x759   : > { %17514 = vmatpush3.bf16.xpose.msk.msra.mxu0 %vm19542_vm4, %v25371_v14  ;;  %v18787_v14 = vld [vmem:[#allocation2 + $0x150] sm:$0xff] }
 0x75a   : > { %17517 = vmatprep.subr.msk.bf16.mxu0 %vm19542_vm4, %v25374_v63  ;;  %v17578_v10 = vpack.c.bf16 %v18787_v14, %v8159_v41  ;;  %v17581_v63 = vpack.c.bf16 %v18789_v3, %v18788_v4  ;;  %v23116_v41 = vld [vmem:[#allocation2 + $0x2f0] sm:$0xff]  ;;  %v18794_v14 = vld [vmem:[#allocation2 + $0x180] sm:$0xff] }
 0x75d   : > { %17466 = vmatpush3.bf16.xpose.msk.msra.mxu1 %vm19542_vm4, %v23026_v8 }
 0x75e   : > { %17469 = vmatprep.subr.msk.bf16.mxu1 %vm19542_vm4, %v23028_v11 }
 0x761   : > { %17520 = vmatpush3.bf16.xpose.msk.msra.mxu0 %vm19542_vm4, %v25377_v25  ;;  %v17584_v25 = vpack.c.bf16 %v18791_v0, %v18790_v53  ;;  %v7808_v53 = vld [vmem:[#allocation2 + $0x532] sm:$0xff]  ;;  %v8183_v0 = vld [vmem:[#allocation2 + $0x320] sm:$0xff] }
 0x762   : > { %17523 = vmatprep.subr.msk.bf16.mxu0 %vm19542_vm4, %v17521_v29 }
 0x765   : > { %17472 = vmatpush3.bf16.xpose.msk.msra.mxu1 %vm19542_vm4, %v23046_v62 }
 0x766   : > { %17475 = vmatprep.subr.msk.bf16.mxu1 %vm19542_vm4, %v17473_v19  ;;  %v25385_v19 = vld [vmem:[#allocation222_spill] sm:$0xff] }
 0x769   : > { %17526 = vmatpush3.bf16.xpose.msk.msra.mxu0 %vm19542_vm4, %v17524_v23  ;;  %v25388_v23 = vld [vmem:[#allocation203_spill] sm:$0xff] }
 0x76a   : > { %17577 = vmatprep.subr.msk.bf16.mxu0 %vm19542_vm4, %v17575_v49  ;;  %v25390_v49 = vld [vmem:[#allocation227_spill] sm:$0xff] }
 0x76b   : > { %v25392_v15 = vpack.c.bf16 %v25390_v49, %v25391_v16  ;;  %v7810_v49 = vld [vmem:[#allocation2 + $0x552] sm:$0xff] }
 0x76c   : > { %v18799_v16 = vld [vmem:[#allocation2 + $0x1f0] sm:$0xff] }
 0x76d   : > { %17478 = vmatpush3.bf16.xpose.msk.msra.mxu1 %vm19542_vm4, %v17476_v17  ;;  %v25387_v17 = vld [vmem:[#allocation204_spill] sm:$0xff] }
 0x76e   : > { %17529 = vmatprep.subr.msk.bf16.mxu1 %vm19542_vm4, %v25380_v24  ;;  %v25389_v18 = vpack.c.bf16 %v25387_v17, %v25388_v23  ;;  %v7806_v24 = vld [vmem:[#allocation2 + $0x4f2] sm:$0xff] }
 0x76f   : > { %v17545_v3 = vpack.c.bf16 %v7806_v24, %v22671_v56  ;;  %v23131_v56 = vld [vmem:[#allocation2 + $0x1b0] sm:$0xff] }
 0x770   : > { %15200 = vmatmul.mubr.msk.f32.vlgmr.msra.gmra.mrb[2].mxu0 %vm442_vm2, %v22932_v44  ;;  %v17596_v36 = vpack.c.bf16 %v23131_v56, %v18797_v33  ;;  %v18798_v17 = vld [vmem:[#allocation2 + $0x330] sm:$0xff] }
 0x771   : > { %17580 = vmatpush3.bf16.xpose.msk.msra.mxu0 %vm19542_vm4, %v17578_v10  ;;  %15267 = vmatprep.mubr.msk.f32.mxu0 %vm442_vm2, %v23082_v48  ;;  %v18795_v10 = vld [vmem:[#allocation2 + $0x190] sm:$0xff]  ;;  %v17599_v23 = vpack.c.bf16 %v18798_v17, %v8183_v0  ;;  %v18804_v0 = vld [vmem:[#allocation2 + $0x360] sm:$0xff]  ;;  %v25400_v17 = vld [vmem:[#allocation212_spill] sm:$0xff] }
 0x772   : > { %17583 = vmatprep.subr.msk.bf16.mxu0 %vm19542_vm4, %v17581_v63  ;;  %v17590_v4 = vpack.c.bf16 %v18795_v10, %v18794_v14  ;;  %v18796_v63 = vld [vmem:[#allocation2 + $0x2e0] sm:$0xff]  ;;  %v18801_v10 = vld [vmem:[#allocation2 + $0x350] sm:$0xff] }
 0x773   : > { %v17593_v42 = vpack.c.bf16 %v23116_v41, %v18796_v63  ;;  %v18800_v14 = vld [vmem:[#allocation2 + $0x340] sm:$0xff]  ;;  %v25397_v63 = vld [vmem:[#allocation209_spill] sm:$0xff] }
 0x774   : > { %15166 = vmatmul.mubr.msk.f32.vlgmr.msra.gmra.mrb[2].mxu1 %vm442_vm2, %v22782_v43  ;;  %v25384_v43 = vld [vmem:[#allocation220_spill] sm:$0xff] }
 0x775   : > { %17532 = vmatpush3.bf16.xpose.msk.msra.mxu1 %vm19542_vm4, %v25383_v32  ;;  %v25386_v29 = vpack.c.bf16 %v25384_v43, %v25385_v19  ;;  %15233 = vmatprep.mubr.msk.f32.mxu1 %vm442_vm2, %v22932_v44  ;;  %v25394_v32 = vld [vmem:[#allocation205_spill] sm:$0xff] }
 0x776   : > { %v25395_v43 = vpack.c.bf16 %v25393_v50, %v25394_v32  ;;  %v7790_v19 = vld [vmem:[#allocation2 + $0x3b2] sm:$0xff]  ;;  %v7811_v50 = vld [vmem:[#allocation2 + $0x562] sm:$0xff] }
 0x777   : > { %17535 = vmatprep.subr.msk.bf16.mxu1 %vm19542_vm4, %v25386_v29  ;;  %v7807_v29 = vld [vmem:[#allocation2 + $0x522] sm:$0xff]  ;;  %v7812_v32 = vld [vmem:[#allocation2 + $0x572] sm:$0xff] }
 0x779   : > { %17586 = vmatpush3.bf16.xpose.msk.msra.mxu0 %vm19542_vm4, %v17584_v25  ;;  %v17548_v25 = vpack.c.bf16 %v7790_v19, %v22686_v55  ;;  %v8167_v55 = vld [vmem:[#allocation2 + $0x1e0] sm:$0xff]  ;;  %v18803_v19 = vld [vmem:[#allocation2 + $0x210] sm:$0xff] }
 0x77a   : > { %17589 = vmatprep.subr.msk.bf16.mxu0 %vm19542_vm4, %v17587_v34  ;;  %v23135_v34 = vpack.c.bf16 %v7808_v53, %v7807_v29  ;;  %v23160_v53 = vpack.c.bf16 %v7812_v32, %v7811_v50  ;;  %v7798_v50 = vld [vmem:[#allocation2 + $0x452] sm:$0xff]  ;;  %v8582_v32 = vld [vmem:[#allocation2 + $0x281] sm:$0xff] }
 0x77d   : > { %17538 = vmatpush3.bf16.xpose.msk.msra.mxu1 %vm19542_vm4, %v25389_v18  ;;  %v7809_v18 = vld [vmem:[#allocation2 + $0x542] sm:$0xff] }
 0x77e   : > { %17541 = vmatprep.subr.msk.bf16.mxu1 %vm19542_vm4, %v25392_v15  ;;  %v17602_v15 = vpack.c.bf16 %v18799_v16, %v8167_v55  ;;  %v23146_v24 = vpack.c.bf16 %v7810_v49, %v7809_v18  ;;  %v7814_v55 = vld [vmem:[#allocation2 + $0x592] sm:$0xff]  ;;  %v18806_v49 = vld [vmem:[#allocation2 + $0x220] sm:$0xff] }
 0x77f   : > { %v23174_v18 = vld [vmem:[#allocation2 + $0x390] sm:$0xff] }
 0x780   : > { %v18807_v16 = vld [vmem:[#allocation2 + $0x230] sm:$0xff] }
 0x781   : > { %17592 = vmatpush3.bf16.xpose.msk.msra.mxu0 %vm19542_vm4, %v17590_v4  ;;  %v17605_v4 = vpack.c.bf16 %v18801_v10, %v18800_v14  ;;  %v17569_v14 = vpack.c.bf16 %v7814_v55, %v22739_v1  ;;  %v18808_v10 = vld [vmem:[#allocation2 + $0x380] sm:$0xff]  ;;  %v23189_v1 = vld [vmem:[#allocation2 + $0x250] sm:$0xff] }
 0x782   : > { %17595 = vmatprep.subr.msk.bf16.mxu0 %vm19542_vm4, %v17593_v42  ;;  %v23207_v55 = vld [vmem:[#allocation2 + $0x151] sm:$0xff] }
 0x785   : > { %17544 = vmatpush3.bf16.xpose.msk.msra.mxu1 %vm19542_vm4, %v25395_v43  ;;  %v18802_v43 = vld [vmem:[#allocation2 + $0x200] sm:$0xff] }
 0x786   : > { %17547 = vmatprep.subr.msk.bf16.mxu1 %vm19542_vm4, %v17545_v3  ;;  %v25396_v3 = vld [vmem:[#allocation210_spill] sm:$0xff]  ;;  %v17608_v29 = vpack.c.bf16 %v18803_v19, %v18802_v43  ;;  %v8207_v43 = vld [vmem:[#allocation2 + $0x500] sm:$0xff]  ;;  %v23191_v19 = vld [vmem:[#allocation2 + $0x510] sm:$0xff] }
 0x787   : > { %v25398_v42 = vpack.c.bf16 %v25396_v3, %v25397_v63  ;;  %v25402_v3 = vld [vmem:[#allocation215_spill] sm:$0xff]  ;;  %v25403_v63 = vld [vmem:[#allocation214_spill] sm:$0xff] }
 0x789   : > { %17598 = vmatpush3.bf16.xpose.msk.msra.mxu0 %vm19542_vm4, %v17596_v36  ;;  %v25399_v36 = vld [vmem:[#allocation213_spill] sm:$0xff] }
 0x78a   : > { %17601 = vmatprep.subr.msk.bf16.mxu0 %vm19542_vm4, %v17599_v23  ;;  %v25401_v23 = vpack.c.bf16 %v25399_v36, %v25400_v17  ;;  %v17623_v36 = vpack.c.bf16 %v23191_v19, %v8207_v43 }
 0x78d   : > { %17550 = vmatpush3.bf16.xpose.msk.msra.mxu1 %vm19542_vm4, %v17548_v25  ;;  %v18805_v25 = vld [vmem:[#allocation2 + $0x370] sm:$0xff] }
 0x78e   : > { %17553 = vmatprep.subr.msk.bf16.mxu1 %vm19542_vm4, %v23135_v34  ;;  %v17611_v33 = vpack.c.bf16 %v18805_v25, %v18804_v0  ;;  %v17572_v0 = vpack.c.bf16 %v7798_v50, %v22755_v13  ;;  %v18809_v25 = vld [vmem:[#allocation2 + $0x240] sm:$0xff] }
 0x78f   : > { %v8191_v13 = vld [vmem:[#allocation2 + $0x3c0] sm:$0xff] }
 0x791   : > { %17604 = vmatpush3.bf16.xpose.msk.msra.mxu0 %vm19542_vm4, %v17602_v15  ;;  %v17614_v15 = vpack.c.bf16 %v18807_v16, %v18806_v49  ;;  %v18810_v49 = vld [vmem:[#allocation2 + $0x3d0] sm:$0xff] }
 0x792   : > { %17607 = vmatprep.subr.msk.bf16.mxu0 %vm19542_vm4, %v17605_v4  ;;  %v17617_v4 = vpack.c.bf16 %v23174_v18, %v18808_v10  ;;  %v17626_v16 = vpack.c.bf16 %v18810_v49, %v8191_v13  ;;  %v18812_v10 = vld [vmem:[#allocation2 + $0x3f0] sm:$0xff] }
 0x793   : > { %v23293_v49 = vld [vmem:[#allocation2 + $0x5f0] sm:$0xff] }
 0x795   : > { %17556 = vmatpush3.bf16.xpose.msk.msra.mxu1 %vm19542_vm4, %v25398_v42  ;;  %v25404_v42 = vpack.c.bf16 %v25402_v3, %v25403_v63  ;;  %v8590_v63 = vld [vmem:[#allocation2 + $0x321] sm:$0xff] }
 0x796   : > { %17559 = vmatprep.subr.msk.bf16.mxu1 %vm19542_vm4, %v23146_v24 }
 0x799   : > { %17610 = vmatpush3.bf16.xpose.msk.msra.mxu0 %vm19542_vm4, %v17608_v29  ;;  %v23193_v29 = vld [vmem:[#allocation2 + $0x291] sm:$0xff] }
 0x79a   : > { %17613 = vmatprep.subr.msk.bf16.mxu0 %vm19542_vm4, %v17611_v33  ;;  %v17620_v33 = vpack.c.bf16 %v23189_v1, %v18809_v25  ;;  %v17671_v17 = vpack.c.bf16 %v23193_v29, %v8582_v32  ;;  %v18815_v32 = vld [vmem:[#allocation2 + $0x420] sm:$0xff] }
 0x79b   : > { %v8574_v25 = vld [vmem:[#allocation2 + $0x1e1] sm:$0xff] }
 0x79d   : > { %17562 = vmatpush3.bf16.xpose.msk.msra.mxu1 %vm19542_vm4, %v25401_v23  ;;  %v8566_v23 = vld [vmem:[#allocation2 + $0x141] sm:$0xff] }
 0x79e   : > { %17565 = vmatprep.subr.msk.bf16.mxu1 %vm19542_vm4, %v23160_v53 }
 0x7a1   : > { %17616 = vmatpush3.bf16.xpose.msk.msra.mxu0 %vm19542_vm4, %v17614_v15  ;;  %v17674_v15 = vpack.c.bf16 %v23207_v55, %v8566_v23  ;;  %v23291_v23 = vld [vmem:[#allocation2 + $0x5e0] sm:$0xff] }
 0x7a2   : > { %17619 = vmatprep.subr.msk.bf16.mxu0 %vm19542_vm4, %v17617_v4 }
 0x7a5   : > { %17568 = vmatpush3.bf16.xpose.msk.msra.mxu1 %vm19542_vm4, %v25404_v42  ;;  %v23259_v42 = vld [vmem:[#allocation2 + $0x331] sm:$0xff] }
 0x7a6   : > { %17571 = vmatprep.subr.msk.bf16.mxu1 %vm19542_vm4, %v17569_v14  ;;  %v23217_v14 = vld [vmem:[%s24349_s3 + $0x98] sm:$0xff]  ;;  %v17695_v43 = vpack.c.bf16 %v23259_v42, %v8590_v63 }
 0x7a7   : > { %v23325_v63 = vld [vmem:[#allocation2 + $0x511] sm:$0xff] }
 0x7a9   : > { %17622 = vmatpush3.bf16.xpose.msk.msra.mxu0 %vm19542_vm4, %v17620_v33  ;;  %v23277_v33 = vld [vmem:[#allocation2 + $0x1f1] sm:$0xff] }
 0x7aa   : > { %17673 = vmatprep.subr.msk.bf16.mxu0 %vm19542_vm4, %v17671_v17  ;;  %v18816_v17 = vld [vmem:[#allocation2 + $0x470] sm:$0xff] }
 0x7ad   : > { %17574 = vmatpush3.bf16.xpose.msk.msra.mxu1 %vm19542_vm4, %v17572_v0  ;;  %v8199_v0 = vld [vmem:[#allocation2 + $0x460] sm:$0xff] }
 0x7ae   : > { %17625 = vmatprep.subr.msk.bf16.mxu1 %vm19542_vm4, %v17623_v36  ;;  %v17650_v13 = vpack.c.bf16 %v18816_v17, %v8199_v0  ;;  %v18822_v0 = vld [vmem:[#allocation2 + $0x292] sm:$0xff] }
 0x7b0   : > { %15268 = vmatmul.mubr.msk.f32.vlgmr.msra.gmra.mrb[2].mxu0 %vm442_vm2, %v23082_v48 }
 0x7b1   : > { %17676 = vmatpush3.bf16.xpose.msk.msra.mxu0 %vm19542_vm4, %v17674_v15  ;;  %15335 = vmatprep.mubr.msk.f32.mxu0 %vm442_vm2, %v23217_v14  ;;  %v18817_v15 = vld [vmem:[#allocation2 + $0x480] sm:$0xff] }
 0x7b2   : > { %17679 = vmatprep.subr.msk.bf16.mxu0 %vm19542_vm4, %v22837_v9  ;;  %v18814_v9 = vld [vmem:[#allocation2 + $0x410] sm:$0xff] }
 0x7b4   : > { %15234 = vmatmul.mubr.msk.f32.vlgmr.msra.gmra.mrb[2].mxu1 %vm442_vm2, %v22932_v44  ;;  %v18811_v44 = vld [vmem:[#allocation2 + $0x3e0] sm:$0xff] }
 0x7b5   : > { %17628 = vmatpush3.bf16.xpose.msk.msra.mxu1 %vm19542_vm4, %v17626_v16  ;;  %15301 = vmatprep.mubr.msk.f32.mxu1 %vm442_vm2, %v23082_v48  ;;  %v17632_v4 = vpack.c.bf16 %v18812_v10, %v18811_v44  ;;  %v17659_v16 = vpack.c.bf16 %v23293_v49, %v23291_v23  ;;  %v18818_v44 = vld [vmem:[#allocation2 + $0x490] sm:$0xff] }
 0x7b6   : > { %17631 = vmatprep.subr.msk.bf16.mxu1 %vm19542_vm4, %v22835_v5  ;;  %v18813_v5 = vld [vmem:[#allocation2 + $0x400] sm:$0xff]  ;;  %v17656_v10 = vpack.c.bf16 %v18818_v44, %v18817_v15 }
 0x7b7   : > { %v17638_v3 = vpack.c.bf16 %v18814_v9, %v18813_v5  ;;  %v18819_v9 = vld [vmem:[#allocation2 + $0x4a0] sm:$0xff] }
 0x7b8   : > { %v23348_v44 = vld [vmem:[%s24349_s3 + $0xa0] sm:$0xff] }
 0x7b9   : > { %17682 = vmatpush3.bf16.xpose.msk.msra.mxu0 %vm19542_vm4, %v22849_v39  ;;  %v8215_v39 = vld [vmem:[#allocation2 + $0x5a0] sm:$0xff] }
 0x7ba   : > { %17685 = vmatprep.subr.msk.bf16.mxu0 %vm19542_vm4, %v22853_v57  ;;  %v23257_v57 = vld [vmem:[#allocation2 + $0x430] sm:$0xff] }
 0x7bd   : > { %17634 = vmatpush3.bf16.xpose.msk.msra.mxu1 %vm19542_vm4, %v17632_v4  ;;  %v23309_v4 = vld [vmem:[#allocation2 + $0x610] sm:$0xff] }
 0x7be   : > { %17637 = vmatprep.subr.msk.bf16.mxu1 %vm19542_vm4, %v22851_v2  ;;  %v23255_v2 = vld [vmem:[#allocation2 + $0x5b0] sm:$0xff] }
 0x7bf   : > { %v17647_v50 = vpack.c.bf16 %v23255_v2, %v8215_v39 }
 0x7c1   : > { %17688 = vmatpush3.bf16.xpose.msk.msra.mxu0 %vm19542_vm4, %v22869_v20  ;;  %v17644_v20 = vpack.c.bf16 %v23257_v57, %v18815_v32  ;;  %v18821_v32 = vld [vmem:[#allocation2 + $0x4c0] sm:$0xff] }
 0x7c2   : > { %17691 = vmatprep.subr.msk.bf16.mxu0 %vm19542_vm4, %v22873_v26  ;;  %v23275_v26 = vld [vmem:[#allocation2 + $0x5d0] sm:$0xff] }
 0x7c5   : > { %17640 = vmatpush3.bf16.xpose.msk.msra.mxu1 %vm19542_vm4, %v17638_v3  ;;  %v18820_v3 = vld [vmem:[#allocation2 + $0x4b0] sm:$0xff] }
 0x7c6   : > { %17643 = vmatprep.subr.msk.bf16.mxu1 %vm19542_vm4, %v22871_v52  ;;  %v23273_v52 = vld [vmem:[#allocation2 + $0x5c0] sm:$0xff]  ;;  %v17662_v39 = vpack.c.bf16 %v18820_v3, %v18819_v9  ;;  %v18829_v3 = vld [vmem:[#allocation2 + $0x2d2] sm:$0xff] }
 0x7c7   : > { %v17653_v36 = vpack.c.bf16 %v23275_v26, %v23273_v52  ;;  %v18828_v9 = vld [vmem:[#allocation2 + $0x2c2] sm:$0xff] }
 0x7c9   : > { %17694 = vmatpush3.bf16.xpose.msk.msra.mxu0 %vm19542_vm4, %v22889_v47  ;;  %v17698_v47 = vpack.c.bf16 %v23277_v33, %v8574_v25  ;;  %v23338_v25 = vld [vmem:[#allocation2 + $0x3d1] sm:$0xff] }
 0x7ca   : > { %17697 = vmatprep.subr.msk.bf16.mxu0 %vm19542_vm4, %v17695_v43 }
 0x7cd   : > { %17646 = vmatpush3.bf16.xpose.msk.msra.mxu1 %vm19542_vm4, %v17644_v20 }
 0x7ce   : > { %17649 = vmatprep.subr.msk.bf16.mxu1 %vm19542_vm4, %v17647_v50  ;;  %v8989_v50 = vld [vmem:[#allocation2 + $0x282] sm:$0xff] }
 0x7d1   : > { %17700 = vmatpush3.bf16.xpose.msk.msra.mxu0 %vm19542_vm4, %v17698_v47 }
 0x7d2   : > { %17703 = vmatprep.subr.msk.bf16.mxu0 %vm19542_vm4, %v22921_v46  ;;  %v23307_v46 = vld [vmem:[#allocation2 + $0x600] sm:$0xff] }
 0x7d3   : > { %v17665_v5 = vpack.c.bf16 %v23309_v4, %v23307_v46 }
 0x7d5   : > { %17652 = vmatpush3.bf16.xpose.msk.msra.mxu1 %vm19542_vm4, %v17650_v13  ;;  %v18823_v13 = vld [vmem:[#allocation2 + $0x152] sm:$0xff] }
 0x7d6   : > { %17655 = vmatprep.subr.msk.bf16.mxu1 %vm19542_vm4, %v17653_v36  ;;  %v8973_v36 = vld [vmem:[#allocation2 + $0x142] sm:$0xff] }
 0x7d7   : > { %v17770_v47 = vpack.c.bf16 %v18823_v13, %v8973_v36  ;;  %v18833_v36 = vld [vmem:[#allocation2 + $0x1a2] sm:$0xff] }
 0x7d9   : > { %17706 = vmatpush3.bf16.xpose.msk.msra.mxu0 %vm19542_vm4, %v22759_v28  ;;  %v23323_v28 = vld [vmem:[#allocation2 + $0x4d0] sm:$0xff] }
 0x7da   : > { %17709 = vmatprep.subr.msk.bf16.mxu0 %vm19542_vm4, %v22954_v61  ;;  %v8614_v61 = vld [vmem:[#allocation2 + $0x501] sm:$0xff]  ;;  %v17668_v20 = vpack.c.bf16 %v23323_v28, %v18821_v32 }
 0x7db   : > { %v17719_v43 = vpack.c.bf16 %v23325_v63, %v8614_v61  ;;  %v18830_v61 = vld [vmem:[#allocation2 + $0x182] sm:$0xff] }
 0x7dd   : > { %17658 = vmatpush3.bf16.xpose.msk.msra.mxu1 %vm19542_vm4, %v17656_v10  ;;  %v18827_v10 = vld [vmem:[#allocation2 + $0x172] sm:$0xff] }
 0x7de   : > { %17661 = vmatprep.subr.msk.bf16.mxu1 %vm19542_vm4, %v17659_v16  ;;  %v18825_v16 = vld [vmem:[#allocation2 + $0x2b2] sm:$0xff] }
 0x7e1   : > { %17712 = vmatpush3.bf16.xpose.msk.msra.mxu0 %vm19542_vm4, %v22777_v59  ;;  %v17767_v59 = vpack.c.bf16 %v18822_v0, %v8989_v50  ;;  %v18831_v50 = vld [vmem:[#allocation2 + $0x192] sm:$0xff] }
 0x7e2   : > { %17715 = vmatprep.subr.msk.bf16.mxu0 %vm19542_vm4, %v22974_v30  ;;  %v8598_v30 = vld [vmem:[#allocation2 + $0x3c1] sm:$0xff]  ;;  %v17782_v32 = vpack.c.bf16 %v18831_v50, %v18830_v61  ;;  %v23388_v0 = vld [vmem:[#allocation2 + $0x1b2] sm:$0xff] }
 0x7e3   : > { %v17722_v17 = vpack.c.bf16 %v23338_v25, %v8598_v30  ;;  %v23418_v61 = vld [vmem:[#allocation2 + $0x5e1] sm:$0xff]  ;;  %v23420_v50 = vld [vmem:[#allocation2 + $0x5f1] sm:$0xff] }
 0x7e5   : > { %17664 = vmatpush3.bf16.xpose.msk.msra.mxu1 %vm19542_vm4, %v17662_v39  ;;  %v17779_v39 = vpack.c.bf16 %v18829_v3, %v18828_v9  ;;  %v18836_v9 = vld [vmem:[#allocation2 + $0x342] sm:$0xff]  ;;  %v18837_v3 = vld [vmem:[#allocation2 + $0x352] sm:$0xff] }
 0x7e6   : > { %17667 = vmatprep.subr.msk.bf16.mxu1 %vm19542_vm4, %v17665_v5 }
 0x7e9   : > { %17718 = vmatpush3.bf16.xpose.msk.msra.mxu0 %vm19542_vm4, %v22803_v35  ;;  %v18824_v35 = vld [vmem:[#allocation2 + $0x2a2] sm:$0xff] }
 0x7ea   : > { %17769 = vmatprep.subr.msk.bf16.mxu0 %vm19542_vm4, %v17767_v59  ;;  %v17773_v15 = vpack.c.bf16 %v18825_v16, %v18824_v35  ;;  %v8997_v59 = vld [vmem:[#allocation2 + $0x322] sm:$0xff]  ;;  %v23405_v16 = vld [vmem:[#allocation2 + $0x471] sm:$0xff] }
 0x7eb   : > { %v8606_v35 = vld [vmem:[#allocation2 + $0x461] sm:$0xff] }
 0x7ed   : > { %17670 = vmatpush3.bf16.xpose.msk.msra.mxu1 %vm19542_vm4, %v17668_v20  ;;  %v18832_v20 = vld [vmem:[#allocation2 + $0x2e2] sm:$0xff] }
 0x7ee   : > { %17721 = vmatprep.subr.msk.bf16.mxu1 %vm19542_vm4, %v17719_v43 }
 0x7f0   : > { %15336 = vmatmul.mubr.msk.f32.vlgmr.msra.gmra.mrb[2].mxu0 %vm442_vm2, %v23217_v14 }
 0x7f1   : > { %17772 = vmatpush3.bf16.xpose.msk.msra.mxu0 %vm19542_vm4, %v17770_v47  ;;  %15403 = vmatprep.mubr.msk.f32.mxu0 %vm442_vm2, %v23348_v44  ;;  %v23403_v47 = vld [vmem:[#allocation2 + $0x5d1] sm:$0xff] }
 0x7f2   : > { %17775 = vmatprep.subr.msk.bf16.mxu0 %vm19542_vm4, %v17773_v15  ;;  %v8981_v15 = vld [vmem:[#allocation2 + $0x1e2] sm:$0xff] }
 0x7f4   : > { %15302 = vmatmul.mubr.msk.f32.vlgmr.msra.gmra.mrb[2].mxu1 %vm442_vm2, %v23082_v48  ;;  %v18826_v48 = vld [vmem:[#allocation2 + $0x162] sm:$0xff] }
 0x7f5   : > { %17724 = vmatpush3.bf16.xpose.msk.msra.mxu1 %vm19542_vm4, %v17722_v17  ;;  %15369 = vmatprep.mubr.msk.f32.mxu1 %vm442_vm2, %v23217_v14  ;;  %v17776_v5 = vpack.c.bf16 %v18827_v10, %v18826_v48  ;;  %v18834_v17 = vld [vmem:[#allocation2 + $0x332] sm:$0xff]  ;;  %v17746_v48 = vpack.c.bf16 %v23405_v16, %v8606_v35 }
 0x7f6   : > { %17727 = vmatprep.subr.msk.bf16.mxu1 %vm19542_vm4, %v22992_v60  ;;  %v23373_v60 = vld [vmem:[#allocation2 + $0x2f2] sm:$0xff]  ;;  %v17791_v13 = vpack.c.bf16 %v18834_v17, %v8997_v59  ;;  %v18840_v59 = vld [vmem:[#allocation2 + $0x362] sm:$0xff] }
 0x7f7   : > { %v17785_v43 = vpack.c.bf16 %v23373_v60, %v18832_v20  ;;  %v18835_v10 = vld [vmem:[#allocation2 + $0x1f2] sm:$0xff]  ;;  %v18838_v20 = vld [vmem:[#allocation2 + $0x202] sm:$0xff] }
 0x7f8   : > { %v23435_v17 = vld [vmem:[#allocation2 + $0x611] sm:$0xff] }
 0x7f9   : > { %17778 = vmatpush3.bf16.xpose.msk.msra.mxu0 %vm19542_vm4, %v17776_v5  ;;  %v17794_v5 = vpack.c.bf16 %v18835_v10, %v8981_v15  ;;  %v18842_v15 = vld [vmem:[#allocation2 + $0x222] sm:$0xff] }
 0x7fa   : > { %17781 = vmatprep.subr.msk.bf16.mxu0 %vm19542_vm4, %v17779_v39  ;;  %v17797_v39 = vpack.c.bf16 %v18837_v3, %v18836_v9  ;;  %v9021_v9 = vld [vmem:[#allocation2 + $0x502] sm:$0xff]  ;;  %v23453_v3 = vld [vmem:[#allocation2 + $0x512] sm:$0xff] }
 0x7fd   : > { %17730 = vmatpush3.bf16.xpose.msk.msra.mxu1 %vm19542_vm4, %v23006_v38  ;;  %v8622_v38 = vld [vmem:[#allocation2 + $0x5a1] sm:$0xff] }
 0x7fe   : > { %17733 = vmatprep.subr.msk.bf16.mxu1 %vm19542_vm4, %v23008_v58  ;;  %v23386_v58 = vld [vmem:[#allocation2 + $0x5b1] sm:$0xff] }
 0x7ff   : > { %v17743_v30 = vpack.c.bf16 %v23386_v58, %v8622_v38 }
 0x801   : > { %17784 = vmatpush3.bf16.xpose.msk.msra.mxu0 %vm19542_vm4, %v17782_v32  ;;  %v17755_v32 = vpack.c.bf16 %v23420_v50, %v23418_v61 }
 0x802   : > { %17787 = vmatprep.subr.msk.bf16.mxu0 %vm19542_vm4, %v17785_v43  ;;  %v18839_v43 = vld [vmem:[#allocation2 + $0x212] sm:$0xff] }
 0x803   : > { %v17800_v38 = vpack.c.bf16 %v18839_v43, %v18838_v20  ;;  %v17815_v20 = vpack.c.bf16 %v23453_v3, %v9021_v9  ;;  %v25406_v43 = vld [vmem:[#allocation230_spill] sm:$0xff] }
 0x804   : > { %v18848_v9 = vld [vmem:[#allocation2 + $0x3f2] sm:$0xff] }
 0x805   : > { %17736 = vmatpush3.bf16.xpose.msk.msra.mxu1 %vm19542_vm4, %v23026_v8  ;;  %v17788_v8 = vpack.c.bf16 %v23388_v0, %v18833_v36 }
 0x806   : > { %17739 = vmatprep.subr.msk.bf16.mxu1 %vm19542_vm4, %v23028_v11  ;;  %v23401_v11 = vld [vmem:[#allocation2 + $0x5c1] sm:$0xff] }
 0x809   : > { %17790 = vmatpush3.bf16.xpose.msk.msra.mxu0 %vm19542_vm4, %v17788_v8  ;;  %v23433_v8 = vld [vmem:[#allocation2 + $0x601] sm:$0xff] }
 0x80a   : > { %17793 = vmatprep.subr.msk.bf16.mxu0 %vm19542_vm4, %v17791_v13  ;;  %v23437_v13 = vld [vmem:[#allocation2 + $0x392] sm:$0xff]  ;;  %v17761_v35 = vpack.c.bf16 %v23435_v17, %v23433_v8 }
 0x80d   : > { %17742 = vmatpush3.bf16.xpose.msk.msra.mxu1 %vm19542_vm4, %v23046_v62  ;;  %v17749_v62 = vpack.c.bf16 %v23403_v47, %v23401_v11 }
 0x80e   : > { %17745 = vmatprep.subr.msk.bf16.mxu1 %vm19542_vm4, %v17743_v30  ;;  %v18841_v30 = vld [vmem:[#allocation2 + $0x372] sm:$0xff] }
 0x80f   : > { %v17803_v36 = vpack.c.bf16 %v18841_v30, %v18840_v59  ;;  %v9005_v59 = vld [vmem:[#allocation2 + $0x3c2] sm:$0xff]  ;;  %v18846_v30 = vld [vmem:[#allocation2 + $0x3d2] sm:$0xff] }
 0x811   : > { %17796 = vmatpush3.bf16.xpose.msk.msra.mxu0 %vm19542_vm4, %v17794_v5  ;;  %v23451_v5 = vld [vmem:[#allocation2 + $0x252] sm:$0xff] }
 0x812   : > { %17799 = vmatprep.subr.msk.bf16.mxu0 %vm19542_vm4, %v17797_v39  ;;  %v18845_v39 = vld [vmem:[#allocation2 + $0x242] sm:$0xff] }
 0x815   : > { %17748 = vmatpush3.bf16.xpose.msk.msra.mxu1 %vm19542_vm4, %v17746_v48  ;;  %v18844_v48 = vld [vmem:[#allocation2 + $0x382] sm:$0xff] }
 0x816   : > { %17751 = vmatprep.subr.msk.bf16.mxu1 %vm19542_vm4, %v17749_v62  ;;  %v17809_v10 = vpack.c.bf16 %v23437_v13, %v18844_v48 }
 0x819   : > { %17802 = vmatpush3.bf16.xpose.msk.msra.mxu0 %vm19542_vm4, %v17800_v38 }
 0x81a   : > { %17805 = vmatprep.subr.msk.bf16.mxu0 %vm19542_vm4, %v17803_v36  ;;  %v17818_v36 = vpack.c.bf16 %v18846_v30, %v9005_v59  ;;  %v23512_v59 = vld [vmem:[#allocation2 + $0x300] sm:$0xff] }
 0x81b   : > { %v18849_v30 = vld [vmem:[#allocation2 + $0x402] sm:$0xff] }
 0x81d   : > { %17754 = vmatpush3.bf16.xpose.msk.msra.mxu1 %vm19542_vm4, %v22907_v6  ;;  %v18843_v6 = vld [vmem:[#allocation2 + $0x232] sm:$0xff] }
 0x81e   : > { %17757 = vmatprep.subr.msk.bf16.mxu1 %vm19542_vm4, %v17755_v32  ;;  %v17806_v62 = vpack.c.bf16 %v18843_v6, %v18842_v15  ;;  %v17812_v32 = vpack.c.bf16 %v23451_v5, %v18845_v39  ;;  %v25409_v15 = vld [vmem:[#allocation232_spill] sm:$0xff] }
 0x821   : > { %17808 = vmatpush3.bf16.xpose.msk.msra.mxu0 %vm19542_vm4, %v17806_v62  ;;  %v25412_v62 = vld [vmem:[#allocation233_spill] sm:$0xff] }
 0x822   : > { %17811 = vmatprep.subr.msk.bf16.mxu0 %vm19542_vm4, %v17809_v10  ;;  %v18847_v10 = vld [vmem:[#allocation2 + $0x3e2] sm:$0xff] }
 0x823   : > { %v17824_v39 = vpack.c.bf16 %v18848_v9, %v18847_v10  ;;  %v23532_v10 = vld [vmem:[#allocation2 + $0x1c0] sm:$0xff] }
 0x825   : > { %17760 = vmatpush3.bf16.xpose.msk.msra.mxu1 %vm19542_vm4, %v22927_v51  ;;  %v25405_v51 = vld [vmem:[#allocation231_spill] sm:$0xff] }
 0x826   : > { %17763 = vmatprep.subr.msk.bf16.mxu1 %vm19542_vm4, %v17761_v35  ;;  %v25407_v38 = vpack.c.bf16 %v25405_v51, %v25406_v43  ;;  %v25408_v35 = vld [vmem:[#allocation234_spill] sm:$0xff]  ;;  %v25417_v51 = vld [vmem:[#allocation239_spill] sm:$0xff] }
 0x827   : > { %v25410_v6 = vpack.c.bf16 %v25408_v35, %v25409_v15  ;;  %v25418_v43 = vld [vmem:[#allocation238_spill] sm:$0xff]  ;;  %v17881_v15 = vpack.c.bf16 %v23512_v59, %v23116_v41 }
 0x828   : > { %v23530_v41 = vld [vmem:[#allocation2 + $0x432] sm:$0xff] }
 0x829   : > { %17814 = vmatpush3.bf16.xpose.msk.msra.mxu0 %vm19542_vm4, %v17812_v32  ;;  %v25414_v32 = vld [vmem:[#allocation237_spill] sm:$0xff] }
 0x82a   : > { %17865 = vmatprep.subr.msk.bf16.mxu0 %vm19542_vm4, %v25407_v38  ;;  %v25419_v38 = vpack.c.bf16 %v25417_v51, %v25418_v43  ;;  %v23549_v43 = vld [vmem:[#allocation2 + $0x5c2] sm:$0xff] }
 0x82d   : > { %17766 = vmatpush3.bf16.xpose.msk.msra.mxu1 %vm19542_vm4, %v22956_v7  ;;  %v23476_v7 = vld [vmem:[%s24349_s3 + $0xa8] sm:$0xff] }
 0x82e   : > { %17817 = vmatprep.subr.msk.bf16.mxu1 %vm19542_vm4, %v17815_v20 }
 0x830   : > { %15404 = vmatmul.mubr.msk.f32.vlgmr.msra.gmra.mrb[2].mxu0 %vm442_vm2, %v23348_v44 }
 0x831   : > { %17868 = vmatpush3.bf16.xpose.msk.msra.mxu0 %vm19542_vm4, %v25410_v6  ;;  %15471 = vmatprep.mubr.msk.f32.mxu0 %vm442_vm2, %v23476_v7  ;;  %v25420_v6 = vld [vmem:[#allocation241_spill] sm:$0xff] }
 0x834   : > { %15370 = vmatmul.mubr.msk.f32.vlgmr.msra.gmra.mrb[2].mxu1 %vm442_vm2, %v23217_v14  ;;  %v25411_v14 = vld [vmem:[#allocation236_spill] sm:$0xff] }
 0x835   : > { %17820 = vmatpush3.bf16.xpose.msk.msra.mxu1 %vm19542_vm4, %v17818_v36  ;;  %v25413_v48 = vpack.c.bf16 %v25411_v14, %v25412_v62  ;;  %15437 = vmatprep.mubr.msk.f32.mxu1 %vm442_vm2, %v23348_v44  ;;  %v18850_v36 = vld [vmem:[#allocation2 + $0x412] sm:$0xff]  ;;  %v25421_v14 = vld [vmem:[#allocation240_spill] sm:$0xff] }
 0x836   : > { %17823 = vmatprep.subr.msk.bf16.mxu1 %vm19542_vm4, %v23135_v34  ;;  %v25415_v34 = vld [vmem:[#allocation235_spill] sm:$0xff]  ;;  %v17830_v35 = vpack.c.bf16 %v18850_v36, %v18849_v30  ;;  %v18852_v36 = vld [vmem:[#allocation2 + $0x472] sm:$0xff] }
 0x837   : > { %17871 = vmatprep.subr.msk.bf16.mxu0 %vm19542_vm4, %v25413_v48  ;;  %v25416_v20 = vpack.c.bf16 %v25414_v32, %v25415_v34  ;;  %v9029_v62 = vld [vmem:[#allocation2 + $0x5a2] sm:$0xff]  ;;  %v23528_v48 = vld [vmem:[#allocation2 + $0x5b2] sm:$0xff]  ;;  %v17884_v34 = vpack.c.bf16 %v23532_v10, %v23131_v56 }
 0x838   : > { %v17839_v9 = vpack.c.bf16 %v23528_v48, %v9029_v62  ;;  %v9013_v56 = vld [vmem:[#allocation2 + $0x462] sm:$0xff]  ;;  %v25430_v62 = vld [vmem:[#allocation245_spill] sm:$0xff] }
 0x839   : > { %17874 = vmatpush3.bf16.xpose.msk.msra.mxu0 %vm19542_vm4, %v25416_v20  ;;  %v25424_v20 = vld [vmem:[#allocation242_spill] sm:$0xff] }
 0x83a   : > { %17877 = vmatprep.subr.msk.bf16.mxu0 %vm19542_vm4, %v25419_v38  ;;  %v23551_v38 = vld [vmem:[#allocation2 + $0x5d2] sm:$0xff] }
 0x83b   : > { %v17845_v30 = vpack.c.bf16 %v23551_v38, %v23549_v43 }
 0x83d   : > { %17826 = vmatpush3.bf16.xpose.msk.msra.mxu1 %vm19542_vm4, %v17824_v39  ;;  %v18851_v39 = vld [vmem:[#allocation2 + $0x422] sm:$0xff] }
 0x83e   : > { %17829 = vmatprep.subr.msk.bf16.mxu1 %vm19542_vm4, %v23146_v24  ;;  %v25422_v24 = vpack.c.bf16 %v25420_v6, %v25421_v14  ;;  %v17836_v32 = vpack.c.bf16 %v23530_v41, %v18851_v39  ;;  %v25427_v6 = vld [vmem:[#allocation243_spill] sm:$0xff] }
 0x83f   : > { %v23569_v39 = vld [vmem:[#allocation2 + $0x5e2] sm:$0xff] }
 0x841   : > { %17880 = vmatpush3.bf16.xpose.msk.msra.mxu0 %vm19542_vm4, %v25422_v24  ;;  %v25429_v24 = vld [vmem:[#allocation248_spill] sm:$0xff] }
 0x842   : > { %17883 = vmatprep.subr.msk.bf16.mxu0 %vm19542_vm4, %v17881_v15  ;;  %v25426_v15 = vld [vmem:[#allocation246_spill] sm:$0xff] }
 0x843   : > { %v25428_v14 = vpack.c.bf16 %v25426_v15, %v25427_v6  ;;  %v25436_v15 = vld [vmem:[#allocation250_spill] sm:$0xff] }
 0x845   : > { %17832 = vmatpush3.bf16.xpose.msk.msra.mxu1 %vm19542_vm4, %v17830_v35  ;;  %v17842_v35 = vpack.c.bf16 %v18852_v36, %v9013_v56  ;;  %v25432_v56 = vld [vmem:[#allocation249_spill] sm:$0xff]  ;;  %v25433_v36 = vld [vmem:[#allocation247_spill] sm:$0xff] }
 0x846   : > { %17835 = vmatprep.subr.msk.bf16.mxu1 %vm19542_vm4, %v23160_v53  ;;  %v25423_v53 = vld [vmem:[#allocation244_spill] sm:$0xff] }
 0x847   : > { %v25425_v51 = vpack.c.bf16 %v25423_v53, %v25424_v20  ;;  %v18853_v53 = vld [vmem:[#allocation2 + $0x482] sm:$0xff]  ;;  %v18854_v20 = vld [vmem:[#allocation2 + $0x492] sm:$0xff] }
 0x849   : > { %17886 = vmatpush3.bf16.xpose.msk.msra.mxu0 %vm19542_vm4, %v17884_v34 }
 0x84a   : > { %17889 = vmatprep.subr.msk.bf16.mxu0 %vm19542_vm4, %v25425_v51  ;;  %v17848_v51 = vpack.c.bf16 %v18854_v20, %v18853_v53  ;;  %v18855_v53 = vld [vmem:[#allocation2 + $0x4a2] sm:$0xff]  ;;  %v18856_v20 = vld [vmem:[#allocation2 + $0x4b2] sm:$0xff] }
 0x84d   : > { %17838 = vmatpush3.bf16.xpose.msk.msra.mxu1 %vm19542_vm4, %v17836_v32  ;;  %v23571_v32 = vld [vmem:[#allocation2 + $0x5f2] sm:$0xff] }
 0x84e   : > { %17841 = vmatprep.subr.msk.bf16.mxu1 %vm19542_vm4, %v17839_v9  ;;  %v25431_v9 = vpack.c.bf16 %v25429_v24, %v25430_v62  ;;  %v17851_v34 = vpack.c.bf16 %v23571_v32, %v23569_v39  ;;  %v23591_v24 = vld [vmem:[#allocation2 + $0x612] sm:$0xff]  ;;  %v23593_v62 = vld [vmem:[#allocation2 + $0x3a0] sm:$0xff] }
 0x851   : > { %17892 = vmatpush3.bf16.xpose.msk.msra.mxu0 %vm19542_vm4, %v25428_v14  ;;  %v23589_v14 = vld [vmem:[#allocation2 + $0x602] sm:$0xff] }
 0x852   : > { %17895 = vmatprep.subr.msk.bf16.mxu0 %vm19542_vm4, %v25431_v9  ;;  %v17857_v9 = vpack.c.bf16 %v23591_v24, %v23589_v14 }
 0x855   : > { %17844 = vmatpush3.bf16.xpose.msk.msra.mxu1 %vm19542_vm4, %v17842_v35  ;;  %v25434_v35 = vpack.c.bf16 %v25432_v56, %v25433_v36  ;;  %v17905_v56 = vpack.c.bf16 %v23593_v62, %v23174_v18  ;;  %v25438_v36 = vld [vmem:[#allocation253_spill] sm:$0xff]  ;;  %v18857_v18 = vld [vmem:[#allocation2 + $0x4c2] sm:$0xff] }
 0x856   : > { %17847 = vmatprep.subr.msk.bf16.mxu1 %vm19542_vm4, %v17845_v30  ;;  %v25435_v30 = vld [vmem:[#allocation251_spill] sm:$0xff] }
 0x857   : > { %v25437_v6 = vpack.c.bf16 %v25435_v30, %v25436_v15  ;;  %v23610_v30 = vld [vmem:[#allocation2 + $0x4d2] sm:$0xff]  ;;  %v23612_v15 = vld [vmem:[#allocation2 + $0x260] sm:$0xff] }
 0x859   : > { %17898 = vmatpush3.bf16.xpose.msk.msra.mxu0 %vm19542_vm4, %v25434_v35 }
 0x85a   : > { %17901 = vmatprep.subr.msk.bf16.mxu0 %vm19542_vm4, %v25437_v6  ;;  %v17860_v6 = vpack.c.bf16 %v23610_v30, %v18857_v18  ;;  %v18864_v18 = vld [vmem:[#allocation2 + $0x2c1] sm:$0xff] }
 0x85d   : > { %17850 = vmatpush3.bf16.xpose.msk.msra.mxu1 %vm19542_vm4, %v17848_v51  ;;  %v17854_v51 = vpack.c.bf16 %v18856_v20, %v18855_v53  ;;  %v17908_v53 = vpack.c.bf16 %v23612_v15, %v23189_v1  ;;  %v18858_v20 = vld [vmem:[#allocation2 + $0x520] sm:$0xff] }
 0x85e   : > { %17853 = vmatprep.subr.msk.bf16.mxu1 %vm19542_vm4, %v17851_v34  ;;  %v25439_v34 = vld [vmem:[#allocation252_spill] sm:$0xff] }
 0x85f   : > { %v25440_v35 = vpack.c.bf16 %v25438_v36, %v25439_v34  ;;  %v18859_v36 = vld [vmem:[#allocation2 + $0x2a1] sm:$0xff] }
 0x860   : > { %v17959_v34 = vpack.c.bf16 %v18859_v36, %v23193_v29  ;;  %v18862_v29 = vld [vmem:[#allocation2 + $0x540] sm:$0xff] }
 0x861   : > { %17904 = vmatpush3.bf16.xpose.msk.msra.mxu0 %vm19542_vm4, %v25440_v35  ;;  %v18863_v35 = vld [vmem:[#allocation2 + $0x2b1] sm:$0xff]  ;;  %v18866_v36 = vld [vmem:[#allocation2 + $0x181] sm:$0xff] }
 0x862   : > { %17907 = vmatprep.subr.msk.bf16.mxu0 %vm19542_vm4, %v17905_v56 }
 0x865   : > { %17856 = vmatpush3.bf16.xpose.msk.msra.mxu1 %vm19542_vm4, %v17854_v51  ;;  %v17911_v51 = vpack.c.bf16 %v18858_v20, %v23191_v19  ;;  %v18861_v19 = vld [vmem:[#allocation2 + $0x530] sm:$0xff]  ;;  %v25441_v20 = vld [vmem:[#allocation255_spill] sm:$0xff] }
 0x866   : > { %17859 = vmatprep.subr.msk.bf16.mxu1 %vm19542_vm4, %v17857_v9  ;;  %v18860_v9 = vld [vmem:[#allocation2 + $0x161] sm:$0xff]  ;;  %v17917_v56 = vpack.c.bf16 %v18862_v29, %v18861_v19 }
 0x867   : > { %v17962_v1 = vpack.c.bf16 %v18860_v9, %v23207_v55  ;;  %v18867_v9 = vld [vmem:[#allocation2 + $0x550] sm:$0xff]  ;;  %v18868_v19 = vld [vmem:[#allocation2 + $0x560] sm:$0xff] }
 0x868   : > { %v17923_v29 = vpack.c.bf16 %v18868_v19, %v18867_v9  ;;  %v18873_v19 = vld [vmem:[#allocation2 + $0x570] sm:$0xff] }
 0x869   : > { %17910 = vmatpush3.bf16.xpose.msk.msra.mxu0 %vm19542_vm4, %v17908_v53  ;;  %v23635_v53 = vld [vmem:[%s24349_s3 + $0xb0] sm:$0xff] }
 0x86a   : > { %17961 = vmatprep.subr.msk.bf16.mxu0 %vm19542_vm4, %v17959_v34 }
 0x86d   : > { %17862 = vmatpush3.bf16.xpose.msk.msra.mxu1 %vm19542_vm4, %v17860_v6  ;;  %v17965_v6 = vpack.c.bf16 %v18864_v18, %v18863_v35  ;;  %v18869_v35 = vld [vmem:[#allocation2 + $0x2d1] sm:$0xff] }
 0x86e   : > { %17913 = vmatprep.subr.msk.bf16.mxu1 %vm19542_vm4, %v17911_v51  ;;  %v25442_v51 = vld [vmem:[#allocation254_spill] sm:$0xff] }
 0x86f   : > { %v25443_v55 = vpack.c.bf16 %v25441_v20, %v25442_v51  ;;  %v25444_v20 = vld [vmem:[#allocation257_spill] sm:$0xff] }
 0x870   : > { %15472 = vmatmul.mubr.msk.f32.vlgmr.msra.gmra.mrb[2].mxu0 %vm442_vm2, %v23476_v7 }
 0x871   : > { %17964 = vmatpush3.bf16.xpose.msk.msra.mxu0 %vm19542_vm4, %v17962_v1  ;;  %15539 = vmatprep.mubr.msk.f32.mxu0 %vm442_vm2, %v23635_v53  ;;  %v18870_v1 = vld [vmem:[#allocation2 + $0x2e1] sm:$0xff] }
 0x872   : > { %17967 = vmatprep.subr.msk.bf16.mxu0 %vm19542_vm4, %v17965_v6  ;;  %v17971_v18 = vpack.c.bf16 %v18870_v1, %v18869_v35  ;;  %v23663_v6 = vld [vmem:[#allocation2 + $0x580] sm:$0xff]  ;;  %v18874_v1 = vld [vmem:[#allocation2 + $0x2f1] sm:$0xff] }
 0x873   : > { %v17929_v35 = vpack.c.bf16 %v23663_v6, %v18873_v19  ;;  %v18875_v19 = vld [vmem:[#allocation2 + $0x1b1] sm:$0xff] }
 0x874   : > { %15438 = vmatmul.mubr.msk.f32.vlgmr.msra.gmra.mrb[2].mxu1 %vm442_vm2, %v23348_v44  ;;  %v18865_v44 = vld [vmem:[#allocation2 + $0x171] sm:$0xff] }
 0x875   : > { %17916 = vmatpush3.bf16.xpose.msk.msra.mxu1 %vm19542_vm4, %v25443_v55  ;;  %15505 = vmatprep.mubr.msk.f32.mxu1 %vm442_vm2, %v23476_v7  ;;  %v17968_v34 = vpack.c.bf16 %v18866_v36, %v18865_v44  ;;  %v23665_v55 = vld [vmem:[#allocation2 + $0x301] sm:$0xff]  ;;  %v18871_v44 = vld [vmem:[#allocation2 + $0x191] sm:$0xff] }
 0x876   : > { %17919 = vmatprep.subr.msk.bf16.mxu1 %vm19542_vm4, %v17917_v56  ;;  %v25445_v56 = vld [vmem:[#allocation256_spill] sm:$0xff] }
 0x877   : > { %v25446_v51 = vpack.c.bf16 %v25444_v20, %v25445_v56  ;;  %v18872_v36 = vld [vmem:[#allocation2 + $0x1a1] sm:$0xff]  ;;  %v17977_v20 = vpack.c.bf16 %v23665_v55, %v18874_v1  ;;  %v25448_v56 = vld [vmem:[#allocation258_spill] sm:$0xff] }
 0x878   : > { %v17974_v9 = vpack.c.bf16 %v18872_v36, %v18871_v44  ;;  %v17935_v44 = vpack.c.bf16 %v23273_v52, %v23255_v2  ;;  %v17941_v2 = vpack.c.bf16 %v23291_v23, %v23275_v26  ;;  %v17947_v26 = vpack.c.bf16 %v23307_v46, %v23293_v49  ;;  %v18881_v23 = vld [vmem:[#allocation2 + $0x221] sm:$0xff] }
 0x879   : > { %17970 = vmatpush3.bf16.xpose.msk.msra.mxu0 %vm19542_vm4, %v17968_v34  ;;  %v25447_v34 = vld [vmem:[#allocation259_spill] sm:$0xff] }
 0x87a   : > { %17973 = vmatprep.subr.msk.bf16.mxu0 %vm19542_vm4, %v17971_v18  ;;  %v23682_v18 = vld [vmem:[#allocation2 + $0x1c1] sm:$0xff] }
 0x87b   : > { %v17980_v1 = vpack.c.bf16 %v23682_v18, %v18875_v19  ;;  %v18882_v19 = vld [vmem:[#allocation2 + $0x371] sm:$0xff]  ;;  %v23725_v49 = vld [vmem:[#allocation2 + $0x620] sm:$0xff] }
 0x87c   : > { %v23727_v46 = vld [vmem:[#allocation2 + $0x3a1] sm:$0xff] }
 0x87d   : > { %17922 = vmatpush3.bf16.xpose.msk.msra.mxu1 %vm19542_vm4, %v25446_v51  ;;  %v25449_v51 = vpack.c.bf16 %v25447_v34, %v25448_v56  ;;  %v25450_v56 = vld [vmem:[#allocation261_spill] sm:$0xff] }
 0x87e   : > { %17925 = vmatprep.subr.msk.bf16.mxu1 %vm19542_vm4, %v17923_v29  ;;  %v23680_v29 = vld [vmem:[#allocation2 + $0x440] sm:$0xff] }
 0x87f   : > { %v17932_v36 = vpack.c.bf16 %v23680_v29, %v23257_v57  ;;  %v18877_v57 = vld [vmem:[#allocation2 + $0x201] sm:$0xff] }
 0x880   : > { %v17986_v52 = vpack.c.bf16 %v18877_v57, %v23277_v33  ;;  %v18880_v33 = vld [vmem:[#allocation2 + $0x211] sm:$0xff] }
 0x881   : > { %17976 = vmatpush3.bf16.xpose.msk.msra.mxu0 %vm19542_vm4, %v17974_v9  ;;  %v18876_v9 = vld [vmem:[#allocation2 + $0x341] sm:$0xff]  ;;  %v25454_v57 = vld [vmem:[#allocation262_spill] sm:$0xff] }
 0x882   : > { %17979 = vmatprep.subr.msk.bf16.mxu0 %vm19542_vm4, %v17977_v20  ;;  %v17983_v34 = vpack.c.bf16 %v18876_v9, %v23259_v42  ;;  %v18879_v42 = vld [vmem:[#allocation2 + $0x361] sm:$0xff] }
 0x885   : > { %17928 = vmatpush3.bf16.xpose.msk.msra.mxu1 %vm19542_vm4, %v25449_v51  ;;  %v25451_v51 = vld [vmem:[#allocation260_spill] sm:$0xff] }
 0x886   : > { %17931 = vmatprep.subr.msk.bf16.mxu1 %vm19542_vm4, %v17929_v35  ;;  %v18878_v35 = vld [vmem:[#allocation2 + $0x351] sm:$0xff] }
 0x887   : > { %v17989_v20 = vpack.c.bf16 %v18879_v42, %v18878_v35  ;;  %v18885_v42 = vld [vmem:[#allocation2 + $0x241] sm:$0xff] }
 0x889   : > { %17982 = vmatpush3.bf16.xpose.msk.msra.mxu0 %vm19542_vm4, %v17980_v1  ;;  %v18883_v1 = vld [vmem:[#allocation2 + $0x381] sm:$0xff] }
 0x88a   : > { %17985 = vmatprep.subr.msk.bf16.mxu0 %vm19542_vm4, %v17983_v34  ;;  %v17995_v9 = vpack.c.bf16 %v18883_v1, %v18882_v19  ;;  %v25453_v34 = vld [vmem:[#allocation263_spill] sm:$0xff]  ;;  %v18887_v19 = vld [vmem:[#allocation2 + $0x251] sm:$0xff] }
 0x88b   : > { %v25455_v35 = vpack.c.bf16 %v25453_v34, %v25454_v57  ;;  %v25459_v57 = vld [vmem:[#allocation268_spill] sm:$0xff] }
 0x88d   : > { %17934 = vmatpush3.bf16.xpose.msk.msra.mxu1 %vm19542_vm4, %v17932_v36  ;;  %v25452_v36 = vpack.c.bf16 %v25450_v56, %v25451_v51  ;;  %v18886_v56 = vld [vmem:[#allocation2 + $0x391] sm:$0xff] }
 0x88e   : > { %17937 = vmatprep.subr.msk.bf16.mxu1 %vm19542_vm4, %v17935_v44  ;;  %v17992_v44 = vpack.c.bf16 %v18881_v23, %v18880_v33  ;;  %v18001_v51 = vpack.c.bf16 %v23727_v46, %v18886_v56  ;;  %v25457_v33 = vld [vmem:[#allocation265_spill] sm:$0xff]  ;;  %v23770_v56 = vld [vmem:[%s24349_s3 + $0xb8] sm:$0xff] }
 0x891   : > { %17988 = vmatpush3.bf16.xpose.msk.msra.mxu0 %vm19542_vm4, %v17986_v52  ;;  %v18884_v52 = vld [vmem:[#allocation2 + $0x231] sm:$0xff] }
 0x892   : > { %17991 = vmatprep.subr.msk.bf16.mxu0 %vm19542_vm4, %v17989_v20  ;;  %v17998_v20 = vpack.c.bf16 %v18885_v42, %v18884_v52  ;;  %v18891_v42 = vld [vmem:[#allocation2 + $0x541] sm:$0xff] }
 0x895   : > { %17940 = vmatpush3.bf16.xpose.msk.msra.mxu1 %vm19542_vm4, %v25452_v36  ;;  %v25456_v36 = vld [vmem:[#allocation264_spill] sm:$0xff] }
 0x896   : > { %17943 = vmatprep.subr.msk.bf16.mxu1 %vm19542_vm4, %v17941_v2  ;;  %v17953_v2 = vpack.c.bf16 %v23725_v49, %v23309_v4  ;;  %v25458_v23 = vpack.c.bf16 %v25456_v36, %v25457_v33  ;;  %v23743_v4 = vld [vmem:[#allocation2 + $0x4e0] sm:$0xff]  ;;  %v25463_v36 = vld [vmem:[#allocation269_spill] sm:$0xff]  ;;  %v25466_v33 = vld [vmem:[#allocation270_spill] sm:$0xff] }
 0x899   : > { %17994 = vmatpush3.bf16.xpose.msk.msra.mxu0 %vm19542_vm4, %v17992_v44  ;;  %v17956_v44 = vpack.c.bf16 %v23743_v4, %v23323_v28  ;;  %v18889_v28 = vld [vmem:[#allocation2 + $0x3e1] sm:$0xff] }
 0x89a   : > { %17997 = vmatprep.subr.msk.bf16.mxu0 %vm19542_vm4, %v17995_v9  ;;  %v18888_v9 = vld [vmem:[#allocation2 + $0x521] sm:$0xff]  ;;  %v18010_v52 = vpack.c.bf16 %v18889_v28, %v23338_v25 }
 0x89b   : > { %v18007_v34 = vpack.c.bf16 %v18888_v9, %v23325_v63  ;;  %v18890_v63 = vld [vmem:[#allocation2 + $0x531] sm:$0xff] }
 0x89c   : > { %v18894_v9 = vld [vmem:[#allocation2 + $0x551] sm:$0xff] }
 0x89d   : > { %17946 = vmatpush3.bf16.xpose.msk.msra.mxu1 %vm19542_vm4, %v25455_v35  ;;  %v25460_v35 = vld [vmem:[#allocation266_spill] sm:$0xff] }
 0x89e   : > { %17949 = vmatprep.subr.msk.bf16.mxu1 %vm19542_vm4, %v17947_v26  ;;  %v23745_v26 = vld [vmem:[#allocation2 + $0x261] sm:$0xff] }
 0x89f   : > { %v18004_v1 = vpack.c.bf16 %v23745_v26, %v18887_v19  ;;  %v18893_v19 = vld [vmem:[#allocation2 + $0x401] sm:$0xff] }
 0x8a1   : > { %18000 = vmatpush3.bf16.xpose.msk.msra.mxu0 %vm19542_vm4, %v17998_v20  ;;  %v18013_v20 = vpack.c.bf16 %v18891_v42, %v18890_v63  ;;  %v25472_v63 = vld [vmem:[#allocation275_spill] sm:$0xff] }
 0x8a2   : > { %18003 = vmatprep.subr.msk.bf16.mxu0 %vm19542_vm4, %v18001_v51  ;;  %v25462_v51 = vld [vmem:[#allocation271_spill] sm:$0xff] }
 0x8a3   : > { %v25464_v25 = vpack.c.bf16 %v25462_v51, %v25463_v36  ;;  %v23806_v51 = vld [vmem:[#allocation2 + $0x302] sm:$0xff]  ;;  %v18896_v36 = vld [vmem:[#allocation2 + $0x411] sm:$0xff] }
 0x8a5   : > { %17952 = vmatpush3.bf16.xpose.msk.msra.mxu1 %vm19542_vm4, %v25458_v23 }
 0x8a6   : > { %17955 = vmatprep.subr.msk.bf16.mxu1 %vm19542_vm4, %v17953_v2  ;;  %v25461_v2 = vpack.c.bf16 %v25459_v57, %v25460_v35  ;;  %v25468_v35 = vld [vmem:[#allocation274_spill] sm:$0xff] }
 0x8a9   : > { %18006 = vmatpush3.bf16.xpose.msk.msra.mxu0 %vm19542_vm4, %v18004_v1 }
 0x8aa   : > { %18057 = vmatprep.subr.msk.bf16.mxu0 %vm19542_vm4, %v25461_v2  ;;  %v25469_v2 = vld [vmem:[#allocation272_spill] sm:$0xff] }
 0x8ab   : > { %v25470_v28 = vpack.c.bf16 %v25468_v35, %v25469_v2  ;;  %v18899_v35 = vld [vmem:[#allocation2 + $0x431] sm:$0xff] }
 0x8ad   : > { %17958 = vmatpush3.bf16.xpose.msk.msra.mxu1 %vm19542_vm4, %v17956_v44  ;;  %v18892_v44 = vld [vmem:[#allocation2 + $0x3f1] sm:$0xff] }
 0x8ae   : > { %18009 = vmatprep.subr.msk.bf16.mxu1 %vm19542_vm4, %v18007_v34  ;;  %v18016_v1 = vpack.c.bf16 %v18893_v19, %v18892_v44  ;;  %v18895_v34 = vld [vmem:[#allocation2 + $0x561] sm:$0xff]  ;;  %v18073_v44 = vpack.c.bf16 %v23806_v51, %v23373_v60  ;;  %v25474_v19 = vld [vmem:[#allocation278_spill] sm:$0xff]  ;;  %v18031_v60 = vpack.c.bf16 %v23401_v11, %v23386_v58  ;;  %v18037_v58 = vpack.c.bf16 %v23418_v61, %v23403_v47 }
 0x8af   : > { %v18019_v57 = vpack.c.bf16 %v18895_v34, %v18894_v9  ;;  %v23822_v34 = vld [vmem:[#allocation2 + $0x441] sm:$0xff]  ;;  %v18043_v47 = vpack.c.bf16 %v23433_v8, %v23420_v50 }
 0x8b0   : > { %15540 = vmatmul.mubr.msk.f32.vlgmr.msra.gmra.mrb[2].mxu0 %vm442_vm2, %v23635_v53  ;;  %v18028_v2 = vpack.c.bf16 %v23822_v34, %v18899_v35  ;;  %v18900_v11 = vld [vmem:[#allocation2 + $0x481] sm:$0xff] }
 0x8b1   : > { %18060 = vmatpush3.bf16.xpose.msk.msra.mxu0 %vm19542_vm4, %v25464_v25  ;;  %15607 = vmatprep.mubr.msk.f32.mxu0 %vm442_vm2, %v23770_v56  ;;  %v18897_v25 = vld [vmem:[#allocation2 + $0x421] sm:$0xff] }
 0x8b2   : > { %v18902_v61 = vld [vmem:[#allocation2 + $0x4a1] sm:$0xff] }
 0x8b3   : > { %v23875_v50 = vld [vmem:[#allocation2 + $0x621] sm:$0xff] }
 0x8b4   : > { %15506 = vmatmul.mubr.msk.f32.vlgmr.msra.gmra.mrb[2].mxu1 %vm442_vm2, %v23476_v7  ;;  %v25465_v7 = vld [vmem:[#allocation273_spill] sm:$0xff]  ;;  %v23877_v8 = vld [vmem:[#allocation2 + $0x3a2] sm:$0xff] }
 0x8b5   : > { %18012 = vmatpush3.bf16.xpose.msk.msra.mxu1 %vm19542_vm4, %v18010_v52  ;;  %v25467_v23 = vpack.c.bf16 %v25465_v7, %v25466_v33  ;;  %15573 = vmatprep.mubr.msk.f32.mxu1 %vm442_vm2, %v23635_v53  ;;  %v25471_v52 = vld [vmem:[#allocation276_spill] sm:$0xff]  ;;  %v18022_v7 = vpack.c.bf16 %v18897_v25, %v18896_v36  ;;  %v18898_v33 = vld [vmem:[#allocation2 + $0x571] sm:$0xff] }
 0x8b6   : > { %18015 = vmatprep.subr.msk.bf16.mxu1 %vm19542_vm4, %v18013_v20  ;;  %v25473_v42 = vpack.c.bf16 %v25471_v52, %v25472_v63  ;;  %v23804_v20 = vld [vmem:[#allocation2 + $0x581] sm:$0xff]  ;;  %v25477_v52 = vld [vmem:[#allocation281_spill] sm:$0xff]  ;;  %v25480_v36 = vld [vmem:[#allocation282_spill] sm:$0xff] }
 0x8b7   : > { %18063 = vmatprep.subr.msk.bf16.mxu0 %vm19542_vm4, %v25467_v23  ;;  %v18025_v23 = vpack.c.bf16 %v23804_v20, %v18898_v33  ;;  %v25478_v63 = vld [vmem:[#allocation279_spill] sm:$0xff]  ;;  %v25481_v25 = vld [vmem:[#allocation280_spill] sm:$0xff] }
 0x8b8   : > { %v25483_v33 = vld [vmem:[#allocation283_spill] sm:$0xff] }
 0x8b9   : > { %18066 = vmatpush3.bf16.xpose.msk.msra.mxu0 %vm19542_vm4, %v25470_v28 }
 0x8ba   : > { %18069 = vmatprep.subr.msk.bf16.mxu0 %vm19542_vm4, %v25473_v42  ;;  %v25479_v42 = vpack.c.bf16 %v25477_v52, %v25478_v63  ;;  %v18904_v52 = vld [vmem:[#allocation2 + $0x4c1] sm:$0xff] }
 0x8bd   : > { %18018 = vmatpush3.bf16.xpose.msk.msra.mxu1 %vm19542_vm4, %v18016_v1  ;;  %v25475_v1 = vld [vmem:[#allocation277_spill] sm:$0xff] }
 0x8be   : > { %18021 = vmatprep.subr.msk.bf16.mxu1 %vm19542_vm4, %v18019_v57  ;;  %v25476_v9 = vpack.c.bf16 %v25474_v19, %v25475_v1  ;;  %v23824_v57 = vld [vmem:[#allocation2 + $0x1c2] sm:$0xff]  ;;  %v25485_v19 = vld [vmem:[#allocation286_spill] sm:$0xff] }
 0x8bf   : > { %v18076_v28 = vpack.c.bf16 %v23824_v57, %v23388_v0  ;;  %v18034_v0 = vpack.c.bf16 %v18900_v11, %v23405_v16  ;;  %v18901_v16 = vld [vmem:[#allocation2 + $0x491] sm:$0xff]  ;;  %v25486_v1 = vld [vmem:[#allocation284_spill] sm:$0xff] }
 0x8c0   : > { %v25492_v11 = vld [vmem:[#allocation288_spill] sm:$0xff] }
 0x8c1   : > { %18072 = vmatpush3.bf16.xpose.msk.msra.mxu0 %vm19542_vm4, %v25476_v9  ;;  %v25487_v9 = vpack.c.bf16 %v25485_v19, %v25486_v1  ;;  %v10621_v19 = vld [vmem:[#allocation2 + $0x2c0] sm:$0xff]  ;;  %v10622_v1 = vld [vmem:[#allocation2 + $0x2d0] sm:$0xff] }
 0x8c2   : > { %18075 = vmatprep.subr.msk.bf16.mxu0 %vm19542_vm4, %v18073_v44  ;;  %v18040_v44 = vpack.c.bf16 %v18902_v61, %v18901_v16 }
 0x8c5   : > { %18024 = vmatpush3.bf16.xpose.msk.msra.mxu1 %vm19542_vm4, %v18022_v7  ;;  %v25482_v7 = vpack.c.bf16 %v25480_v36, %v25481_v25  ;;  %v23896_v36 = vld [vmem:[#allocation2 + $0x262] sm:$0xff]  ;;  %v10620_v25 = vld [vmem:[#allocation2 + $0x2b0] sm:$0xff] }
 0x8c6   : > { %18027 = vmatprep.subr.msk.bf16.mxu1 %vm19542_vm4, %v18025_v23  ;;  %v25484_v23 = vpack.c.bf16 %v20655_v21, %v25483_v33  ;;  %v25488_v21 = vld [vmem:[#allocation287_spill] sm:$0xff] }
 0x8c9   : > { %18078 = vmatpush3.bf16.xpose.msk.msra.mxu0 %vm19542_vm4, %v18076_v28  ;;  %v18903_v28 = vld [vmem:[#allocation2 + $0x4b1] sm:$0xff] }
 0x8ca   : > { %18081 = vmatprep.subr.msk.bf16.mxu0 %vm19542_vm4, %v25479_v42  ;;  %v18046_v63 = vpack.c.bf16 %v18904_v52, %v18903_v28  ;;  %v18097_v42 = vpack.c.bf16 %v23877_v8, %v23437_v13  ;;  %v10619_v13 = vld [vmem:[#allocation2 + $0x2a0] sm:$0xff]  ;;  %v25495_v52 = vld [vmem:[#allocation290_spill] sm:$0xff] }
 0x8cb   : > { %v18151_v61 = vpack.c.bf16 %v10620_v25, %v10619_v13  ;;  %v25494_v28 = vld [vmem:[#allocation291_spill] sm:$0xff]  ;;  %v18909_v13 = vld [vmem:[#allocation2 + $0x552] sm:$0xff] }
 0x8cc   : > { %v18910_v25 = vld [vmem:[#allocation2 + $0x562] sm:$0xff] }
 0x8cd   : > { %18030 = vmatpush3.bf16.xpose.msk.msra.mxu1 %vm19542_vm4, %v18028_v2  ;;  %v18049_v2 = vpack.c.bf16 %v23875_v50, %v23435_v17  ;;  %v23894_v17 = vld [vmem:[#allocation2 + $0x4e1] sm:$0xff] }
 0x8ce   : > { %18033 = vmatprep.subr.msk.bf16.mxu1 %vm19542_vm4, %v18031_v60  ;;  %v25489_v60 = vld [vmem:[#allocation285_spill] sm:$0xff] }
 0x8cf   : > { %v25490_v35 = vpack.c.bf16 %v25488_v21, %v25489_v60  ;;  %v18908_v21 = vld [vmem:[#allocation2 + $0x542] sm:$0xff] }
 0x8d1   : > { %18084 = vmatpush3.bf16.xpose.msk.msra.mxu0 %vm19542_vm4, %v25482_v7  ;;  %v18905_v7 = vld [vmem:[#allocation2 + $0x4d1] sm:$0xff] }
 0x8d2   : > { %18087 = vmatprep.subr.msk.bf16.mxu0 %vm19542_vm4, %v25484_v23  ;;  %v18052_v33 = vpack.c.bf16 %v23894_v17, %v18905_v7  ;;  %v18100_v23 = vpack.c.bf16 %v23896_v36, %v23451_v5  ;;  %v10603_v5 = vld [vmem:[#allocation2 + $0x160] sm:$0xff]  ;;  %v18115_v7 = vpack.c.bf16 %v18910_v25, %v18909_v13  ;;  %v10630_v13 = vld [vmem:[#allocation2 + $0x370] sm:$0xff] }
 0x8d3   : > { %v10629_v25 = vld [vmem:[#allocation2 + $0x360] sm:$0xff] }
 0x8d5   : > { %18036 = vmatpush3.bf16.xpose.msk.msra.mxu1 %vm19542_vm4, %v18034_v0 }
 0x8d6   : > { %18039 = vmatprep.subr.msk.bf16.mxu1 %vm19542_vm4, %v18037_v58  ;;  %v25491_v58 = vld [vmem:[#allocation289_spill] sm:$0xff] }
 0x8d7   : > { %v25493_v0 = vpack.c.bf16 %v25491_v58, %v25492_v11  ;;  %v10624_v58 = vld [vmem:[#allocation2 + $0x2f0] sm:$0xff]  ;;  %v10605_v11 = vld [vmem:[#allocation2 + $0x180] sm:$0xff] }
 0x8d9   : > { %18090 = vmatpush3.bf16.xpose.msk.msra.mxu0 %vm19542_vm4, %v25487_v9 }
 0x8da   : > { %18093 = vmatprep.subr.msk.bf16.mxu0 %vm19542_vm4, %v25490_v35  ;;  %v18157_v35 = vpack.c.bf16 %v10622_v1, %v10621_v19  ;;  %v10626_v19 = vld [vmem:[#allocation2 + $0x310] sm:$0xff]  ;;  %v10607_v1 = vld [vmem:[#allocation2 + $0x1a0] sm:$0xff] }
 0x8dd   : > { %18042 = vmatpush3.bf16.xpose.msk.msra.mxu1 %vm19542_vm4, %v18040_v44  ;;  %v10604_v44 = vld [vmem:[#allocation2 + $0x170] sm:$0xff] }
 0x8de   : > { %18045 = vmatprep.subr.msk.bf16.mxu1 %vm19542_vm4, %v18043_v47  ;;  %v18906_v47 = vld [vmem:[#allocation2 + $0x522] sm:$0xff]  ;;  %v18154_v9 = vpack.c.bf16 %v10604_v44, %v10603_v5 }
 0x8df   : > { %v18103_v16 = vpack.c.bf16 %v18906_v47, %v23453_v3  ;;  %v18907_v3 = vld [vmem:[#allocation2 + $0x532] sm:$0xff]  ;;  %v25498_v47 = vld [vmem:[#allocation292_spill] sm:$0xff] }
 0x8e0   : > { %v18109_v60 = vpack.c.bf16 %v18908_v21, %v18907_v3  ;;  %v23945_v44 = vld [vmem:[#allocation2 + $0x582] sm:$0xff]  ;;  %v18169_v21 = vpack.c.bf16 %v10626_v19, %v23512_v59  ;;  %v18127_v59 = vpack.c.bf16 %v23549_v43, %v23528_v48  ;;  %v10612_v43 = vld [vmem:[#allocation2 + $0x210] sm:$0xff] }
 0x8e1   : > { %18096 = vmatpush3.bf16.xpose.msk.msra.mxu0 %vm19542_vm4, %v25493_v0  ;;  %v10611_v48 = vld [vmem:[#allocation2 + $0x200] sm:$0xff] }
 0x8e2   : > { %18099 = vmatprep.subr.msk.bf16.mxu0 %vm19542_vm4, %v18097_v42  ;;  %v10623_v42 = vld [vmem:[#allocation2 + $0x2e0] sm:$0xff] }
 0x8e5   : > { %18048 = vmatpush3.bf16.xpose.msk.msra.mxu1 %vm19542_vm4, %v18046_v63  ;;  %v25496_v63 = vpack.c.bf16 %v25494_v28, %v25495_v52  ;;  %v23960_v52 = vld [vmem:[#allocation2 + $0x442] sm:$0xff] }
 0x8e6   : > { %18051 = vmatprep.subr.msk.bf16.mxu1 %vm19542_vm4, %v18049_v2  ;;  %v23917_v2 = vld [vmem:[%s24349_s3 + $0xc0] sm:$0xff] }
 0x8e9   : > { %18102 = vmatpush3.bf16.xpose.msk.msra.mxu0 %vm19542_vm4, %v18100_v23  ;;  %v25497_v23 = vld [vmem:[#allocation293_spill] sm:$0xff] }
 0x8ea   : > { %18153 = vmatprep.subr.msk.bf16.mxu0 %vm19542_vm4, %v18151_v61  ;;  %v10608_v61 = vld [vmem:[#allocation2 + $0x1b0] sm:$0xff] }
 0x8eb   : > { %v18166_v5 = vpack.c.bf16 %v10608_v61, %v10607_v1  ;;  %v18139_v61 = vpack.c.bf16 %v23589_v14, %v23571_v32  ;;  %v10631_v1 = vld [vmem:[#allocation2 + $0x380] sm:$0xff]  ;;  %v10616_v14 = vld [vmem:[#allocation2 + $0x250] sm:$0xff] }
 0x8ec   : > { %v10615_v32 = vld [vmem:[#allocation2 + $0x240] sm:$0xff] }
 0x8ed   : > { %18054 = vmatpush3.bf16.xpose.msk.msra.mxu1 %vm19542_vm4, %v18052_v33  ;;  %v18163_v33 = vpack.c.bf16 %v10624_v58, %v10623_v42  ;;  %v18124_v42 = vpack.c.bf16 %v23960_v52, %v23530_v41  ;;  %v18133_v41 = vpack.c.bf16 %v23569_v39, %v23551_v38  ;;  %v10614_v38 = vld [vmem:[#allocation2 + $0x230] sm:$0xff] }
 0x8ee   : > { %18105 = vmatprep.subr.msk.bf16.mxu1 %vm19542_vm4, %v18103_v16  ;;  %v25499_v16 = vpack.c.bf16 %v25497_v23, %v25498_v47  ;;  %v25504_v23 = vld [vmem:[#allocation296_spill] sm:$0xff]  ;;  %v10632_v39 = vld [vmem:[#allocation2 + $0x390] sm:$0xff] }
 0x8f0   : > { %15608 = vmatmul.mubr.msk.f32.vlgmr.msra.gmra.mrb[2].mxu0 %vm442_vm2, %v23770_v56 }
 0x8f1   : > { %18156 = vmatpush3.bf16.xpose.msk.msra.mxu0 %vm19542_vm4, %v18154_v9  ;;  %15675 = vmatprep.mubr.msk.f32.mxu0 %vm442_vm2, %v23917_v2  ;;  %v18911_v9 = vld [vmem:[#allocation2 + $0x572] sm:$0xff] }
 0x8f2   : > { %18159 = vmatprep.subr.msk.bf16.mxu0 %vm19542_vm4, %v18157_v35  ;;  %v18121_v3 = vpack.c.bf16 %v23945_v44, %v18911_v9  ;;  %v25501_v35 = vld [vmem:[#allocation294_spill] sm:$0xff]  ;;  %v25506_v9 = vld [vmem:[#allocation299_spill] sm:$0xff] }
 0x8f4   : > { %15574 = vmatmul.mubr.msk.f32.vlgmr.msra.gmra.mrb[2].mxu1 %vm442_vm2, %v23635_v53  ;;  %v10606_v53 = vld [vmem:[#allocation2 + $0x190] sm:$0xff] }
 0x8f5   : > { %18108 = vmatpush3.bf16.xpose.msk.msra.mxu1 %vm19542_vm4, %v25496_v63  ;;  %15641 = vmatprep.mubr.msk.f32.mxu1 %vm442_vm2, %v23770_v56  ;;  %v18160_v0 = vpack.c.bf16 %v10606_v53, %v10605_v11  ;;  %v10610_v63 = vld [vmem:[#allocation2 + $0x1d0] sm:$0xff]  ;;  %v10627_v11 = vld [vmem:[#allocation2 + $0x340] sm:$0xff] }
 0x8f6   : > { %18111 = vmatprep.subr.msk.bf16.mxu1 %vm19542_vm4, %v18109_v60  ;;  %v25500_v60 = vld [vmem:[#allocation295_spill] sm:$0xff]  ;;  %v10628_v53 = vld [vmem:[#allocation2 + $0x350] sm:$0xff]  ;;  %v18172_v58 = vpack.c.bf16 %v10610_v63, %v23532_v10  ;;  %v18178_v10 = vpack.c.bf16 %v10612_v43, %v10611_v48  ;;  %v18190_v63 = vpack.c.bf16 %v10616_v14, %v10615_v32 }
 0x8f7   : > { %v25502_v28 = vpack.c.bf16 %v25500_v60, %v25501_v35  ;;  %v24001_v60 = vld [vmem:[#allocation2 + $0x622] sm:$0xff]  ;;  %v10634_v35 = vld [vmem:[#allocation2 + $0x3b0] sm:$0xff] }
 0x8f8   : > { %v25512_v48 = vld [vmem:[#allocation19_spill] sm:$0xff] }
 0x8f9   : > { %18162 = vmatpush3.bf16.xpose.msk.msra.mxu0 %vm19542_vm4, %v18160_v0  ;;  %v18175_v0 = vpack.c.bf16 %v10628_v53, %v10627_v11  ;;  %v18193_v53 = vpack.c.bf16 %v10634_v35, %v23593_v62  ;;  %v24017_v11 = vld [vmem:[#allocation2 + $0x4e2] sm:$0xff]  ;;  %v25513_v43 = vpack.c.bf16 %v22132_v37, %v25512_v48 }
 0x8fa   : > { %18165 = vmatprep.subr.msk.bf16.mxu0 %vm19542_vm4, %v18163_v33  ;;  %v25503_v33 = vld [vmem:[#allocation297_spill] sm:$0xff]  ;;  %v18148_v62 = vpack.c.bf16 %v24017_v11, %v23610_v30  ;;  %v24043_v37 = vld [vmem:[%s24349_s3 + $0xc8] sm:$0xff]  ;;  %v25529_v32 = vld [vmem:[#allocation31_spill] sm:$0xff] }
 0x8fb   : > { %v25505_v47 = vpack.c.bf16 %v25503_v33, %v25504_v23  ;;  %v10636_v30 = vld [vmem:[#allocation2 + $0x3f0] sm:$0xff]  ;;  %v25518_v33 = vld [vmem:[#allocation304_spill] sm:$0xff]  ;;  %v25530_v14 = vpack.c.bf16 %v22182_v27, %v25529_v32  ;;  %v25531_v35 = vld [vmem:[#allocation311_spill] sm:$0xff] }
 0x8fc   : > { %v25534_v27 = vld [vmem:[#allocation313_spill] sm:$0xff]  ;;  %v25535_v48 = vld [vmem:[#allocation312_spill] sm:$0xff] }
 0x8fd   : > { %18114 = vmatpush3.bf16.xpose.msk.msra.mxu1 %vm19542_vm4, %v25499_v16  ;;  %v10613_v16 = vld [vmem:[#allocation2 + $0x220] sm:$0xff]  ;;  %v10646_v32 = vld [vmem:[#allocation2 + $0x4b0] sm:$0xff] }
 0x8fe   : > { %18117 = vmatprep.subr.msk.bf16.mxu1 %vm19542_vm4, %v18115_v7  ;;  %v18181_v7 = vpack.c.bf16 %v10630_v13, %v10629_v25  ;;  %v18184_v19 = vpack.c.bf16 %v10614_v38, %v10613_v16  ;;  %v25514_v13 = vld [vmem:[#allocation303_spill] sm:$0xff]  ;;  %v25521_v16 = vld [vmem:[#allocation20_spill] sm:$0xff]  ;;  %v25523_v38 = vld [vmem:[#allocation306_spill] sm:$0xff] }
 0x901   : > { %18168 = vmatpush3.bf16.xpose.msk.msra.mxu0 %vm19542_vm4, %v18166_v5  ;;  %v18187_v5 = vpack.c.bf16 %v10632_v39, %v10631_v1  ;;  %v25524_v39 = vld [vmem:[#allocation307_spill] sm:$0xff] }
 0x902   : > { %18171 = vmatprep.subr.msk.bf16.mxu0 %vm19542_vm4, %v18169_v21  ;;  %v10637_v1 = vld [vmem:[#allocation2 + $0x400] sm:$0xff] }
 0x905   : > { %18120 = vmatpush3.bf16.xpose.msk.msra.mxu1 %vm19542_vm4, %v25502_v28  ;;  %v18145_v28 = vpack.c.bf16 %v24001_v60, %v23591_v24  ;;  %v10618_v24 = vld [vmem:[#allocation2 + $0x270] sm:$0xff] }
 0x906   : > { %18123 = vmatprep.subr.msk.bf16.mxu1 %vm19542_vm4, %v18121_v3  ;;  %v25507_v3 = vld [vmem:[#allocation298_spill] sm:$0xff] }
 0x907   : > { %v25508_v21 = vpack.c.bf16 %v25506_v9, %v25507_v3  ;;  %v25526_v9 = vld [vmem:[#allocation308_spill] sm:$0xff]  ;;  %v25527_v3 = vld [vmem:[#allocation309_spill] sm:$0xff] }
 0x909   : > { %18174 = vmatpush3.bf16.xpose.msk.msra.mxu0 %vm19542_vm4, %v18172_v58 }
 0x90a   : > { %18177 = vmatprep.subr.msk.bf16.mxu0 %vm19542_vm4, %v18175_v0  ;;  %v18196_v0 = vpack.c.bf16 %v10618_v24, %v23612_v15  ;;  %v10635_v15 = vld [vmem:[#allocation2 + $0x3e0] sm:$0xff] }
 0x90b   : > { %v18202_v25 = vpack.c.bf16 %v10636_v30, %v10635_v15 }
 0x90d   : > { %18126 = vmatpush3.bf16.xpose.msk.msra.mxu1 %vm19542_vm4, %v18124_v42  ;;  %v25510_v42 = vld [vmem:[#allocation300_spill] sm:$0xff] }
 0x90e   : > { %18129 = vmatprep.subr.msk.bf16.mxu1 %vm19542_vm4, %v18127_v59  ;;  %v25509_v59 = vld [vmem:[#allocation301_spill] sm:$0xff] }
 0x90f   : > { %v25511_v58 = vpack.c.bf16 %v25509_v59, %v25510_v42  ;;  %v10658_v59 = vld [vmem:[#allocation2 + $0x590] sm:$0xff] }
 0x910   : > { %v11033_v42 = vld [vmem:[#allocation2 + $0x311] sm:$0xff] }
 0x911   : > { %18180 = vmatpush3.bf16.xpose.msk.msra.mxu0 %vm19542_vm4, %v18178_v10 }
 0x912   : > { %18183 = vmatprep.subr.msk.bf16.mxu0 %vm19542_vm4, %v18181_v7  ;;  %v25517_v7 = vld [vmem:[#allocation305_spill] sm:$0xff] }
 0x913   : > { %v25519_v23 = vpack.c.bf16 %v25517_v7, %v25518_v33  ;;  %v25538_v7 = vld [vmem:[#allocation314_spill] sm:$0xff] }
 0x915   : > { %18132 = vmatpush3.bf16.xpose.msk.msra.mxu1 %vm19542_vm4, %v25505_v47  ;;  %v25520_v47 = vld [vmem:[#allocation24_spill] sm:$0xff] }
 0x916   : > { %18135 = vmatprep.subr.msk.bf16.mxu1 %vm19542_vm4, %v18133_v41  ;;  %v25515_v41 = vld [vmem:[#allocation302_spill] sm:$0xff] }
 0x917   : > { %v25516_v10 = vpack.c.bf16 %v25514_v13, %v25515_v41  ;;  %v10659_v13 = vld [vmem:[#allocation2 + $0x5c0] sm:$0xff]  ;;  %v10660_v41 = vld [vmem:[#allocation2 + $0x5d0] sm:$0xff] }
 0x919   : > { %18186 = vmatpush3.bf16.xpose.msk.msra.mxu0 %vm19542_vm4, %v18184_v19  ;;  %v10638_v19 = vld [vmem:[#allocation2 + $0x410] sm:$0xff] }
 0x91a   : > { %18189 = vmatprep.subr.msk.bf16.mxu0 %vm19542_vm4, %v18187_v5  ;;  %v18208_v5 = vpack.c.bf16 %v10638_v19, %v10637_v1  ;;  %v25543_v19 = vld [vmem:[#allocation319_spill] sm:$0xff]  ;;  %v25544_v1 = vld [vmem:[#allocation317_spill] sm:$0xff] }
 0x91d   : > { %18138 = vmatpush3.bf16.xpose.msk.msra.mxu1 %vm19542_vm4, %v25508_v21  ;;  %v25528_v21 = vpack.c.bf16 %v25526_v9, %v25527_v3  ;;  %v10663_v9 = vld [vmem:[#allocation2 + $0x600] sm:$0xff]  ;;  %v10664_v3 = vld [vmem:[#allocation2 + $0x610] sm:$0xff] }
 0x91e   : > { %18141 = vmatprep.subr.msk.bf16.mxu1 %vm19542_vm4, %v18139_v61  ;;  %v25525_v61 = vpack.c.bf16 %v25523_v38, %v25524_v39  ;;  %v25540_v38 = vld [vmem:[#allocation318_spill] sm:$0xff]  ;;  %v25541_v39 = vld [vmem:[#allocation315_spill] sm:$0xff] }
 0x921   : > { %18192 = vmatpush3.bf16.xpose.msk.msra.mxu0 %vm19542_vm4, %v18190_v63 }
 0x922   : > { %18195 = vmatprep.subr.msk.bf16.mxu0 %vm19542_vm4, %v18193_v53  ;;  %v10640_v53 = vld [vmem:[#allocation2 + $0x430] sm:$0xff] }
 0x925   : > { %18144 = vmatpush3.bf16.xpose.msk.msra.mxu1 %vm19542_vm4, %v25511_v58  ;;  %v10639_v58 = vld [vmem:[#allocation2 + $0x420] sm:$0xff] }
 0x926   : > { %18147 = vmatprep.subr.msk.bf16.mxu1 %vm19542_vm4, %v18145_v28  ;;  %v25532_v28 = vld [vmem:[#allocation310_spill] sm:$0xff]  ;;  %v18214_v24 = vpack.c.bf16 %v10640_v53, %v10639_v58 }
 0x927   : > { %v25533_v63 = vpack.c.bf16 %v25531_v35, %v25532_v28  ;;  %v25546_v28 = vld [vmem:[#allocation321_spill] sm:$0xff] }
 0x929   : > { %18198 = vmatpush3.bf16.xpose.msk.msra.mxu0 %vm19542_vm4, %v18196_v0  ;;  %v18265_v0 = vpack.c.bf16 %v11033_v42, %v23665_v55  ;;  %v18223_v55 = vpack.c.bf16 %v10660_v41, %v10659_v13  ;;  %v25550_v42 = vld [vmem:[#allocation322_spill] sm:$0xff]  ;;  %v25552_v41 = vld [vmem:[#allocation325_spill] sm:$0xff] }
 0x92a   : > { %18249 = vmatprep.subr.msk.bf16.mxu0 %vm19542_vm4, %v25516_v10  ;;  %v11017_v10 = vld [vmem:[#allocation2 + $0x1d1] sm:$0xff] }
 0x92b   : > { %v18268_v15 = vpack.c.bf16 %v11017_v10, %v23682_v18 }
 0x92d   : > { %18150 = vmatpush3.bf16.xpose.msk.msra.mxu1 %vm19542_vm4, %v18148_v62  ;;  %v18217_v62 = vpack.c.bf16 %v10658_v59, %v23663_v6  ;;  %v10642_v6 = vld [vmem:[#allocation2 + $0x450] sm:$0xff]  ;;  %v25549_v59 = vld [vmem:[#allocation323_spill] sm:$0xff] }
 0x92e   : > { %18201 = vmatprep.subr.msk.bf16.mxu1 %vm19542_vm4, %v25513_v43  ;;  %v25536_v43 = vpack.c.bf16 %v25534_v27, %v25535_v48  ;;  %v18220_v30 = vpack.c.bf16 %v10642_v6, %v23680_v29  ;;  %v10643_v29 = vld [vmem:[#allocation2 + $0x480] sm:$0xff]  ;;  %v25551_v58 = vpack.c.bf16 %v25549_v59, %v25550_v42  ;;  %v11041_v27 = vld [vmem:[#allocation2 + $0x3b1] sm:$0xff]  ;;  %v25553_v6 = vld [vmem:[#allocation324_spill] sm:$0xff] }
 0x92f   : > { %v18289_v13 = vpack.c.bf16 %v11041_v27, %v23727_v46  ;;  %v25554_v10 = vpack.c.bf16 %v25552_v41, %v25553_v6  ;;  %v11065_v59 = vld [vmem:[#allocation2 + $0x591] sm:$0xff]  ;;  %v25567_v27 = vld [vmem:[#allocation331_spill] sm:$0xff] }
 0x930   : > { %15676 = vmatmul.mubr.msk.f32.vlgmr.msra.gmra.mrb[2].mxu0 %vm442_vm2, %v23917_v2  ;;  %v11440_v42 = vld [vmem:[#allocation2 + $0x312] sm:$0xff] }
 0x931   : > { %18252 = vmatpush3.bf16.xpose.msk.msra.mxu0 %vm19542_vm4, %v25519_v23  ;;  %15743 = vmatprep.mubr.msk.f32.mxu0 %vm442_vm2, %v24043_v37  ;;  %v10661_v23 = vld [vmem:[#allocation2 + $0x5e0] sm:$0xff] }
 0x932   : > { %18255 = vmatprep.subr.msk.bf16.mxu0 %vm19542_vm4, %v25525_v61  ;;  %v25542_v61 = vpack.c.bf16 %v25540_v38, %v25541_v39  ;;  %v24170_v38 = vld [vmem:[%s24349_s3 + $0xd0] sm:$0xff]  ;;  %v25558_v39 = vld [vmem:[#allocation327_spill] sm:$0xff] }
 0x934   : > { %15642 = vmatmul.mubr.msk.f32.vlgmr.msra.gmra.mrb[2].mxu1 %vm442_vm2, %v23770_v56  ;;  %v25522_v56 = vpack.c.bf16 %v25520_v47, %v25521_v16  ;;  %v10662_v47 = vld [vmem:[#allocation2 + $0x5f0] sm:$0xff] }
 0x935   : > { %18204 = vmatpush3.bf16.xpose.msk.msra.mxu1 %vm19542_vm4, %v18202_v25  ;;  %15709 = vmatprep.mubr.msk.f32.mxu1 %vm442_vm2, %v23917_v2  ;;  %v25537_v25 = vld [vmem:[#allocation316_spill] sm:$0xff]  ;;  %v10644_v16 = vld [vmem:[#allocation2 + $0x490] sm:$0xff]  ;;  %v18229_v18 = vpack.c.bf16 %v10662_v47, %v10661_v23 }
 0x936   : > { %18207 = vmatprep.subr.msk.bf16.mxu1 %vm19542_vm4, %v25522_v56  ;;  %v25539_v33 = vpack.c.bf16 %v25537_v25, %v25538_v7  ;;  %v18226_v56 = vpack.c.bf16 %v10644_v16, %v10643_v29  ;;  %v25556_v23 = vld [vmem:[#allocation164_spill] sm:$0xff]  ;;  %v11418_v29 = vld [vmem:[#allocation2 + $0x172] sm:$0xff] }
 0x937   : > { %v11436_v16 = vld [vmem:[#allocation2 + $0x2d2] sm:$0xff] }
 0x939   : > { %18258 = vmatpush3.bf16.xpose.msk.msra.mxu0 %vm19542_vm4, %v25528_v21  ;;  %v10645_v21 = vld [vmem:[#allocation2 + $0x4a0] sm:$0xff] }
 0x93a   : > { %18261 = vmatprep.subr.msk.bf16.mxu0 %vm19542_vm4, %v25533_v63  ;;  %v18232_v35 = vpack.c.bf16 %v10646_v32, %v10645_v21  ;;  %v25547_v63 = vld [vmem:[#allocation320_spill] sm:$0xff] }
 0x93b   : > { %v25548_v53 = vpack.c.bf16 %v25546_v28, %v25547_v63  ;;  %v11419_v21 = vld [vmem:[#allocation2 + $0x182] sm:$0xff]  ;;  %v25566_v63 = vpack.c.bf16 %v22242_v31, %v22247_v12  ;;  %v11067_v31 = vld [vmem:[#allocation2 + $0x5d1] sm:$0xff] }
 0x93c   : > { %v11066_v12 = vld [vmem:[#allocation2 + $0x5c1] sm:$0xff] }
 0x93d   : > { %18210 = vmatpush3.bf16.xpose.msk.msra.mxu1 %vm19542_vm4, %v18208_v5  ;;  %v25545_v5 = vpack.c.bf16 %v25543_v19, %v25544_v1  ;;  %v18319_v41 = vpack.c.bf16 %v11067_v31, %v11066_v12 }
 0x93e   : > { %18213 = vmatprep.subr.msk.bf16.mxu1 %vm19542_vm4, %v25530_v14  ;;  %v18235_v14 = vpack.c.bf16 %v10664_v3, %v10663_v9  ;;  %v11437_v9 = vld [vmem:[#allocation2 + $0x2e2] sm:$0xff]  ;;  %v11438_v3 = vld [vmem:[#allocation2 + $0x2f2] sm:$0xff] }
 0x941   : > { %18264 = vmatpush3.bf16.xpose.msk.msra.mxu0 %vm19542_vm4, %v25536_v43 }
 0x942   : > { %18267 = vmatprep.subr.msk.bf16.mxu0 %vm19542_vm4, %v18265_v0  ;;  %v10648_v0 = vld [vmem:[#allocation2 + $0x4d0] sm:$0xff] }
 0x945   : > { %18216 = vmatpush3.bf16.xpose.msk.msra.mxu1 %vm19542_vm4, %v18214_v24  ;;  %v10666_v24 = vld [vmem:[#allocation2 + $0x630] sm:$0xff] }
 0x946   : > { %18219 = vmatprep.subr.msk.bf16.mxu1 %vm19542_vm4, %v18217_v62  ;;  %v10647_v62 = vld [vmem:[#allocation2 + $0x4c0] sm:$0xff]  ;;  %v18241_v48 = vpack.c.bf16 %v10666_v24, %v23725_v49  ;;  %v11025_v49 = vld [vmem:[#allocation2 + $0x271] sm:$0xff] }
 0x947   : > { %v18238_v43 = vpack.c.bf16 %v10648_v0, %v10647_v62  ;;  %v18292_v25 = vpack.c.bf16 %v11025_v49, %v23745_v26  ;;  %v11417_v26 = vld [vmem:[#allocation2 + $0x162] sm:$0xff]  ;;  %v18313_v62 = vpack.c.bf16 %v11065_v59, %v23804_v20  ;;  %v18361_v0 = vpack.c.bf16 %v11440_v42, %v23806_v51  ;;  %v11049_v20 = vld [vmem:[#allocation2 + $0x451] sm:$0xff] }
 0x948   : > { %v11442_v51 = vld [vmem:[#allocation2 + $0x352] sm:$0xff]  ;;  %v18316_v6 = vpack.c.bf16 %v11049_v20, %v23822_v34  ;;  %v25585_v20 = vmov 0.0  }
 0x949   : > { %18270 = vmatpush3.bf16.xpose.msk.msra.mxu0 %vm19542_vm4, %v18268_v15  ;;  %v11434_v15 = vld [vmem:[#allocation2 + $0x2b2] sm:$0xff] }
 0x94a   : > { %18273 = vmatprep.subr.msk.bf16.mxu0 %vm19542_vm4, %v25539_v33  ;;  %v25555_v33 = vld [vmem:[#allocation21_spill] sm:$0xff] }
 0x94b   : > { %v25557_v47 = vpack.c.bf16 %v25555_v33, %v25556_v23  ;;  %v11426_v34 = vld [vmem:[#allocation2 + $0x212] sm:$0xff]  ;;  %v11443_v33 = vld [vmem:[#allocation2 + $0x362] sm:$0xff] }
 0x94c   : > { %v25577_v59 = vld [vmem:[#allocation337_spill] sm:$0xff] }
 0x94d   : > { %18222 = vmatpush3.bf16.xpose.msk.msra.mxu1 %vm19542_vm4, %v18220_v30  ;;  %v11433_v30 = vld [vmem:[#allocation2 + $0x2a2] sm:$0xff] }
 0x94e   : > { %18225 = vmatprep.subr.msk.bf16.mxu1 %vm19542_vm4, %v18223_v55  ;;  %v10650_v55 = vld [vmem:[#allocation2 + $0x4f0] sm:$0xff]  ;;  %v18343_v7 = vpack.c.bf16 %v11434_v15, %v11433_v30  ;;  %v11068_v30 = vld [vmem:[#allocation2 + $0x5e1] sm:$0xff] }
 0x94f   : > { %v18244_v46 = vpack.c.bf16 %v10650_v55, %v23743_v4  ;;  %v11435_v4 = vld [vmem:[#allocation2 + $0x2c2] sm:$0xff]  ;;  %v11069_v15 = vld [vmem:[#allocation2 + $0x5f1] sm:$0xff] }
 0x950   : > { %v11441_v55 = vld [vmem:[#allocation2 + $0x342] sm:$0xff] }
 0x951   : > { %18276 = vmatpush3.bf16.xpose.msk.msra.mxu0 %vm19542_vm4, %v25542_v61  ;;  %v25559_v61 = vld [vmem:[#allocation326_spill] sm:$0xff]  ;;  %v18367_v49 = vpack.c.bf16 %v11442_v51, %v11441_v55  ;;  %v11451_v51 = vld [vmem:[#allocation2 + $0x402] sm:$0xff] }
 0x952   : > { %18279 = vmatprep.subr.msk.bf16.mxu0 %vm19542_vm4, %v25545_v5  ;;  %v25560_v19 = vpack.c.bf16 %v25558_v39, %v25559_v61  ;;  %v11420_v5 = vld [vmem:[#allocation2 + $0x192] sm:$0xff]  ;;  %v11453_v55 = vld [vmem:[#allocation2 + $0x422] sm:$0xff] }
 0x953   : > { %v18352_v32 = vpack.c.bf16 %v11420_v5, %v11419_v21  ;;  %v11446_v39 = vld [vmem:[#allocation2 + $0x392] sm:$0xff]  ;;  %v25573_v5 = vld [vmem:[#allocation335_spill] sm:$0xff] }
 0x954   : > { %v11073_v21 = vld [vmem:[#allocation2 + $0x631] sm:$0xff] }
 0x955   : > { %18228 = vmatpush3.bf16.xpose.msk.msra.mxu1 %vm19542_vm4, %v18226_v56  ;;  %v18349_v56 = vpack.c.bf16 %v11436_v16, %v11435_v4  ;;  %v11070_v16 = vld [vmem:[#allocation2 + $0x601] sm:$0xff] }
 0x956   : > { %18231 = vmatprep.subr.msk.bf16.mxu1 %vm19542_vm4, %v18229_v18  ;;  %v18346_v18 = vpack.c.bf16 %v11418_v29, %v11417_v26  ;;  %v25571_v29 = vld [vmem:[#allocation332_spill] sm:$0xff]  ;;  %v11071_v26 = vld [vmem:[#allocation2 + $0x611] sm:$0xff] }
 0x957   : > { %v18331_v61 = vpack.c.bf16 %v11071_v26, %v11070_v16 }
 0x959   : > { %18282 = vmatpush3.bf16.xpose.msk.msra.mxu0 %vm19542_vm4, %v25548_v53  ;;  %v11422_v53 = vld [vmem:[#allocation2 + $0x1b2] sm:$0xff] }
 0x95a   : > { %18285 = vmatprep.subr.msk.bf16.mxu0 %vm19542_vm4, %v25551_v58  ;;  %v11421_v58 = vld [vmem:[#allocation2 + $0x1a2] sm:$0xff] }
 0x95b   : > { %v18358_v24 = vpack.c.bf16 %v11422_v53, %v11421_v58  ;;  %v25576_v53 = vld [vmem:[#allocation336_spill] sm:$0xff]  ;;  %v11057_v58 = vld [vmem:[#allocation2 + $0x4f1] sm:$0xff] }
 0x95c   : > { %v25578_v42 = vpack.c.bf16 %v25576_v53, %v25577_v59 }
 0x95d   : > { %18234 = vmatpush3.bf16.xpose.msk.msra.mxu1 %vm19542_vm4, %v18232_v35  ;;  %v25563_v35 = vld [vmem:[#allocation329_spill] sm:$0xff] }
 0x95e   : > { %18237 = vmatprep.subr.msk.bf16.mxu1 %vm19542_vm4, %v18235_v14  ;;  %v18355_v14 = vpack.c.bf16 %v11438_v3, %v11437_v9  ;;  %v25574_v9 = vld [vmem:[#allocation334_spill] sm:$0xff] }
 0x95f   : > { %v25575_v3 = vpack.c.bf16 %v25573_v5, %v25574_v9 }
 0x961   : > { %18288 = vmatpush3.bf16.xpose.msk.msra.mxu0 %vm19542_vm4, %v25554_v10 }
 0x962   : > { %18291 = vmatprep.subr.msk.bf16.mxu0 %vm19542_vm4, %v18289_v13  ;;  %v11424_v13 = vld [vmem:[#allocation2 + $0x1d2] sm:$0xff] }
 0x963   : > { %v18364_v10 = vpack.c.bf16 %v11424_v13, %v23824_v57  ;;  %v18325_v57 = vpack.c.bf16 %v11069_v15, %v11068_v30  ;;  %v11452_v13 = vld [vmem:[#allocation2 + $0x412] sm:$0xff]  ;;  %v11473_v15 = vld [vmem:[#allocation2 + $0x5c2] sm:$0xff] }
 0x965   : > { %18240 = vmatpush3.bf16.xpose.msk.msra.mxu1 %vm19542_vm4, %v18238_v43 }
 0x966   : > { %18243 = vmatprep.subr.msk.bf16.mxu1 %vm19542_vm4, %v18241_v48  ;;  %v25568_v48 = vld [vmem:[#allocation330_spill] sm:$0xff] }
 0x967   : > { %v25569_v43 = vpack.c.bf16 %v25567_v27, %v25568_v48  ;;  %v11450_v48 = vld [vmem:[#allocation2 + $0x3f2] sm:$0xff] }
 0x969   : > { %18294 = vmatpush3.bf16.xpose.msk.msra.mxu0 %vm19542_vm4, %v18292_v25  ;;  %v11444_v25 = vld [vmem:[#allocation2 + $0x372] sm:$0xff] }
 0x96a   : > { %18345 = vmatprep.subr.msk.bf16.mxu0 %vm19542_vm4, %v18343_v7  ;;  %v18373_v23 = vpack.c.bf16 %v11444_v25, %v11443_v33 }
 0x96d   : > { %18246 = vmatpush3.bf16.xpose.msk.msra.mxu1 %vm19542_vm4, %v18244_v46  ;;  %v11425_v46 = vld [vmem:[#allocation2 + $0x202] sm:$0xff] }
 0x96e   : > { %18297 = vmatprep.subr.msk.bf16.mxu1 %vm19542_vm4, %v25557_v47  ;;  %v18370_v7 = vpack.c.bf16 %v11426_v34, %v11425_v46  ;;  %v25570_v47 = vld [vmem:[#allocation333_spill] sm:$0xff] }
 0x96f   : > { %v25572_v4 = vpack.c.bf16 %v25570_v47, %v25571_v29  ;;  %v11474_v46 = vld [vmem:[#allocation2 + $0x5d2] sm:$0xff]  ;;  %v11477_v47 = vld [vmem:[#allocation2 + $0x602] sm:$0xff] }
 0x970   : > { %15744 = vmatmul.mubr.msk.f32.vlgmr.msra.gmra.mrb[2].mxu0 %vm442_vm2, %v24043_v37  ;;  %v11456_v34 = vld [vmem:[#allocation2 + $0x452] sm:$0xff]  ;;  %v18415_v25 = vpack.c.bf16 %v11474_v46, %v11473_v15  ;;  %v11459_v29 = vld [vmem:[#allocation2 + $0x4a2] sm:$0xff] }
 0x971   : > { %18348 = vmatpush3.bf16.xpose.msk.msra.mxu0 %vm19542_vm4, %v18346_v18  ;;  %15811 = vmatprep.mubr.msk.f32.mxu0 %vm442_vm2, %v24170_v38  ;;  %v11427_v18 = vld [vmem:[#allocation2 + $0x222] sm:$0xff] }
 0x972   : > { %18351 = vmatprep.subr.msk.bf16.mxu0 %vm19542_vm4, %v18349_v56  ;;  %v11428_v56 = vld [vmem:[#allocation2 + $0x232] sm:$0xff] }
 0x974   : > { %15710 = vmatmul.mubr.msk.f32.vlgmr.msra.gmra.mrb[2].mxu1 %vm442_vm2, %v23917_v2  ;;  %v25561_v2 = vld [vmem:[#allocation54_spill] sm:$0xff] }
 0x975   : > { %18300 = vmatpush3.bf16.xpose.msk.msra.mxu1 %vm19542_vm4, %v25560_v19  ;;  %v25562_v1 = vpack.c.bf16 %v22218_v40, %v25561_v2  ;;  %15777 = vmatprep.mubr.msk.f32.mxu1 %vm442_vm2, %v24043_v37  ;;  %v25564_v40 = vld [vmem:[#allocation328_spill] sm:$0xff]  ;;  %v18376_v19 = vpack.c.bf16 %v11428_v56, %v11427_v18  ;;  %v11480_v18 = vld [vmem:[#allocation2 + $0x632] sm:$0xff] }
 0x976   : > { %v25565_v28 = vpack.c.bf16 %v25563_v35, %v25564_v40  ;;  %v11445_v2 = vld [vmem:[#allocation2 + $0x382] sm:$0xff]  ;;  %v11448_v35 = vld [vmem:[#allocation2 + $0x3b2] sm:$0xff]  ;;  %v18337_v40 = vpack.c.bf16 %v11073_v21, %v23875_v50 }
 0x977   : > { %18303 = vmatprep.subr.msk.bf16.mxu1 %vm19542_vm4, %v25562_v1  ;;  %v18379_v1 = vpack.c.bf16 %v11446_v39, %v11445_v2  ;;  %v11432_v50 = vld [vmem:[#allocation2 + $0x272] sm:$0xff]  ;;  %v11461_v56 = vld [vmem:[#allocation2 + $0x4c2] sm:$0xff] }
 0x978   : > { %v11462_v39 = vld [vmem:[#allocation2 + $0x4d2] sm:$0xff] }
 0x979   : > { %18354 = vmatpush3.bf16.xpose.msk.msra.mxu0 %vm19542_vm4, %v18352_v32  ;;  %v11429_v32 = vld [vmem:[#allocation2 + $0x242] sm:$0xff]  ;;  %v11464_v2 = vld [vmem:[#allocation2 + $0x4f2] sm:$0xff] }
 0x97a   : > { %18357 = vmatprep.subr.msk.bf16.mxu0 %vm19542_vm4, %v18355_v14  ;;  %v11430_v14 = vld [vmem:[#allocation2 + $0x252] sm:$0xff] }
 0x97d   : > { %18306 = vmatpush3.bf16.xpose.msk.msra.mxu1 %vm19542_vm4, %v25565_v28  ;;  %v18382_v28 = vpack.c.bf16 %v11430_v14, %v11429_v32 }
 0x97e   : > { %18309 = vmatprep.subr.msk.bf16.mxu1 %vm19542_vm4, %v25566_v63  ;;  %v18385_v63 = vpack.c.bf16 %v11448_v35, %v23877_v8  ;;  %v18388_v8 = vpack.c.bf16 %v11432_v50, %v23896_v36  ;;  %v25583_v36 = vld [vmem:[#allocation51_spill] sm:$0xff] }
 0x981   : > { %18360 = vmatpush3.bf16.xpose.msk.msra.mxu0 %vm19542_vm4, %v18358_v24  ;;  %v18340_v24 = vpack.c.bf16 %v11057_v58, %v23894_v17  ;;  %v25582_v17 = vld [vmem:[#allocation41_spill] sm:$0xff] }
 0x982   : > { %18363 = vmatprep.subr.msk.bf16.mxu0 %vm19542_vm4, %v18361_v0  ;;  %v25580_v0 = vld [vmem:[#allocation44_spill] sm:$0xff]  ;;  %v25584_v31 = vpack.c.bf16 %v25582_v17, %v25583_v36 }
 0x985   : > { %18312 = vmatpush3.bf16.xpose.msk.msra.mxu1 %vm19542_vm4, %v25569_v43  ;;  %v11449_v43 = vld [vmem:[#allocation2 + $0x3e2] sm:$0xff] }
 0x986   : > { %18315 = vmatprep.subr.msk.bf16.mxu1 %vm19542_vm4, %v18313_v62  ;;  %v25579_v62 = vld [vmem:[#allocation34_spill] sm:$0xff]  ;;  %v18394_v12 = vpack.c.bf16 %v11450_v48, %v11449_v43 }
 0x987   : > { %v25581_v27 = vpack.c.bf16 %v25579_v62, %v25580_v0 }
 0x989   : > { %18366 = vmatpush3.bf16.xpose.msk.msra.mxu0 %vm19542_vm4, %v18364_v10  ;;  %v11472_v10 = vld [vmem:[#allocation2 + $0x592] sm:$0xff] }
 0x98a   : > { %18369 = vmatprep.subr.msk.bf16.mxu0 %vm19542_vm4, %v18367_v49  ;;  %v18409_v30 = vpack.c.bf16 %v11472_v10, %v23945_v44  ;;  %v11476_v44 = vld [vmem:[#allocation2 + $0x5f2] sm:$0xff] }
 0x98d   : > { %18318 = vmatpush3.bf16.xpose.msk.msra.mxu1 %vm19542_vm4, %v18316_v6  ;;  %v11454_v6 = vld [vmem:[#allocation2 + $0x432] sm:$0xff] }
 0x98e   : > { %18321 = vmatprep.subr.msk.bf16.mxu1 %vm19542_vm4, %v18319_v41  ;;  %v18400_v41 = vpack.c.bf16 %v11452_v13, %v11451_v51  ;;  %v18406_v49 = vpack.c.bf16 %v11454_v6, %v11453_v55  ;;  %v11858_v55 = vld [vmem:[%s24350_s4] sm:$0xff] }
 0x991   : > { %18372 = vmatpush3.bf16.xpose.msk.msra.mxu0 %vm19542_vm4, %v18370_v7  ;;  %v11458_v7 = vld [vmem:[#allocation2 + $0x492] sm:$0xff] }
 0x992   : > { %18375 = vmatprep.subr.msk.bf16.mxu0 %vm19542_vm4, %v18373_v23 }
 0x995   : > { %18324 = vmatpush3.bf16.xpose.msk.msra.mxu1 %vm19542_vm4, %v25572_v4  ;;  %v11460_v4 = vld [vmem:[#allocation2 + $0x4b2] sm:$0xff] }
 0x996   : > { %18327 = vmatprep.subr.msk.bf16.mxu1 %vm19542_vm4, %v18325_v57  ;;  %v11457_v57 = vld [vmem:[#allocation2 + $0x482] sm:$0xff]  ;;  %v18424_v26 = vpack.c.bf16 %v11460_v4, %v11459_v29 }
 0x997   : > { %v18418_v23 = vpack.c.bf16 %v11458_v7, %v11457_v57 }
 0x999   : > { %18378 = vmatpush3.bf16.xpose.msk.msra.mxu0 %vm19542_vm4, %v18376_v19  ;;  %v18430_v19 = vpack.c.bf16 %v11462_v39, %v11461_v56 }
 0x99a   : > { %18381 = vmatprep.subr.msk.bf16.mxu0 %vm19542_vm4, %v18379_v1  ;;  %v18436_v1 = vpack.c.bf16 %v11464_v2, %v24017_v11 }
 0x99d   : > { %18330 = vmatpush3.bf16.xpose.msk.msra.mxu1 %vm19542_vm4, %v25575_v3 }
 0x99e   : > { %18333 = vmatprep.subr.msk.bf16.mxu1 %vm19542_vm4, %v18331_v61  ;;  %v18433_v61 = vpack.c.bf16 %v11480_v18, %v24001_v60 }
 0x9a1   : > { %18384 = vmatpush3.bf16.xpose.msk.msra.mxu0 %vm19542_vm4, %v18382_v28 }
 0x9a2   : > { %18387 = vmatprep.subr.msk.bf16.mxu0 %vm19542_vm4, %v18385_v63 }
 0x9a5   : > { %18336 = vmatpush3.bf16.xpose.msk.msra.mxu1 %vm19542_vm4, %v25578_v42 }
 0x9a6   : > { %18339 = vmatprep.subr.msk.bf16.mxu1 %vm19542_vm4, %v18337_v40 }
 0x9a9   : > { %18390 = vmatpush3.bf16.xpose.msk.msra.mxu0 %vm19542_vm4, %v18388_v8 }
 0x9ad   : > { %18342 = vmatpush3.bf16.xpose.msk.msra.mxu1 %vm19542_vm4, %v18340_v24 }
 0x9ae   : > { %18393 = vmatprep.subr.msk.bf16.mxu1 %vm19542_vm4, %v25581_v27 }
 0x9b0   : > { %15812 = vmatmul.mubr.msk.f32.vlgmr.msra.gmra.mrb[2].mxu0 %vm442_vm2, %v24170_v38 }
 0x9b1   : > { %11930 = vmatprep.mubr.f32.mxu0 %v25585_v20 }
 0x9b4   : > { %15778 = vmatmul.mubr.msk.f32.vlgmr.msra.gmra.mrb[2].mxu1 %vm442_vm2, %v24043_v37  ;;  %v25586_v37 = vpack.c.bf16 %v22244_v45, %v22249_v22  ;;  %v18412_v22 = vpack.c.bf16 %v11456_v34, %v23960_v52  ;;  %v11475_v45 = vld [vmem:[#allocation2 + $0x5e2] sm:$0xff]  ;;  %v11478_v52 = vld [vmem:[#allocation2 + $0x612] sm:$0xff] }
 0x9b5   : > { %18396 = vmatpush3.bf16.xpose.msk.msra.mxu1 %vm19542_vm4, %v18394_v12  ;;  %15845 = vmatprep.mubr.msk.f32.mxu1 %vm442_vm2, %v24170_v38  ;;  %v18421_v33 = vpack.c.bf16 %v11476_v44, %v11475_v45  ;;  %v18427_v16 = vpack.c.bf16 %v11478_v52, %v11477_v47 }
 0x9b6   : > { %18399 = vmatprep.subr.msk.bf16.mxu1 %vm19542_vm4, %v25584_v31 }
 0x9bd   : > { %18402 = vmatpush3.bf16.xpose.msk.msra.mxu1 %vm19542_vm4, %v18400_v41 }
 0x9be   : > { %18405 = vmatprep.subr.msk.bf16.mxu1 %vm19542_vm4, %v25586_v37 }
 0x9c5   : > { %18408 = vmatpush3.bf16.xpose.msk.msra.mxu1 %vm19542_vm4, %v18406_v49  ;;  %v11859_v49 = vld [vmem:[%s24350_s4 + $0x8] sm:$0xff] }
 0x9c6   : > { %18411 = vmatprep.subr.msk.bf16.mxu1 %vm19542_vm4, %v18409_v30 }
 0x9cd   : > { %18414 = vmatpush3.bf16.xpose.msk.msra.mxu1 %vm19542_vm4, %v18412_v22 }
 0x9ce   : > { %18417 = vmatprep.subr.msk.bf16.mxu1 %vm19542_vm4, %v18415_v25 }
 0x9d5   : > { %18420 = vmatpush3.bf16.xpose.msk.msra.mxu1 %vm19542_vm4, %v18418_v23 }
 0x9d6   : > { %18423 = vmatprep.subr.msk.bf16.mxu1 %vm19542_vm4, %v18421_v33 }
 0x9dd   : > { %18426 = vmatpush3.bf16.xpose.msk.msra.mxu1 %vm19542_vm4, %v18424_v26 }
 0x9de   : > { %18429 = vmatprep.subr.msk.bf16.mxu1 %vm19542_vm4, %v18427_v16 }
 0x9e5   : > { %18432 = vmatpush3.bf16.xpose.msk.msra.mxu1 %vm19542_vm4, %v18430_v19 }
 0x9e6   : > { %18435 = vmatprep.subr.msk.bf16.mxu1 %vm19542_vm4, %v18433_v61 }
 0x9ed   : > { %18438 = vmatpush3.bf16.xpose.msk.msra.mxu1 %vm19542_vm4, %v18436_v1 }
 0x9f4   : > { %15846 = vmatmul.mubr.msk.f32.vlgmr.msra.gmra.mrb[2].mxu1 %vm442_vm2, %v24170_v38 }
 0x9f5   : > { %12007 = vmatprep.mubr.f32.mxu1 %v25585_v20 }
 0xa83   : > { %v11744_v5 = vpop.f32.mrb[2].mxu0 }
 0xa84   : > { %v11746_v60 = vpop.f32.mrb[3].mxu0 }
 0xa85   : > { %v11824_v9 = vadd.f32 %v11746_v60, %v11744_v5 }
 0xac7   : > { %v11815_v3 = vpop.f32.mrb[2].mxu1 }
 0xac8   : > { %v11825_v21 = vadd.f32 %v11824_v9, %v11815_v3  ;;  %v11817_v32 = vpop.f32.mrb[3].mxu1 }
 0xaca   : > { %v11826_v14 = vadd.f32 %v11825_v21, %v11817_v32 }
 0xacc   : > { %11827 = vadd.xlane.f32.xlu1 %v11826_v14 }
 0xb59   : > { %v11828_v35 = vpop.xlane.xlu1 %11827 }
 0xb5a   : > { %v11829_v40 = vmul.f32 0.001953125, %v11828_v35 }
 0xb5c   : > { %v11830_v28 = vsub.f32 %v11744_v5, %v11829_v40  ;;  %v11831_v11 = vsub.f32 %v11746_v60, %v11829_v40  ;;  %v11832_v63 = vsub.f32 %v11815_v3, %v11829_v40  ;;  %v11833_v54 = vsub.f32 %v11817_v32, %v11829_v40 }
 0xb5e   : > { %v11834_v53 = vmul.f32 %v11830_v28, %v11830_v28  ;;  %v11835_v59 = vmul.f32 %v11831_v11, %v11831_v11  ;;  %v11836_v42 = vmul.f32 %v11832_v63, %v11832_v63  ;;  %v11837_v58 = vmul.f32 %v11833_v54, %v11833_v54 }
 0xb60   : > { %v11838_v38 = vadd.f32 %v11835_v59, %v11834_v53 }
 0xb62   : > { %v11839_v50 = vadd.f32 %v11838_v38, %v11836_v42 }
 0xb64   : > { %v11840_v24 = vadd.f32 %v11839_v50, %v11837_v58 }
 0xb66   : > { %11841 = vadd.xlane.f32.xlu0 %v11840_v24 }
 0xbf3   : > { %v11842_v8 = vpop.xlane.xlu0 %11841 }
 0xbf4   : > { %v11843_v62 = vmul.f32 0.001953125, %v11842_v8 }
 0xbf6   : > { %v11844_v0 = vadd.f32 1e-05, %v11843_v62 }
 0xbf8   : > { %18557 = vrsqrt.f32 %v11844_v0 }
 0xc02   : > { %v18558_v27 = vpop.eup %18557 }
 0xc03   : > { %v11847_v48 = vmul.f32 %v18558_v27, %v11831_v11  ;;  %v11849_v43 = vmul.f32 %v18558_v27, %v11833_v54  ;;  %v11846_v12 = vmul.f32 %v18558_v27, %v11830_v28  ;;  %v11848_v17 = vmul.f32 %v18558_v27, %v11832_v63 }
 0xc05   : > { %v11851_v36 = vmul.f32 0.2, %v11847_v48  ;;  %v11853_v31 = vmul.f32 0.2, %v11849_v43  ;;  %v11850_v13 = vmul.f32 0.2, %v11846_v12 }
 0xc06   : > { %v11852_v51 = vmul.f32 0.2, %v11848_v17 }
 0xc07   : > { %v11855_v41 = vmax.f32 %v11847_v48, %v11851_v36  ;;  %v11857_v37 = vmax.f32 %v11849_v43, %v11853_v31  ;;  %v11854_v6 = vmax.f32 %v11846_v12, %v11850_v13 }
 0xc08   : > { %v11856_v10 = vmax.f32 %v11848_v17, %v11852_v51 }
 0xc09   : > { %11866 = vmatprep.subr.mxu0 %v11855_v41  ;;  %11943 = vmatprep.subr.mxu1 %v11857_v37 }
 0xc0a   : > { %11867 = vmatpush1.msra.mxu0 %v11854_v6  ;;  %11944 = vmatpush1.msra.mxu1 %v11856_v10 }
 0xc0b   : > { %14003 = vmatmul.mubr.msk.f32.vlgmr.msra.gmra.mrb[4].mxu0 %vm442_vm2, %v11858_v55  ;;  %14005 = vmatmul.mubr.msk.f32.vlgmr.msra.gmra.mrb[4].mxu1 %vm442_vm2, %v11858_v55 }
 0xc0c   : > { %11936 = vmatprep.mubr.f32.mxu0 %v25585_v20  ;;  %12013 = vmatprep.mubr.f32.mxu1 %v25585_v20 }
 0xc0f   : > { %14004 = vmatmul.mubr.msk.f32.gmra.mrb[6].mxu0 %vm442_vm2, %v11859_v49  ;;  %14006 = vmatmul.mubr.msk.f32.gmra.mrb[6].mxu1 %vm442_vm2, %v11859_v49 }
 0xcde   : > { %v11932_v30 = vpop.f32.mrb[4].mxu0  ;;  %v12009_v15 = vpop.f32.mrb[4].mxu1 }
 0xcdf   : > { %v11934_v46 = vpop.f32.mrb[5].mxu0  ;;  %v12011_v34 = vpop.f32.mrb[5].mxu1 }
 0xce0   : > { %v12020_v25 = vadd.f32 %v11934_v46, %v11932_v30 }
 0xce2   : > { %v12021_v22 = vadd.f32 %v12020_v25, %v12009_v15  ;;  %v11938_v45 = vpop.f32.mrb[6].mxu0  ;;  %v12015_v44 = vpop.f32.mrb[6].mxu1 }
 0xce3   : > { %v11940_v57 = vpop.f32.mrb[7].mxu0  ;;  %v12017_v7 = vpop.f32.mrb[7].mxu1 }
 0xce4   : > { %v12025_v33 = vadd.f32 %v11940_v57, %v11938_v45  ;;  %v12022_v23 = vadd.f32 %v12021_v22, %v12011_v34 }
 0xce6   : > { %v12026_v47 = vadd.f32 %v12025_v33, %v12015_v44  ;;  %12023 = vadd.xlane.f32.xlu1 %v12022_v23 }
 0xce8   : > { %v12027_v52 = vadd.f32 %v12026_v47, %v12017_v7 }
 0xcea   : > { %12028 = vadd.xlane.f32.xlu1 %v12027_v52 }
 0xd73   : > { %v12024_v20 = vpop.xlane.xlu1 %12023 }
 0xd74   : > { %v12030_v29 = vmul.f32 0.001953125, %v12024_v20 }
 0xd76   : > { %v12032_v4 = vsub.f32 %v11932_v30, %v12030_v29  ;;  %v12033_v16 = vsub.f32 %v11934_v46, %v12030_v29  ;;  %v12034_v26 = vsub.f32 %v12009_v15, %v12030_v29  ;;  %v12035_v56 = vsub.f32 %v12011_v34, %v12030_v29 }
 0xd77   : > { %v12029_v18 = vpop.xlane.xlu1 %12028 }
 0xd78   : > { %v12031_v39 = vmul.f32 0.001953125, %v12029_v18  ;;  %v12040_v61 = vmul.f32 %v12032_v4, %v12032_v4  ;;  %v12041_v19 = vmul.f32 %v12033_v16, %v12033_v16  ;;  %v12042_v2 = vmul.f32 %v12034_v26, %v12034_v26 }
 0xd79   : > { %v12043_v3 = vmul.f32 %v12035_v56, %v12035_v56 }
 0xd7a   : > { %v12036_v1 = vsub.f32 %v11938_v45, %v12031_v39  ;;  %v12037_v5 = vsub.f32 %v11940_v57, %v12031_v39  ;;  %v12048_v60 = vadd.f32 %v12041_v19, %v12040_v61  ;;  %v12038_v9 = vsub.f32 %v12015_v44, %v12031_v39 }
 0xd7b   : > { %v12039_v32 = vsub.f32 %v12017_v7, %v12031_v39 }
 0xd7c   : > { %v12049_v21 = vadd.f32 %v12048_v60, %v12042_v2  ;;  %v12044_v14 = vmul.f32 %v12036_v1, %v12036_v1  ;;  %v12045_v35 = vmul.f32 %v12037_v5, %v12037_v5  ;;  %v12046_v28 = vmul.f32 %v12038_v9, %v12038_v9 }
 0xd7d   : > { %v12047_v63 = vmul.f32 %v12039_v32, %v12039_v32 }
 0xd7e   : > { %v12050_v40 = vadd.f32 %v12049_v21, %v12043_v3  ;;  %v12053_v11 = vadd.f32 %v12045_v35, %v12044_v14 }
 0xd80   : > { %12051 = vadd.xlane.f32.xlu1 %v12050_v40  ;;  %v12054_v54 = vadd.f32 %v12053_v11, %v12046_v28 }
 0xd82   : > { %v12055_v53 = vadd.f32 %v12054_v54, %v12047_v63 }
 0xd84   : > { %12056 = vadd.xlane.f32.xlu1 %v12055_v53 }
 0xe0d   : > { %v12052_v59 = vpop.xlane.xlu1 %12051 }
 0xe0e   : > { %v12058_v42 = vmul.f32 0.001953125, %v12052_v59 }
 0xe10   : > { %v12060_v38 = vadd.f32 1e-05, %v12058_v42 }
 0xe11   : > { %v12057_v58 = vpop.xlane.xlu1 %12056 }
 0xe12   : > { %18559 = vrsqrt.f32 %v12060_v38  ;;  %v12059_v50 = vmul.f32 0.001953125, %v12057_v58 }
 0xe14   : > { %v12061_v24 = vadd.f32 1e-05, %v12059_v50 }
 0xe16   : > { %18561 = vrsqrt.f32 %v12061_v24 }
 0xe1c   : > { %v18560_v8 = vpop.eup %18559 }
 0xe1d   : > { %v12064_v62 = vmul.f32 %v18560_v8, %v12032_v4  ;;  %v12065_v0 = vmul.f32 %v18560_v8, %v12033_v16  ;;  %v12066_v27 = vmul.f32 %v18560_v8, %v12034_v26  ;;  %v12067_v48 = vmul.f32 %v18560_v8, %v12035_v56 }
 0xe1f   : > { %v12072_v43 = vmul.f32 0.2, %v12064_v62  ;;  %v12073_v12 = vmul.f32 0.2, %v12065_v0  ;;  %v12074_v17 = vmul.f32 0.2, %v12066_v27 }
 0xe20   : > { %v18562_v36 = vpop.eup %18561  ;;  %v12075_v31 = vmul.f32 0.2, %v12067_v48 }
 0xe21   : > { %v12080_v13 = vmax.f32 %v12064_v62, %v12072_v43  ;;  %v12081_v51 = vmax.f32 %v12065_v0, %v12073_v12  ;;  %v12082_v41 = vmax.f32 %v12066_v27, %v12074_v17  ;;  %v12068_v37 = vmul.f32 %v18562_v36, %v12036_v1 }
 0xe22   : > { %v12083_v6 = vmax.f32 %v12067_v48, %v12075_v31  ;;  %v12069_v10 = vmul.f32 %v18562_v36, %v12037_v5  ;;  %v12070_v55 = vmul.f32 %v18562_v36, %v12038_v9  ;;  %v12071_v49 = vmul.f32 %v18562_v36, %v12039_v32 }
 0xe23   : > { %12088 = vst [vmem:[%s18974_s7] sm:$0xff] %v12080_v13  ;;  %12089 = vst [vmem:[%s18974_s7 + $0x8] sm:$0xff] %v12081_v51  ;;  %v12076_v30 = vmul.f32 0.2, %v12068_v37 }
 0xe24   : > { %12090 = vst [vmem:[%s18974_s7 + $0x10] sm:$0xff] %v12082_v41  ;;  %12091 = vst [vmem:[%s18974_s7 + $0x18] sm:$0xff] %v12083_v6  ;;  %v12077_v15 = vmul.f32 0.2, %v12069_v10  ;;  %v12078_v46 = vmul.f32 0.2, %v12070_v55 }
 0xe25   : > { %v12079_v34 = vmul.f32 0.2, %v12071_v49  ;;  %v12084_v25 = vmax.f32 %v12068_v37, %v12076_v30 }
 0xe26   : > { %v12085_v22 = vmax.f32 %v12069_v10, %v12077_v15  ;;  %v12086_v45 = vmax.f32 %v12070_v55, %v12078_v46 }
 0xe27   : > { %v12087_v44 = vmax.f32 %v12071_v49, %v12079_v34  ;;  %12092 = vst [vmem:[%s18974_s7 + $0x20] sm:$0xff] %v12084_v25 }
 0xe28   : > { %12093 = vst [vmem:[%s18974_s7 + $0x28] sm:$0xff] %v12085_v22  ;;  %12094 = vst [vmem:[%s18974_s7 + $0x30] sm:$0xff] %v12086_v45 }
 0xe29   : > { %12095 = vst [vmem:[%s18974_s7 + $0x38] sm:$0xff] %v12087_v44 }
 0xe2a PF: > { %s15_s18 = sadd.s32 1, %s18918_s18  }
 0xe2b   : > { %p12_p4 = scmp.ge.s32.totalorder %s15_s18, 4  }
 0xe2d   :  { %14 = sbr.rel (!%p12_p4) target bundleno = 1 (0x1), region = 107 }

</bundles_post_ra>
